<compile_context>
chip_gen: v5e
topology: v5e:2x2
jax: 0.10.0
libtpu: 0.0.40
codegen_flags: <defaults>
</compile_context>

<pallas_src>
import functools

import jax
import jax.numpy as jnp
from jax import lax
from jax.experimental import pallas as pl
from jax.experimental.pallas import tpu as pltpu

# f32-accurate matmuls on both the Pallas path and the jnp reference -> tight parity check.
jax.config.update("jax_default_matmul_precision", "highest")


# --------------------------------------------------------------------------- tiling
def _tiling(L):
    assert L % 2 == 0, "sequence length must be even (MaxPool1d(2,2))"
    Lh = L // 2
    if Lh > 512:
        Th = 512                               # L-tile size (half-length space)
    else:
        Th = ((Lh + 7) // 8) * 8               # single tile, rounded to sublane multiple
    Lh_pad = ((Lh + Th - 1) // Th) * Th
    n_tiles = Lh_pad // Th
    return Lh, Th, Lh_pad, n_tiles


def _pick_tile(total, other_dim, dtype_bytes=4, max_tile_bytes=4 << 20):
    """Largest power-of-two tile dividing `total` whose weight slab
    (tile * other_dim * dtype_bytes) stays <= max_tile_bytes (double-buffer friendly)."""
    for t in (8192, 4096, 2048, 1024, 512, 256, 128, 64):
        if t <= total and total % t == 0 and t * other_dim * dtype_bytes <= max_tile_bytes:
            return t
    return total


# --------------------------------------------------------------------------- kernels
def _enc_conv_pool_kernel(x_ref, w1_ref, b1_ref, w2f_ref, b2_ref, o_ref, *, Th, Lh):
    """Fused conv1+ReLU+conv2+ReLU+MaxPool1d(2,2) for one (batch, L-tile) block.

    x_ref rows (phase/shift-split input): [x_e[q-1], x_o[q-1], x_e[q], x_o[q], x_e[q+1], x_o[q+1]]
    where x_e[q] = x[2q], x_o[q] = x[2q+1].
    """
    j = pl.program_id(1)
    x = x_ref[0]                    # (6, Th)
    w1 = w1_ref[...]                # (32, 3)
    b1 = b1_ref[...]                # (32, 1)

    def conv1(r0, r1, r2):          # VPU: 3 broadcast FMAs + ReLU (C_in = 1)
        acc = (w1[:, 0:1] * x[r0:r0 + 1, :] + w1[:, 1:2] * x[r1:r1 + 1, :]
               + w1[:, 2:3] * x[r2:r2 + 1, :] + b1)
        return jnp.maximum(acc, 0.0)

    y1e = conv1(1, 2, 3)            # relu(conv1(x)) at positions 2q
    y1o = conv1(2, 3, 4)            # at positions 2q+1
    y1em = conv1(0, 1, 2)           # at positions 2q-1
    y1ep = conv1(3, 4, 5)           # at positions 2q+2

    # conv2's zero padding: y1 is zero at global positions -1 and L.
    gq = j * Th + lax.broadcasted_iota(jnp.int32, (1, Th), 1)
    y1em = jnp.where(gq == 0, 0.0, y1em)
    y1ep = jnp.where(gq == Lh - 1, 0.0, y1ep)

    w2f = w2f_ref[...]              # (64, 96)  = [W2_k0 | W2_k1 | W2_k2]
    b2 = b2_ref[...]                # (64, 1)
    se = jnp.concatenate([y1em, y1e, y1o], axis=0)   # (96, Th): y1 at 2q-1, 2q, 2q+1
    so = jnp.concatenate([y1e, y1o, y1ep], axis=0)   # (96, Th): y1 at 2q, 2q+1, 2q+2
    y2e = jnp.maximum(jnp.dot(w2f, se, preferred_element_type=jnp.float32) + b2, 0.0)
    y2o = jnp.maximum(jnp.dot(w2f, so, preferred_element_type=jnp.float32) + b2, 0.0)
    o_ref[0] = jnp.maximum(y2e, y2o)                 # MaxPool1d(2,2) == VPU max of phases


def _dec_conv_kernel(d_ref, h_ref, w1f_ref, b1_ref, w2c_ref, b2_ref, o_ref, *, Th, Lh):
    """Fused deconv1+ReLU+Upsample(2x nearest)+deconv2+sigmoid for one (batch, L-tile)."""
    j = pl.program_id(1)
    d0 = d_ref[0]                   # (64, Th)  d[:, J0 : J0+Th]
    halo = h_ref[0, 0]              # (64, 4)   d[:, J0-2], d[:, J0-1], d[:, J0+Th], d[:, J0+Th+1]
    lane = lax.broadcasted_iota(jnp.int32, (1, Th), 1)

    # Shifted views of d (cross-tile / zero-pad boundaries patched from the halo columns).
    dm1 = jnp.where(lane >= 1, pltpu.roll(d0, 1, 1), halo[:, 1:2])
    dm2 = jnp.where(lane >= 2, pltpu.roll(d0, 2, 1),
                    jnp.where(lane == 0, halo[:, 0:1], halo[:, 1:2]))
    dp1 = jnp.where(lane <= Th - 2, pltpu.roll(d0, Th - 1, 1), halo[:, 2:3])
    dp2 = jnp.where(lane <= Th - 3, pltpu.roll(d0, Th - 2, 1),
                    jnp.where(lane == Th - 2, halo[:, 2:3], halo[:, 3:4]))

    w1f = w1f_ref[...]              # (32, 192) = [Wd1'_k0 | Wd1'_k1 | Wd1'_k2]
    b1 = b1_ref[...]                # (32, 1)

    def deconv1(a, b, c):           # tap-folded K=192 MXU matmul + ReLU
        s = jnp.concatenate([a, b, c], axis=0)       # (192, Th)
        return jnp.maximum(
            jnp.dot(w1f, s, preferred_element_type=jnp.float32) + b1, 0.0)

    u_m1 = deconv1(dm2, dm1, d0)    # relu(deconv1(d)) at position q-1
    u_0 = deconv1(dm1, d0, dp1)     # at position q
    u_p1 = deconv1(d0, dp1, dp2)    # at position q+1

    gq = j * Th + lane
    # deconv2's zero padding zeroes the upsampled signal at positions -1 and L.
    u_m1 = jnp.where(gq == 0, 0.0, u_m1)
    u_p1 = jnp.where(gq == Lh - 1, 0.0, u_p1)

    # deconv2 (C_out=1) + fused nearest-2x upsample: pure VPU FMAs + sublane reduction.
    w2c = w2c_ref[...]              # (32, 4) phase-combined taps
    b2 = b2_ref[...]                # (1, 1)
    oe = jnp.sum(w2c[:, 0:1] * u_m1 + w2c[:, 1:2] * u_0, axis=0, keepdims=True) + b2
    oo = jnp.sum(w2c[:, 2:3] * u_0 + w2c[:, 3:4] * u_p1, axis=0, keepdims=True) + b2
    o_ref[0] = jnp.concatenate([jax.nn.sigmoid(oe), jax.nn.sigmoid(oo)], axis=0)


def _fc_enc_kernel(a_ref, w_ref, b_ref, o_ref):
    """K-tiled Linear: accumulate in the VMEM-resident f32 output block."""
    @pl.when(pl.program_id(0) == 0)
    def _():
        o_ref[...] = jnp.broadcast_to(b_ref[...], o_ref.shape)
    o_ref[...] += jnp.dot(a_ref[...], w_ref[...], preferred_element_type=jnp.float32)


def _fc_dec_kernel(z_ref, w_ref, b_ref, o_ref):
    """N-tiled Linear: stream weight columns, single small-K matmul per tile."""
    o_ref[...] = (jnp.dot(z_ref[...], w_ref[...], preferred_element_type=jnp.float32)
                  + b_ref[...])


# --------------------------------------------------------------------------- wrappers
def _build_shifted_input(x, Lh_pad):
    """(B, 1, L) -> (B, 6, Lh_pad) phase/shift-split input (cheapest tensor in the net)."""
    B, _, L = x.shape
    Lh = L // 2
    xr = x.reshape(B, Lh, 2)
    xe, xo = xr[:, :, 0], xr[:, :, 1]
    z = jnp.zeros((B, 1), x.dtype)
    rows = [
        jnp.concatenate([z, xe[:, :-1]], axis=1),    # x_e[q-1]
        jnp.concatenate([z, xo[:, :-1]], axis=1),    # x_o[q-1]
        xe,                                          # x_e[q]
        xo,                                          # x_o[q]
        jnp.concatenate([xe[:, 1:], z], axis=1),     # x_e[q+1]
        jnp.concatenate([xo[:, 1:], z], axis=1),     # x_o[q+1]
    ]
    x6 = jnp.stack(rows, axis=1)
    if Lh_pad > Lh:
        x6 = jnp.pad(x6, ((0, 0), (0, 0), (0, Lh_pad - Lh)))
    return x6


def _build_halo(d, Th, n_tiles):
    """Per-tile boundary columns of d: (B, n_tiles, 64, 4) (tiny gather, no copy of d)."""
    B, C, Lp = d.shape
    j0 = jnp.arange(n_tiles) * Th
    cols = jnp.stack([j0 - 2, j0 - 1, j0 + Th, j0 + Th + 1], axis=1).reshape(-1)
    valid = (cols >= 0) & (cols < Lp)
    h = jnp.take(d, jnp.clip(cols, 0, Lp - 1), axis=2)
    h = h * valid.astype(d.dtype)[None, None, :]
    return h.reshape(B, C, n_tiles, 4).transpose(0, 2, 1, 3)


def encoder_conv_pool(x, w1, b1, w2f, b2, Lh, Th, Lh_pad, n_tiles):
    B = x.shape[0]
    x6 = _build_shifted_input(x, Lh_pad)
    kern = functools.partial(_enc_conv_pool_kernel, Th=Th, Lh=Lh)
    return pl.pallas_call(
        kern,
        out_shape=jax.ShapeDtypeStruct((B, 64, Lh_pad), jnp.float32),
        grid=(B, n_tiles),
        in_specs=[
            pl.BlockSpec((1, 6, Th), lambda b, j: (b, 0, j)),
            pl.BlockSpec((32, 3), lambda b, j: (0, 0)),
            pl.BlockSpec((32, 1), lambda b, j: (0, 0)),
            pl.BlockSpec((64, 96), lambda b, j: (0, 0)),
            pl.BlockSpec((64, 1), lambda b, j: (0, 0)),
        ],
        out_specs=pl.BlockSpec((1, 64, Th), lambda b, j: (b, 0, j)),
        compiler_params=pltpu.CompilerParams(
            dimension_semantics=("parallel", "parallel")),
    )(x6, w1, b1, w2f, b2)


def decoder_conv(d, w1f, bd1, w2c, bd2, Lh, Th, Lh_pad, n_tiles):
    B = d.shape[0]
    halo = _build_halo(d, Th, n_tiles)
    kern = functools.partial(_dec_conv_kernel, Th=Th, Lh=Lh)
    return pl.pallas_call(
        kern,
        out_shape=jax.ShapeDtypeStruct((B, 2, Lh_pad), jnp.float32),
        grid=(B, n_tiles),
        in_specs=[
            pl.BlockSpec((1, 64, Th), lambda b, j: (b, 0, j)),
            pl.BlockSpec((1, 1, 64, 4), lambda b, j: (b, j, 0, 0)),
            pl.BlockSpec((32, 192), lambda b, j: (0, 0)),
            pl.BlockSpec((32, 1), lambda b, j: (0, 0)),
            pl.BlockSpec((32, 4), lambda b, j: (0, 0)),
            pl.BlockSpec((1, 1), lambda b, j: (0, 0)),
        ],
        out_specs=pl.BlockSpec((1, 2, Th), lambda b, j: (b, 0, j)),
        compiler_params=pltpu.CompilerParams(
            dimension_semantics=("parallel", "parallel")),
    )(d, halo, w1f, bd1, w2c, bd2)


def linear_ktiled(a, w, b):
    """a: (B, F); w: (F, D) pre-transposed; b: (1, D).  Tiled over the reduction axis."""
    B, F = a.shape
    D = w.shape[1]
    tk = _pick_tile(F, D)            # bigger tiles at production F (fewer grid steps)
    assert F % tk == 0
    return pl.pallas_call(
        _fc_enc_kernel,
        out_shape=jax.ShapeDtypeStruct((B, D), jnp.float32),
        grid=(F // tk,),
        in_specs=[
            pl.BlockSpec((B, tk), lambda k: (0, k)),
            pl.BlockSpec((tk, D), lambda k: (k, 0)),
            pl.BlockSpec((1, D), lambda k: (0, 0)),
        ],
        out_specs=pl.BlockSpec((B, D), lambda k: (0, 0)),
        compiler_params=pltpu.CompilerParams(dimension_semantics=("arbitrary",)),
    )(a, w, b)


def linear_ntiled(z, w, b):
    """z: (B, D); w: (D, F) pre-transposed; b: (1, F).  Tiled over the output axis."""
    B, D = z.shape
    F = w.shape[1]
    tn = _pick_tile(F, D)
    assert F % tn == 0
    return pl.pallas_call(
        _fc_dec_kernel,
        out_shape=jax.ShapeDtypeStruct((B, F), jnp.float32),
        grid=(F // tn,),
        in_specs=[
            pl.BlockSpec((B, D), lambda n: (0, 0)),
            pl.BlockSpec((D, tn), lambda n: (0, n)),
            pl.BlockSpec((1, tn), lambda n: (0, n)),
        ],
        out_specs=pl.BlockSpec((B, tn), lambda n: (0, n)),
        compiler_params=pltpu.CompilerParams(dimension_semantics=("parallel",)),
    )(z, w, b)


# --------------------------------------------------------------------------- params
def init_params(key, input_length, latent_dim):
    """Parameters in PyTorch layouts (Conv: (Co,Ci,K); ConvT: (Ci,Co,K); Linear: (out,in))."""
    L = input_length * 5
    Lh = L // 2
    flat = 64 * Lh
    ks = jax.random.split(key, 12)

    def w(k, shape, scale=0.05):
        return scale * jax.random.normal(k, shape, jnp.float32)

    return dict(
        conv1_w=w(ks[0], (32, 1, 3)), conv1_b=w(ks[1], (32,)),
        conv2_w=w(ks[2], (64, 32, 3)), conv2_b=w(ks[3], (64,)),
        fc_enc_w=w(ks[4], (latent_dim, flat)), fc_enc_b=w(ks[5], (latent_dim,)),
        fc_dec_w=w(ks[6], (flat, latent_dim)), fc_dec_b=w(ks[7], (flat,)),
        deconv1_w=w(ks[8], (64, 32, 3)), deconv1_b=w(ks[9], (32,)),
        deconv2_w=w(ks[10], (32, 1, 3)), deconv2_b=w(ks[11], (1,)),
    )


def prepare_params(params, L):
    """One-time weight repacking (transpose / tap-fold / pad) -- never done per forward."""
    Lh, Th, Lh_pad, n_tiles = _tiling(L)
    D = params["fc_enc_w"].shape[0]

    w1 = params["conv1_w"][:, 0, :]                                       # (32, 3)
    b1 = params["conv1_b"].reshape(32, 1)
    c2 = params["conv2_w"]
    w2f = jnp.concatenate([c2[:, :, 0], c2[:, :, 1], c2[:, :, 2]], axis=1)  # (64, 96)
    b2 = params["conv2_b"].reshape(64, 1)

    # fc_enc: (D, F) -> transposed and row-padded to (64*Lh_pad, D)
    we = params["fc_enc_w"].T.reshape(64, Lh, D)
    we = jnp.pad(we, ((0, 0), (0, Lh_pad - Lh), (0, 0))).reshape(64 * Lh_pad, D)
    be = params["fc_enc_b"].reshape(1, D)

    # fc_dec: (F, D) -> transposed and column-padded to (D, 64*Lh_pad)
    wd = params["fc_dec_w"].T.reshape(D, 64, Lh)
    wd = jnp.pad(wd, ((0, 0), (0, 0), (0, Lh_pad - Lh))).reshape(D, 64 * Lh_pad)
    bd = jnp.pad(params["fc_dec_b"].reshape(64, Lh),
                 ((0, 0), (0, Lh_pad - Lh))).reshape(1, 64 * Lh_pad)

    # ConvTranspose1d(k=3,s=1,p=1) == same-padding Conv1d with swapped+flipped weights.
    d1 = jnp.flip(jnp.transpose(params["deconv1_w"], (1, 0, 2)), axis=-1)   # (32, 64, 3)
    w1f = jnp.concatenate([d1[:, :, 0], d1[:, :, 1], d1[:, :, 2]], axis=1)  # (32, 192)
    bd1 = params["deconv1_b"].reshape(32, 1)
    d2 = jnp.flip(params["deconv2_w"][:, 0, :], axis=-1)                    # (32, 3)
    # phase-combined deconv2 taps (upsample folded in): [k0, k1+k2, k0+k1, k2]
    w2c = jnp.stack([d2[:, 0], d2[:, 1] + d2[:, 2], d2[:, 0] + d2[:, 1], d2[:, 2]], axis=1)
    bd2 = params["deconv2_b"].reshape(1, 1)

    return dict(w1=w1, b1=b1, w2f=w2f, b2=b2, we=we, be=be, wd=wd, bd=bd,
                w1f=w1f, bd1=bd1, w2c=w2c, bd2=bd2)


# --------------------------------------------------------------------------- forward
def autoencoder_forward(prep, x):
    B, _, L = x.shape
    Lh, Th, Lh_pad, n_tiles = _tiling(L)

    pooled = encoder_conv_pool(x, prep["w1"], prep["b1"], prep["w2f"], prep["b2"],
                               Lh, Th, Lh_pad, n_tiles)                 # (B, 64, Lh_pad)
    z = linear_ktiled(pooled.reshape(B, 64 * Lh_pad), prep["we"], prep["be"])   # (B, D)
    d = linear_ntiled(z, prep["wd"], prep["bd"]).reshape(B, 64, Lh_pad)
    out_ph = decoder_conv(d, prep["w1f"], prep["bd1"], prep["w2c"], prep["bd2"],
                          Lh, Th, Lh_pad, n_tiles)                      # (B, 2, Lh_pad)
    out = out_ph[:, :, :Lh].transpose(0, 2, 1).reshape(B, 1, L)
    return out


# --------------------------------------------------------------------------- reference
def _conv1d_same_ref(x, w, b):
    L = x.shape[-1]
    xp = jnp.pad(x, ((0, 0), (0, 0), (1, 1)))
    y = sum(jnp.einsum("oi,bil->bol", w[:, :, k], xp[:, :, k:k + L]) for k in range(3))
    return y + b[None, :, None]


def forward_reference(params, x):
    B, _, L = x.shape
    Lh = L // 2
    h = jax.nn.relu(_conv1d_same_ref(x, params["conv1_w"], params["conv1_b"]))
    h = jax.nn.relu(_conv1d_same_ref(h, params["conv2_w"], params["conv2_b"]))
    h = jnp.max(h.reshape(B, 64, Lh, 2), axis=-1)
    z = h.reshape(B, -1) @ params["fc_enc_w"].T + params["fc_enc_b"]
    d = (z @ params["fc_dec_w"].T + params["fc_dec_b"]).reshape(B, 64, Lh)
    w1 = jnp.flip(jnp.transpose(params["deconv1_w"], (1, 0, 2)), axis=-1)
    d = jax.nn.relu(_conv1d_same_ref(d, w1, params["deconv1_b"]))
    d = jnp.repeat(d, 2, axis=-1)
    w2 = jnp.flip(jnp.transpose(params["deconv2_w"], (1, 0, 2)), axis=-1)
    return jax.nn.sigmoid(_conv1d_same_ref(d, w2, params["deconv2_b"]))


# --------------------------------------------------------------------------- main
if __name__ == "__main__":
    input_length = 16     # small synthetic config (production: 7098)
    latent_dim = 32       # small synthetic config (production: 200)
    B = 2
    L = input_length * 5  # 80

    key = jax.random.PRNGKey(0)
    pkey, xkey = jax.random.split(key)
    params = init_params(pkey, input_length, latent_dim)
    x = jax.random.normal(xkey, (B, 1, L), jnp.float32)

    prep = prepare_params(params, L)          # one-time weight repack (not per forward)
    fwd = jax.jit(autoencoder_forward)
    out = jax.block_until_ready(fwd(prep, x))

    assert out.shape == (B, 1, L), out.shape
    assert bool(jnp.all(jnp.isfinite(out)))
    ref = forward_reference(params, x)
    max_err = float(jnp.max(jnp.abs(out - ref)))
    assert max_err < 1e-5, max_err
    print("KERNEL_OK")
</pallas_src>

<mosaic_0001>
module attributes {stable_mosaic.version = 11 : i64} {
  func.func @_enc_conv_pool_kernel(%arg0: i32, %arg1: i32, %arg2: memref<1x6x40xf32, #tpu.memory_space<vmem>>, %arg3: memref<32x3xf32, #tpu.memory_space<vmem>>, %arg4: memref<32x1xf32, #tpu.memory_space<vmem>>, %arg5: memref<64x96xf32, #tpu.memory_space<vmem>>, %arg6: memref<64x1xf32, #tpu.memory_space<vmem>>, %arg7: memref<1x64x40xf32, #tpu.memory_space<vmem>>) attributes {dimension_semantics = [#tpu.dimension_semantics<parallel>, #tpu.dimension_semantics<parallel>], iteration_bounds = array<i64: 2, 1>, scalar_prefetch = 0 : i64, scratch_operands = 0 : i64, tpu.core_type = #tpu.core_type<tc>, window_params = [{transform_indices = @transform_0, window_bounds = array<i64: 1, 6, 40>}, {pipeline_mode = #tpu.pipeline_mode<synchronous>, transform_indices = @transform_1, window_bounds = array<i64: 32, 3>}, {pipeline_mode = #tpu.pipeline_mode<synchronous>, transform_indices = @transform_2, window_bounds = array<i64: 32, 1>}, {pipeline_mode = #tpu.pipeline_mode<synchronous>, transform_indices = @transform_3, window_bounds = array<i64: 64, 96>}, {pipeline_mode = #tpu.pipeline_mode<synchronous>, transform_indices = @transform_4, window_bounds = array<i64: 64, 1>}, {transform_indices = @transform_5, window_bounds = array<i64: 1, 64, 40>}]} {
    %c0 = arith.constant 0 : index
    %c0_0 = arith.constant 0 : index
    %c0_1 = arith.constant 0 : index
    %0 = vector.load %arg2[%c0, %c0_0, %c0_1] : memref<1x6x40xf32, #tpu.memory_space<vmem>>, vector<1x6x40xf32>
    %1 = vector.shape_cast %0 : vector<1x6x40xf32> to vector<6x40xf32>
    %c0_2 = arith.constant 0 : index
    %c0_3 = arith.constant 0 : index
    %2 = vector.load %arg3[%c0_2, %c0_3] : memref<32x3xf32, #tpu.memory_space<vmem>>, vector<32x3xf32>
    %c0_4 = arith.constant 0 : index
    %c0_5 = arith.constant 0 : index
    %3 = vector.load %arg4[%c0_4, %c0_5] : memref<32x1xf32, #tpu.memory_space<vmem>>, vector<32x1xf32>
    %4 = vector.extract_strided_slice %2 {offsets = [0, 0], sizes = [32, 1], strides = [1, 1]} : vector<32x3xf32> to vector<32x1xf32>
    %5 = vector.extract_strided_slice %1 {offsets = [1, 0], sizes = [1, 40], strides = [1, 1]} : vector<6x40xf32> to vector<1x40xf32>
    %6 = vector.broadcast %4 : vector<32x1xf32> to vector<32x40xf32>
    %7 = vector.broadcast %5 : vector<1x40xf32> to vector<32x40xf32>
    %8 = arith.mulf %6, %7 : vector<32x40xf32>
    %9 = vector.extract_strided_slice %2 {offsets = [0, 1], sizes = [32, 1], strides = [1, 1]} : vector<32x3xf32> to vector<32x1xf32>
    %10 = vector.extract_strided_slice %1 {offsets = [2, 0], sizes = [1, 40], strides = [1, 1]} : vector<6x40xf32> to vector<1x40xf32>
    %11 = vector.broadcast %9 : vector<32x1xf32> to vector<32x40xf32>
    %12 = vector.broadcast %10 : vector<1x40xf32> to vector<32x40xf32>
    %13 = arith.mulf %11, %12 : vector<32x40xf32>
    %14 = arith.addf %8, %13 : vector<32x40xf32>
    %15 = vector.extract_strided_slice %2 {offsets = [0, 2], sizes = [32, 1], strides = [1, 1]} : vector<32x3xf32> to vector<32x1xf32>
    %16 = vector.extract_strided_slice %1 {offsets = [3, 0], sizes = [1, 40], strides = [1, 1]} : vector<6x40xf32> to vector<1x40xf32>
    %17 = vector.broadcast %15 : vector<32x1xf32> to vector<32x40xf32>
    %18 = vector.broadcast %16 : vector<1x40xf32> to vector<32x40xf32>
    %19 = arith.mulf %17, %18 : vector<32x40xf32>
    %20 = arith.addf %14, %19 : vector<32x40xf32>
    %21 = vector.broadcast %3 : vector<32x1xf32> to vector<32x40xf32>
    %22 = arith.addf %20, %21 : vector<32x40xf32>
    %cst = arith.constant 0.000000e+00 : f32
    %23 = vector.broadcast %cst : f32 to vector<32x40xf32>
    %24 = arith.maximumf %22, %23 : vector<32x40xf32>
    %25 = vector.extract_strided_slice %2 {offsets = [0, 0], sizes = [32, 1], strides = [1, 1]} : vector<32x3xf32> to vector<32x1xf32>
    %26 = vector.extract_strided_slice %1 {offsets = [2, 0], sizes = [1, 40], strides = [1, 1]} : vector<6x40xf32> to vector<1x40xf32>
    %27 = vector.broadcast %25 : vector<32x1xf32> to vector<32x40xf32>
    %28 = vector.broadcast %26 : vector<1x40xf32> to vector<32x40xf32>
    %29 = arith.mulf %27, %28 : vector<32x40xf32>
    %30 = vector.extract_strided_slice %2 {offsets = [0, 1], sizes = [32, 1], strides = [1, 1]} : vector<32x3xf32> to vector<32x1xf32>
    %31 = vector.extract_strided_slice %1 {offsets = [3, 0], sizes = [1, 40], strides = [1, 1]} : vector<6x40xf32> to vector<1x40xf32>
    %32 = vector.broadcast %30 : vector<32x1xf32> to vector<32x40xf32>
    %33 = vector.broadcast %31 : vector<1x40xf32> to vector<32x40xf32>
    %34 = arith.mulf %32, %33 : vector<32x40xf32>
    %35 = arith.addf %29, %34 : vector<32x40xf32>
    %36 = vector.extract_strided_slice %2 {offsets = [0, 2], sizes = [32, 1], strides = [1, 1]} : vector<32x3xf32> to vector<32x1xf32>
    %37 = vector.extract_strided_slice %1 {offsets = [4, 0], sizes = [1, 40], strides = [1, 1]} : vector<6x40xf32> to vector<1x40xf32>
    %38 = vector.broadcast %36 : vector<32x1xf32> to vector<32x40xf32>
    %39 = vector.broadcast %37 : vector<1x40xf32> to vector<32x40xf32>
    %40 = arith.mulf %38, %39 : vector<32x40xf32>
    %41 = arith.addf %35, %40 : vector<32x40xf32>
    %42 = vector.broadcast %3 : vector<32x1xf32> to vector<32x40xf32>
    %43 = arith.addf %41, %42 : vector<32x40xf32>
    %cst_6 = arith.constant 0.000000e+00 : f32
    %44 = vector.broadcast %cst_6 : f32 to vector<32x40xf32>
    %45 = arith.maximumf %43, %44 : vector<32x40xf32>
    %46 = vector.extract_strided_slice %2 {offsets = [0, 0], sizes = [32, 1], strides = [1, 1]} : vector<32x3xf32> to vector<32x1xf32>
    %47 = vector.extract_strided_slice %1 {offsets = [0, 0], sizes = [1, 40], strides = [1, 1]} : vector<6x40xf32> to vector<1x40xf32>
    %48 = vector.broadcast %46 : vector<32x1xf32> to vector<32x40xf32>
    %49 = vector.broadcast %47 : vector<1x40xf32> to vector<32x40xf32>
    %50 = arith.mulf %48, %49 : vector<32x40xf32>
    %51 = vector.extract_strided_slice %2 {offsets = [0, 1], sizes = [32, 1], strides = [1, 1]} : vector<32x3xf32> to vector<32x1xf32>
    %52 = vector.extract_strided_slice %1 {offsets = [1, 0], sizes = [1, 40], strides = [1, 1]} : vector<6x40xf32> to vector<1x40xf32>
    %53 = vector.broadcast %51 : vector<32x1xf32> to vector<32x40xf32>
    %54 = vector.broadcast %52 : vector<1x40xf32> to vector<32x40xf32>
    %55 = arith.mulf %53, %54 : vector<32x40xf32>
    %56 = arith.addf %50, %55 : vector<32x40xf32>
    %57 = vector.extract_strided_slice %2 {offsets = [0, 2], sizes = [32, 1], strides = [1, 1]} : vector<32x3xf32> to vector<32x1xf32>
    %58 = vector.extract_strided_slice %1 {offsets = [2, 0], sizes = [1, 40], strides = [1, 1]} : vector<6x40xf32> to vector<1x40xf32>
    %59 = vector.broadcast %57 : vector<32x1xf32> to vector<32x40xf32>
    %60 = vector.broadcast %58 : vector<1x40xf32> to vector<32x40xf32>
    %61 = arith.mulf %59, %60 : vector<32x40xf32>
    %62 = arith.addf %56, %61 : vector<32x40xf32>
    %63 = vector.broadcast %3 : vector<32x1xf32> to vector<32x40xf32>
    %64 = arith.addf %62, %63 : vector<32x40xf32>
    %cst_7 = arith.constant 0.000000e+00 : f32
    %65 = vector.broadcast %cst_7 : f32 to vector<32x40xf32>
    %66 = arith.maximumf %64, %65 : vector<32x40xf32>
    %67 = vector.extract_strided_slice %2 {offsets = [0, 0], sizes = [32, 1], strides = [1, 1]} : vector<32x3xf32> to vector<32x1xf32>
    %68 = vector.extract_strided_slice %1 {offsets = [3, 0], sizes = [1, 40], strides = [1, 1]} : vector<6x40xf32> to vector<1x40xf32>
    %69 = vector.broadcast %67 : vector<32x1xf32> to vector<32x40xf32>
    %70 = vector.broadcast %68 : vector<1x40xf32> to vector<32x40xf32>
    %71 = arith.mulf %69, %70 : vector<32x40xf32>
    %72 = vector.extract_strided_slice %2 {offsets = [0, 1], sizes = [32, 1], strides = [1, 1]} : vector<32x3xf32> to vector<32x1xf32>
    %73 = vector.extract_strided_slice %1 {offsets = [4, 0], sizes = [1, 40], strides = [1, 1]} : vector<6x40xf32> to vector<1x40xf32>
    %74 = vector.broadcast %72 : vector<32x1xf32> to vector<32x40xf32>
    %75 = vector.broadcast %73 : vector<1x40xf32> to vector<32x40xf32>
    %76 = arith.mulf %74, %75 : vector<32x40xf32>
    %77 = arith.addf %71, %76 : vector<32x40xf32>
    %78 = vector.extract_strided_slice %2 {offsets = [0, 2], sizes = [32, 1], strides = [1, 1]} : vector<32x3xf32> to vector<32x1xf32>
    %79 = vector.extract_strided_slice %1 {offsets = [5, 0], sizes = [1, 40], strides = [1, 1]} : vector<6x40xf32> to vector<1x40xf32>
    %80 = vector.broadcast %78 : vector<32x1xf32> to vector<32x40xf32>
    %81 = vector.broadcast %79 : vector<1x40xf32> to vector<32x40xf32>
    %82 = arith.mulf %80, %81 : vector<32x40xf32>
    %83 = arith.addf %77, %82 : vector<32x40xf32>
    %84 = vector.broadcast %3 : vector<32x1xf32> to vector<32x40xf32>
    %85 = arith.addf %83, %84 : vector<32x40xf32>
    %cst_8 = arith.constant 0.000000e+00 : f32
    %86 = vector.broadcast %cst_8 : f32 to vector<32x40xf32>
    %87 = arith.maximumf %85, %86 : vector<32x40xf32>
    %c40_i32 = arith.constant 40 : i32
    %88 = arith.muli %arg1, %c40_i32 : i32
    %89 = tpu.iota {dimensions = array<i32: 1>} : vector<1x40xi32>
    %90 = vector.broadcast %88 : i32 to vector<1x40xi32>
    %91 = arith.addi %90, %89 : vector<1x40xi32>
    %c0_i32 = arith.constant 0 : i32
    %92 = vector.broadcast %c0_i32 : i32 to vector<1x40xi32>
    %93 = arith.cmpi eq, %91, %92 : vector<1x40xi32>
    %cst_9 = arith.constant 0.000000e+00 : f32
    %94 = vector.shape_cast %93 : vector<1x40xi1> to vector<1x40xi1>
    %95 = vector.broadcast %94 : vector<1x40xi1> to vector<32x40xi1>
    %96 = vector.broadcast %cst_9 : f32 to vector<32x40xf32>
    %97 = arith.select %95, %96, %66 : vector<32x40xi1>, vector<32x40xf32>
    %c39_i32 = arith.constant 39 : i32
    %98 = vector.broadcast %c39_i32 : i32 to vector<1x40xi32>
    %99 = arith.cmpi eq, %91, %98 : vector<1x40xi32>
    %cst_10 = arith.constant 0.000000e+00 : f32
    %100 = vector.shape_cast %99 : vector<1x40xi1> to vector<1x40xi1>
    %101 = vector.broadcast %100 : vector<1x40xi1> to vector<32x40xi1>
    %102 = vector.broadcast %cst_10 : f32 to vector<32x40xf32>
    %103 = arith.select %101, %102, %87 : vector<32x40xi1>, vector<32x40xf32>
    %c0_11 = arith.constant 0 : index
    %c0_12 = arith.constant 0 : index
    %104 = vector.load %arg5[%c0_11, %c0_12] : memref<64x96xf32, #tpu.memory_space<vmem>>, vector<64x96xf32>
    %c0_13 = arith.constant 0 : index
    %c0_14 = arith.constant 0 : index
    %105 = vector.load %arg6[%c0_13, %c0_14] : memref<64x1xf32, #tpu.memory_space<vmem>>, vector<64x1xf32>
    %106 = tpu.concatenate %97, %24, %45 in 0 : vector<32x40xf32>, vector<32x40xf32>, vector<32x40xf32> -> vector<96x40xf32>
    %107 = tpu.concatenate %24, %45, %103 in 0 : vector<32x40xf32>, vector<32x40xf32>, vector<32x40xf32> -> vector<96x40xf32>
    %cst_15 = arith.constant dense<0.000000e+00> : vector<64x40xf32>
    %108 = tpu.matmul %104, %106, %cst_15 {dimension_numbers = #tpu.dot_dimension_numbers<[1], [0], [0], [1], [0, 0, 1, 1], [], []>, precision = #tpu.contract_precision<fp32>} : vector<64x96xf32>, vector<96x40xf32>, vector<64x40xf32> -> vector<64x40xf32>
    %109 = vector.broadcast %105 : vector<64x1xf32> to vector<64x40xf32>
    %110 = arith.addf %108, %109 : vector<64x40xf32>
    %cst_16 = arith.constant 0.000000e+00 : f32
    %111 = vector.broadcast %cst_16 : f32 to vector<64x40xf32>
    %112 = arith.maximumf %110, %111 : vector<64x40xf32>
    %cst_17 = arith.constant dense<0.000000e+00> : vector<64x40xf32>
    %113 = tpu.matmul %104, %107, %cst_17 {dimension_numbers = #tpu.dot_dimension_numbers<[1], [0], [0], [1], [0, 0, 1, 1], [], []>, precision = #tpu.contract_precision<fp32>} : vector<64x96xf32>, vector<96x40xf32>, vector<64x40xf32> -> vector<64x40xf32>
    %114 = vector.broadcast %105 : vector<64x1xf32> to vector<64x40xf32>
    %115 = arith.addf %113, %114 : vector<64x40xf32>
    %cst_18 = arith.constant 0.000000e+00 : f32
    %116 = vector.broadcast %cst_18 : f32 to vector<64x40xf32>
    %117 = arith.maximumf %115, %116 : vector<64x40xf32>
    %118 = arith.maximumf %112, %117 : vector<64x40xf32>
    %c0_19 = arith.constant 0 : index
    %c0_20 = arith.constant 0 : index
    %c0_21 = arith.constant 0 : index
    %119 = vector.load %arg7[%c0_19, %c0_20, %c0_21] : memref<1x64x40xf32, #tpu.memory_space<vmem>>, vector<1x64x40xf32>
    %120 = vector.shape_cast %119 : vector<1x64x40xf32> to vector<64x40xf32>
    %121 = vector.shape_cast %118 : vector<64x40xf32> to vector<1x64x40xf32>
    tpu.vector_store %arg7[%c0_19, %c0_20, %c0_21], %121 {strides = array<i32>} : memref<1x64x40xf32, #tpu.memory_space<vmem>>, vector<1x64x40xf32>,
    return
  }
  func.func @transform_0(%arg0: i32, %arg1: i32) -> (i32, i32, i32) {
    %c0_i32 = arith.constant 0 : i32
    %c0_i32_0 = arith.constant 0 : i32
    return %arg0, %c0_i32, %arg1 : i32, i32, i32
  }
  func.func @transform_1(%arg0: i32, %arg1: i32) -> (i32, i32) {
    %c0_i32 = arith.constant 0 : i32
    %c0_i32_0 = arith.constant 0 : i32
    %c0_i32_1 = arith.constant 0 : i32
    return %c0_i32, %c0_i32_0 : i32, i32
  }
  func.func @transform_2(%arg0: i32, %arg1: i32) -> (i32, i32) {
    %c0_i32 = arith.constant 0 : i32
    %c0_i32_0 = arith.constant 0 : i32
    %c0_i32_1 = arith.constant 0 : i32
    return %c0_i32, %c0_i32_0 : i32, i32
  }
  func.func @transform_3(%arg0: i32, %arg1: i32) -> (i32, i32) {
    %c0_i32 = arith.constant 0 : i32
    %c0_i32_0 = arith.constant 0 : i32
    %c0_i32_1 = arith.constant 0 : i32
    return %c0_i32, %c0_i32_0 : i32, i32
  }
  func.func @transform_4(%arg0: i32, %arg1: i32) -> (i32, i32) {
    %c0_i32 = arith.constant 0 : i32
    %c0_i32_0 = arith.constant 0 : i32
    %c0_i32_1 = arith.constant 0 : i32
    return %c0_i32, %c0_i32_0 : i32, i32
  }
  func.func @transform_5(%arg0: i32, %arg1: i32) -> (i32, i32, i32) {
    %c0_i32 = arith.constant 0 : i32
    %c0_i32_0 = arith.constant 0 : i32
    return %arg0, %c0_i32, %arg1 : i32, i32, i32
  }
}

module attributes {stable_mosaic.version = 11 : i64} {
  func.func @_fc_enc_kernel(%arg0: i32, %arg1: memref<2x512xf32, #tpu.memory_space<vmem>>, %arg2: memref<512x32xf32, #tpu.memory_space<vmem>>, %arg3: memref<1x32xf32, #tpu.memory_space<vmem>>, %arg4: memref<2x32xf32, #tpu.memory_space<vmem>>) attributes {dimension_semantics = [#tpu.dimension_semantics<arbitrary>], iteration_bounds = array<i64: 5>, scalar_prefetch = 0 : i64, scratch_operands = 0 : i64, tpu.core_type = #tpu.core_type<tc>, window_params = [{transform_indices = @transform_0, window_bounds = array<i64: 2, 512>}, {transform_indices = @transform_1, window_bounds = array<i64: 512, 32>}, {pipeline_mode = #tpu.pipeline_mode<synchronous>, transform_indices = @transform_2, window_bounds = array<i64: 1, 32>}, {pipeline_mode = #tpu.pipeline_mode<synchronous>, transform_indices = @transform_3, window_bounds = array<i64: 2, 32>}]} {
    %c0_i32 = arith.constant 0 : i32
    %0 = arith.cmpi eq, %arg0, %c0_i32 : i32
    %1 = arith.extui %0 : i1 to i32
    %c0_i32_0 = arith.constant 0 : i32
    %2 = arith.cmpi ne, %1, %c0_i32_0 : i32
    scf.if %2 {
      %c0_8 = arith.constant 0 : index
      %c0_9 = arith.constant 0 : index
      %9 = vector.load %arg3[%c0_8, %c0_9] : memref<1x32xf32, #tpu.memory_space<vmem>>, vector<1x32xf32>
      %10 = vector.shape_cast %9 : vector<1x32xf32> to vector<1x32xf32>
      %11 = vector.broadcast %10 : vector<1x32xf32> to vector<2x32xf32>
      %c0_10 = arith.constant 0 : index
      %c0_11 = arith.constant 0 : index
      %12 = vector.load %arg4[%c0_10, %c0_11] : memref<2x32xf32, #tpu.memory_space<vmem>>, vector<2x32xf32>
      tpu.vector_store %arg4[%c0_10, %c0_11], %11 {strides = array<i32>} : memref<2x32xf32, #tpu.memory_space<vmem>>, vector<2x32xf32>,
    } else {
    }
    %c0 = arith.constant 0 : index
    %c0_1 = arith.constant 0 : index
    %3 = vector.load %arg4[%c0, %c0_1] : memref<2x32xf32, #tpu.memory_space<vmem>>, vector<2x32xf32>
    %c0_2 = arith.constant 0 : index
    %c0_3 = arith.constant 0 : index
    %4 = vector.load %arg1[%c0_2, %c0_3] : memref<2x512xf32, #tpu.memory_space<vmem>>, vector<2x512xf32>
    %c0_4 = arith.constant 0 : index
    %c0_5 = arith.constant 0 : index
    %5 = vector.load %arg2[%c0_4, %c0_5] : memref<512x32xf32, #tpu.memory_space<vmem>>, vector<512x32xf32>
    %cst = arith.constant dense<0.000000e+00> : vector<2x32xf32>
    %6 = tpu.matmul %4, %5, %cst {dimension_numbers = #tpu.dot_dimension_numbers<[1], [0], [0], [1], [0, 0, 1, 1], [], []>, precision = #tpu.contract_precision<fp32>} : vector<2x512xf32>, vector<512x32xf32>, vector<2x32xf32> -> vector<2x32xf32>
    %7 = arith.addf %3, %6 : vector<2x32xf32>
    %c0_6 = arith.constant 0 : index
    %c0_7 = arith.constant 0 : index
    %8 = vector.load %arg4[%c0_6, %c0_7] : memref<2x32xf32, #tpu.memory_space<vmem>>, vector<2x32xf32>
    tpu.vector_store %arg4[%c0_6, %c0_7], %7 {strides = array<i32>} : memref<2x32xf32, #tpu.memory_space<vmem>>, vector<2x32xf32>,
    return
  }
  func.func @transform_0(%arg0: i32) -> (i32, i32) {
    %c0_i32 = arith.constant 0 : i32
    %c0_i32_0 = arith.constant 0 : i32
    return %c0_i32, %arg0 : i32, i32
  }
  func.func @transform_1(%arg0: i32) -> (i32, i32) {
    %c0_i32 = arith.constant 0 : i32
    %c0_i32_0 = arith.constant 0 : i32
    return %arg0, %c0_i32 : i32, i32
  }
  func.func @transform_2(%arg0: i32) -> (i32, i32) {
    %c0_i32 = arith.constant 0 : i32
    %c0_i32_0 = arith.constant 0 : i32
    %c0_i32_1 = arith.constant 0 : i32
    return %c0_i32, %c0_i32_0 : i32, i32
  }
  func.func @transform_3(%arg0: i32) -> (i32, i32) {
    %c0_i32 = arith.constant 0 : i32
    %c0_i32_0 = arith.constant 0 : i32
    %c0_i32_1 = arith.constant 0 : i32
    return %c0_i32, %c0_i32_0 : i32, i32
  }
}

module attributes {stable_mosaic.version = 11 : i64} {
  func.func @_fc_dec_kernel(%arg0: i32, %arg1: memref<2x32xf32, #tpu.memory_space<vmem>>, %arg2: memref<32x512xf32, #tpu.memory_space<vmem>>, %arg3: memref<1x512xf32, #tpu.memory_space<vmem>>, %arg4: memref<2x512xf32, #tpu.memory_space<vmem>>) attributes {dimension_semantics = [#tpu.dimension_semantics<parallel>], iteration_bounds = array<i64: 5>, scalar_prefetch = 0 : i64, scratch_operands = 0 : i64, tpu.core_type = #tpu.core_type<tc>, window_params = [{pipeline_mode = #tpu.pipeline_mode<synchronous>, transform_indices = @transform_0, window_bounds = array<i64: 2, 32>}, {transform_indices = @transform_1, window_bounds = array<i64: 32, 512>}, {transform_indices = @transform_2, window_bounds = array<i64: 1, 512>}, {transform_indices = @transform_3, window_bounds = array<i64: 2, 512>}]} {
    %c0 = arith.constant 0 : index
    %c0_0 = arith.constant 0 : index
    %0 = vector.load %arg1[%c0, %c0_0] : memref<2x32xf32, #tpu.memory_space<vmem>>, vector<2x32xf32>
    %c0_1 = arith.constant 0 : index
    %c0_2 = arith.constant 0 : index
    %1 = vector.load %arg2[%c0_1, %c0_2] : memref<32x512xf32, #tpu.memory_space<vmem>>, vector<32x512xf32>
    %cst = arith.constant dense<0.000000e+00> : vector<2x512xf32>
    %2 = tpu.matmul %0, %1, %cst {dimension_numbers = #tpu.dot_dimension_numbers<[1], [0], [0], [1], [0, 0, 1, 1], [], []>, precision = #tpu.contract_precision<fp32>} : vector<2x32xf32>, vector<32x512xf32>, vector<2x512xf32> -> vector<2x512xf32>
    %c0_3 = arith.constant 0 : index
    %c0_4 = arith.constant 0 : index
    %3 = vector.load %arg3[%c0_3, %c0_4] : memref<1x512xf32, #tpu.memory_space<vmem>>, vector<1x512xf32>
    %4 = vector.broadcast %3 : vector<1x512xf32> to vector<2x512xf32>
    %5 = arith.addf %2, %4 : vector<2x512xf32>
    %c0_5 = arith.constant 0 : index
    %c0_6 = arith.constant 0 : index
    %6 = vector.load %arg4[%c0_5, %c0_6] : memref<2x512xf32, #tpu.memory_space<vmem>>, vector<2x512xf32>
    tpu.vector_store %arg4[%c0_5, %c0_6], %5 {strides = array<i32>} : memref<2x512xf32, #tpu.memory_space<vmem>>, vector<2x512xf32>,
    return
  }
  func.func @transform_0(%arg0: i32) -> (i32, i32) {
    %c0_i32 = arith.constant 0 : i32
    %c0_i32_0 = arith.constant 0 : i32
    %c0_i32_1 = arith.constant 0 : i32
    return %c0_i32, %c0_i32_0 : i32, i32
  }
  func.func @transform_1(%arg0: i32) -> (i32, i32) {
    %c0_i32 = arith.constant 0 : i32
    %c0_i32_0 = arith.constant 0 : i32
    return %c0_i32, %arg0 : i32, i32
  }
  func.func @transform_2(%arg0: i32) -> (i32, i32) {
    %c0_i32 = arith.constant 0 : i32
    %c0_i32_0 = arith.constant 0 : i32
    return %c0_i32, %arg0 : i32, i32
  }
  func.func @transform_3(%arg0: i32) -> (i32, i32) {
    %c0_i32 = arith.constant 0 : i32
    %c0_i32_0 = arith.constant 0 : i32
    return %c0_i32, %arg0 : i32, i32
  }
}

module attributes {stable_mosaic.version = 11 : i64} {
  func.func @_dec_conv_kernel(%arg0: i32, %arg1: i32, %arg2: memref<1x64x40xf32, #tpu.memory_space<vmem>>, %arg3: memref<1x1x64x4xf32, #tpu.memory_space<vmem>>, %arg4: memref<32x192xf32, #tpu.memory_space<vmem>>, %arg5: memref<32x1xf32, #tpu.memory_space<vmem>>, %arg6: memref<32x4xf32, #tpu.memory_space<vmem>>, %arg7: memref<1x1xf32, #tpu.memory_space<vmem>>, %arg8: memref<1x2x40xf32, #tpu.memory_space<vmem>>) attributes {dimension_semantics = [#tpu.dimension_semantics<parallel>, #tpu.dimension_semantics<parallel>], iteration_bounds = array<i64: 2, 1>, scalar_prefetch = 0 : i64, scratch_operands = 0 : i64, tpu.core_type = #tpu.core_type<tc>, window_params = [{transform_indices = @transform_0, window_bounds = array<i64: 1, 64, 40>}, {transform_indices = @transform_1, window_bounds = array<i64: 1, 1, 64, 4>}, {pipeline_mode = #tpu.pipeline_mode<synchronous>, transform_indices = @transform_2, window_bounds = array<i64: 32, 192>}, {pipeline_mode = #tpu.pipeline_mode<synchronous>, transform_indices = @transform_3, window_bounds = array<i64: 32, 1>}, {pipeline_mode = #tpu.pipeline_mode<synchronous>, transform_indices = @transform_4, window_bounds = array<i64: 32, 4>}, {pipeline_mode = #tpu.pipeline_mode<synchronous>, transform_indices = @transform_5, window_bounds = array<i64: 1, 1>}, {transform_indices = @transform_6, window_bounds = array<i64: 1, 2, 40>}]} {
    %c0 = arith.constant 0 : index
    %c0_0 = arith.constant 0 : index
    %c0_1 = arith.constant 0 : index
    %0 = vector.load %arg2[%c0, %c0_0, %c0_1] : memref<1x64x40xf32, #tpu.memory_space<vmem>>, vector<1x64x40xf32>
    %1 = vector.shape_cast %0 : vector<1x64x40xf32> to vector<64x40xf32>
    %c0_2 = arith.constant 0 : index
    %c0_3 = arith.constant 0 : index
    %c0_4 = arith.constant 0 : index
    %c0_5 = arith.constant 0 : index
    %2 = vector.load %arg3[%c0_2, %c0_3, %c0_4, %c0_5] : memref<1x1x64x4xf32, #tpu.memory_space<vmem>>, vector<1x1x64x4xf32>
    %3 = vector.shape_cast %2 : vector<1x1x64x4xf32> to vector<64x4xf32>
    %4 = tpu.iota {dimensions = array<i32: 1>} : vector<1x40xi32>
    %c1_i32 = arith.constant 1 : i32
    %5 = vector.broadcast %c1_i32 : i32 to vector<1x40xi32>
    %6 = arith.cmpi sge, %4, %5 : vector<1x40xi32>
    %c1_i32_6 = arith.constant 1 : i32
    %7 = tpu.dynamic_rotate %1 by %c1_i32_6 dim 1 : vector<64x40xf32>, i32 -> vector<64x40xf32>
    %8 = vector.extract_strided_slice %3 {offsets = [0, 1], sizes = [64, 1], strides = [1, 1]} : vector<64x4xf32> to vector<64x1xf32>
    %9 = vector.shape_cast %6 : vector<1x40xi1> to vector<1x40xi1>
    %10 = vector.broadcast %9 : vector<1x40xi1> to vector<64x40xi1>
    %11 = vector.shape_cast %8 : vector<64x1xf32> to vector<64x1xf32>
    %12 = vector.broadcast %11 : vector<64x1xf32> to vector<64x40xf32>
    %13 = arith.select %10, %7, %12 : vector<64x40xi1>, vector<64x40xf32>
    %c2_i32 = arith.constant 2 : i32
    %14 = vector.broadcast %c2_i32 : i32 to vector<1x40xi32>
    %15 = arith.cmpi sge, %4, %14 : vector<1x40xi32>
    %c2_i32_7 = arith.constant 2 : i32
    %16 = tpu.dynamic_rotate %1 by %c2_i32_7 dim 1 : vector<64x40xf32>, i32 -> vector<64x40xf32>
    %c0_i32 = arith.constant 0 : i32
    %17 = vector.broadcast %c0_i32 : i32 to vector<1x40xi32>
    %18 = arith.cmpi eq, %4, %17 : vector<1x40xi32>
    %19 = vector.extract_strided_slice %3 {offsets = [0, 0], sizes = [64, 1], strides = [1, 1]} : vector<64x4xf32> to vector<64x1xf32>
    %20 = vector.extract_strided_slice %3 {offsets = [0, 1], sizes = [64, 1], strides = [1, 1]} : vector<64x4xf32> to vector<64x1xf32>
    %21 = vector.shape_cast %18 : vector<1x40xi1> to vector<1x40xi1>
    %22 = vector.broadcast %21 : vector<1x40xi1> to vector<64x40xi1>
    %23 = vector.shape_cast %19 : vector<64x1xf32> to vector<64x1xf32>
    %24 = vector.broadcast %23 : vector<64x1xf32> to vector<64x40xf32>
    %25 = vector.shape_cast %20 : vector<64x1xf32> to vector<64x1xf32>
    %26 = vector.broadcast %25 : vector<64x1xf32> to vector<64x40xf32>
    %27 = arith.select %22, %24, %26 : vector<64x40xi1>, vector<64x40xf32>
    %28 = vector.shape_cast %15 : vector<1x40xi1> to vector<1x40xi1>
    %29 = vector.broadcast %28 : vector<1x40xi1> to vector<64x40xi1>
    %30 = arith.select %29, %16, %27 : vector<64x40xi1>, vector<64x40xf32>
    %c38_i32 = arith.constant 38 : i32
    %31 = vector.broadcast %c38_i32 : i32 to vector<1x40xi32>
    %32 = arith.cmpi sle, %4, %31 : vector<1x40xi32>
    %c39_i32 = arith.constant 39 : i32
    %33 = tpu.dynamic_rotate %1 by %c39_i32 dim 1 : vector<64x40xf32>, i32 -> vector<64x40xf32>
    %34 = vector.extract_strided_slice %3 {offsets = [0, 2], sizes = [64, 1], strides = [1, 1]} : vector<64x4xf32> to vector<64x1xf32>
    %35 = vector.shape_cast %32 : vector<1x40xi1> to vector<1x40xi1>
    %36 = vector.broadcast %35 : vector<1x40xi1> to vector<64x40xi1>
    %37 = vector.shape_cast %34 : vector<64x1xf32> to vector<64x1xf32>
    %38 = vector.broadcast %37 : vector<64x1xf32> to vector<64x40xf32>
    %39 = arith.select %36, %33, %38 : vector<64x40xi1>, vector<64x40xf32>
    %c37_i32 = arith.constant 37 : i32
    %40 = vector.broadcast %c37_i32 : i32 to vector<1x40xi32>
    %41 = arith.cmpi sle, %4, %40 : vector<1x40xi32>
    %c38_i32_8 = arith.constant 38 : i32
    %42 = tpu.dynamic_rotate %1 by %c38_i32_8 dim 1 : vector<64x40xf32>, i32 -> vector<64x40xf32>
    %c38_i32_9 = arith.constant 38 : i32
    %43 = vector.broadcast %c38_i32_9 : i32 to vector<1x40xi32>
    %44 = arith.cmpi eq, %4, %43 : vector<1x40xi32>
    %45 = vector.extract_strided_slice %3 {offsets = [0, 2], sizes = [64, 1], strides = [1, 1]} : vector<64x4xf32> to vector<64x1xf32>
    %46 = vector.extract_strided_slice %3 {offsets = [0, 3], sizes = [64, 1], strides = [1, 1]} : vector<64x4xf32> to vector<64x1xf32>
    %47 = vector.shape_cast %44 : vector<1x40xi1> to vector<1x40xi1>
    %48 = vector.broadcast %47 : vector<1x40xi1> to vector<64x40xi1>
    %49 = vector.shape_cast %45 : vector<64x1xf32> to vector<64x1xf32>
    %50 = vector.broadcast %49 : vector<64x1xf32> to vector<64x40xf32>
    %51 = vector.shape_cast %46 : vector<64x1xf32> to vector<64x1xf32>
    %52 = vector.broadcast %51 : vector<64x1xf32> to vector<64x40xf32>
    %53 = arith.select %48, %50, %52 : vector<64x40xi1>, vector<64x40xf32>
    %54 = vector.shape_cast %41 : vector<1x40xi1> to vector<1x40xi1>
    %55 = vector.broadcast %54 : vector<1x40xi1> to vector<64x40xi1>
    %56 = arith.select %55, %42, %53 : vector<64x40xi1>, vector<64x40xf32>
    %c0_10 = arith.constant 0 : index
    %c0_11 = arith.constant 0 : index
    %57 = vector.load %arg4[%c0_10, %c0_11] : memref<32x192xf32, #tpu.memory_space<vmem>>, vector<32x192xf32>
    %c0_12 = arith.constant 0 : index
    %c0_13 = arith.constant 0 : index
    %58 = vector.load %arg5[%c0_12, %c0_13] : memref<32x1xf32, #tpu.memory_space<vmem>>, vector<32x1xf32>
    %59 = tpu.concatenate %30, %13, %1 in 0 : vector<64x40xf32>, vector<64x40xf32>, vector<64x40xf32> -> vector<192x40xf32>
    %cst = arith.constant dense<0.000000e+00> : vector<32x40xf32>
    %60 = tpu.matmul %57, %59, %cst {dimension_numbers = #tpu.dot_dimension_numbers<[1], [0], [0], [1], [0, 0, 1, 1], [], []>, precision = #tpu.contract_precision<fp32>} : vector<32x192xf32>, vector<192x40xf32>, vector<32x40xf32> -> vector<32x40xf32>
    %61 = vector.broadcast %58 : vector<32x1xf32> to vector<32x40xf32>
    %62 = arith.addf %60, %61 : vector<32x40xf32>
    %cst_14 = arith.constant 0.000000e+00 : f32
    %63 = vector.broadcast %cst_14 : f32 to vector<32x40xf32>
    %64 = arith.maximumf %62, %63 : vector<32x40xf32>
    %65 = tpu.concatenate %13, %1, %39 in 0 : vector<64x40xf32>, vector<64x40xf32>, vector<64x40xf32> -> vector<192x40xf32>
    %cst_15 = arith.constant dense<0.000000e+00> : vector<32x40xf32>
    %66 = tpu.matmul %57, %65, %cst_15 {dimension_numbers = #tpu.dot_dimension_numbers<[1], [0], [0], [1], [0, 0, 1, 1], [], []>, precision = #tpu.contract_precision<fp32>} : vector<32x192xf32>, vector<192x40xf32>, vector<32x40xf32> -> vector<32x40xf32>
    %67 = vector.broadcast %58 : vector<32x1xf32> to vector<32x40xf32>
    %68 = arith.addf %66, %67 : vector<32x40xf32>
    %cst_16 = arith.constant 0.000000e+00 : f32
    %69 = vector.broadcast %cst_16 : f32 to vector<32x40xf32>
    %70 = arith.maximumf %68, %69 : vector<32x40xf32>
    %71 = tpu.concatenate %1, %39, %56 in 0 : vector<64x40xf32>, vector<64x40xf32>, vector<64x40xf32> -> vector<192x40xf32>
    %cst_17 = arith.constant dense<0.000000e+00> : vector<32x40xf32>
    %72 = tpu.matmul %57, %71, %cst_17 {dimension_numbers = #tpu.dot_dimension_numbers<[1], [0], [0], [1], [0, 0, 1, 1], [], []>, precision = #tpu.contract_precision<fp32>} : vector<32x192xf32>, vector<192x40xf32>, vector<32x40xf32> -> vector<32x40xf32>
    %73 = vector.broadcast %58 : vector<32x1xf32> to vector<32x40xf32>
    %74 = arith.addf %72, %73 : vector<32x40xf32>
    %cst_18 = arith.constant 0.000000e+00 : f32
    %75 = vector.broadcast %cst_18 : f32 to vector<32x40xf32>
    %76 = arith.maximumf %74, %75 : vector<32x40xf32>
    %c40_i32 = arith.constant 40 : i32
    %77 = arith.muli %arg1, %c40_i32 : i32
    %78 = vector.broadcast %77 : i32 to vector<1x40xi32>
    %79 = arith.addi %78, %4 : vector<1x40xi32>
    %c0_i32_19 = arith.constant 0 : i32
    %80 = vector.broadcast %c0_i32_19 : i32 to vector<1x40xi32>
    %81 = arith.cmpi eq, %79, %80 : vector<1x40xi32>
    %cst_20 = arith.constant 0.000000e+00 : f32
    %82 = vector.shape_cast %81 : vector<1x40xi1> to vector<1x40xi1>
    %83 = vector.broadcast %82 : vector<1x40xi1> to vector<32x40xi1>
    %84 = vector.broadcast %cst_20 : f32 to vector<32x40xf32>
    %85 = arith.select %83, %84, %64 : vector<32x40xi1>, vector<32x40xf32>
    %c39_i32_21 = arith.constant 39 : i32
    %86 = vector.broadcast %c39_i32_21 : i32 to vector<1x40xi32>
    %87 = arith.cmpi eq, %79, %86 : vector<1x40xi32>
    %cst_22 = arith.constant 0.000000e+00 : f32
    %88 = vector.shape_cast %87 : vector<1x40xi1> to vector<1x40xi1>
    %89 = vector.broadcast %88 : vector<1x40xi1> to vector<32x40xi1>
    %90 = vector.broadcast %cst_22 : f32 to vector<32x40xf32>
    %91 = arith.select %89, %90, %76 : vector<32x40xi1>, vector<32x40xf32>
    %c0_23 = arith.constant 0 : index
    %c0_24 = arith.constant 0 : index
    %92 = vector.load %arg6[%c0_23, %c0_24] : memref<32x4xf32, #tpu.memory_space<vmem>>, vector<32x4xf32>
    %c0_25 = arith.constant 0 : index
    %c0_26 = arith.constant 0 : index
    %93 = vector.load %arg7[%c0_25, %c0_26] : memref<1x1xf32, #tpu.memory_space<vmem>>, vector<1x1xf32>
    %94 = vector.extract_strided_slice %92 {offsets = [0, 0], sizes = [32, 1], strides = [1, 1]} : vector<32x4xf32> to vector<32x1xf32>
    %95 = vector.broadcast %94 : vector<32x1xf32> to vector<32x40xf32>
    %96 = arith.mulf %95, %85 : vector<32x40xf32>
    %97 = vector.extract_strided_slice %92 {offsets = [0, 1], sizes = [32, 1], strides = [1, 1]} : vector<32x4xf32> to vector<32x1xf32>
    %98 = vector.broadcast %97 : vector<32x1xf32> to vector<32x40xf32>
    %99 = arith.mulf %98, %70 : vector<32x40xf32>
    %100 = arith.addf %96, %99 : vector<32x40xf32>
    %cst_27 = arith.constant dense<0.000000e+00> : vector<40xf32>
    %101 = vector.multi_reduction <add>, %100, %cst_27 [0] : vector<32x40xf32> to vector<40xf32>
    %102 = vector.shape_cast %101 : vector<40xf32> to vector<1x40xf32>
    %103 = vector.broadcast %93 : vector<1x1xf32> to vector<1x40xf32>
    %104 = arith.addf %102, %103 : vector<1x40xf32>
    %105 = vector.extract_strided_slice %92 {offsets = [0, 2], sizes = [32, 1], strides = [1, 1]} : vector<32x4xf32> to vector<32x1xf32>
    %106 = vector.broadcast %105 : vector<32x1xf32> to vector<32x40xf32>
    %107 = arith.mulf %106, %70 : vector<32x40xf32>
    %108 = vector.extract_strided_slice %92 {offsets = [0, 3], sizes = [32, 1], strides = [1, 1]} : vector<32x4xf32> to vector<32x1xf32>
    %109 = vector.broadcast %108 : vector<32x1xf32> to vector<32x40xf32>
    %110 = arith.mulf %109, %91 : vector<32x40xf32>
    %111 = arith.addf %107, %110 : vector<32x40xf32>
    %cst_28 = arith.constant dense<0.000000e+00> : vector<40xf32>
    %112 = vector.multi_reduction <add>, %111, %cst_28 [0] : vector<32x40xf32> to vector<40xf32>
    %113 = vector.shape_cast %112 : vector<40xf32> to vector<1x40xf32>
    %114 = vector.broadcast %93 : vector<1x1xf32> to vector<1x40xf32>
    %115 = arith.addf %113, %114 : vector<1x40xf32>
    %116 = arith.negf %104 : vector<1x40xf32>
    %117 = math.exp %116 : vector<1x40xf32>
    %cst_29 = arith.constant 1.000000e+00 : f32
    %118 = vector.broadcast %cst_29 : f32 to vector<1x40xf32>
    %119 = arith.addf %118, %117 : vector<1x40xf32>
    %120 = arith.divf %118, %119 : vector<1x40xf32>
    %121 = arith.negf %115 : vector<1x40xf32>
    %122 = math.exp %121 : vector<1x40xf32>
    %cst_30 = arith.constant 1.000000e+00 : f32
    %123 = vector.broadcast %cst_30 : f32 to vector<1x40xf32>
    %124 = arith.addf %123, %122 : vector<1x40xf32>
    %125 = arith.divf %123, %124 : vector<1x40xf32>
    %126 = tpu.concatenate %120, %125 in 0 : vector<1x40xf32>, vector<1x40xf32> -> vector<2x40xf32>
    %c0_31 = arith.constant 0 : index
    %c0_32 = arith.constant 0 : index
    %c0_33 = arith.constant 0 : index
    %127 = vector.load %arg8[%c0_31, %c0_32, %c0_33] : memref<1x2x40xf32, #tpu.memory_space<vmem>>, vector<1x2x40xf32>
    %128 = vector.shape_cast %127 : vector<1x2x40xf32> to vector<2x40xf32>
    %129 = vector.shape_cast %126 : vector<2x40xf32> to vector<1x2x40xf32>
    tpu.vector_store %arg8[%c0_31, %c0_32, %c0_33], %129 {strides = array<i32>} : memref<1x2x40xf32, #tpu.memory_space<vmem>>, vector<1x2x40xf32>,
    return
  }
  func.func @transform_0(%arg0: i32, %arg1: i32) -> (i32, i32, i32) {
    %c0_i32 = arith.constant 0 : i32
    %c0_i32_0 = arith.constant 0 : i32
    return %arg0, %c0_i32, %arg1 : i32, i32, i32
  }
  func.func @transform_1(%arg0: i32, %arg1: i32) -> (i32, i32, i32, i32) {
    %c0_i32 = arith.constant 0 : i32
    %c0_i32_0 = arith.constant 0 : i32
    %c0_i32_1 = arith.constant 0 : i32
    return %arg0, %arg1, %c0_i32, %c0_i32_0 : i32, i32, i32, i32
  }
  func.func @transform_2(%arg0: i32, %arg1: i32) -> (i32, i32) {
    %c0_i32 = arith.constant 0 : i32
    %c0_i32_0 = arith.constant 0 : i32
    %c0_i32_1 = arith.constant 0 : i32
    return %c0_i32, %c0_i32_0 : i32, i32
  }
  func.func @transform_3(%arg0: i32, %arg1: i32) -> (i32, i32) {
    %c0_i32 = arith.constant 0 : i32
    %c0_i32_0 = arith.constant 0 : i32
    %c0_i32_1 = arith.constant 0 : i32
    return %c0_i32, %c0_i32_0 : i32, i32
  }
  func.func @transform_4(%arg0: i32, %arg1: i32) -> (i32, i32) {
    %c0_i32 = arith.constant 0 : i32
    %c0_i32_0 = arith.constant 0 : i32
    %c0_i32_1 = arith.constant 0 : i32
    return %c0_i32, %c0_i32_0 : i32, i32
  }
  func.func @transform_5(%arg0: i32, %arg1: i32) -> (i32, i32) {
    %c0_i32 = arith.constant 0 : i32
    %c0_i32_0 = arith.constant 0 : i32
    %c0_i32_1 = arith.constant 0 : i32
    return %c0_i32, %c0_i32_0 : i32, i32
  }
  func.func @transform_6(%arg0: i32, %arg1: i32) -> (i32, i32, i32) {
    %c0_i32 = arith.constant 0 : i32
    %c0_i32_0 = arith.constant 0 : i32
    return %arg0, %c0_i32, %arg1 : i32, i32, i32
  }
}

</mosaic_0001>

<bundles_post_ra>
// kernel: autoencoder_forward.4
= control target key start
LH: loop header
LB: loop body
LE: loop exit
PB: predicated region body
PF: predicated region fallthrough
CT: control target
= control target key end

     0   :  { %10 = vsyncpa [#allocation3], 0  ;;  %s1863_s18 = smov 0   ;;  %s1865_s19 = smov 0   ;;  %s2699_s0 = inlined_call_operand.vmem [shape: f32[2,6,40], index: 0, kind: input, shape index: {}]   ;;  %s2700_s1 = inlined_call_operand.vmem [shape: f32[32,3], index: 1, kind: input, shape index: {}]   ;;  %s2701_s2 = inlined_call_operand.vmem [shape: f32[32,1], index: 2, kind: input, shape index: {}]   ;;  %s2702_s3 = inlined_call_operand.hbm [shape: f32[64,96], index: 3, kind: input, shape index: {}]   ;;  %s2703_s4 = inlined_call_operand.vmem [shape: f32[64,1], index: 4, kind: input, shape index: {}]   ;;  %s2704_s5 = inlined_call_operand.vmem [shape: f32[2,64,40], index: 5, kind: output, shape index: {}]  }
   0x1   :  { %s1867_s20 = smov 0  }
   0x2 LB: > { %s1707_s21 = sadd.s32 4294967295, %s1825_s20   ;;  %s28_s22 = sadd.s32 1, %s1821_s19  ;;  %s1825_s20 = sphi %s1867_s20, %s16_s20   ;;  %s1821_s19 = sphi %s1865_s19, %s2740_s19   ;;  %s1817_s18 = sphi %s1863_s18, %s2739_s18  }
   0x3   : > { %p30_p0 = scmp.ge.s32.totalorder %s28_s22, 2  ;;  %p1709_p1 = scmp.ge.s32.totalorder %s1825_s20, 1 }
   0x4   : > { %p173_p2 = scmp.lt.s32.totalorder %s1825_s20, 3  ;;  %p1728_p4 = scmp.eq.s32.totalorder %s1707_s21, 0 }
   0x5   : > { %s2742_s22 = smov (%p30_p0, %s28_s22), 0  ;;  %s190_s25 = sshll.u32 %s2702_s3, 4  ;;  %s191_s25 = int_to_ptr.hbm [resolvable:$true] %s190_s25 }
   0x6   : > { %p174_p3 = pnand %p1709_p1, %p173_p2  ;;  %s1827_s26 = smov [#allocation2]  }
   0x7   : > { %s192_s27 = sshll.u32 %s1827_s26, 4  ;;  %s1828_s28 = smov 128   ;;  %s193_s27 = int_to_ptr.vmem [resolvable:$true] %s192_s27 }
   0x8   : > { %p1724_p5 = pneg %p174_p3  ;;  %s1829_s29 = smov 8  }
   0x9   : > { %221 = sbr.rel (%p174_p3) target bundleno = 543 (0x21f), region = 40 }
   0xa   : > { %p1725_p6 = pnand %p1728_p4, %p1724_p5 }
   0xc   : > { %1727 = dma.hbm_to_vmem [thread:$0]  (!%p1725_p6), %s191_s25, 1024, %s193_s27, [#allocation3], %s1828_s28, %s1828_s28, %s1829_s29  }
   0xe   : > { %1812 = dma.done.wait (%p1728_p4), [#allocation3], 1024  }
   0xf   : > { %1814 = vsyncadd (%p1728_p4), [#allocation3], 4294966272  ;;  %v1830_v0 = vmov 1   ;;  %v1831_v1 = vmov 0   ;;  %v1832_v2 = vmov 2   ;;  %v274_v3 = vld [vmem:[%s2700_s1 + $0x18] sm:$0xff]  ;;  %v470_v33 = vlaneseq }
  0x10   : > { %1760 = vset.pattern.permute.xlu0 %v1830_v0  ;;  %1762 = vset.pattern.permute.xlu1 %v1831_v1  ;;  %v273_v4 = vld [vmem:[%s2700_s1 + $0x10] sm:$0xff]  ;;  %v272_v5 = vld [vmem:[%s2700_s1 + $0x8] sm:$0xff]  ;;  %v271_v6 = vld [vmem:[%s2700_s1] sm:$0xff]  ;;  %p255_p7 = scmp.lt.s32.totalorder %s1817_s18, 1  ;;  %vm544_vm2 = vcmask 785408   ;;  %vm1605_vm3 = vcmask 326656  }
  0x11   : > { %1764 = vset.pattern.permute.xlu2 %v1832_v2  ;;  %317 = vperm.xlu0 %1760, %v274_v3   ;;  %v277_v7 = vld [vmem:[%s2701_s2 + $0x10] sm:$0xff]  ;;  %v496_v8 = vld [vmem:[%s2703_s4] sm:$0xff]  ;;  %v278_v9 = vld [vmem:[%s2701_s2 + $0x18] sm:$0xff]  ;;  %v1979_v49 = vand.u32 127, %v470_v33 }
  0x12   : > { %291 = vperm.xlu1 %1762, %v273_v4   ;;  %342 = vperm.xlu2 %1764, %v274_v3   ;;  %v499_v10 = vld [vmem:[%s2703_s4 + $0x18] sm:$0xff]  ;;  %v276_v11 = vld [vmem:[%s2701_s2 + $0x8] sm:$0xff]  ;;  %v275_v12 = vld [vmem:[%s2701_s2] sm:$0xff]  ;;  %s2744_s18 = smov (!%p255_p7, %s1817_s18), 1 }
  0x13   : > { %v502_v13 = vld [vmem:[%s2703_s4 + $0x30] sm:$0xff]  ;;  %v497_v14 = vld [vmem:[%s2703_s4 + $0x8] sm:$0xff]  ;;  %v500_v16 = vld [vmem:[%s2703_s4 + $0x20] sm:$0xff]  ;;  %s1714_s16 = sshll.u32 %s2744_s18, 3  ;;  %vm474_vm0 = vcmp.eq.s32.totalorder %v1979_v49, 0  ;;  %vm481_vm1 = vcmp.eq.s32.totalorder %v1979_v49, 39 }
  0x14   : > { %v498_v15 = vld [vmem:[%s2703_s4 + $0x10] sm:$0xff]  ;;  %v501_v17 = vld [vmem:[%s2703_s4 + $0x28] sm:$0xff]  ;;  %v503_v18 = vld [vmem:[%s2703_s4 + $0x38] sm:$0xff]  ;;  %s261_s23 = scalar_lea.vmem %s2699_s0, %s1714_s16  ;;  %s1719_s24 = sshll.u32 %s2744_s18, 6 }
  0x15   : > { %v270_v24 = vld [vmem:[%s261_s23] sm:$0x3f]  ;;  %s2650_s27 = scalar_lea.vmem %s2704_s5, %s1719_s24 }
  0x16   : > { %v1943_v27 = vperm.slane %v270_v24, 3  ;;  %v1945_v29 = vperm.slane %v270_v24, 2  ;;  %v1947_v30 = vperm.slane %v270_v24, 4  ;;  %v452_v31 = vperm.slane %v270_v24, 5 }
  0x17   : > { %v1949_v32 = vperm.slane %v270_v24, 1  ;;  %v411_v35 = vperm.slane %v270_v24, 0 }
  0x19   : > { %1761 = vset.pattern.permute.xlu0 %v1831_v1 }
  0x1a   : > { %1763 = vset.pattern.permute.xlu1 %v1830_v0  ;;  %296 = vperm.xlu0 %1761, %v274_v3  }
  0x1b   : > { %313 = vperm.xlu1 %1763, %v273_v4   ;;  %1765 = vset.pattern.permute.xlu2 %v1831_v1 }
  0x1c   : > { %286 = vperm.xlu2 %1765, %v272_v5  }
  0x22   : > { %281 = vperm.xlu0 %1761, %v271_v6  }
  0x23   : > { %309 = vperm.xlu1 %1763, %v272_v5  }
  0x24   : > { %1766 = vset.pattern.permute.xlu2 %v1832_v2 }
  0x25   : > { %338 = vperm.xlu2 %1766, %v273_v4  }
  0x2a   : > { %366 = vperm.xlu0 %1761, %v277_v7  }
  0x2b   : > { %305 = vperm.xlu1 %1763, %v271_v6  }
  0x2d   : > { %334 = vperm.xlu2 %1766, %v272_v5  }
  0x32   : > { %506 = vperm.xlu0 %1761, %v496_v8  }
  0x33   : > { %1767 = vset.pattern.permute.xlu1 %v1831_v1 }
  0x34   : > { %371 = vperm.xlu1 %1767, %v278_v9  }
  0x35   : > { %330 = vperm.xlu2 %1766, %v271_v6  }
  0x3a   : > { %521 = vperm.xlu0 %1761, %v499_v10  }
  0x3c   : > { %361 = vperm.xlu1 %1767, %v276_v11  }
  0x3d   : > { %1768 = vset.pattern.permute.xlu2 %v1831_v1 }
  0x3e   : > { %356 = vperm.xlu2 %1768, %v275_v12  }
  0x42   : > { %536 = vperm.xlu0 %1761, %v502_v13  }
  0x44   : > { %511 = vperm.xlu1 %1767, %v497_v14  }
  0x46   : > { %516 = vperm.xlu2 %1768, %v498_v15  }
  0x4c   : > { %526 = vperm.xlu1 %1767, %v500_v16  }
  0x4e   : > { %531 = vperm.xlu2 %1768, %v501_v17  }
  0x54   : > { %541 = vperm.xlu1 %1767, %v503_v18  }
  0x6c   : > { %v343_v19 = vpop.permute.xlu2 %342 }
  0x6d   : > { %v1952_v34 = vmul.f32 %v1943_v27, %v343_v19  ;;  %v1955_v36 = vmul.f32 %v1947_v30, %v343_v19  ;;  %v1958_v37 = vmul.f32 %v343_v19, %v1945_v29  ;;  %v1960_v38 = vmul.f32 %v452_v31, %v343_v19 }
  0x76   : > { %v287_v20 = vpop.permute.xlu2 %286 }
  0x77   : > { %v1963_v39 = vmul.f32 %v1949_v32, %v287_v20  ;;  %v1966_v40 = vmul.f32 %v1945_v29, %v287_v20  ;;  %v1968_v41 = vmul.f32 %v411_v35, %v287_v20  ;;  %v1971_v42 = vmul.f32 %v1943_v27, %v287_v20 }
  0x7f   : > { %v339_v23 = vpop.permute.xlu2 %338 }
  0x80   : > { %v348_v46 = vmul.f32 %v1943_v27, %v339_v23  ;;  %v397_v47 = vmul.f32 %v1947_v30, %v339_v23  ;;  %v426_v48 = vmul.f32 %v339_v23, %v1945_v29  ;;  %v455_v53 = vmul.f32 %v452_v31, %v339_v23 }
  0x83   : > { %v318_v22 = vpop.permute.xlu0 %317 }
  0x84   : > { %v292_v21 = vpop.permute.xlu1 %291  ;;  %v324_v52 = vmul.f32 %v1945_v29, %v318_v22  ;;  %v389_v54 = vmul.f32 %v1943_v27, %v318_v22  ;;  %v419_v55 = vmul.f32 %v318_v22, %v1949_v32  ;;  %v447_v0 = vmul.f32 %v1947_v30, %v318_v22 }
  0x85   : > { %v302_v50 = vmul.f32 %v1949_v32, %v292_v21  ;;  %v384_v51 = vmul.f32 %v1945_v29, %v292_v21  ;;  %v414_v63 = vmul.f32 %v411_v35, %v292_v21  ;;  %v442_v3 = vmul.f32 %v1943_v27, %v292_v21 }
  0x87   : > { %v335_v28 = vpop.permute.xlu2 %334 }
  0x88   : > { %v1995_v4 = vmul.f32 %v1943_v27, %v335_v28  ;;  %v1998_v5 = vmul.f32 %v1947_v30, %v335_v28  ;;  %v2001_v6 = vmul.f32 %v335_v28, %v1945_v29  ;;  %v2003_v9 = vmul.f32 %v452_v31, %v335_v28 }
  0x8c   : > { %v297_v25 = vpop.permute.xlu0 %296 }
  0x8d   : > { %v314_v26 = vpop.permute.xlu1 %313  ;;  %v303_v56 = vmul.f32 %v1949_v32, %v297_v25  ;;  %v385_v58 = vmul.f32 %v1945_v29, %v297_v25  ;;  %v415_v59 = vmul.f32 %v411_v35, %v297_v25  ;;  %v443_v1 = vmul.f32 %v1943_v27, %v297_v25 }
  0x8e   : > { %v388_v43 = vmul.f32 %v1943_v27, %v314_v26  ;;  %v323_v57 = vmul.f32 %v1945_v29, %v314_v26  ;;  %v418_v61 = vmul.f32 %v314_v26, %v1949_v32  ;;  %v446_v2 = vmul.f32 %v1947_v30, %v314_v26 }
  0x8f   : > { %v331_v62 = vpop.permute.xlu2 %330  ;;  %v328_v7 = vadd.f32 %v324_v52, %v303_v56  ;;  %v393_v11 = vadd.f32 %v389_v54, %v385_v58  ;;  %v423_v12 = vadd.f32 %v419_v55, %v415_v59  ;;  %v451_v17 = vadd.f32 %v447_v0, %v443_v1 }
  0x90   : > { %v392_v60 = vadd.f32 %v388_v43, %v384_v51  ;;  %v327_v8 = vadd.f32 %v323_v57, %v302_v50  ;;  %v422_v13 = vadd.f32 %v418_v61, %v414_v63  ;;  %v450_v18 = vadd.f32 %v446_v2, %v442_v3 }
  0x91   : > { %v346_v19 = vmul.f32 %v1943_v27, %v331_v62  ;;  %v395_v21 = vmul.f32 %v1947_v30, %v331_v62  ;;  %v424_v22 = vmul.f32 %v331_v62, %v1945_v29  ;;  %v453_v23 = vmul.f32 %v452_v31, %v331_v62 }
  0x92   : > { %v401_v16 = vadd.f32 %v397_v47, %v392_v60  ;;  %v352_v33 = vadd.f32 %v348_v46, %v327_v8  ;;  %v430_v51 = vadd.f32 %v426_v48, %v422_v13  ;;  %v402_v62 = vadd.f32 %v1955_v36, %v393_v11 }
  0x93   : > { %v431_v63 = vadd.f32 %v1958_v37, %v423_v12  ;;  %v460_v36 = vadd.f32 %v1960_v38, %v451_v17 }
  0x94   : > { %v282_v45 = vpop.permute.xlu0 %281 }
  0x95   : > { %v1974_v44 = vpop.permute.xlu1 %309  ;;  %v382_v10 = vmul.f32 %v1945_v29, %v282_v45  ;;  %v300_v25 = vmul.f32 %v1949_v32, %v282_v45  ;;  %v412_v52 = vmul.f32 %v411_v35, %v282_v45  ;;  %v440_v56 = vmul.f32 %v1943_v27, %v282_v45 }
  0x96   : > { %v322_v43 = vmul.f32 %v1945_v29, %v1974_v44  ;;  %v387_v47 = vmul.f32 %v1943_v27, %v1974_v44  ;;  %v417_v50 = vmul.f32 %v1974_v44, %v1949_v32  ;;  %v445_v59 = vmul.f32 %v1947_v30, %v1974_v44 }
  0x97   : > { %v353_v35 = vadd.f32 %v1952_v34, %v328_v7 }
  0x98   : > { %v357_v58 = vpop.permute.xlu2 %356  ;;  %v421_v45 = vadd.f32 %v417_v50, %v1968_v41  ;;  %v449_v34 = vadd.f32 %v445_v59, %v1971_v42 }
  0x9a   : > { %v429_v38 = vadd.f32 %v2001_v6, %v421_v45 }
  0x9c   : > { %v367_v15 = vpop.permute.xlu0 %366 }
  0x9d   : > { %v306_v14 = vpop.permute.xlu1 %305  ;;  %v405_v24 = vadd.f32 %v401_v16, %v367_v15  ;;  %v376_v57 = vadd.f32 %v367_v15, %v352_v33  ;;  %v434_v48 = vadd.f32 %v430_v51, %v367_v15 }
  0x9e   : > { %v386_v20 = vmul.f32 %v1943_v27, %v306_v14  ;;  %v321_v26 = vmul.f32 %v1945_v29, %v306_v14  ;;  %v416_v31 = vmul.f32 %v306_v14, %v1949_v32  ;;  %v444_v46 = vmul.f32 %v1947_v30, %v306_v14 }
  0x9f   : > { %v409_v54 = vmax.f32 %v405_v24, 0.0  ;;  %v459_v29 = vadd.f32 %v455_v53, %v450_v18  ;;  %v326_v32 = vadd.f32 %v322_v43, %v1963_v39  ;;  %v391_v27 = vadd.f32 %v387_v47, %v1966_v40  ;;  %v488_v24 = vld [vmem:[#allocation2] sm:$0xff] }
  0xa0   : > { %v390_v28 = vadd.f32 %v386_v20, %v382_v10  ;;  %v325_v60 = vadd.f32 %v321_v26, %v300_v25  ;;  %v420_v53 = vadd.f32 %v416_v31, %v412_v52  ;;  %v448_v30 = vadd.f32 %v444_v46, %v440_v56 }
  0xa1   : > { %v2030_v0 = vand.u32 4294901760, %v409_v54  ;;  %v380_v44 = vmax.f32 %v376_v57, 0.0  ;;  %v438_v8 = vmax.f32 %v434_v48, 0.0  ;;  %v2034_v37 = vadd.f32 %v459_v29, %v367_v15 }
  0xa2   : > { %v399_v55 = vadd.f32 %v395_v21, %v390_v28  ;;  %v350_v39 = vadd.f32 %v346_v19, %v325_v60  ;;  %v351_v41 = vadd.f32 %v1995_v4, %v326_v32  ;;  %v428_v10 = vadd.f32 %v424_v22, %v420_v53 }
  0xa3   : > { %v400_v12 = vadd.f32 %v1998_v5, %v391_v27  ;;  %v2039_v13 = vsub.f32 %v409_v54, %v2030_v0  ;;  %v2041_v14 = vand.u32 4294901760, %v380_v44  ;;  %v457_v42 = vadd.f32 %v453_v23, %v448_v30 }
  0xa4   : > { %v403_v61 = vadd.f32 %v399_v55, %v357_v58  ;;  %v2047_v15 = vadd.f32 %v357_v58, %v350_v39  ;;  %v458_v18 = vadd.f32 %v2003_v9, %v449_v34  ;;  %v467_v5 = vmax.f32 %v2034_v37, 0.0 }
  0xa5   : > { %v2055_v19 = vsel %vm474_vm0, 0.0, %v438_v8  ;;  %v2062_v21 = vadd.f32 %v428_v10, %v357_v58  ;;  %v2067_v9 = vand.u32 4294901760, %v2039_v13  ;;  %v2069_v25 = vadd.f32 %v457_v42, %v357_v58 }
  0xa6   : > { %v372_v1 = vpop.permute.xlu1 %371  ;;  %v407_v7 = vmax.f32 %v403_v61, 0.0  ;;  %v2073_v33 = vsub.f32 %v380_v44, %v2041_v14  ;;  %v378_v43 = vmax.f32 %v2047_v15, 0.0  ;;  %v546_v55 = vsel %vm544_vm2, %v488_v24, 0 }
  0xa7   : > { %v377_v2 = vadd.f32 %v372_v1, %v353_v35  ;;  %v406_v3 = vadd.f32 %v402_v62, %v372_v1  ;;  %v464_v4 = vadd.f32 %v460_v36, %v372_v1  ;;  %v435_v20 = vadd.f32 %v431_v63, %v372_v1 }
  0xa8   : > { %v2049_v17 = vand.u32 4294901760, %v407_v7  ;;  %2714 = vst [vmem:[#allocation5_spill] sm:$0xff] %v2073_v33  ;;  %v675_v57 = vsub.f32 %v2039_v13, %v2067_v9  ;;  %v436_v58 = vmax.f32 %v2062_v21, 0.0  ;;  %v2098_v35 = vand.u32 4294901760, %v378_v43 }
  0xa9   : > { %v410_v40 = vmax.f32 %v406_v3, 0.0  ;;  %v381_v11 = vmax.f32 %v377_v2, 0.0  ;;  %v468_v47 = vmax.f32 %v464_v4, 0.0  ;;  %v439_v52 = vmax.f32 %v435_v20, 0.0 }
  0xaa   : > { %v2082_v51 = vsub.f32 %v407_v7, %v2049_v17  ;;  %v2115_v45 = vand.u32 4294901760, %v2073_v33  ;;  %v2117_v53 = vand.u32 4294901760, %v546_v55  ;;  %v2120_v30 = vand.u32 4294901760, %v675_v57 }
  0xab   : > { %v2043_v16 = vand.u32 4294901760, %v410_v40  ;;  %v2064_v22 = vand.u32 4294901760, %v381_v11  ;;  %v487_v62 = vsel %vm481_vm1, 0.0, %v468_v47  ;;  %v480_v63 = vsel %vm474_vm0, 0.0, %v439_v52 }
  0xac   : > { %v2103_v48 = vand.u32 4294901760, %v2082_v51  ;;  %v486_v2 = vsel %vm481_vm1, 0.0, %v467_v5  ;;  %v2135_v7 = vand.u32 4294901760, %v487_v62  ;;  %v465_v36 = vmax.f32 %v2069_v25, 0.0 }
  0xad   : > { %574 = vmatpush.msra.mxu0 %v2043_v16  ;;  %857 = vmatpush.msra.mxu3 %v2043_v16  ;;  %v2060_v6 = vsub.f32 %v410_v40, %v2043_v16  ;;  %v2091_v29 = vsub.f32 %v381_v11, %v2064_v22  ;;  %v2142_v37 = vand.u32 4294901760, %v480_v63  ;;  %v2145_v40 = vsub.f32 %v378_v43, %v2098_v35 }
  0xae   : > { %v362_v23 = vpop.permute.xlu1 %361  ;;  %v687_v8 = vsub.f32 %v2082_v51, %v2103_v48  ;;  %v2152_v10 = vand.u32 4294901760, %v2055_v19  ;;  %v2155_v11 = vsub.f32 %v546_v55, %v2117_v53  ;;  %v477_v42 = vsel %vm474_vm0, 0.0, %v436_v58 }
  0xaf   : > { %v375_v26 = vadd.f32 %v362_v23, %v351_v41  ;;  %v404_v28 = vadd.f32 %v400_v12, %v362_v23  ;;  %576 = vmatpush.msra.mxu0 %v2030_v0  ;;  %777 = vmatpush.msra.mxu2 %v2060_v6  ;;  %v2079_v50 = vand.u32 4294901760, %v2060_v6  ;;  %v462_v56 = vadd.f32 %v458_v18, %v362_v23  ;;  %v489_v18 = vld [vmem:[#allocation2 + $0x8] sm:$0xff] }
  0xb0   : > { %859 = vmatpush.msra.mxu3 %v2030_v0  ;;  %2715 = vst [vmem:[#allocation6_spill] sm:$0xff] %v2091_v29  ;;  %v433_v59 = vadd.f32 %v429_v38, %v362_v23  ;;  %v2123_v44 = vand.u32 4294901760, %v2091_v29  ;;  %v2157_v12 = vand.u32 4294901760, %v486_v2  ;;  %v699_v15 = vsub.f32 %v2073_v33, %v2115_v45 }
  0xb1   : > { %v379_v31 = vmax.f32 %v375_v26, 0.0  ;;  %v408_v54 = vmax.f32 %v404_v28, 0.0  ;;  %780 = vmatpush.msra.mxu2 %v2039_v13  ;;  %v669_v46 = vsub.f32 %v2060_v6, %v2079_v50  ;;  %v466_v1 = vmax.f32 %v462_v56, 0.0  ;;  %2717 = vst [vmem:[#allocation8_spill] sm:$0xff] %v2145_v40 }
  0xb2   : > { %v437_v3 = vmax.f32 %v433_v59, 0.0  ;;  %2718 = vst [vmem:[#allocation9_spill] sm:$0xff] %v2155_v11  ;;  %v693_v38 = vsub.f32 %v2091_v29, %v2123_v44  ;;  %v2178_v23 = vsub.f32 %v487_v62, %v2135_v7  ;;  %v2181_v24 = vand.u32 4294901760, %v687_v8 }
  0xb3   : > { %v2094_v60 = vand.u32 4294901760, %v408_v54  ;;  %v2096_v61 = vand.u32 4294901760, %v379_v31  ;;  %v2100_v32 = vand.u32 4294901760, %v669_v46  ;;  %v485_v4 = vsel %vm481_vm1, 0.0, %v466_v1 }
  0xb4   : > { %v478_v5 = vsel %vm474_vm0, 0.0, %v437_v3  ;;  %v2184_v25 = vsub.f32 %v480_v63, %v2142_v37  ;;  %v2187_v26 = vand.u32 4294901760, %v2145_v40  ;;  %v484_v28 = vsel %vm481_vm1, 0.0, %v465_v36 }
  0xb5   : > { %578 = vmatpush.msra.mxu0 %v2094_v60  ;;  %861 = vmatpush.msra.mxu3 %v2094_v60  ;;  %v2112_v27 = vsub.f32 %v408_v54, %v2094_v60  ;;  %v2133_v39 = vsub.f32 %v379_v31, %v2096_v61  ;;  %v2194_v43 = vand.u32 4294901760, %v2155_v11  ;;  %v2197_v47 = vsub.f32 %v486_v2, %v2157_v12 }
  0xb6   : > { %671 = vmatpush.msra.mxu1 %v2100_v32  ;;  %v2199_v52 = vand.u32 4294901760, %v485_v4  ;;  %v549_v31 = vsel %vm544_vm2, %v489_v18, 0  ;;  %v2204_v49 = vand.u32 4294901760, %v478_v5  ;;  %v2208_v54 = vsub.f32 %v2055_v19, %v2152_v10 }
  0xb7   : > { %580 = vmatpush.msra.mxu0 %v2049_v17  ;;  %783 = vmatpush.msra.mxu2 %v2112_v27  ;;  %v2130_v34 = vand.u32 4294901760, %v2112_v27  ;;  %2716 = vst [vmem:[#allocation7_spill] sm:$0xff] %v2133_v39  ;;  %v2175_v21 = vand.u32 4294901760, %v2133_v39  ;;  %v2210_v55 = vand.u32 4294901760, %v549_v31  ;;  %v2214_v56 = vand.u32 4294901760, %v693_v38 }
  0xb8   : > { %677 = vmatpush.msra.mxu1 %v2120_v30  ;;  %863 = vmatpush.msra.mxu3 %v2049_v17  ;;  %v2705_v57 = vand.u32 4294901760, %v2178_v23  ;;  %v2219_v58 = vand.u32 4294901760, %v484_v28  ;;  %v2223_v19 = vand.u32 4294901760, %v477_v42  ;;  %v711_v59 = vsub.f32 %v2145_v40, %v2187_v26 }
  0xb9   : > { %582 = vmatpush.msra.mxu0 %v2064_v22  ;;  %786 = vmatpush.msra.mxu2 %v2082_v51  ;;  %v681_v41 = vsub.f32 %v2112_v27, %v2130_v34  ;;  %v705_v46 = vsub.f32 %v2133_v39, %v2175_v21  ;;  %v2706_v62 = vand.u32 4294901760, %v2184_v25  ;;  %v2230_v63 = vand.u32 4294901760, %v699_v15 }
  0xba   : > { %865 = vmatpush.msra.mxu3 %v2064_v22  ;;  %v600_v1 = vsub.f32 %v2155_v11, %v2194_v43  ;;  %v2707_v2 = vand.u32 4294901760, %v2197_v47  ;;  %v2236_v3 = vsub.f32 %v485_v4, %v2199_v52  ;;  %v2241_v36 = vsub.f32 %v478_v5, %v2204_v49 }
  0xbb   : > { %584 = vmatpush.msra.mxu0 %v2041_v14  ;;  %789 = vmatpush.msra.mxu2 %v2091_v29  ;;  %v2172_v20 = vand.u32 4294901760, %v681_v41  ;;  %v2244_v8 = vsub.f32 %v549_v31, %v2210_v55  ;;  %v490_v41 = vld [vmem:[#allocation2 + $0x10] sm:$0xff]  ;;  %v2248_v38 = vand.u32 4294901760, %v705_v46  ;;  %v1183_v15 = vsub.f32 %v2178_v23, %v2705_v57 }
  0xbc   : > { %867 = vmatpush.msra.mxu3 %v2041_v14  ;;  %v2255_v18 = vsub.f32 %v484_v28, %v2219_v58  ;;  %v2259_v5 = vand.u32 4294901760, %v711_v59  ;;  %v717_v31 = vsub.f32 %v2184_v25, %v2706_v62  ;;  %v2265_v46 = vsub.f32 %v477_v42, %v2223_v19 }
  0xbd   : > { %586 = vmatpush.msra.mxu0 %v2096_v61  ;;  %683 = vmatpush.msra.mxu1 %v2172_v20  ;;  %v2269_v57 = vand.u32 4294901760, %v600_v1  ;;  %v1189_v28 = vsub.f32 %v2197_v47, %v2707_v2  ;;  %v552_v4 = vsel %vm544_vm2, %v490_v41, 0  ;;  %v2280_v62 = vand.u32 4294901760, %v2244_v8 }
  0xbe   : > { %792 = vmatpush.msra.mxu2 %v2073_v33  ;;  %869 = vmatpush.msra.mxu3 %v2096_v61  ;;  %v1184_v1 = vand.u32 4294901760, %v1183_v15  ;;  %v2720_v2 = vand.u32 4294901760, %v2208_v54  ;;  %v2721_v15 = vand.u32 4294901760, %v2236_v3 }
  0xbf   : > { %588 = vmatpush.msra.mxu0 %v2098_v35  ;;  %689 = vmatpush.msra.mxu1 %v2181_v24  ;;  %2719 = vst [vmem:[#allocation10_spill] sm:$0xff] %v2269_v57  ;;  %v1190_v33 = vand.u32 4294901760, %v1189_v28  ;;  %v2723_v28 = vand.u32 4294901760, %v2255_v18 }
  0xc0   : > { %795 = vmatpush.msra.mxu2 %v2133_v39  ;;  %871 = vmatpush.msra.mxu3 %v2098_v35  ;;  %v723_v59 = vsub.f32 %v2208_v54, %v2720_v2  ;;  %v2291_v39 = vand.u32 4294901760, %v552_v4  ;;  %v1195_v29 = vsub.f32 %v2236_v3, %v2721_v15  ;;  %v2722_v2 = vand.u32 4294901760, %v2241_v36 }
  0xc1   : > { %590 = vmatpush.msra.mxu0 %v2142_v37  ;;  %695 = vmatpush.msra.mxu1 %v2214_v56 }
  0xc2   : > { %798 = vmatpush.msra.mxu2 %v2145_v40  ;;  %873 = vmatpush.msra.mxu3 %v2142_v37  ;;  %v718_v40 = vand.u32 4294901760, %v717_v31  ;;  %v729_v41 = vsub.f32 %v2241_v36, %v2722_v2  ;;  %v608_v31 = vsub.f32 %v2244_v8, %v2280_v62  ;;  %v724_v42 = vand.u32 4294901760, %v723_v59  ;;  %v491_v59 = vld [vmem:[#allocation2 + $0x18] sm:$0xff] }
  0xc3   : > { %592 = vmatpush.msra.mxu0 %v2152_v10  ;;  %701 = vmatpush.msra.mxu1 %v2230_v63  ;;  %v2313_v2 = vsub.f32 %v552_v4, %v2291_v39 }
  0xc4   : > { %801 = vmatpush.msra.mxu2 %v2184_v25  ;;  %875 = vmatpush.msra.mxu3 %v2152_v10 }
  0xc5   : > { %594 = vmatpush.msra.mxu0 %v2204_v49  ;;  %707 = vmatpush.msra.mxu1 %v2248_v38 }
  0xc6   : > { %804 = vmatpush.msra.mxu2 %v2208_v54  ;;  %877 = vmatpush.msra.mxu3 %v2204_v49 }
  0xc7   : > { %596 = vmatpush.msra.mxu0 %v2223_v19  ;;  %713 = vmatpush.msra.mxu1 %v2259_v5 }
  0xc8   : > { %807 = vmatpush.msra.mxu2 %v2241_v36  ;;  %879 = vmatpush.msra.mxu3 %v2223_v19 }
  0xc9   : > { %602 = vmatmul.f32.vlgmr.msra.gmra.mxu0 %v2269_v57  ;;  %719 = vmatpush.msra.mxu1 %v718_v40  ;;  %v2724_v40 = vand.u32 4294901760, %v2265_v46 }
  0xca   : > { %1185 = vmatpush.msrb.mxu3 %v1184_v1  ;;  %936 = vmatpush.msrb.mxu0 %v2079_v50  ;;  %v1201_v1 = vsub.f32 %v2255_v18, %v2723_v28  ;;  %v730_v28 = vand.u32 4294901760, %v729_v41 }
  0xcb   : > { %810 = vmatpush.msra.mxu2 %v2265_v46  ;;  %v735_v15 = vsub.f32 %v2265_v46, %v2724_v40  ;;  %725 = vmatpush.msra.mxu1 %v724_v42  ;;  %v2323_v40 = vand.u32 4294901760, %v2313_v2 }
  0xcc   : > { %1191 = vmatpush.msrb.mxu3 %v1190_v33  ;;  %813 = vmatmul.f32.vlgmr.msra.gmra.mxu2 %v2155_v11  ;;  %v1196_v33 = vand.u32 4294901760, %v1195_v29  ;;  %v2318_v11 = vand.u32 4294901760, %v608_v31  ;;  %v1202_v57 = vand.u32 4294901760, %v1201_v1  ;;  %v555_v29 = vsel %vm544_vm2, %v491_v59, 0  ;;  %v493_v59 = vld [vmem:[#allocation2 + $0x28] sm:$0xff] }
  0xcd   : > { %940 = vmatpush.msrb.mxu0 %v2067_v9  ;;  %1088 = vmatpush.msrb.mxu2 %v2135_v7  ;;  %v736_v4 = vand.u32 4294901760, %v735_v15  ;;  %v2330_v42 = vand.u32 4294901760, %v555_v29  ;;  %v616_v41 = vsub.f32 %v2313_v2, %v2323_v40  ;;  %v2725_v15 = vand.u32 4294901760, %v2184_v25 }
  0xce   : > { %883 = vmatmul.f32.vlgmr.msra.gmra.mxu3 %v2194_v43  ;;  %731 = vmatpush.msra.mxu1 %v730_v28  ;;  %v2727_v25 = vand.u32 4294901760, %v2241_v36  ;;  %v2728_v28 = vand.u32 4294901760, %v2265_v46 }
  0xcf   : > { %944 = vmatpush.msrb.mxu0 %v2130_v34  ;;  %1090 = vmatpush.msrb.mxu2 %v2157_v12  ;;  %v2347_v31 = vand.u32 4294901760, %v616_v41 }
  0xd0   : > { %1197 = vmatpush.msrb.mxu3 %v1196_v33  ;;  %737 = vmatpush.msra.mxu1 %v736_v4  ;;  %v2726_v33 = vand.u32 4294901760, %v2208_v54  ;;  %v494_v4 = vld [vmem:[#allocation2 + $0x30] sm:$0xff] }
  0xd1   : > { %948 = vmatpush.msrb.mxu0 %v2103_v48  ;;  %1092 = vmatpush.msrb.mxu2 %v2199_v52 }
  0xd2   : > { %1203 = vmatpush.msrb.mxu3 %v1202_v57  ;;  %610 = vmatmul.f32.gmra.mxu0 %v2318_v11  ;;  %v2343_v57 = vsub.f32 %v555_v29, %v2330_v42  ;;  %v2730_v29 = vand.u32 4294901760, %v2197_v47 }
  0xd3   : > { %739 = vmatmul.f32.vlgmr.msra.gmra.mxu1 %v2117_v53  ;;  %952 = vmatpush.msrb.mxu0 %v2123_v44 }
  0xd4   : > { %1019 = vmatpush.msrb.mxu1 %v2043_v16  ;;  %1094 = vmatpush.msrb.mxu2 %v2219_v58 }
  0xd5   : > { %1209 = vmatpush.msrb.mxu3 %v2100_v32  ;;  %818 = vmatmul.f32.gmra.mxu2 %v2244_v8  ;;  %v492_v32 = vld [vmem:[#allocation2 + $0x20] sm:$0xff] }
  0xd6   : > { %956 = vmatpush.msrb.mxu0 %v2115_v45  ;;  %1021 = vmatpush.msrb.mxu1 %v2030_v0  ;;  %v558_v1 = vsel %vm544_vm2, %v492_v32, 0  ;;  %v2732_v32 = vand.u32 4294901760, %v2255_v18 }
  0xd7   : > { %1096 = vmatpush.msrb.mxu2 %v2043_v16  ;;  %1215 = vmatpush.msrb.mxu3 %v2120_v30  ;;  %v2356_v30 = vand.u32 4294901760, %v2343_v57 }
  0xd8   : > { %889 = vmatmul.f32.gmra.mxu3 %v2280_v62  ;;  %960 = vmatpush.msrb.mxu0 %v2175_v21 }
  0xd9   : > { %1023 = vmatpush.msrb.mxu1 %v2094_v60  ;;  %1098 = vmatpush.msrb.mxu2 %v2030_v0 }
  0xda   : > { %1221 = vmatpush.msrb.mxu3 %v2172_v20  ;;  %964 = vmatpush.msrb.mxu0 %v2187_v26  ;;  %v2366_v20 = vand.u32 4294901760, %v558_v1 }
  0xdb   : > { %1025 = vmatpush.msrb.mxu1 %v2049_v17  ;;  %1100 = vmatpush.msrb.mxu2 %v2094_v60 }
  0xdc   : > { %1227 = vmatpush.msrb.mxu3 %v2181_v24  ;;  %618 = vmatmul.f32.gmra.mxu0 %v2347_v31  ;;  %v624_v24 = vsub.f32 %v2343_v57, %v2356_v30 }
  0xdd   : > { %743 = vmatmul.f32.gmra.mxu1 %v2210_v55  ;;  %968 = vmatpush.msrb.mxu0 %v2725_v15 }
  0xde   : > { %1027 = vmatpush.msrb.mxu1 %v2064_v22  ;;  %1102 = vmatpush.msrb.mxu2 %v2049_v17  ;;  %v2385_v54 = vand.u32 4294901760, %v624_v24 }
  0xdf   : > { %1233 = vmatpush.msrb.mxu3 %v2214_v56  ;;  %823 = vmatmul.f32.gmra.mxu2 %v2313_v2  ;;  %v2381_v56 = vsub.f32 %v558_v1, %v2366_v20  ;;  %v2548_v1 = vpop.permute.xlu1 %511 }
  0xe0   : > { %972 = vmatpush.msrb.mxu0 %v2726_v33  ;;  %1029 = vmatpush.msrb.mxu1 %v2041_v14 }
  0xe1   : > { %1104 = vmatpush.msrb.mxu2 %v2064_v22  ;;  %1239 = vmatpush.msrb.mxu3 %v2230_v63  ;;  %v561_v63 = vsel %vm544_vm2, %v493_v59, 0  ;;  %v2396_v36 = vand.u32 4294901760, %v2381_v56 }
  0xe2   : > { %895 = vmatmul.f32.gmra.mxu3 %v2323_v40  ;;  %976 = vmatpush.msrb.mxu0 %v2727_v25 }
  0xe3   : > { %1031 = vmatpush.msrb.mxu1 %v2096_v61  ;;  %1106 = vmatpush.msrb.mxu2 %v2041_v14  ;;  %v632_v46 = vsub.f32 %v2381_v56, %v2396_v36 }
  0xe4   : > { %1245 = vmatpush.msrb.mxu3 %v2248_v38  ;;  %980 = vmatpush.msrb.mxu0 %v2728_v28  ;;  %v2402_v38 = vand.u32 4294901760, %v561_v63 }
  0xe5   : > { %1033 = vmatpush.msrb.mxu1 %v2098_v35  ;;  %1108 = vmatpush.msrb.mxu2 %v2096_v61  ;;  %v2424_v41 = vand.u32 4294901760, %v632_v46 }
  0xe6   : > { %1251 = vmatpush.msrb.mxu3 %v2259_v5  ;;  %1291 = vmatpush.msra.mxu0 %v2178_v23  ;;  %v2729_v5 = vand.u32 4294901760, %v2178_v23  ;;  %v564_v23 = vsel %vm544_vm2, %v494_v4, 0 }
  0xe7   : > { %626 = vmatmul.f32.gmra.mxu0 %v2385_v54  ;;  %747 = vmatmul.f32.gmra.mxu1 %v2291_v39 }
  0xe8   : > { %1533 = vmatpush.msra.mxu3 %v2135_v7  ;;  %1110 = vmatpush.msrb.mxu2 %v2098_v35 }
  0xe9   : > { %1035 = vmatpush.msrb.mxu1 %v2142_v37  ;;  %1294 = vmatpush.msra.mxu0 %v2197_v47  ;;  %v2417_v37 = vsub.f32 %v561_v63, %v2402_v38 }
  0xea   : > { %1450 = vmatpush.msra.mxu2 %v2729_v5  ;;  %1535 = vmatpush.msra.mxu3 %v2157_v12  ;;  %v2558_v5 = vpop.permute.xlu2 %516 }
  0xeb   : > { %828 = vmatmul.f32.gmra.mxu2 %v2343_v57  ;;  %1037 = vmatpush.msrb.mxu1 %v2152_v10  ;;  %v2731_v10 = vand.u32 4294901760, %v2236_v3  ;;  %v2432_v47 = vand.u32 4294901760, %v2417_v37 }
  0xec   : > { %1297 = vmatpush.msra.mxu0 %v2236_v3  ;;  %1454 = vmatpush.msra.mxu2 %v2730_v29  ;;  %v495_v3 = vld [vmem:[#allocation2 + $0x38] sm:$0xff] }
  0xed   : > { %1537 = vmatpush.msra.mxu3 %v2199_v52  ;;  %1039 = vmatpush.msrb.mxu1 %v2204_v49  ;;  %v2434_v49 = vand.u32 4294901760, %v564_v23 }
  0xee   : > { %901 = vmatmul.f32.gmra.mxu3 %v2356_v30  ;;  %1300 = vmatpush.msra.mxu0 %v2255_v18  ;;  %v2738_v18 = vld [vmem:[#allocation9_spill] sm:$0xff] }
  0xef   : > { %1458 = vmatpush.msra.mxu2 %v2731_v10  ;;  %1539 = vmatpush.msra.mxu3 %v2219_v58 }
  0xf0   : > { %1041 = vmatpush.msrb.mxu1 %v2223_v19  ;;  %1303 = vmatpush.msra.mxu0 %v2060_v6  ;;  %v640_v6 = vsub.f32 %v2417_v37, %v2432_v47  ;;  %v567_v19 = vsel %vm544_vm2, %v495_v3, 0 }
  0xf1   : > { %1462 = vmatpush.msra.mxu2 %v2732_v32  ;;  %1541 = vmatpush.msra.mxu3 %v2043_v16 }
  0xf2   : > { %1371 = vmatpush.msra.mxu1 %v2135_v7  ;;  %634 = vmatmul.f32.gmra.mxu0 %v2424_v41  ;;  %v2448_v7 = vsub.f32 %v564_v23, %v2434_v49 }
  0xf3   : > { %751 = vmatmul.f32.gmra.mxu1 %v2330_v42  ;;  %1306 = vmatpush.msra.mxu0 %v2039_v13  ;;  %v2459_v13 = vand.u32 4294901760, %v640_v6 }
  0xf4   : > { %1373 = vmatpush.msra.mxu1 %v2157_v12  ;;  %1466 = vmatpush.msra.mxu2 %v2079_v50  ;;  %v2462_v50 = vand.u32 4294901760, %v2448_v7  ;;  %v2464_v12 = vand.u32 4294901760, %v567_v19 }
  0xf5   : > { %1543 = vmatpush.msra.mxu3 %v2030_v0  ;;  %833 = vmatmul.f32.gmra.mxu2 %v2381_v56 }
  0xf6   : > { %1309 = vmatpush.msra.mxu0 %v2112_v27  ;;  %1375 = vmatpush.msra.mxu1 %v2199_v52  ;;  %v2477_v27 = vsub.f32 %v567_v19, %v2464_v12 }
  0xf7   : > { %1470 = vmatpush.msra.mxu2 %v2067_v9  ;;  %1545 = vmatpush.msra.mxu3 %v2094_v60  ;;  %v2733_v9 = vld [vmem:[#allocation6_spill] sm:$0xff] }
  0xf8   : > { %907 = vmatmul.f32.gmra.mxu3 %v2396_v36  ;;  %1312 = vmatpush.msra.mxu0 %v2082_v51  ;;  %v648_v51 = vsub.f32 %v2448_v7, %v2462_v50  ;;  %v2488_v52 = vand.u32 4294901760, %v2477_v27 }
  0xf9   : > { %1377 = vmatpush.msra.mxu1 %v2219_v58  ;;  %1474 = vmatpush.msra.mxu2 %v2130_v34  ;;  %v2734_v34 = vld [vmem:[#allocation5_spill] sm:$0xff] }
  0xfa   : > { %1547 = vmatpush.msra.mxu3 %v2049_v17  ;;  %1315 = vmatpush.msra.mxu0 %v2733_v9 }
  0xfb   : > { %1379 = vmatpush.msra.mxu1 %v2043_v16  ;;  %1478 = vmatpush.msra.mxu2 %v2103_v48  ;;  %v2735_v16 = vld [vmem:[#allocation7_spill] sm:$0xff]  ;;  %v649_v48 = vand.u32 4294901760, %v648_v51 }
  0xfc   : > { %1549 = vmatpush.msra.mxu3 %v2064_v22  ;;  %642 = vmatmul.f32.gmra.mxu0 %v2459_v13 }
  0xfd   : > { %755 = vmatmul.f32.gmra.mxu1 %v2366_v20  ;;  %1318 = vmatpush.msra.mxu0 %v2734_v34 }
  0xfe   : > { %1381 = vmatpush.msra.mxu1 %v2030_v0  ;;  %1482 = vmatpush.msra.mxu2 %v2123_v44  ;;  %v2736_v0 = vld [vmem:[#allocation8_spill] sm:$0xff] }
  0xff   : > { %1551 = vmatpush.msra.mxu3 %v2041_v14  ;;  %838 = vmatmul.f32.gmra.mxu2 %v2417_v37 }
 0x100   : > { %1321 = vmatpush.msra.mxu0 %v2735_v16  ;;  %1383 = vmatpush.msra.mxu1 %v2094_v60  ;;  %v656_v60 = vsub.f32 %v2477_v27, %v2488_v52 }
 0x101   : > { %1486 = vmatpush.msra.mxu2 %v2115_v45  ;;  %1553 = vmatpush.msra.mxu3 %v2096_v61 }
 0x102   : > { %913 = vmatmul.f32.gmra.mxu3 %v2432_v47  ;;  %1324 = vmatpush.msra.mxu0 %v2736_v0  ;;  %v657_v45 = vand.u32 4294901760, %v656_v60 }
 0x103   : > { %1385 = vmatpush.msra.mxu1 %v2049_v17  ;;  %1490 = vmatpush.msra.mxu2 %v2175_v21 }
 0x104   : > { %1555 = vmatpush.msra.mxu3 %v2098_v35  ;;  %650 = vmatmul.f32.gmra.mxu0 %v649_v48 }
 0x105   : > { %1387 = vmatpush.msra.mxu1 %v2064_v22  ;;  %1494 = vmatpush.msra.mxu2 %v2187_v26  ;;  %v2538_v22 = vpop.permute.xlu0 %506 }
 0x106   : > { %759 = vmatmul.f32.gmra.mxu1 %v2402_v38 }
 0x107   : > { %1389 = vmatpush.msra.mxu1 %v2041_v14  ;;  %843 = vmatmul.f32.gmra.mxu2 %v2448_v7  ;;  %v2737_v14 = vld [vmem:[#allocation10_spill] sm:$0xff] }
 0x109   : > { %1391 = vmatpush.msra.mxu1 %v2096_v61 }
 0x10a   : > { %919 = vmatmul.f32.gmra.mxu3 %v2462_v50 }
 0x10b   : > { %1393 = vmatpush.msra.mxu1 %v2098_v35 }
 0x10c   : > { %658 = vmatmul.f32.gmra.mxu0 %v657_v45 }
 0x10e   : > { %763 = vmatmul.f32.gmra.mxu1 %v2434_v49 }
 0x10f   : > { %848 = vmatmul.f32.gmra.mxu2 %v2477_v27 }
 0x112   : > { %925 = vmatmul.f32.gmra.mxu3 %v2488_v52 }
 0x114   : > { %982 = vmatmul.f32.vlgmr.msrb.gmra.mxu0 %v2117_v53 }
 0x116   : > { %767 = vmatmul.f32.gmra.mxu1 %v2464_v12 }
 0x117   : > { %1116 = vmatmul.f32.vlgmr.msrb.gmra.mxu2 %v2737_v14 }
 0x11a   : > { %1253 = vmatmul.f32.vlgmr.msrb.gmra.mxu3 %v2117_v53 }
 0x11c   : > { %986 = vmatmul.f32.gmra.mxu0 %v2210_v55 }
 0x11e   : > { %1043 = vmatmul.f32.vlgmr.msrb.gmra.mxu1 %v2117_v53 }
 0x11f   : > { %1124 = vmatmul.f32.gmra.mxu2 %v2318_v11 }
 0x122   : > { %1257 = vmatmul.f32.gmra.mxu3 %v2210_v55 }
 0x124   : > { %990 = vmatmul.f32.gmra.mxu0 %v2291_v39 }
 0x126   : > { %1047 = vmatmul.f32.gmra.mxu1 %v2210_v55 }
 0x127   : > { %1132 = vmatmul.f32.gmra.mxu2 %v2347_v31 }
 0x12a   : > { %1261 = vmatmul.f32.gmra.mxu3 %v2291_v39 }
 0x12c   : > { %994 = vmatmul.f32.gmra.mxu0 %v2330_v42 }
 0x12e   : > { %1051 = vmatmul.f32.gmra.mxu1 %v2291_v39 }
 0x12f   : > { %1140 = vmatmul.f32.gmra.mxu2 %v2385_v54 }
 0x132   : > { %1265 = vmatmul.f32.gmra.mxu3 %v2330_v42 }
 0x134   : > { %998 = vmatmul.f32.gmra.mxu0 %v2366_v20 }
 0x136   : > { %1055 = vmatmul.f32.gmra.mxu1 %v2330_v42 }
 0x137   : > { %1148 = vmatmul.f32.gmra.mxu2 %v2424_v41 }
 0x13a   : > { %1269 = vmatmul.f32.gmra.mxu3 %v2366_v20 }
 0x13c   : > { %1002 = vmatmul.f32.gmra.mxu0 %v2402_v38 }
 0x13e   : > { %1059 = vmatmul.f32.gmra.mxu1 %v2366_v20 }
 0x13f   : > { %1156 = vmatmul.f32.gmra.mxu2 %v2459_v13 }
 0x142   : > { %1273 = vmatmul.f32.gmra.mxu3 %v2402_v38 }
 0x144   : > { %1006 = vmatmul.f32.gmra.mxu0 %v2434_v49 }
 0x146   : > { %1063 = vmatmul.f32.gmra.mxu1 %v2402_v38  ;;  %v603_v17 = vpop.f32.mrf.mxu0 }
 0x147   : > { %1164 = vmatmul.f32.gmra.mxu2 %v649_v48  ;;  %v604_v61 = vadd.f32 %v603_v17, %v2538_v22 }
 0x14a   : > { %1277 = vmatmul.f32.gmra.mxu3 %v2434_v49 }
 0x14c   : > { %1010 = vmatmul.f32.gmra.mxu0 %v2464_v12 }
 0x14e   : > { %1067 = vmatmul.f32.gmra.mxu1 %v2434_v49 }
 0x14f   : > { %1172 = vmatmul.f32.gmra.mxu2 %v657_v45  ;;  %v814_v44 = vpop.f32.mrf.mxu2  ;;  %v611_v11 = vpop.f32.mrf.mxu0 }
 0x150   : > { %v740_v35 = vpop.f32.mrf.mxu1  ;;  %v612_v15 = vadd.f32 %v611_v11, %v2548_v1 }
 0x151   : > { %v741_v21 = vadd.f32 %v740_v35, %v604_v61  ;;  %v884_v58 = vpop.f32.mrf.mxu3 }
 0x152   : > { %1281 = vmatmul.f32.gmra.mxu3 %v2464_v12 }
 0x153   : > { %v815_v26 = vadd.f32 %v814_v44, %v741_v21 }
 0x154   : > { %1327 = vmatmul.f32.vlgmr.msra.gmra.mxu0 %v2738_v18 }
 0x155   : > { %v2544_v31 = vadd.f32 %v884_v58, %v815_v26 }
 0x156   : > { %1071 = vmatmul.f32.gmra.mxu1 %v2464_v12 }
 0x157   : > { %1496 = vmatmul.f32.vlgmr.msra.gmra.mxu2 %v2117_v53 }
 0x158   : > { %v819_v33 = vpop.f32.mrf.mxu2 }
 0x159   : > { %v619_v25 = vpop.f32.mrf.mxu0 }
 0x15a   : > { %1557 = vmatmul.f32.vlgmr.msra.gmra.mxu3 %v2117_v53  ;;  %v744_v24 = vpop.f32.mrf.mxu1  ;;  %v620_v53 = vadd.f32 %v619_v25, %v2558_v5 }
 0x15b   : > { %v745_v59 = vadd.f32 %v744_v24, %v612_v15  ;;  %v890_v28 = vpop.f32.mrf.mxu3 }
 0x15c   : > { %1332 = vmatmul.f32.gmra.mxu0 %v2244_v8 }
 0x15d   : > { %v820_v54 = vadd.f32 %v819_v33, %v745_v59 }
 0x15e   : > { %1397 = vmatmul.f32.vlgmr.msra.gmra.mxu1 %v2194_v43 }
 0x15f   : > { %1500 = vmatmul.f32.gmra.mxu2 %v2210_v55  ;;  %v2555_v63 = vadd.f32 %v890_v28, %v820_v54 }
 0x162   : > { %1561 = vmatmul.f32.gmra.mxu3 %v2210_v55  ;;  %v824_v46 = vpop.f32.mrf.mxu2  ;;  %v2568_v55 = vpop.permute.xlu0 %521 }
 0x164   : > { %1337 = vmatmul.f32.gmra.mxu0 %v2313_v2  ;;  %v627_v4 = vpop.f32.mrf.mxu0  ;;  %v748_v29 = vpop.f32.mrf.mxu1 }
 0x165   : > { %v749_v8 = vadd.f32 %v748_v29, %v620_v53  ;;  %v896_v43 = vpop.f32.mrf.mxu3  ;;  %v628_v10 = vadd.f32 %v627_v4, %v2568_v55 }
 0x166   : > { %1403 = vmatmul.f32.gmra.mxu1 %v2280_v62 }
 0x167   : > { %1504 = vmatmul.f32.gmra.mxu2 %v2291_v39  ;;  %v825_v23 = vadd.f32 %v824_v46, %v749_v8 }
 0x169   : > { %v2565_v41 = vadd.f32 %v896_v43, %v825_v23 }
 0x16a   : > { %1565 = vmatmul.f32.gmra.mxu3 %v2291_v39  ;;  %v2593_v17 = vpop.permute.xlu0 %536 }
 0x16c   : > { %1342 = vmatmul.f32.gmra.mxu0 %v2343_v57 }
 0x16e   : > { %1409 = vmatmul.f32.gmra.mxu1 %v2323_v40  ;;  %v829_v2 = vpop.f32.mrf.mxu2  ;;  %v2579_v40 = vpop.permute.xlu1 %526 }
 0x16f   : > { %1508 = vmatmul.f32.gmra.mxu2 %v2330_v42  ;;  %v635_v62 = vpop.f32.mrf.mxu0 }
 0x170   : > { %v752_v32 = vpop.f32.mrf.mxu1  ;;  %v636_v13 = vadd.f32 %v635_v62, %v2579_v40 }
 0x171   : > { %v753_v3 = vadd.f32 %v752_v32, %v628_v10  ;;  %v902_v6 = vpop.f32.mrf.mxu3 }
 0x172   : > { %1569 = vmatmul.f32.gmra.mxu3 %v2330_v42 }
 0x173   : > { %v830_v39 = vadd.f32 %v829_v2, %v753_v3 }
 0x174   : > { %1347 = vmatmul.f32.gmra.mxu0 %v2381_v56 }
 0x175   : > { %v2575_v19 = vadd.f32 %v902_v6, %v830_v39 }
 0x176   : > { %1415 = vmatmul.f32.gmra.mxu1 %v2356_v30  ;;  %v2586_v30 = vpop.permute.xlu2 %531  ;;  %v2600_v26 = vpop.permute.xlu1 %541 }
 0x177   : > { %1512 = vmatmul.f32.gmra.mxu2 %v2366_v20 }
 0x178   : > { %v834_v57 = vpop.f32.mrf.mxu2 }
 0x179   : > { %v643_v9 = vpop.f32.mrf.mxu0 }
 0x17a   : > { %v756_v51 = vpop.f32.mrf.mxu1  ;;  %1573 = vmatmul.f32.gmra.mxu3 %v2366_v20  ;;  %v644_v0 = vadd.f32 %v643_v9, %v2586_v30 }
 0x17b   : > { %v757_v34 = vadd.f32 %v756_v51, %v636_v13  ;;  %v908_v42 = vpop.f32.mrf.mxu3 }
 0x17c   : > { %1352 = vmatmul.f32.gmra.mxu0 %v2417_v37 }
 0x17d   : > { %v835_v56 = vadd.f32 %v834_v57, %v757_v34 }
 0x17e   : > { %1421 = vmatmul.f32.gmra.mxu1 %v2396_v36 }
 0x17f   : > { %v909_v16 = vadd.f32 %v908_v42, %v835_v56  ;;  %1516 = vmatmul.f32.gmra.mxu2 %v2402_v38 }
 0x181   : > { %v651_v48 = vpop.f32.mrf.mxu0 }
 0x182   : > { %v839_v60 = vpop.f32.mrf.mxu2  ;;  %1577 = vmatmul.f32.gmra.mxu3 %v2402_v38  ;;  %v652_v35 = vadd.f32 %v651_v48, %v2593_v17 }
 0x183   : > { %v760_v45 = vpop.f32.mrf.mxu1 }
 0x184   : > { %v761_v20 = vadd.f32 %v760_v45, %v644_v0  ;;  %1357 = vmatmul.f32.gmra.mxu0 %v2448_v7 }
 0x185   : > { %v914_v14 = vpop.f32.mrf.mxu3 }
 0x186   : > { %v840_v37 = vadd.f32 %v839_v60, %v761_v20  ;;  %1427 = vmatmul.f32.gmra.mxu1 %v2432_v47 }
 0x187   : > { %1520 = vmatmul.f32.gmra.mxu2 %v2434_v49 }
 0x188   : > { %v915_v36 = vadd.f32 %v914_v14, %v840_v37 }
 0x189   : > { %v659_v61 = vpop.f32.mrf.mxu0 }
 0x18a   : > { %v844_v44 = vpop.f32.mrf.mxu2  ;;  %1581 = vmatmul.f32.gmra.mxu3 %v2434_v49  ;;  %v660_v18 = vadd.f32 %v659_v61, %v2600_v26 }
 0x18b   : > { %v764_v38 = vpop.f32.mrf.mxu1 }
 0x18c   : > { %v765_v11 = vadd.f32 %v764_v38, %v652_v35  ;;  %1362 = vmatmul.f32.gmra.mxu0 %v2477_v27 }
 0x18d   : > { %v920_v7 = vpop.f32.mrf.mxu3 }
 0x18e   : > { %v845_v21 = vadd.f32 %v844_v44, %v765_v11  ;;  %1433 = vmatmul.f32.gmra.mxu1 %v2462_v50 }
 0x18f   : > { %1524 = vmatmul.f32.gmra.mxu2 %v2464_v12 }
 0x190   : > { %v921_v47 = vadd.f32 %v920_v7, %v845_v21 }
 0x191   : > { %v983_v58 = vpop.f32.mrf.mxu0 }
 0x192   : > { %v849_v15 = vpop.f32.mrf.mxu2  ;;  %v984_v24 = vadd.f32 %v983_v58, %v2544_v31  ;;  %1585 = vmatmul.f32.gmra.mxu3 %v2464_v12 }
 0x193   : > { %v768_v49 = vpop.f32.mrf.mxu1 }
 0x194   : > { %v769_v33 = vadd.f32 %v768_v49, %v660_v18 }
 0x195   : > { %v926_v27 = vpop.f32.mrf.mxu3 }
 0x196   : > { %v850_v25 = vadd.f32 %v849_v15, %v769_v33  ;;  %1439 = vmatmul.f32.gmra.mxu1 %v2488_v52 }
 0x198   : > { %v927_v50 = vadd.f32 %v926_v27, %v850_v25 }
 0x199   : > { %v987_v59 = vpop.f32.mrf.mxu0 }
 0x19a   : > { %v988_v54 = vadd.f32 %v987_v59, %v2555_v63  ;;  %v1117_v28 = vpop.f32.mrf.mxu2 }
 0x19b   : > { %v1044_v53 = vpop.f32.mrf.mxu1  ;;  %v1118_v21 = vadd.f32 %v1117_v28, %v2538_v22 }
 0x19c   : > { %v2607_v46 = vadd.f32 %v1044_v53, %v984_v24 }
 0x19d   : > { %v1254_v4 = vpop.f32.mrf.mxu3 }
 0x19e   : > { %v1255_v18 = vadd.f32 %v1254_v4, %v1118_v21  ;;  %v1075_v22 = vmax.f32 %v2607_v46, 0.0 }
 0x1a1   : > { %v991_v29 = vpop.f32.mrf.mxu0 }
 0x1a2   : > { %v992_v31 = vadd.f32 %v991_v29, %v2565_v41  ;;  %v1125_v8 = vpop.f32.mrf.mxu2 }
 0x1a3   : > { %v1048_v12 = vpop.f32.mrf.mxu1  ;;  %v1126_v27 = vadd.f32 %v1125_v8, %v2548_v1 }
 0x1a4   : > { %v2610_v43 = vadd.f32 %v1048_v12, %v988_v54 }
 0x1a5   : > { %v1258_v23 = vpop.f32.mrf.mxu3 }
 0x1a6   : > { %v1259_v54 = vadd.f32 %v1258_v23, %v1126_v27 }
 0x1a9   : > { %v995_v2 = vpop.f32.mrf.mxu0 }
 0x1aa   : > { %v996_v52 = vadd.f32 %v995_v2, %v2575_v19  ;;  %v1133_v10 = vpop.f32.mrf.mxu2 }
 0x1ab   : > { %v1052_v62 = vpop.f32.mrf.mxu1  ;;  %v1134_v4 = vadd.f32 %v1133_v10, %v2558_v5 }
 0x1ac   : > { %v2613_v32 = vadd.f32 %v1052_v62, %v992_v31 }
 0x1ad   : > { %v1262_v63 = vpop.f32.mrf.mxu3 }
 0x1b1   : > { %v999_v3 = vpop.f32.mrf.mxu0 }
 0x1b2   : > { %v1000_v6 = vadd.f32 %v999_v3, %v909_v16  ;;  %v1141_v39 = vpop.f32.mrf.mxu2 }
 0x1b3   : > { %v1056_v57 = vpop.f32.mrf.mxu1 }
 0x1b4   : > { %v2615_v13 = vadd.f32 %v1056_v57, %v996_v52  ;;  %v1263_v52 = vadd.f32 %v1262_v63, %v1134_v4 }
 0x1b5   : > { %v2617_v41 = vpop.f32.mrf.mxu3 }
 0x1b9   : > { %v1003_v9 = vpop.f32.mrf.mxu0 }
 0x1ba   : > { %v1004_v51 = vadd.f32 %v1003_v9, %v915_v36  ;;  %v2619_v34 = vpop.f32.mrf.mxu2 }
 0x1bb   : > { %v1060_v42 = vpop.f32.mrf.mxu1 }
 0x1bc   : > { %v2621_v56 = vadd.f32 %v1060_v42, %v1000_v6  ;;  %v1076_v6 = vmax.f32 %v2610_v43, 0.0 }
 0x1bd   : > { %v2623_v19 = vpop.f32.mrf.mxu3 }
 0x1c1   : > { %v1007_v48 = vpop.f32.mrf.mxu0 }
 0x1c2   : > { %v1008_v0 = vadd.f32 %v1007_v48, %v921_v47  ;;  %v2625_v60 = vpop.f32.mrf.mxu2  ;;  %v1142_v48 = vadd.f32 %v1141_v39, %v2568_v55  ;;  %v1150_v55 = vadd.f32 %v2619_v34, %v2579_v40 }
 0x1c3   : > { %v1064_v16 = vpop.f32.mrf.mxu1  ;;  %v1158_v40 = vadd.f32 %v2625_v60, %v2586_v30 }
 0x1c4   : > { %v2627_v45 = vadd.f32 %v1064_v16, %v1004_v51 }
 0x1c5   : > { %v2629_v20 = vpop.f32.mrf.mxu3 }
 0x1c9   : > { %v1011_v14 = vpop.f32.mrf.mxu0 }
 0x1ca   : > { %v1012_v37 = vadd.f32 %v1011_v14, %v927_v50  ;;  %v2631_v61 = vpop.f32.mrf.mxu2  ;;  %v1267_v14 = vadd.f32 %v2617_v41, %v1142_v48  ;;  %v1271_v41 = vadd.f32 %v2623_v19, %v1150_v55  ;;  %v1275_v19 = vadd.f32 %v2629_v20, %v1158_v40 }
 0x1cb   : > { %v1068_v36 = vpop.f32.mrf.mxu1  ;;  %v1166_v4 = vadd.f32 %v2631_v61, %v2593_v17 }
 0x1cc   : > { %v2633_v35 = vadd.f32 %v1068_v36, %v1008_v0  ;;  %v1077_v36 = vmax.f32 %v2613_v32, 0.0 }
 0x1cd   : > { %v2635_v44 = vpop.f32.mrf.mxu3 }
 0x1ce   : > { %v1279_v20 = vadd.f32 %v2635_v44, %v1166_v4 }
 0x1d1   : > { %v1328_v38 = vpop.f32.mrf.mxu0 }
 0x1d2   : > { %v2637_v11 = vpop.f32.mrf.mxu2  ;;  %v1329_v24 = vadd.f32 %v1328_v38, %v1255_v18 }
 0x1d3   : > { %v1072_v7 = vpop.f32.mrf.mxu1  ;;  %v1174_v17 = vadd.f32 %v2637_v11, %v2600_v26 }
 0x1d4   : > { %v2640_v47 = vadd.f32 %v1072_v7, %v1012_v37 }
 0x1d5   : > { %v2642_v58 = vpop.f32.mrf.mxu3 }
 0x1d6   : > { %v1283_v44 = vadd.f32 %v2642_v58, %v1174_v17 }
 0x1d9   : > { %v1333_v15 = vpop.f32.mrf.mxu0 }
 0x1da   : > { %v1497_v49 = vpop.f32.mrf.mxu2  ;;  %v1334_v28 = vadd.f32 %v1333_v15, %v1259_v54 }
 0x1db   : > { %v1398_v33 = vpop.f32.mrf.mxu1 }
 0x1dc   : > { %v1399_v25 = vadd.f32 %v1398_v33, %v1329_v24  ;;  %v1078_v33 = vmax.f32 %v2615_v13, 0.0  ;;  %v1079_v13 = vmax.f32 %v2621_v56, 0.0  ;;  %v1080_v56 = vmax.f32 %v2627_v45, 0.0 }
 0x1dd   : > { %v1558_v50 = vpop.f32.mrf.mxu3  ;;  %v1081_v45 = vmax.f32 %v2633_v35, 0.0 }
 0x1de   : > { %v1498_v59 = vadd.f32 %v1497_v49, %v1399_v25 }
 0x1e0   : > { %v1559_v53 = vadd.f32 %v1558_v50, %v1498_v59 }
 0x1e1   : > { %v1338_v29 = vpop.f32.mrf.mxu0 }
 0x1e2   : > { %v1589_v31 = vmax.f32 %v1559_v53, 0.0  ;;  %v1501_v12 = vpop.f32.mrf.mxu2  ;;  %v1339_v57 = vadd.f32 %v1338_v29, %v1263_v52 }
 0x1e3   : > { %v1404_v1 = vpop.f32.mrf.mxu1 }
 0x1e4   : > { %v1597_v8 = vmax.f32 %v1075_v22, %v1589_v31  ;;  %v1405_v23 = vadd.f32 %v1404_v1, %v1334_v28 }
 0x1e5   : > { %v1562_v2 = vpop.f32.mrf.mxu3 }
 0x1e6   : > { %1606 = vst.msk [vmem:[%s2650_s27] sm:$0xff] %vm1605_vm3, %v1597_v8  ;;  %v1502_v46 = vadd.f32 %v1501_v12, %v1405_v23 }
 0x1e8   : > { %v1563_v62 = vadd.f32 %v1562_v2, %v1502_v46 }
 0x1e9   : > { %v1343_v3 = vpop.f32.mrf.mxu0 }
 0x1ea   : > { %v1590_v9 = vmax.f32 %v1563_v62, 0.0  ;;  %v1505_v51 = vpop.f32.mrf.mxu2  ;;  %v1344_v43 = vadd.f32 %v1343_v3, %v1267_v14 }
 0x1eb   : > { %v1410_v42 = vpop.f32.mrf.mxu1 }
 0x1ec   : > { %v1598_v0 = vmax.f32 %v1076_v6, %v1590_v9  ;;  %v1411_v5 = vadd.f32 %v1410_v42, %v1339_v57 }
 0x1ed   : > { %v1566_v10 = vpop.f32.mrf.mxu3 }
 0x1ee   : > { %1607 = vst.msk [vmem:[%s2650_s27 + $0x8] sm:$0xff] %vm1605_vm3, %v1598_v0  ;;  %v1506_v16 = vadd.f32 %v1505_v51, %v1411_v5 }
 0x1f0   : > { %v1567_v63 = vadd.f32 %v1566_v10, %v1506_v16 }
 0x1f1   : > { %v1348_v37 = vpop.f32.mrf.mxu0 }
 0x1f2   : > { %v1591_v38 = vmax.f32 %v1567_v63, 0.0  ;;  %v1509_v7 = vpop.f32.mrf.mxu2  ;;  %v1349_v32 = vadd.f32 %v1348_v37, %v1271_v41 }
 0x1f3   : > { %v1416_v21 = vpop.f32.mrf.mxu1 }
 0x1f4   : > { %v1599_v39 = vmax.f32 %v1077_v36, %v1591_v38  ;;  %v1417_v18 = vadd.f32 %v1416_v21, %v1344_v43  ;;  %v1082_v36 = vmax.f32 %v2640_v47, 0.0 }
 0x1f5   : > { %v1570_v15 = vpop.f32.mrf.mxu3 }
 0x1f6   : > { %1608 = vst.msk [vmem:[%s2650_s27 + $0x10] sm:$0xff] %vm1605_vm3, %v1599_v39  ;;  %v1510_v24 = vadd.f32 %v1509_v7, %v1417_v18 }
 0x1f8   : > { %v1571_v49 = vadd.f32 %v1570_v15, %v1510_v24 }
 0x1f9   : > { %v1353_v50 = vpop.f32.mrf.mxu0 }
 0x1fa   : > { %v1592_v27 = vmax.f32 %v1571_v49, 0.0  ;;  %v1513_v25 = vpop.f32.mrf.mxu2  ;;  %v1354_v28 = vadd.f32 %v1353_v50, %v1275_v19 }
 0x1fb   : > { %v1422_v59 = vpop.f32.mrf.mxu1 }
 0x1fc   : > { %v1600_v34 = vmax.f32 %v1078_v33, %v1592_v27  ;;  %v1423_v54 = vadd.f32 %v1422_v59, %v1349_v32 }
 0x1fd   : > { %v1574_v53 = vpop.f32.mrf.mxu3 }
 0x1fe   : > { %1609 = vst.msk [vmem:[%s2650_s27 + $0x18] sm:$0xff] %vm1605_vm3, %v1600_v34  ;;  %v1514_v29 = vadd.f32 %v1513_v25, %v1423_v54 }
 0x200   : > { %v1575_v22 = vadd.f32 %v1574_v53, %v1514_v29 }
 0x201   : > { %v1358_v8 = vpop.f32.mrf.mxu0 }
 0x202   : > { %v1593_v31 = vmax.f32 %v1575_v22, 0.0  ;;  %v1517_v12 = vpop.f32.mrf.mxu2  ;;  %v1359_v52 = vadd.f32 %v1358_v8, %v1279_v20 }
 0x203   : > { %v1428_v1 = vpop.f32.mrf.mxu1 }
 0x204   : > { %v1601_v30 = vmax.f32 %v1079_v13, %v1593_v31  ;;  %v1429_v60 = vadd.f32 %v1428_v1, %v1354_v28 }
 0x205   : > { %v1578_v23 = vpop.f32.mrf.mxu3 }
 0x206   : > { %1610 = vst.msk [vmem:[%s2650_s27 + $0x20] sm:$0xff] %vm1605_vm3, %v1601_v30  ;;  %v1518_v2 = vadd.f32 %v1517_v12, %v1429_v60 }
 0x208   : > { %v1579_v46 = vadd.f32 %v1578_v23, %v1518_v2 }
 0x209   : > { %v1363_v42 = vpop.f32.mrf.mxu0 }
 0x20a   : > { %v1594_v62 = vmax.f32 %v1579_v46, 0.0  ;;  %v1521_v3 = vpop.f32.mrf.mxu2  ;;  %v1364_v0 = vadd.f32 %v1363_v42, %v1283_v44 }
 0x20b   : > { %v1434_v6 = vpop.f32.mrf.mxu1 }
 0x20c   : > { %v1602_v61 = vmax.f32 %v1080_v56, %v1594_v62  ;;  %v1435_v57 = vadd.f32 %v1434_v6, %v1359_v52 }
 0x20d   : > { %v1582_v9 = vpop.f32.mrf.mxu3 }
 0x20e   : > { %1611 = vst.msk [vmem:[%s2650_s27 + $0x28] sm:$0xff] %vm1605_vm3, %v1602_v61  ;;  %v1522_v51 = vadd.f32 %v1521_v3, %v1435_v57 }
 0x210   : > { %v1583_v48 = vadd.f32 %v1582_v9, %v1522_v51 }
 0x212   : > { %v1595_v5 = vmax.f32 %v1583_v48, 0.0  ;;  %v1525_v16 = vpop.f32.mrf.mxu2 }
 0x213   : > { %v1440_v10 = vpop.f32.mrf.mxu1 }
 0x214   : > { %v1603_v14 = vmax.f32 %v1081_v45, %v1595_v5  ;;  %v1441_v26 = vadd.f32 %v1440_v10, %v1364_v0 }
 0x215   : > { %v1586_v11 = vpop.f32.mrf.mxu3 }
 0x216   : > { %1612 = vst.msk [vmem:[%s2650_s27 + $0x30] sm:$0xff] %vm1605_vm3, %v1603_v14  ;;  %v1526_v63 = vadd.f32 %v1525_v16, %v1441_v26 }
 0x218   : > { %v1587_v37 = vadd.f32 %v1586_v11, %v1526_v63 }
 0x21a   : > { %v1596_v43 = vmax.f32 %v1587_v37, 0.0 }
 0x21c   : > { %v1604_v38 = vmax.f32 %v1082_v36, %v1596_v43 }
 0x21e   : > { %1613 = vst.msk [vmem:[%s2650_s27 + $0x38] sm:$0xff] %vm1605_vm3, %v1604_v38 }
 0x21f PF: > { %s16_s20 = sadd.s32 1, %s1825_s20   ;;  %s2739_s18 = smov %s1821_s19 }
 0x220   : > { %p13_p8 = scmp.ge.s32.totalorder %s16_s20, 4   ;;  %s2740_s19 = smov %s2742_s22 }
 0x222   :  { %15 = sbr.rel (!%p13_p8) target bundleno = 2 (0x2), region = 75 }
 0x227   :  { %1641 = vsyncpa [#allocation3], 1 }
 0x228   :  { %1643 = vsyncpa [#allocation3 + $0x1], 1 }

// kernel: autoencoder_forward.5
= control target key start
LH: loop header
LB: loop body
LE: loop exit
PB: predicated region body
PF: predicated region fallthrough
CT: control target
= control target key end

     0   :  { %s1721_s12 = smov 0   ;;  %s2835_s0 = inlined_call_operand.vmem [shape: f32[2,2560], index: 0, kind: input, shape index: {}]   ;;  %s2836_s1 = inlined_call_operand.vmem [shape: f32[2560,32], index: 1, kind: input, shape index: {}]   ;;  %s2837_s2 = inlined_call_operand.vmem [shape: f32[1,32], index: 2, kind: input, shape index: {}]   ;;  %s2838_s3 = inlined_call_operand.vmem [shape: f32[2,32], index: 3, kind: output, shape index: {}]  }
   0x1 LB: > { %s1673_s13 = sadd.s32 4294967295, %s1699_s12   ;;  %p1676_p0 = scmp.ge.s32.totalorder %s1699_s12, 1  ;;  %s1699_s12 = sphi %s1721_s12, %s13_s12  }
   0x2   : > { %p144_p1 = scmp.lt.s32.totalorder %s1699_s12, 6 }
   0x4   : > { %p145_p2 = pnand %p1676_p0, %p144_p1 }
   0x6   : > { %148 = sbr.rel (%p145_p2) target bundleno = 370 (0x172), region = 32 }
   0xb   : > { %s1677_s14 = sshll.u32 %s1673_s13, 2  ;;  %s1679_s15 = sshll.u32 %s1673_s13, 6 }
   0xc   : > { %p169_p3 = scmp.lt.s32.totalorder %s1677_s14, 19  ;;  %p175_p4 = scmp.lt.s32.totalorder %s1679_s15, 319 }
   0xd   : > { %p1681_p5 = scmp.ne.s32.totalorder %s1673_s13, 0 }
   0xe   : > { %s2943_s14 = smov (!%p169_p3, %s1677_s14), 19  ;;  %s2945_s15 = smov (!%p175_p4, %s1679_s15), 319 }
   0xf   : > { %s1678_s16 = sshll.u32 %s2943_s14, 1  ;;  %s1680_s20 = sshll.u32 %s2945_s15, 3 }
  0x10   : > { %s1732_s19 = scalar_lea.vmem %s2835_s0, %s1678_s16  ;;  %s1737_s23 = scalar_lea.vmem %s2836_s1, %s1680_s20 }
  0x11   : > { %183 = sbr.rel (%p1681_p5) target bundleno = 24 (0x18), region = 36 }
  0x16   : > { %v1692_v0 = vld [vmem:[%s2837_s2] ss:$0 sm:$0xff]  ;;  %vm188_vm0 = vcmask 254976  }
  0x17   : > { %189 = vst.msk [vmem:[%s2838_s3] sm:$0x3] %vm188_vm0, %v1692_v0 }
  0x18 PF: > { %v207_v1 = vld [vmem:[%s1737_s23 + $0x78] sm:$0xff]  ;;  %v206_v2 = vld [vmem:[%s1737_s23 + $0x70] sm:$0xff]  ;;  %v205_v3 = vld [vmem:[%s1737_s23 + $0x68] sm:$0xff]  ;;  %vm1631_vm1 = vcmask 254976  }
  0x19   : > { %v1748_v4 = vand.u32 4294901760, %v207_v1  ;;  %v1750_v5 = vand.u32 4294901760, %v206_v2  ;;  %v1752_v6 = vand.u32 4294901760, %v205_v3  ;;  %v204_v7 = vld [vmem:[%s1737_s23 + $0x60] sm:$0xff]  ;;  %v203_v8 = vld [vmem:[%s1737_s23 + $0x58] sm:$0xff]  ;;  %v202_v9 = vld [vmem:[%s1737_s23 + $0x50] sm:$0xff] }
  0x1a   : > { %v1757_v10 = vand.u32 4294901760, %v204_v7  ;;  %v1759_v11 = vand.u32 4294901760, %v203_v8  ;;  %v1761_v12 = vand.u32 4294901760, %v202_v9  ;;  %v201_v13 = vld [vmem:[%s1737_s23 + $0x48] sm:$0xff]  ;;  %v200_v14 = vld [vmem:[%s1737_s23 + $0x40] sm:$0xff]  ;;  %v199_v19 = vld [vmem:[%s1737_s23 + $0x38] sm:$0xff] }
  0x1b   : > { %267 = vmatpush.msra.mxu0 %v1748_v4  ;;  %v1767_v15 = vsub.f32 %v207_v1, %v1748_v4  ;;  %v1770_v16 = vsub.f32 %v206_v2, %v1750_v5  ;;  %463 = vmatpush.msra.mxu3 %v1748_v4  ;;  %v1774_v17 = vsub.f32 %v205_v3, %v1752_v6  ;;  %v1776_v18 = vand.u32 4294901760, %v201_v13  ;;  %v198_v27 = vld [vmem:[%s1737_s23 + $0x30] sm:$0xff]  ;;  %v197_v35 = vld [vmem:[%s1737_s23 + $0x28] sm:$0xff]  ;;  %v196_v43 = vld [vmem:[%s1737_s23 + $0x20] sm:$0xff] }
  0x1c   : > { %v1780_v20 = vsub.f32 %v204_v7, %v1757_v10  ;;  %v1783_v21 = vsub.f32 %v203_v8, %v1759_v11  ;;  %v1786_v22 = vsub.f32 %v202_v9, %v1761_v12  ;;  %v1793_v26 = vand.u32 4294901760, %v200_v14  ;;  %v195_v49 = vld [vmem:[%s1737_s23 + $0x18] sm:$0xff]  ;;  %v194_v55 = vld [vmem:[%s1737_s23 + $0x10] sm:$0xff]  ;;  %v191_v56 = vld [vmem:[%s1732_s19] sm:$0xff] }
  0x1d   : > { %269 = vmatpush.msra.mxu0 %v1750_v5  ;;  %410 = vmatpush.msra.mxu2 %v1767_v15  ;;  %v309_v23 = vand.u32 4294901760, %v1767_v15  ;;  %v2854_v24 = vand.u32 4294901760, %v1770_v16  ;;  %v2852_v25 = vand.u32 4294901760, %v1774_v17  ;;  %v1798_v29 = vand.u32 4294901760, %v199_v19  ;;  %v223_v61 = vld [vmem:[%s1737_s23 + $0xf8] sm:$0xff]  ;;  %v193_v63 = vld [vmem:[%s1737_s23 + $0x8] sm:$0xff] }
  0x1e   : > { %465 = vmatpush.msra.mxu3 %v1750_v5  ;;  %v2851_v28 = vand.u32 4294901760, %v1780_v20  ;;  %v1801_v30 = vsub.f32 %v201_v13, %v1776_v18  ;;  %v2848_v34 = vand.u32 4294901760, %v1783_v21  ;;  %v1817_v36 = vand.u32 4294901760, %v198_v27  ;;  %257 = vst [vmem:[#allocation1] ss:$4 sm:$0xff] %v191_v56  ;;  %v192_v7 = vld [vmem:[%s1737_s23] sm:$0xff] }
  0x1f   : > { %271 = vmatpush.msra.mxu0 %v1752_v6  ;;  %413 = vmatpush.msra.mxu2 %v1770_v16  ;;  %v310_v31 = vsub.f32 %v1767_v15, %v309_v23  ;;  %v316_v32 = vsub.f32 %v1770_v16, %v2854_v24  ;;  %v322_v33 = vsub.f32 %v1774_v17, %v2852_v25  ;;  %v2847_v37 = vand.u32 4294901760, %v1786_v22  ;;  %v222_v8 = vld [vmem:[%s1737_s23 + $0xf0] sm:$0xff] }
  0x20   : > { %467 = vmatpush.msra.mxu3 %v1752_v6  ;;  %v328_v40 = vsub.f32 %v1780_v20, %v2851_v28  ;;  %v1826_v41 = vsub.f32 %v200_v14, %v1793_v26  ;;  %v1829_v42 = vand.u32 4294901760, %v197_v35  ;;  %v334_v45 = vsub.f32 %v1783_v21, %v2848_v34 }
  0x21   : > { %273 = vmatpush.msra.mxu0 %v1757_v10  ;;  %v311_v38 = vand.u32 4294901760, %v310_v31  ;;  %416 = vmatpush.msra.mxu2 %v1774_v17  ;;  %v317_v39 = vand.u32 4294901760, %v316_v32  ;;  %v323_v44 = vand.u32 4294901760, %v322_v33  ;;  %v2845_v46 = vand.u32 4294901760, %v1801_v30 }
  0x22   : > { %469 = vmatpush.msra.mxu3 %v1757_v10  ;;  %v1838_v47 = vsub.f32 %v199_v19, %v1798_v29  ;;  %v340_v48 = vsub.f32 %v1786_v22, %v2847_v37  ;;  %v329_v50 = vand.u32 4294901760, %v328_v40  ;;  %v1847_v51 = vand.u32 4294901760, %v196_v43 }
  0x23   : > { %275 = vmatpush.msra.mxu0 %v1759_v11  ;;  %312 = vmatpush.msra.mxu1 %v311_v38  ;;  %v2844_v52 = vand.u32 4294901760, %v1826_v41  ;;  %v1851_v53 = vsub.f32 %v198_v27, %v1817_v36  ;;  %v1856_v54 = vsub.f32 %v197_v35, %v1829_v42  ;;  %v335_v57 = vand.u32 4294901760, %v334_v45  ;;  %v221_v35 = vld [vmem:[%s1737_s23 + $0xe8] sm:$0xff] }
  0x24   : > { %419 = vmatpush.msra.mxu2 %v1780_v20  ;;  %471 = vmatpush.msra.mxu3 %v1759_v11  ;;  %v346_v58 = vsub.f32 %v1801_v30, %v2845_v46  ;;  %v1864_v59 = vand.u32 4294901760, %v195_v49  ;;  %v2843_v60 = vand.u32 4294901760, %v1838_v47  ;;  %v341_v62 = vand.u32 4294901760, %v340_v48  ;;  %v220_v48 = vld [vmem:[%s1737_s23 + $0xe0] sm:$0xff] }
  0x25   : > { %277 = vmatpush.msra.mxu0 %v1761_v12  ;;  %318 = vmatpush.msra.mxu1 %v317_v39  ;;  %v352_v0 = vsub.f32 %v1826_v41, %v2844_v52  ;;  %v1875_v1 = vand.u32 4294901760, %v194_v55  ;;  %v2841_v2 = vand.u32 4294901760, %v1851_v53  ;;  %v1879_v3 = vsub.f32 %v196_v43, %v1847_v51  ;;  %v216_v46 = vld [vmem:[%s1737_s23 + $0xc0] sm:$0xff] }
  0x26   : > { %422 = vmatpush.msra.mxu2 %v1783_v21  ;;  %473 = vmatpush.msra.mxu3 %v1761_v12  ;;  %v2840_v9 = vand.u32 4294901760, %v1856_v54  ;;  %v1886_v13 = vand.u32 4294901760, %v223_v61  ;;  %v347_v14 = vand.u32 4294901760, %v346_v58  ;;  %v358_v19 = vsub.f32 %v1838_v47, %v2843_v60 }
  0x27   : > { %279 = vmatpush.msra.mxu0 %v1776_v18  ;;  %324 = vmatpush.msra.mxu1 %v323_v44  ;;  %v1892_v27 = vand.u32 4294901760, %v193_v63  ;;  %v1895_v31 = vsub.f32 %v195_v49, %v1864_v59  ;;  %v1899_v32 = vand.u32 4294901760, %v192_v7  ;;  %v1901_v33 = vand.u32 4294901760, %v222_v8 }
  0x28   : > { %425 = vmatpush.msra.mxu2 %v1786_v22  ;;  %475 = vmatpush.msra.mxu3 %v1776_v18  ;;  %v353_v38 = vand.u32 4294901760, %v352_v0  ;;  %v364_v39 = vsub.f32 %v1851_v53, %v2841_v2  ;;  %v2839_v40 = vand.u32 4294901760, %v1879_v3  ;;  %v1910_v43 = vsub.f32 %v194_v55, %v1875_v1 }
  0x29   : > { %281 = vmatpush.msra.mxu0 %v1793_v26  ;;  %330 = vmatpush.msra.mxu1 %v329_v50  ;;  %2879 = vst [vmem:[#allocation2_spill] sm:$0xff] %v1899_v32  ;;  %v370_v44 = vsub.f32 %v1856_v54, %v2840_v9  ;;  %v1918_v45 = vsub.f32 %v223_v61, %v1886_v13  ;;  %v359_v49 = vand.u32 4294901760, %v358_v19  ;;  %v2842_v50 = vand.u32 4294901760, %v1895_v31  ;;  %v219_v61 = vld [vmem:[%s1737_s23 + $0xd8] sm:$0xff]  ;;  %v218_v19 = vld [vmem:[%s1737_s23 + $0xd0] sm:$0xff] }
  0x2a   : > { %428 = vmatpush.msra.mxu2 %v1801_v30  ;;  %477 = vmatpush.msra.mxu3 %v1793_v26  ;;  %v1924_v55 = vsub.f32 %v193_v63, %v1892_v27  ;;  %v1926_v56 = vand.u32 4294901760, %v221_v35  ;;  %v1934_v58 = vsub.f32 %v222_v8, %v1901_v33  ;;  %v376_v63 = vsub.f32 %v1879_v3, %v2839_v40 }
  0x2b   : > { %283 = vmatpush.msra.mxu0 %v1798_v29  ;;  %336 = vmatpush.msra.mxu1 %v335_v57  ;;  %v1931_v57 = vsub.f32 %v192_v7, %v1899_v32  ;;  %v2846_v0 = vand.u32 4294901760, %v1910_v43  ;;  %v371_v7 = vand.u32 4294901760, %v370_v44  ;;  %v2849_v8 = vand.u32 4294901760, %v1918_v45  ;;  %v217_v44 = vld [vmem:[%s1737_s23 + $0xc8] sm:$0xff] }
  0x2c   : > { %431 = vmatpush.msra.mxu2 %v1826_v41  ;;  %479 = vmatpush.msra.mxu3 %v1798_v29  ;;  %v1954_v40 = vsub.f32 %v221_v35, %v1926_v56  ;;  %v1956_v9 = vand.u32 4294901760, %v219_v61  ;;  %v1970_v52 = vand.u32 4294901760, %v218_v19 }
  0x2d   : > { %285 = vmatpush.msra.mxu0 %v1817_v36  ;;  %342 = vmatpush.msra.mxu1 %v341_v62  ;;  %v365_v62 = vand.u32 4294901760, %v364_v39  ;;  %v2850_v39 = vand.u32 4294901760, %v1924_v55  ;;  %v2855_v2 = vand.u32 4294901760, %v1931_v57  ;;  %v388_v35 = vsub.f32 %v1910_v43, %v2846_v0 }
  0x2e   : > { %434 = vmatpush.msra.mxu2 %v1838_v47  ;;  %481 = vmatpush.msra.mxu3 %v1817_v36  ;;  %v2856_v37 = vand.u32 4294901760, %v1954_v40  ;;  %v1986_v34 = vsub.f32 %v219_v61, %v1956_v9  ;;  %v2002_v25 = vsub.f32 %v218_v19, %v1970_v52 }
  0x2f   : > { %287 = vmatpush.msra.mxu0 %v1829_v42  ;;  %348 = vmatpush.msra.mxu1 %v347_v14  ;;  %v1942_v14 = vand.u32 4294901760, %v220_v48  ;;  %v400_v61 = vsub.f32 %v1931_v57, %v2855_v2 }
  0x30   : > { %437 = vmatpush.msra.mxu2 %v1851_v53  ;;  %483 = vmatpush.msra.mxu3 %v1829_v42  ;;  %v663_v19 = vsub.f32 %v1954_v40, %v2856_v37 }
  0x31   : > { %289 = vmatpush.msra.mxu0 %v1847_v51  ;;  %354 = vmatpush.msra.mxu1 %v353_v38  ;;  %v382_v38 = vsub.f32 %v1895_v31, %v2842_v50  ;;  %v377_v50 = vand.u32 4294901760, %v376_v63  ;;  %v1968_v60 = vsub.f32 %v220_v48, %v1942_v14  ;;  %v1978_v63 = vand.u32 4294901760, %v217_v44 }
  0x32   : > { %440 = vmatpush.msra.mxu2 %v1856_v54  ;;  %485 = vmatpush.msra.mxu3 %v1847_v51  ;;  %v394_v48 = vsub.f32 %v1924_v55, %v2850_v39  ;;  %v389_v39 = vand.u32 4294901760, %v388_v35 }
  0x33   : > { %291 = vmatpush.msra.mxu0 %v1864_v59  ;;  %360 = vmatpush.msra.mxu1 %v359_v49  ;;  %v2853_v49 = vand.u32 4294901760, %v1934_v58  ;;  %v383_v0 = vand.u32 4294901760, %v382_v38  ;;  %v215_v38 = vld [vmem:[%s1737_s23 + $0xb8] sm:$0xff]  ;;  %v2857_v28 = vand.u32 4294901760, %v1968_v60  ;;  %v2008_v24 = vsub.f32 %v217_v44, %v1978_v63 }
  0x34   : > { %443 = vmatpush.msra.mxu2 %v1879_v3  ;;  %487 = vmatpush.msra.mxu3 %v1864_v59  ;;  %v395_v35 = vand.u32 4294901760, %v394_v48  ;;  %v2016_v15 = vand.u32 4294901760, %v215_v38  ;;  %v401_v48 = vand.u32 4294901760, %v400_v61  ;;  %v2882_v61 = vand.u32 4294901760, %v1986_v34 }
  0x35   : > { %293 = vmatpush.msra.mxu0 %v1875_v1  ;;  %366 = vmatpush.msra.mxu1 %v365_v62  ;;  %v651_v62 = vsub.f32 %v1918_v45, %v2849_v8  ;;  %v657_v8 = vsub.f32 %v1934_v58, %v2853_v49  ;;  %v669_v37 = vsub.f32 %v1968_v60, %v2857_v28 }
  0x36   : > { %446 = vmatpush.msra.mxu2 %v1895_v31  ;;  %489 = vmatpush.msra.mxu3 %v1875_v1  ;;  %v675_v28 = vsub.f32 %v1986_v34, %v2882_v61 }
  0x37   : > { %295 = vmatpush.msra.mxu0 %v1892_v27  ;;  %372 = vmatpush.msra.mxu1 %v371_v7  ;;  %v1993_v7 = vand.u32 4294901760, %v216_v46  ;;  %v652_v49 = vand.u32 4294901760, %v651_v62  ;;  %v658_v44 = vand.u32 4294901760, %v657_v8  ;;  %v213_v62 = vld [vmem:[%s1737_s23 + $0xa8] sm:$0xff]  ;;  %v212_v8 = vld [vmem:[%s1737_s23 + $0xa0] sm:$0xff] }
  0x38   : > { %449 = vmatpush.msra.mxu2 %v1910_v43  ;;  %491 = vmatpush.msra.mxu3 %v1892_v27  ;;  %v2043_v2 = vand.u32 4294901760, %v213_v62 }
  0x39   : > { %297 = vmatpush.msra.mxu0 %v1899_v32  ;;  %378 = vmatpush.msra.mxu1 %v377_v50  ;;  %v214_v50 = vld [vmem:[%s1737_s23 + $0xb0] sm:$0xff] }
  0x3a   : > { %452 = vmatpush.msra.mxu2 %v1924_v55  ;;  %493 = vmatpush.msra.mxu3 %v1899_v32  ;;  %v2041_v32 = vsub.f32 %v215_v38, %v2016_v15 }
  0x3b   : > { %504 = vmatpush.msrb.mxu0 %v309_v23  ;;  %384 = vmatpush.msra.mxu1 %v383_v0  ;;  %v2880_v23 = vand.u32 4294901760, %v1770_v16  ;;  %v2022_v0 = vsub.f32 %v216_v46, %v1993_v7  ;;  %v2030_v16 = vand.u32 4294901760, %v214_v50  ;;  %v2056_v46 = vand.u32 4294901760, %v212_v8 }
  0x3c   : > { %455 = vmatpush.msra.mxu2 %v1931_v57  ;;  %653 = vmatpush.msrb.mxu3 %v652_v49 }
  0x3d   : > { %508 = vmatpush.msrb.mxu0 %v2880_v23  ;;  %390 = vmatpush.msra.mxu1 %v389_v39  ;;  %v2881_v23 = vand.u32 4294901760, %v1774_v17  ;;  %v664_v39 = vand.u32 4294901760, %v663_v19  ;;  %v2883_v17 = vand.u32 4294901760, %v1780_v20  ;;  %v2884_v19 = vand.u32 4294901760, %v2002_v25 }
  0x3e   : > { %608 = vmatpush.msrb.mxu2 %v1886_v13  ;;  %659 = vmatpush.msrb.mxu3 %v658_v44  ;;  %v2054_v38 = vsub.f32 %v214_v50, %v2030_v16  ;;  %v2885_v20 = vand.u32 4294901760, %v1783_v21  ;;  %v2886_v44 = vand.u32 4294901760, %v2008_v24  ;;  %v2067_v50 = vsub.f32 %v213_v62, %v2043_v2 }
  0x3f   : > { %512 = vmatpush.msrb.mxu0 %v2881_v23  ;;  %396 = vmatpush.msra.mxu1 %v395_v35  ;;  %v211_v23 = vld [vmem:[%s1737_s23 + $0x98] sm:$0xff]  ;;  %v670_v35 = vand.u32 4294901760, %v669_v37  ;;  %v681_v61 = vsub.f32 %v2002_v25, %v2884_v19  ;;  %v258_v37 = vld.sshfl [vmem:[#allocation1] sm:$0xff pattern:$0x73625140]  ;;  %v2887_v21 = vand.u32 4294901760, %v1786_v22  ;;  %v2081_v62 = vsub.f32 %v212_v8, %v2056_v46 }
  0x40   : > { %610 = vmatpush.msrb.mxu2 %v1901_v33  ;;  %665 = vmatpush.msrb.mxu3 %v664_v39  ;;  %v2069_v49 = vand.u32 4294901760, %v211_v23  ;;  %v2083_v19 = vand.u32 4294901760, %v258_v37  ;;  %v2889_v22 = vand.u32 4294901760, %v1801_v30  ;;  %v2891_v30 = vand.u32 4294901760, %v1826_v41  ;;  %v208_v8 = vld [vmem:[%s1737_s23 + $0x80] sm:$0xff] }
  0x41   : > { %516 = vmatpush.msrb.mxu0 %v2883_v17  ;;  %402 = vmatpush.msra.mxu1 %v401_v48  ;;  %v687_v48 = vsub.f32 %v2008_v24, %v2886_v44  ;;  %v676_v17 = vand.u32 4294901760, %v675_v28  ;;  %v210_v44 = vld [vmem:[%s1737_s23 + $0x90] sm:$0xff]  ;;  %v682_v28 = vand.u32 4294901760, %v681_v61  ;;  %v2893_v41 = vand.u32 4294901760, %v1838_v47 }
  0x42   : > { %612 = vmatpush.msrb.mxu2 %v1926_v56  ;;  %671 = vmatpush.msrb.mxu3 %v670_v35  ;;  %v2890_v35 = vand.u32 4294901760, %v2041_v32  ;;  %v2097_v39 = vsub.f32 %v211_v23, %v2069_v49  ;;  %v2127_v47 = vand.u32 4294901760, %v208_v8 }
  0x43   : > { %520 = vmatpush.msrb.mxu0 %v2885_v20  ;;  %571 = vmatpush.msrb.mxu1 %v1748_v4  ;;  %v2888_v4 = vand.u32 4294901760, %v2022_v0 }
  0x44   : > { %614 = vmatpush.msrb.mxu2 %v1942_v14  ;;  %677 = vmatpush.msrb.mxu3 %v676_v17  ;;  %v699_v61 = vsub.f32 %v2041_v32, %v2890_v35  ;;  %v2108_v35 = vsub.f32 %v258_v37, %v2083_v19 }
  0x45   : > { %524 = vmatpush.msrb.mxu0 %v2887_v21  ;;  %573 = vmatpush.msrb.mxu1 %v1750_v5  ;;  %v693_v20 = vsub.f32 %v2022_v0, %v2888_v4  ;;  %v688_v5 = vand.u32 4294901760, %v687_v48  ;;  %v209_v21 = vld [vmem:[%s1737_s23 + $0x88] sm:$0xff]  ;;  %v2094_v4 = vand.u32 4294901760, %v210_v44  ;;  %v2892_v48 = vand.u32 4294901760, %v2054_v38 }
  0x46   : > { %616 = vmatpush.msrb.mxu2 %v1956_v9  ;;  %683 = vmatpush.msrb.mxu3 %v682_v28  ;;  %v2110_v23 = vand.u32 4294901760, %v209_v21 }
  0x47   : > { %528 = vmatpush.msrb.mxu0 %v2889_v22  ;;  %575 = vmatpush.msrb.mxu1 %v1752_v6  ;;  %v694_v6 = vand.u32 4294901760, %v693_v20  ;;  %v705_v17 = vsub.f32 %v2054_v38, %v2892_v48  ;;  %v716_v22 = vand.u32 4294901760, %v2081_v62  ;;  %v2894_v20 = vand.u32 4294901760, %v2067_v50 }
  0x48   : > { %618 = vmatpush.msrb.mxu2 %v1970_v52  ;;  %689 = vmatpush.msrb.mxu3 %v688_v5  ;;  %v2122_v37 = vsub.f32 %v210_v44, %v2094_v4  ;;  %v2895_v48 = vand.u32 4294901760, %v1851_v53  ;;  %v2135_v44 = vsub.f32 %v209_v21, %v2110_v23  ;;  %v2896_v53 = vand.u32 4294901760, %v1856_v54 }
  0x49   : > { %532 = vmatpush.msrb.mxu0 %v2891_v30  ;;  %577 = vmatpush.msrb.mxu1 %v1757_v10  ;;  %v700_v10 = vand.u32 4294901760, %v699_v61  ;;  %v711_v28 = vsub.f32 %v2067_v50, %v2894_v20  ;;  %v722_v30 = vand.u32 4294901760, %v2097_v39  ;;  %v717_v5 = vsub.f32 %v2081_v62, %v716_v22 }
  0x4a   : > { %620 = vmatpush.msrb.mxu2 %v1978_v63  ;;  %695 = vmatpush.msrb.mxu3 %v694_v6  ;;  %v300_v61 = vand.u32 4294901760, %v2108_v35  ;;  %v2897_v20 = vand.u32 4294901760, %v1879_v3  ;;  %v2149_v54 = vsub.f32 %v208_v8, %v2127_v47  ;;  %v2899_v8 = vand.u32 4294901760, %v1910_v43 }
  0x4b   : > { %536 = vmatpush.msrb.mxu0 %v2893_v41  ;;  %579 = vmatpush.msrb.mxu1 %v1759_v11  ;;  %v706_v11 = vand.u32 4294901760, %v705_v17  ;;  %v712_v6 = vand.u32 4294901760, %v711_v28  ;;  %v723_v17 = vsub.f32 %v2097_v39, %v722_v30  ;;  %v728_v41 = vand.u32 4294901760, %v2122_v37 }
  0x4c   : > { %622 = vmatpush.msrb.mxu2 %v1993_v7  ;;  %701 = vmatpush.msrb.mxu3 %v700_v10  ;;  %v301_v21 = vsub.f32 %v2108_v35, %v300_v61  ;;  %v734_v10 = vand.u32 4294901760, %v2135_v44  ;;  %v2901_v43 = vand.u32 4294901760, %v1931_v57 }
  0x4d   : > { %540 = vmatpush.msrb.mxu0 %v2895_v48  ;;  %581 = vmatpush.msrb.mxu1 %v1761_v12  ;;  %v259_v12 = vld.sshfl [vmem:[#allocation1 + $0x8] sm:$0xff pattern:$0x73625140]  ;;  %v2898_v48 = vand.u32 4294901760, %v1895_v31  ;;  %v729_v3 = vsub.f32 %v2122_v37, %v728_v41 }
  0x4e   : > { %624 = vmatpush.msrb.mxu2 %v2016_v15  ;;  %707 = vmatpush.msrb.mxu3 %v706_v11  ;;  %v2154_v28 = vand.u32 4294901760, %v259_v12  ;;  %v740_v11 = vand.u32 4294901760, %v2149_v54  ;;  %v302_v31 = vand.u32 4294901760, %v301_v21  ;;  %v230_v21 = vld [vmem:[%s1737_s23 + $0x130] sm:$0xff] }
  0x4f   : > { %544 = vmatpush.msrb.mxu0 %v2896_v53  ;;  %583 = vmatpush.msrb.mxu1 %v1776_v18  ;;  %v718_v18 = vand.u32 4294901760, %v717_v5  ;;  %v2900_v53 = vand.u32 4294901760, %v1924_v55 }
  0x50   : > { %626 = vmatpush.msrb.mxu2 %v2030_v16  ;;  %713 = vmatpush.msrb.mxu3 %v712_v6  ;;  %v2172_v5 = vsub.f32 %v259_v12, %v2154_v28  ;;  %v741_v6 = vsub.f32 %v2149_v54, %v740_v11 }
  0x51   : > { %548 = vmatpush.msrb.mxu0 %v2897_v20  ;;  %585 = vmatpush.msrb.mxu1 %v1793_v26  ;;  %v724_v26 = vand.u32 4294901760, %v723_v17  ;;  %v231_v17 = vld [vmem:[%s1737_s23 + $0x138] sm:$0xff] }
  0x52   : > { %628 = vmatpush.msrb.mxu2 %v2043_v2  ;;  %719 = vmatpush.msrb.mxu3 %v718_v18  ;;  %v641_v12 = vand.u32 4294901760, %v2172_v5 }
  0x53   : > { %552 = vmatpush.msrb.mxu0 %v2898_v48  ;;  %587 = vmatpush.msrb.mxu1 %v1798_v29  ;;  %v735_v29 = vsub.f32 %v2135_v44, %v734_v10 }
  0x54   : > { %630 = vmatpush.msrb.mxu2 %v2056_v46  ;;  %725 = vmatpush.msrb.mxu3 %v724_v26  ;;  %v2344_v26 = vand.u32 4294901760, %v231_v17 }
  0x55   : > { %556 = vmatpush.msrb.mxu0 %v2899_v8  ;;  %589 = vmatpush.msrb.mxu1 %v1817_v36  ;;  %v730_v36 = vand.u32 4294901760, %v729_v3  ;;  %v736_v55 = vand.u32 4294901760, %v735_v29 }
  0x56   : > { %632 = vmatpush.msrb.mxu2 %v2069_v49  ;;  %303 = vmatmul.f32.vlgmr.msra.gmra.mxu0 %v302_v31  ;;  %v2358_v31 = vand.u32 4294901760, %v230_v21 }
  0x57   : > { %560 = vmatpush.msrb.mxu0 %v2900_v53  ;;  %591 = vmatpush.msrb.mxu1 %v1829_v42  ;;  %v742_v42 = vand.u32 4294901760, %v741_v6  ;;  %v228_v53 = vld [vmem:[%s1737_s23 + $0x120] sm:$0xff] }
  0x58   : > { %634 = vmatpush.msrb.mxu2 %v2094_v4  ;;  %731 = vmatpush.msrb.mxu3 %v730_v36 }
  0x59   : > { %564 = vmatpush.msrb.mxu0 %v2901_v43  ;;  %593 = vmatpush.msrb.mxu1 %v1847_v51  ;;  %v642_v51 = vsub.f32 %v2172_v5, %v641_v12 }
  0x5a   : > { %636 = vmatpush.msrb.mxu2 %v2110_v23  ;;  %737 = vmatpush.msrb.mxu3 %v736_v55  ;;  %v2375_v55 = vsub.f32 %v231_v17, %v2344_v26 }
  0x5b   : > { %751 = vmatpush.msra.mxu0 %v1918_v45  ;;  %595 = vmatpush.msrb.mxu1 %v1864_v59  ;;  %v2902_v59 = vand.u32 4294901760, %v1918_v45  ;;  %v643_v57 = vand.u32 4294901760, %v642_v51  ;;  %v2905_v45 = vand.u32 4294901760, %v1954_v40 }
  0x5c   : > { %458 = vmatmul.f32.vlgmr.msra.gmra.mxu2 %v2108_v35  ;;  %497 = vmatmul.f32.vlgmr.msra.gmra.mxu3 %v300_v61  ;;  %v2904_v35 = vld [vmem:[#allocation2_spill] sm:$0xff] }
  0x5d   : > { %754 = vmatpush.msra.mxu0 %v1934_v58  ;;  %597 = vmatpush.msrb.mxu1 %v1875_v1  ;;  %v2903_v1 = vand.u32 4294901760, %v1934_v58 }
  0x5e   : > { %638 = vmatpush.msrb.mxu2 %v2127_v47  ;;  %743 = vmatpush.msrb.mxu3 %v742_v42  ;;  %v227_v42 = vld [vmem:[%s1737_s23 + $0x118] sm:$0xff] }
  0x5f   : > { %757 = vmatpush.msra.mxu0 %v1954_v40  ;;  %599 = vmatpush.msrb.mxu1 %v1892_v27  ;;  %v2906_v27 = vand.u32 4294901760, %v1968_v60 }
  0x60   : > { %845 = vmatpush.msra.mxu2 %v2902_v59  ;;  %404 = vmatmul.f32.vlgmr.msra.gmra.mxu1 %v2083_v19  ;;  %v2384_v59 = vand.u32 4294901760, %v228_v53 }
  0x61   : > { %760 = vmatpush.msra.mxu0 %v1968_v60  ;;  %912 = vmatpush.msra.mxu3 %v1886_v13  ;;  %v2908_v60 = vand.u32 4294901760, %v2002_v25 }
  0x62   : > { %849 = vmatpush.msra.mxu2 %v2903_v1  ;;  %601 = vmatpush.msrb.mxu1 %v2904_v35 }
  0x63   : > { %763 = vmatpush.msra.mxu0 %v1986_v34  ;;  %914 = vmatpush.msra.mxu3 %v1901_v33 }
  0x64   : > { %804 = vmatpush.msra.mxu1 %v1886_v13  ;;  %853 = vmatpush.msra.mxu2 %v2905_v45  ;;  %v2907_v13 = vand.u32 4294901760, %v1986_v34  ;;  %v2909_v34 = vand.u32 4294901760, %v2008_v24  ;;  %v226_v45 = vld [vmem:[%s1737_s23 + $0x110] sm:$0xff] }
  0x65   : > { %644 = vmatmul.f32.vlgmr.msrb.gmra.mxu2 %v643_v57  ;;  %766 = vmatpush.msra.mxu0 %v2002_v25  ;;  %v239_v25 = vld [vmem:[%s1737_s23 + $0x178] sm:$0xff]  ;;  %v2388_v57 = vsub.f32 %v230_v21, %v2358_v31 }
  0x66   : > { %806 = vmatpush.msra.mxu1 %v1901_v33  ;;  %857 = vmatpush.msra.mxu2 %v2906_v27  ;;  %v2910_v33 = vand.u32 4294901760, %v2022_v0  ;;  %v2250_v40 = vand.u32 4294901760, %v239_v25 }
  0x67   : > { %916 = vmatpush.msra.mxu3 %v1926_v56  ;;  %566 = vmatmul.f32.vlgmr.msrb.gmra.mxu0 %v2083_v19 }
  0x68   : > { %745 = vmatmul.f32.vlgmr.msrb.gmra.mxu3 %v2154_v28  ;;  %769 = vmatpush.msra.mxu0 %v2008_v24  ;;  %v2911_v24 = vand.u32 4294901760, %v2041_v32 }
  0x69   : > { %808 = vmatpush.msra.mxu1 %v1926_v56  ;;  %861 = vmatpush.msra.mxu2 %v2907_v13  ;;  %v2913_v56 = vand.u32 4294901760, %v2067_v50 }
  0x6a   : > { %918 = vmatpush.msra.mxu3 %v1942_v14  ;;  %603 = vmatmul.f32.vlgmr.msrb.gmra.mxu1 %v2083_v19 }
  0x6b   : > { %772 = vmatpush.msra.mxu0 %v2022_v0  ;;  %810 = vmatpush.msra.mxu1 %v1942_v14  ;;  %v236_v14 = vld [vmem:[%s1737_s23 + $0x160] sm:$0xff] }
  0x6c   : > { %865 = vmatpush.msra.mxu2 %v2908_v60  ;;  %920 = vmatpush.msra.mxu3 %v1956_v9  ;;  %v2277_v0 = vand.u32 4294901760, %v236_v14  ;;  %v2399_v60 = vand.u32 4294901760, %v227_v42 }
  0x6d   : > { %775 = vmatpush.msra.mxu0 %v2041_v32  ;;  %812 = vmatpush.msra.mxu1 %v1956_v9  ;;  %v2912_v9 = vand.u32 4294901760, %v2054_v38  ;;  %v237_v32 = vld [vmem:[%s1737_s23 + $0x168] sm:$0xff] }
  0x6e   : > { %869 = vmatpush.msra.mxu2 %v2909_v34  ;;  %922 = vmatpush.msra.mxu3 %v1970_v52  ;;  %v2863_v34 = vand.u32 4294901760, %v2375_v55 }
  0x6f   : > { %778 = vmatpush.msra.mxu0 %v2054_v38  ;;  %814 = vmatpush.msra.mxu1 %v1970_v52  ;;  %v238_v52 = vld [vmem:[%s1737_s23 + $0x170] sm:$0xff] }
  0x70   : > { %873 = vmatpush.msra.mxu2 %v2910_v33  ;;  %924 = vmatpush.msra.mxu3 %v1978_v63  ;;  %v2258_v58 = vand.u32 4294901760, %v238_v52  ;;  %v234_v38 = vld [vmem:[%s1737_s23 + $0x150] sm:$0xff] }
  0x71   : > { %781 = vmatpush.msra.mxu0 %v2067_v50  ;;  %816 = vmatpush.msra.mxu1 %v1978_v63  ;;  %v2266_v63 = vand.u32 4294901760, %v237_v32 }
  0x72   : > { %877 = vmatpush.msra.mxu2 %v2911_v24  ;;  %926 = vmatpush.msra.mxu3 %v1993_v7 }
  0x73   : > { %784 = vmatpush.msra.mxu0 %v2081_v62  ;;  %818 = vmatpush.msra.mxu1 %v1993_v7  ;;  %v2269_v7 = vsub.f32 %v239_v25, %v2250_v40  ;;  %v2292_v50 = vsub.f32 %v237_v32, %v2266_v63  ;;  %v2415_v32 = vsub.f32 %v228_v53, %v2384_v59 }
  0x74   : > { %881 = vmatpush.msra.mxu2 %v2912_v9  ;;  %928 = vmatpush.msra.mxu3 %v2016_v15  ;;  %v2862_v9 = vand.u32 4294901760, %v2388_v57 }
  0x75   : > { %787 = vmatpush.msra.mxu0 %v2097_v39  ;;  %820 = vmatpush.msra.mxu1 %v2016_v15  ;;  %v235_v15 = vld [vmem:[%s1737_s23 + $0x158] sm:$0xff]  ;;  %v2296_v39 = vand.u32 4294901760, %v234_v38 }
  0x76   : > { %885 = vmatpush.msra.mxu2 %v2913_v56  ;;  %930 = vmatpush.msra.mxu3 %v2030_v16  ;;  %v2285_v19 = vand.u32 4294901760, %v235_v15  ;;  %v225_v56 = vld [vmem:[%s1737_s23 + $0x108] sm:$0xff] }
  0x77   : > { %790 = vmatpush.msra.mxu0 %v2122_v37  ;;  %822 = vmatpush.msra.mxu1 %v2030_v16  ;;  %v2280_v16 = vsub.f32 %v238_v52, %v2258_v58  ;;  %v2411_v52 = vand.u32 4294901760, %v226_v45  ;;  %v2434_v17 = vand.u32 4294901760, %v225_v56 }
  0x78   : > { %889 = vmatpush.msra.mxu2 %v716_v22  ;;  %932 = vmatpush.msra.mxu3 %v2043_v2  ;;  %v2304_v22 = vsub.f32 %v236_v14, %v2277_v0 }
  0x79   : > { %793 = vmatpush.msra.mxu0 %v2135_v44  ;;  %824 = vmatpush.msra.mxu1 %v2043_v2  ;;  %v991_v2 = vand.u32 4294901760, %v2269_v7  ;;  %v997_v62 = vand.u32 4294901760, %v2280_v16  ;;  %v1003_v44 = vand.u32 4294901760, %v2292_v50 }
  0x7a   : > { %893 = vmatpush.msra.mxu2 %v722_v30  ;;  %934 = vmatpush.msra.mxu3 %v2056_v46  ;;  %v232_v30 = vld [vmem:[%s1737_s23 + $0x140] sm:$0xff] }
  0x7b   : > { %796 = vmatpush.msra.mxu0 %v2149_v54  ;;  %826 = vmatpush.msra.mxu1 %v2056_v46  ;;  %v233_v46 = vld [vmem:[%s1737_s23 + $0x148] sm:$0xff]  ;;  %v992_v37 = vsub.f32 %v2269_v7, %v991_v2  ;;  %v2332_v20 = vand.u32 4294901760, %v232_v30  ;;  %v2871_v54 = vand.u32 4294901760, %v2304_v22  ;;  %v1004_v48 = vsub.f32 %v2292_v50, %v1003_v44 }
  0x7c   : > { %897 = vmatpush.msra.mxu2 %v728_v41  ;;  %936 = vmatpush.msra.mxu3 %v2069_v49  ;;  %v2318_v61 = vand.u32 4294901760, %v233_v46  ;;  %v998_v41 = vsub.f32 %v2280_v16, %v997_v62 }
  0x7d   : > { %799 = vmatmul.f32.vlgmr.msra.gmra.mxu0 %v2172_v5  ;;  %828 = vmatpush.msra.mxu1 %v2069_v49  ;;  %v2309_v49 = vsub.f32 %v235_v15, %v2285_v19  ;;  %v2361_v29 = vsub.f32 %v232_v30, %v2332_v20  ;;  %v1005_v36 = vand.u32 4294901760, %v1004_v48  ;;  %v260_v5 = vld.sshfl [vmem:[#allocation1 + $0x10] sm:$0xff pattern:$0x73625140]  ;;  %v2429_v30 = vsub.f32 %v227_v42, %v2399_v60 }
  0x7e   : > { %949 = vmatpush.msrb.mxu0 %v2250_v40  ;;  %901 = vmatpush.msra.mxu2 %v734_v10  ;;  %v993_v10 = vand.u32 4294901760, %v992_v37  ;;  %v2347_v3 = vsub.f32 %v233_v46, %v2318_v61  ;;  %v999_v8 = vand.u32 4294901760, %v998_v41  ;;  %v2393_v27 = vand.u32 4294901760, %v260_v5  ;;  %v255_v37 = vld [vmem:[%s1737_s23 + $0x1f8] sm:$0xff]  ;;  %v224_v41 = vld [vmem:[%s1737_s23 + $0x100] sm:$0xff] }
  0x7f   : > { %938 = vmatpush.msra.mxu3 %v2094_v4  ;;  %830 = vmatpush.msra.mxu1 %v2094_v4  ;;  %v2324_v4 = vsub.f32 %v234_v38, %v2296_v39  ;;  %v2869_v18 = vand.u32 4294901760, %v2309_v49  ;;  %v2864_v1 = vand.u32 4294901760, %v2361_v29  ;;  %v1040_v38 = vsub.f32 %v2375_v55, %v2863_v34 }
  0x80   : > { %951 = vmatpush.msrb.mxu0 %v2258_v58  ;;  %905 = vmatpush.msra.mxu2 %v740_v11  ;;  %v1010_v11 = vsub.f32 %v2304_v22, %v2871_v54  ;;  %v2866_v6 = vand.u32 4294901760, %v2347_v3  ;;  %v2421_v14 = vsub.f32 %v260_v5, %v2393_v27  ;;  %v2859_v48 = vand.u32 4294901760, %v2415_v32  ;;  %v247_v54 = vld [vmem:[%s1737_s23 + $0x1b8] sm:$0xff] }
  0x81   : > { %940 = vmatpush.msra.mxu3 %v2110_v23  ;;  %907 = vmatmul.f32.vlgmr.msra.gmra.mxu2 %v2154_v28  ;;  %v1034_v24 = vsub.f32 %v2361_v29, %v2864_v1  ;;  %v1041_v53 = vand.u32 4294901760, %v1040_v38  ;;  %v2455_v5 = vand.u32 4294901760, %v224_v41  ;;  %v2461_v42 = vsub.f32 %v225_v56, %v2434_v17 }
  0x82   : > { %953 = vmatpush.msrb.mxu0 %v2266_v63  ;;  %1092 = vmatpush.msrb.mxu2 %v2269_v7  ;;  %v1011_v51 = vand.u32 4294901760, %v1010_v11  ;;  %v1028_v13 = vsub.f32 %v2347_v3, %v2866_v6  ;;  %v2448_v11 = vand.u32 4294901760, %v255_v37 }
  0x83   : > { %832 = vmatpush.msra.mxu1 %v2110_v23  ;;  %942 = vmatpush.msra.mxu3 %v2127_v47  ;;  %v2867_v23 = vand.u32 4294901760, %v2324_v4  ;;  %v1035_v21 = vand.u32 4294901760, %v1034_v24  ;;  %v252_v24 = vld [vmem:[%s1737_s23 + $0x1e0] sm:$0xff] }
  0x84   : > { %944 = vmatmul.f32.vlgmr.msra.gmra.mxu3 %v2154_v28  ;;  %955 = vmatpush.msrb.mxu0 %v2277_v0  ;;  %v229_v28 = vld [vmem:[%s1737_s23 + $0x128] sm:$0xff]  ;;  %v1029_v15 = vand.u32 4294901760, %v1028_v13 }
  0x85   : > { %1095 = vmatpush.msrb.mxu2 %v2280_v16  ;;  %1145 = vmatpush.msrb.mxu3 %v2250_v40  ;;  %v2371_v43 = vand.u32 4294901760, %v229_v28  ;;  %v246_v16 = vld [vmem:[%s1737_s23 + $0x1b0] sm:$0xff] }
  0x86   : > { %834 = vmatpush.msra.mxu1 %v2127_v47  ;;  %957 = vmatpush.msrb.mxu0 %v2285_v19  ;;  %v1016_v47 = vsub.f32 %v2309_v49, %v2869_v18  ;;  %v248_v18 = vld [vmem:[%s1737_s23 + $0x1c0] sm:$0xff] }
  0x87   : > { %838 = vmatmul.f32.vlgmr.msra.gmra.mxu1 %v641_v12  ;;  %1098 = vmatpush.msrb.mxu2 %v2292_v50  ;;  %v1022_v12 = vsub.f32 %v2324_v4, %v2867_v23  ;;  %v2403_v33 = vsub.f32 %v229_v28, %v2371_v43  ;;  %v2443_v28 = vsub.f32 %v226_v45, %v2411_v52 }
  0x88   : > { %994 = vmatpush.msrb.mxu1 %v993_v10  ;;  %1147 = vmatpush.msrb.mxu3 %v2258_v58  ;;  %v1017_v35 = vand.u32 4294901760, %v1016_v47  ;;  %v1046_v10 = vsub.f32 %v2388_v57, %v2862_v9  ;;  %v254_v47 = vld [vmem:[%s1737_s23 + $0x1f0] sm:$0xff]  ;;  %v1058_v45 = vsub.f32 %v2415_v32, %v2859_v48 }
  0x89   : > { %959 = vmatpush.msrb.mxu0 %v2296_v39  ;;  %1101 = vmatpush.msrb.mxu2 %v2304_v22  ;;  %v1023_v25 = vand.u32 4294901760, %v1022_v12  ;;  %v2860_v46 = vand.u32 4294901760, %v2403_v33  ;;  %v2861_v12 = vand.u32 4294901760, %v2429_v30  ;;  %v2865_v13 = vand.u32 4294901760, %v2443_v28 }
  0x8a   : > { %1000 = vmatpush.msrb.mxu1 %v999_v8  ;;  %1149 = vmatpush.msrb.mxu3 %v2266_v63  ;;  %v982_v8 = vand.u32 4294901760, %v2421_v14 }
  0x8b   : > { %961 = vmatpush.msrb.mxu0 %v2318_v61  ;;  %1104 = vmatpush.msrb.mxu2 %v2309_v49 }
  0x8c   : > { %1006 = vmatpush.msrb.mxu1 %v1005_v36  ;;  %1151 = vmatpush.msrb.mxu3 %v2277_v0  ;;  %v1052_v36 = vsub.f32 %v2403_v33, %v2860_v46  ;;  %v983_v56 = vsub.f32 %v2421_v14, %v982_v8  ;;  %v251_v46 = vld [vmem:[%s1737_s23 + $0x1d8] sm:$0xff] }
  0x8d   : > { %963 = vmatpush.msrb.mxu0 %v2332_v20  ;;  %1107 = vmatpush.msrb.mxu2 %v2324_v4  ;;  %v2505_v1 = vand.u32 4294901760, %v251_v46 }
  0x8e   : > { %1012 = vmatpush.msrb.mxu1 %v1011_v51  ;;  %1153 = vmatpush.msrb.mxu3 %v2285_v19  ;;  %v253_v51 = vld [vmem:[%s1737_s23 + $0x1e8] sm:$0xff]  ;;  %v1053_v38 = vand.u32 4294901760, %v1052_v36  ;;  %v1059_v36 = vand.u32 4294901760, %v1058_v45  ;;  %v984_v9 = vand.u32 4294901760, %v983_v56 }
  0x8f   : > { %965 = vmatpush.msrb.mxu0 %v2344_v26  ;;  %1110 = vmatpush.msrb.mxu2 %v2347_v3  ;;  %v2487_v48 = vand.u32 4294901760, %v253_v51 }
  0x90   : > { %1018 = vmatpush.msrb.mxu1 %v1017_v35  ;;  %1155 = vmatpush.msrb.mxu3 %v2296_v39  ;;  %v1047_v35 = vand.u32 4294901760, %v1046_v10  ;;  %v2485_v10 = vsub.f32 %v224_v41, %v2455_v5  ;;  %v1070_v41 = vsub.f32 %v2443_v28, %v2865_v13 }
  0x91   : > { %967 = vmatpush.msrb.mxu0 %v2358_v31  ;;  %1113 = vmatpush.msrb.mxu2 %v2361_v29 }
  0x92   : > { %1024 = vmatpush.msrb.mxu1 %v1023_v25  ;;  %1157 = vmatpush.msrb.mxu3 %v2318_v61  ;;  %v2469_v25 = vand.u32 4294901760, %v254_v47  ;;  %v2872_v13 = vand.u32 4294901760, %v2485_v10 }
  0x93   : > { %969 = vmatpush.msrb.mxu0 %v2371_v43  ;;  %1116 = vmatpush.msrb.mxu2 %v2375_v55 }
  0x94   : > { %1030 = vmatpush.msrb.mxu1 %v1029_v15  ;;  %1159 = vmatpush.msrb.mxu3 %v2332_v20  ;;  %v2478_v15 = vsub.f32 %v255_v37, %v2448_v11  ;;  %v2868_v37 = vand.u32 4294901760, %v2461_v42 }
  0x95   : > { %971 = vmatpush.msrb.mxu0 %v2384_v59  ;;  %1119 = vmatpush.msrb.mxu2 %v2388_v57 }
  0x96   : > { %1036 = vmatpush.msrb.mxu1 %v1035_v21  ;;  %1161 = vmatpush.msrb.mxu3 %v2344_v26  ;;  %v1064_v21 = vsub.f32 %v2429_v30, %v2861_v12  ;;  %v2500_v12 = vsub.f32 %v254_v47, %v2469_v25  ;;  %v2870_v34 = vand.u32 4294901760, %v2478_v15  ;;  %v2511_v47 = vsub.f32 %v253_v51, %v2487_v48 }
  0x97   : > { %973 = vmatpush.msrb.mxu0 %v2399_v60  ;;  %1122 = vmatpush.msrb.mxu2 %v2403_v33  ;;  %v1076_v56 = vsub.f32 %v2461_v42, %v2868_v37 }
  0x98   : > { %1042 = vmatpush.msrb.mxu1 %v1041_v53  ;;  %1163 = vmatpush.msrb.mxu3 %v2358_v31  ;;  %v2493_v53 = vand.u32 4294901760, %v252_v24  ;;  %v1065_v45 = vand.u32 4294901760, %v1064_v21  ;;  %v1071_v21 = vand.u32 4294901760, %v1070_v41  ;;  %v2873_v23 = vand.u32 4294901760, %v2500_v12 }
  0x99   : > { %975 = vmatpush.msrb.mxu0 %v2411_v52  ;;  %1125 = vmatpush.msrb.mxu2 %v2415_v32  ;;  %v1333_v37 = vsub.f32 %v2478_v15, %v2870_v34 }
  0x9a   : > { %1048 = vmatpush.msrb.mxu1 %v1047_v35  ;;  %1165 = vmatpush.msrb.mxu3 %v2371_v43  ;;  %v250_v35 = vld [vmem:[%s1737_s23 + $0x1d0] sm:$0xff]  ;;  %v2519_v6 = vsub.f32 %v252_v24, %v2493_v53  ;;  %v2531_v24 = vsub.f32 %v251_v46, %v2505_v1  ;;  %v1077_v46 = vand.u32 4294901760, %v1076_v56  ;;  %v1339_v7 = vsub.f32 %v2500_v12, %v2873_v23 }
  0x9b   : > { %977 = vmatpush.msrb.mxu0 %v2434_v17  ;;  %1128 = vmatpush.msrb.mxu2 %v2429_v30  ;;  %v2524_v51 = vand.u32 4294901760, %v250_v35  ;;  %v1334_v56 = vand.u32 4294901760, %v1333_v37  ;;  %v2569_v23 = vand.u32 4294901760, %v247_v54  ;;  %v2914_v37 = vand.u32 4294901760, %v2304_v22 }
  0x9c   : > { %1054 = vmatpush.msrb.mxu1 %v1053_v38  ;;  %1167 = vmatpush.msrb.mxu3 %v2384_v59  ;;  %v249_v38 = vld [vmem:[%s1737_s23 + $0x1c8] sm:$0xff]  ;;  %v2875_v34 = vand.u32 4294901760, %v2519_v6  ;;  %v2915_v22 = vand.u32 4294901760, %v2309_v49 }
  0x9d   : > { %979 = vmatpush.msrb.mxu0 %v2455_v5  ;;  %1131 = vmatpush.msrb.mxu2 %v2443_v28  ;;  %v2540_v41 = vand.u32 4294901760, %v249_v38 }
  0x9e   : > { %1060 = vmatpush.msrb.mxu1 %v1059_v36  ;;  %1169 = vmatpush.msrb.mxu3 %v2399_v60  ;;  %v1082_v36 = vsub.f32 %v2485_v10, %v2872_v13  ;;  %v2876_v13 = vand.u32 4294901760, %v2531_v24  ;;  %v1351_v50 = vsub.f32 %v2519_v6, %v2875_v34 }
  0x9f   : > { %985 = vmatmul.f32.vlgmr.msrb.gmra.mxu0 %v984_v9  ;;  %1134 = vmatpush.msrb.mxu2 %v2461_v42  ;;  %v2874_v9 = vand.u32 4294901760, %v2511_v47 }
  0xa0   : > { %1186 = vmatpush.msra.mxu0 %v991_v2  ;;  %1066 = vmatpush.msrb.mxu1 %v1065_v45  ;;  %v2552_v2 = vsub.f32 %v250_v35, %v2524_v51  ;;  %v2554_v45 = vand.u32 4294901760, %v248_v18 }
  0xa1   : > { %1171 = vmatpush.msrb.mxu3 %v2411_v52  ;;  %1137 = vmatpush.msrb.mxu2 %v2485_v10  ;;  %v1345_v35 = vsub.f32 %v2511_v47, %v2874_v9 }
  0xa2   : > { %1190 = vmatpush.msra.mxu0 %v997_v62  ;;  %1072 = vmatpush.msrb.mxu1 %v1071_v21  ;;  %v1083_v62 = vand.u32 4294901760, %v1082_v36  ;;  %v2567_v21 = vsub.f32 %v249_v38, %v2540_v41  ;;  %v1340_v36 = vand.u32 4294901760, %v1339_v7  ;;  %v2582_v9 = vsub.f32 %v248_v18, %v2554_v45  ;;  %v243_v38 = vld [vmem:[%s1737_s23 + $0x198] sm:$0xff] }
  0xa3   : > { %1173 = vmatpush.msrb.mxu3 %v2434_v17  ;;  %1140 = vmatmul.f32.vlgmr.msrb.gmra.mxu2 %v2421_v14  ;;  %v1357_v14 = vsub.f32 %v2531_v24, %v2876_v13  ;;  %v1346_v7 = vand.u32 4294901760, %v1345_v35  ;;  %v2595_v18 = vsub.f32 %v247_v54, %v2569_v23  ;;  %v2916_v49 = vand.u32 4294901760, %v2552_v2 }
  0xa4   : > { %1194 = vmatpush.msra.mxu0 %v1003_v44  ;;  %1290 = vmatpush.msra.mxu2 %v2448_v11  ;;  %v245_v44 = vld [vmem:[%s1737_s23 + $0x1a8] sm:$0xff]  ;;  %v2878_v35 = vand.u32 4294901760, %v2582_v9  ;;  %v2917_v13 = vand.u32 4294901760, %v2324_v4  ;;  %v242_v4 = vld [vmem:[%s1737_s23 + $0x190] sm:$0xff] }
  0xa5   : > { %1078 = vmatpush.msrb.mxu1 %v1077_v46  ;;  %1175 = vmatpush.msrb.mxu3 %v2455_v5  ;;  %v2584_v46 = vand.u32 4294901760, %v246_v16  ;;  %v2597_v34 = vand.u32 4294901760, %v245_v44 }
  0xa6   : > { %1179 = vmatmul.f32.vlgmr.msrb.gmra.mxu3 %v982_v8  ;;  %1198 = vmatpush.msra.mxu0 %v2914_v37  ;;  %v244_v8 = vld [vmem:[%s1737_s23 + $0x1a0] sm:$0xff]  ;;  %v2877_v37 = vand.u32 4294901760, %v2567_v21 }
  0xa7   : > { %1292 = vmatpush.msra.mxu2 %v2469_v25  ;;  %1335 = vmatpush.msra.mxu3 %v1334_v56  ;;  %v1352_v56 = vand.u32 4294901760, %v1351_v50  ;;  %v2608_v54 = vsub.f32 %v246_v16, %v2584_v46  ;;  %v1358_v50 = vand.u32 4294901760, %v1357_v14  ;;  %v2621_v16 = vsub.f32 %v245_v44, %v2597_v34  ;;  %v240_v44 = vld [vmem:[%s1737_s23 + $0x180] sm:$0xff] }
  0xa8   : > { %1084 = vmatpush.msrb.mxu1 %v1083_v62  ;;  %1202 = vmatpush.msra.mxu0 %v2915_v22  ;;  %v1363_v62 = vsub.f32 %v2552_v2, %v2916_v49  ;;  %v2610_v22 = vand.u32 4294901760, %v244_v8  ;;  %v2623_v49 = vand.u32 4294901760, %v243_v38  ;;  %v1375_v14 = vsub.f32 %v2582_v9, %v2878_v35 }
  0xa9   : > { %1086 = vmatmul.f32.vlgmr.msrb.gmra.mxu1 %v2393_v27  ;;  %1294 = vmatpush.msra.mxu2 %v2487_v48 }
  0xaa   : > { %1253 = vmatpush.msra.mxu1 %v2250_v40  ;;  %1341 = vmatpush.msra.mxu3 %v1340_v36  ;;  %v1369_v40 = vsub.f32 %v2567_v21, %v2877_v37  ;;  %v241_v37 = vld [vmem:[%s1737_s23 + $0x188] sm:$0xff]  ;;  %v261_v36 = vld.sshfl [vmem:[#allocation1 + $0x18] sm:$0xff pattern:$0x73625140]  ;;  %v2649_v35 = vsub.f32 %v243_v38, %v2623_v49 }
  0xab   : > { %1206 = vmatpush.msra.mxu0 %v2917_v13  ;;  %1296 = vmatpush.msra.mxu2 %v2493_v53  ;;  %v2918_v13 = vand.u32 4294901760, %v2347_v3  ;;  %v2919_v3 = vand.u32 4294901760, %v2361_v29  ;;  %v2921_v29 = vand.u32 4294901760, %v2375_v55 }
  0xac   : > { %1255 = vmatpush.msra.mxu1 %v2258_v58  ;;  %1347 = vmatpush.msra.mxu3 %v1346_v7  ;;  %v1364_v58 = vand.u32 4294901760, %v1363_v62  ;;  %v2635_v7 = vsub.f32 %v244_v8, %v2610_v22  ;;  %v2920_v62 = vand.u32 4294901760, %v2595_v18  ;;  %v2923_v8 = vand.u32 4294901760, %v2388_v57 }
  0xad   : > { %1210 = vmatpush.msra.mxu0 %v2918_v13  ;;  %1298 = vmatpush.msra.mxu2 %v2505_v1  ;;  %v2925_v57 = vand.u32 4294901760, %v2403_v33 }
  0xae   : > { %1257 = vmatpush.msra.mxu1 %v2266_v63  ;;  %1353 = vmatpush.msra.mxu3 %v1352_v56  ;;  %v2641_v63 = vand.u32 4294901760, %v242_v4  ;;  %v1370_v56 = vand.u32 4294901760, %v1369_v40  ;;  %v1381_v13 = vsub.f32 %v2595_v18, %v2920_v62  ;;  %v2922_v40 = vand.u32 4294901760, %v2608_v54 }
  0xaf   : > { %1214 = vmatpush.msra.mxu0 %v2919_v3  ;;  %1300 = vmatpush.msra.mxu2 %v2524_v51  ;;  %v2655_v3 = vand.u32 4294901760, %v241_v37  ;;  %v1398_v38 = vand.u32 4294901760, %v2635_v7 }
  0xb0   : > { %1259 = vmatpush.msra.mxu1 %v2277_v0  ;;  %1359 = vmatpush.msra.mxu3 %v1358_v50  ;;  %v2657_v0 = vand.u32 4294901760, %v261_v36  ;;  %v1376_v50 = vand.u32 4294901760, %v1375_v14  ;;  %v1387_v62 = vsub.f32 %v2608_v54, %v2922_v40  ;;  %v2668_v55 = vsub.f32 %v242_v4, %v2641_v63 }
  0xb1   : > { %1218 = vmatpush.msra.mxu0 %v2921_v29  ;;  %1302 = vmatpush.msra.mxu2 %v2540_v41  ;;  %v2670_v29 = vand.u32 4294901760, %v240_v44  ;;  %v1404_v40 = vand.u32 4294901760, %v2649_v35  ;;  %v2681_v4 = vsub.f32 %v241_v37, %v2655_v3 }
  0xb2   : > { %1261 = vmatpush.msra.mxu1 %v2285_v19  ;;  %1365 = vmatpush.msra.mxu3 %v1364_v58  ;;  %v1382_v19 = vand.u32 4294901760, %v1381_v13  ;;  %v2924_v58 = vand.u32 4294901760, %v2621_v16  ;;  %v2926_v13 = vand.u32 4294901760, %v2415_v32  ;;  %v1410_v33 = vand.u32 4294901760, %v2668_v55 }
  0xb3   : > { %1222 = vmatpush.msra.mxu0 %v2923_v8  ;;  %1304 = vmatpush.msra.mxu2 %v2554_v45  ;;  %v2684_v8 = vsub.f32 %v261_v36, %v2657_v0  ;;  %v2695_v37 = vsub.f32 %v240_v44, %v2670_v29  ;;  %v1405_v36 = vsub.f32 %v2649_v35, %v1404_v40  ;;  %v1416_v32 = vand.u32 4294901760, %v2681_v4 }
  0xb4   : > { %1263 = vmatpush.msra.mxu1 %v2296_v39  ;;  %1371 = vmatpush.msra.mxu3 %v1370_v56  ;;  %v1393_v14 = vsub.f32 %v2621_v16, %v2924_v58  ;;  %v1388_v39 = vand.u32 4294901760, %v1387_v62  ;;  %v1399_v56 = vsub.f32 %v2635_v7, %v1398_v38 }
  0xb5   : > { %1226 = vmatpush.msra.mxu0 %v2925_v57  ;;  %1306 = vmatpush.msra.mxu2 %v2569_v23  ;;  %v1323_v62 = vand.u32 4294901760, %v2684_v8  ;;  %v1406_v58 = vand.u32 4294901760, %v1405_v36 }
  0xb6   : > { %1265 = vmatpush.msra.mxu1 %v2318_v61  ;;  %1377 = vmatpush.msra.mxu3 %v1376_v50  ;;  %v1394_v61 = vand.u32 4294901760, %v1393_v14  ;;  %v2927_v50 = vand.u32 4294901760, %v2429_v30  ;;  %v1400_v44 = vand.u32 4294901760, %v1399_v56  ;;  %v1411_v30 = vsub.f32 %v2668_v55, %v1410_v33 }
  0xb7   : > { %1230 = vmatpush.msra.mxu0 %v2926_v13  ;;  %1308 = vmatpush.msra.mxu2 %v2584_v46  ;;  %v2929_v14 = vand.u32 4294901760, %v2461_v42 }
  0xb8   : > { %1267 = vmatpush.msra.mxu1 %v2332_v20  ;;  %1383 = vmatpush.msra.mxu3 %v1382_v19  ;;  %v2928_v20 = vand.u32 4294901760, %v2443_v28  ;;  %v1422_v19 = vand.u32 4294901760, %v2695_v37  ;;  %v1324_v28 = vsub.f32 %v2684_v8, %v1323_v62  ;;  %v1412_v42 = vand.u32 4294901760, %v1411_v30 }
  0xb9   : > { %1234 = vmatpush.msra.mxu0 %v2927_v50  ;;  %1310 = vmatpush.msra.mxu2 %v2597_v34 }
  0xba   : > { %1269 = vmatpush.msra.mxu1 %v2344_v26  ;;  %1389 = vmatpush.msra.mxu3 %v1388_v39  ;;  %v1417_v26 = vsub.f32 %v2681_v4, %v1416_v32  ;;  %v1423_v57 = vsub.f32 %v2695_v37, %v1422_v19 }
  0xbb   : > { %1238 = vmatpush.msra.mxu0 %v2928_v20  ;;  %1312 = vmatpush.msra.mxu2 %v2610_v22 }
  0xbc   : > { %1271 = vmatpush.msra.mxu1 %v2358_v31  ;;  %1395 = vmatpush.msra.mxu3 %v1394_v61  ;;  %v2930_v31 = vand.u32 4294901760, %v2485_v10  ;;  %v1418_v39 = vand.u32 4294901760, %v1417_v26  ;;  %v1424_v10 = vand.u32 4294901760, %v1423_v57  ;;  %v190_v26 = vld [vmem:[%s2838_s3] sm:$0x3] }
  0xbd   : > { %1242 = vmatpush.msra.mxu0 %v2929_v14  ;;  %1314 = vmatpush.msra.mxu2 %v2623_v49 }
  0xbe   : > { %1273 = vmatpush.msra.mxu1 %v2371_v43  ;;  %1401 = vmatpush.msra.mxu3 %v1400_v44  ;;  %v1325_v43 = vand.u32 4294901760, %v1324_v28 }
  0xbf   : > { %1246 = vmatpush.msra.mxu0 %v2930_v31  ;;  %1316 = vmatpush.msra.mxu2 %v2641_v63 }
  0xc0   : > { %1275 = vmatpush.msra.mxu1 %v2384_v59  ;;  %1407 = vmatpush.msra.mxu3 %v1406_v58  ;;  %v2931_v59 = vand.u32 4294901760, %v2478_v15 }
  0xc1   : > { %1248 = vmatmul.f32.vlgmr.msra.gmra.mxu0 %v2393_v27  ;;  %1318 = vmatpush.msra.mxu2 %v2655_v3 }
  0xc2   : > { %1433 = vmatpush.msrb.mxu0 %v2478_v15  ;;  %1277 = vmatpush.msra.mxu1 %v2399_v60  ;;  %v2932_v60 = vand.u32 4294901760, %v2500_v12 }
  0xc3   : > { %1413 = vmatpush.msra.mxu3 %v1412_v42  ;;  %1320 = vmatpush.msra.mxu2 %v2670_v29 }
  0xc4   : > { %1436 = vmatpush.msrb.mxu0 %v2500_v12  ;;  %1279 = vmatpush.msra.mxu1 %v2411_v52  ;;  %v2933_v52 = vand.u32 4294901760, %v2511_v47  ;;  %v2941_v12 = vand.u32 4294901760, %v2621_v16 }
  0xc5   : > { %1419 = vmatpush.msra.mxu3 %v1418_v39  ;;  %1326 = vmatmul.f32.vlgmr.msra.gmra.mxu2 %v1325_v43 }
  0xc6   : > { %1439 = vmatpush.msrb.mxu0 %v2511_v47  ;;  %1527 = vmatpush.msrb.mxu2 %v2931_v59 }
  0xc7   : > { %1281 = vmatpush.msra.mxu1 %v2434_v17  ;;  %1425 = vmatpush.msra.mxu3 %v1424_v10  ;;  %v2934_v17 = vand.u32 4294901760, %v2519_v6 }
  0xc8   : > { %1427 = vmatmul.f32.vlgmr.msra.gmra.mxu3 %v2657_v0  ;;  %1442 = vmatpush.msrb.mxu0 %v2519_v6  ;;  %v2937_v6 = vand.u32 4294901760, %v2567_v21 }
  0xc9   : > { %1531 = vmatpush.msrb.mxu2 %v2932_v60  ;;  %1594 = vmatpush.msrb.mxu3 %v2448_v11 }
  0xca   : > { %1283 = vmatpush.msra.mxu1 %v2455_v5  ;;  %1445 = vmatpush.msrb.mxu0 %v2531_v24  ;;  %v2939_v5 = vand.u32 4294901760, %v2595_v18 }
  0xcb   : > { %1285 = vmatmul.f32.vlgmr.msra.gmra.mxu1 %v2393_v27  ;;  %1535 = vmatpush.msrb.mxu2 %v2933_v52  ;;  %v2935_v27 = vand.u32 4294901760, %v2531_v24 }
  0xcc   : > { %1486 = vmatpush.msrb.mxu1 %v2448_v11  ;;  %1596 = vmatpush.msrb.mxu3 %v2469_v25  ;;  %v2936_v11 = vand.u32 4294901760, %v2552_v2 }
  0xcd   : > { %1448 = vmatpush.msrb.mxu0 %v2552_v2  ;;  %1539 = vmatpush.msrb.mxu2 %v2934_v17 }
  0xce   : > { %1488 = vmatpush.msrb.mxu1 %v2469_v25  ;;  %1598 = vmatpush.msrb.mxu3 %v2487_v48 }
  0xcf   : > { %1451 = vmatpush.msrb.mxu0 %v2567_v21  ;;  %1543 = vmatpush.msrb.mxu2 %v2935_v27 }
  0xd0   : > { %1490 = vmatpush.msrb.mxu1 %v2487_v48  ;;  %1600 = vmatpush.msrb.mxu3 %v2493_v53  ;;  %v2938_v48 = vand.u32 4294901760, %v2582_v9 }
  0xd1   : > { %1454 = vmatpush.msrb.mxu0 %v2582_v9  ;;  %1547 = vmatpush.msrb.mxu2 %v2936_v11 }
  0xd2   : > { %1492 = vmatpush.msrb.mxu1 %v2493_v53  ;;  %1602 = vmatpush.msrb.mxu3 %v2505_v1 }
  0xd3   : > { %1457 = vmatpush.msrb.mxu0 %v2595_v18  ;;  %1551 = vmatpush.msrb.mxu2 %v2937_v6 }
  0xd4   : > { %1494 = vmatpush.msrb.mxu1 %v2505_v1  ;;  %1604 = vmatpush.msrb.mxu3 %v2524_v51  ;;  %v2940_v1 = vand.u32 4294901760, %v2608_v54 }
  0xd5   : > { %1460 = vmatpush.msrb.mxu0 %v2608_v54  ;;  %1555 = vmatpush.msrb.mxu2 %v2938_v48 }
  0xd6   : > { %1496 = vmatpush.msrb.mxu1 %v2524_v51  ;;  %1606 = vmatpush.msrb.mxu3 %v2540_v41 }
  0xd7   : > { %1463 = vmatpush.msrb.mxu0 %v2621_v16  ;;  %1559 = vmatpush.msrb.mxu2 %v2939_v5 }
  0xd8   : > { %1498 = vmatpush.msrb.mxu1 %v2540_v41  ;;  %1608 = vmatpush.msrb.mxu3 %v2554_v45 }
  0xd9   : > { %1466 = vmatpush.msrb.mxu0 %v2635_v7  ;;  %1563 = vmatpush.msrb.mxu2 %v2940_v1 }
  0xda   : > { %1500 = vmatpush.msrb.mxu1 %v2554_v45  ;;  %1610 = vmatpush.msrb.mxu3 %v2569_v23 }
  0xdb   : > { %1469 = vmatpush.msrb.mxu0 %v2649_v35  ;;  %1567 = vmatpush.msrb.mxu2 %v2941_v12 }
  0xdc   : > { %1502 = vmatpush.msrb.mxu1 %v2569_v23  ;;  %1612 = vmatpush.msrb.mxu3 %v2584_v46 }
  0xdd   : > { %1472 = vmatpush.msrb.mxu0 %v2668_v55  ;;  %1571 = vmatpush.msrb.mxu2 %v1398_v38  ;;  %v405_v23 = vpop.f32.mrf.mxu1 }
  0xde   : > { %1504 = vmatpush.msrb.mxu1 %v2584_v46  ;;  %1614 = vmatpush.msrb.mxu3 %v2597_v34 }
  0xdf   : > { %1475 = vmatpush.msrb.mxu0 %v2681_v4  ;;  %1575 = vmatpush.msrb.mxu2 %v1404_v40  ;;  %v459_v15 = vpop.f32.mrf.mxu2  ;;  %v498_v47 = vpop.f32.mrf.mxu3 }
  0xe0   : > { %1506 = vmatpush.msrb.mxu1 %v2597_v34  ;;  %1616 = vmatpush.msrb.mxu3 %v2610_v22  ;;  %v304_v34 = vpop.f32.mrf.mxu0 }
  0xe1   : > { %1478 = vmatpush.msrb.mxu0 %v2695_v37  ;;  %1579 = vmatpush.msrb.mxu2 %v1410_v33  ;;  %v406_v25 = vadd.f32 %v405_v23, %v304_v34 }
  0xe2   : > { %1508 = vmatpush.msrb.mxu1 %v2610_v22  ;;  %1618 = vmatpush.msrb.mxu3 %v2623_v49 }
  0xe3   : > { %1481 = vmatmul.f32.vlgmr.msrb.gmra.mxu0 %v2684_v8  ;;  %1583 = vmatpush.msrb.mxu2 %v1416_v32  ;;  %v460_v53 = vadd.f32 %v459_v15, %v406_v25 }
  0xe4   : > { %1510 = vmatpush.msrb.mxu1 %v2623_v49  ;;  %1620 = vmatpush.msrb.mxu3 %v2641_v63 }
  0xe5   : > { %1587 = vmatpush.msrb.mxu2 %v1422_v19  ;;  %v499_v51 = vadd.f32 %v498_v47, %v460_v53 }
  0xe6   : > { %1512 = vmatpush.msrb.mxu1 %v2641_v63  ;;  %1622 = vmatpush.msrb.mxu3 %v2655_v3 }
  0xe7   : > { %1589 = vmatmul.f32.vlgmr.msrb.gmra.mxu2 %v2657_v0  ;;  %v604_v41 = vpop.f32.mrf.mxu1 }
  0xe8   : > { %1514 = vmatpush.msrb.mxu1 %v2655_v3  ;;  %1624 = vmatpush.msrb.mxu3 %v2670_v29  ;;  %v567_v24 = vpop.f32.mrf.mxu0  ;;  %v645_v45 = vpop.f32.mrf.mxu2 }
  0xe9   : > { %1626 = vmatmul.f32.vlgmr.msrb.gmra.mxu3 %v2657_v0  ;;  %v568_v9 = vadd.f32 %v567_v24, %v499_v51 }
  0xea   : > { %1516 = vmatpush.msrb.mxu1 %v2670_v29 }
  0xeb   : > { %1520 = vmatmul.f32.vlgmr.msrb.gmra.mxu1 %v1323_v62  ;;  %v605_v2 = vadd.f32 %v604_v41, %v568_v9  ;;  %v746_v46 = vpop.f32.mrf.mxu3 }
  0xed   : > { %v646_v21 = vadd.f32 %v645_v45, %v605_v2 }
  0xef   : > { %v747_v35 = vadd.f32 %v746_v46, %v646_v21 }
  0xfa   : > { %v800_v18 = vpop.f32.mrf.mxu0 }
  0xfb   : > { %v801_v22 = vadd.f32 %v800_v18, %v747_v35 }
 0x104   : > { %v839_v54 = vpop.f32.mrf.mxu1  ;;  %v908_v49 = vpop.f32.mrf.mxu2 }
 0x105   : > { %v840_v16 = vadd.f32 %v839_v54, %v801_v22 }
 0x107   : > { %v909_v7 = vadd.f32 %v908_v49, %v840_v16  ;;  %v945_v63 = vpop.f32.mrf.mxu3 }
 0x109   : > { %v946_v0 = vadd.f32 %v945_v63, %v909_v7 }
 0x11c   : > { %v986_v3 = vpop.f32.mrf.mxu0 }
 0x11d   : > { %v987_v55 = vadd.f32 %v986_v3, %v946_v0 }
 0x126   : > { %v1087_v38 = vpop.f32.mrf.mxu1  ;;  %v1141_v40 = vpop.f32.mrf.mxu2 }
 0x127   : > { %v1088_v29 = vadd.f32 %v1087_v38, %v987_v55 }
 0x129   : > { %v1142_v4 = vadd.f32 %v1141_v40, %v1088_v29  ;;  %v1180_v8 = vpop.f32.mrf.mxu3 }
 0x12b   : > { %v1181_v13 = vadd.f32 %v1180_v8, %v1142_v4 }
 0x13e   : > { %v1249_v56 = vpop.f32.mrf.mxu0 }
 0x13f   : > { %v1250_v37 = vadd.f32 %v1249_v56, %v1181_v13 }
 0x148   : > { %v1286_v33 = vpop.f32.mrf.mxu1  ;;  %v1327_v36 = vpop.f32.mrf.mxu2 }
 0x149   : > { %v1287_v61 = vadd.f32 %v1286_v33, %v1250_v37 }
 0x14b   : > { %v1328_v50 = vadd.f32 %v1327_v36, %v1287_v61  ;;  %v1428_v32 = vpop.f32.mrf.mxu3 }
 0x14d   : > { %v1429_v44 = vadd.f32 %v1428_v32, %v1328_v50 }
 0x160   : > { %v1482_v62 = vpop.f32.mrf.mxu0 }
 0x161   : > { %v1483_v20 = vadd.f32 %v1482_v62, %v1429_v44 }
 0x168   : > { %v1521_v30 = vpop.f32.mrf.mxu1 }
 0x169   : > { %v1522_v19 = vadd.f32 %v1521_v30, %v1483_v20 }
 0x16a   : > { %v1590_v58 = vpop.f32.mrf.mxu2 }
 0x16b   : > { %v1591_v14 = vadd.f32 %v1590_v58, %v1522_v19 }
 0x16c   : > { %v1627_v28 = vpop.f32.mrf.mxu3 }
 0x16d   : > { %v1628_v31 = vadd.f32 %v1627_v28, %v1591_v14 }
 0x16f   : > { %v1630_v42 = vadd.f32 %v1628_v31, %v190_v26 }
 0x171   : > { %1632 = vst.msk [vmem:[%s2838_s3] sm:$0x3] %vm1631_vm1, %v1630_v42 }
 0x172 PF: > { %s13_s12 = sadd.s32 1, %s1699_s12  }
 0x173   : > { %p10_p6 = scmp.ge.s32.totalorder %s13_s12, 7  }
 0x175   :  { %12 = sbr.rel (!%p10_p6) target bundleno = 1 (0x1), region = 65 }

// kernel: autoencoder_forward.6
= control target key start
LH: loop header
LB: loop body
LE: loop exit
PB: predicated region body
PF: predicated region fallthrough
CT: control target
= control target key end

     0   :  { %s1182_s12 = smov 0   ;;  %s1184_s13 = smov 0   ;;  %s1497_s0 = inlined_call_operand.vmem [shape: f32[2,32], index: 0, kind: input, shape index: {}]   ;;  %s1498_s1 = inlined_call_operand.vmem [shape: f32[32,2560], index: 1, kind: input, shape index: {}]   ;;  %s1499_s2 = inlined_call_operand.vmem [shape: f32[1,2560], index: 2, kind: input, shape index: {}]   ;;  %s1500_s3 = inlined_call_operand.vmem [shape: f32[2,2560], index: 3, kind: output, shape index: {}]  }
   0x1   :  { %s1186_s14 = smov 0  }
   0x2 LB: > { %s1099_s15 = sadd.s32 4294967295, %s1160_s14   ;;  %s1199_s16 = sadd.s32 1, %s1160_s14   ;;  %s1160_s14 = sphi %s1186_s14, %s1503_s14   ;;  %s1156_s13 = sphi %s1184_s13, %s1502_s13   ;;  %s1152_s12 = sphi %s1182_s12, %s1501_s12  }
   0x3   : > { %s38_s17 = ssub.s32 %s1160_s14, %s1199_s16  ;;  %s41_s18 = sadd.s32 1, %s1156_s13 }
   0x4   : > { %p39_p0 = scmp.eq.s32.totalorder %s38_s17, 0  ;;  %p48_p1 = scmp.ne.s32.totalorder %s1156_s13, %s1152_s12 }
   0x5   : > { %p49_p2 = scmp.eq.s32.totalorder %s1160_s14, 0  ;;  %p1102_p4 = scmp.ge.s32.totalorder %s1160_s14, 5 }
   0x6   : > { %s1208_s19 = scalar_select %p39_p0, %s1156_s13, %s41_s18  }
   0x7   : > { %p50_p3 = por %p49_p2, %p48_p1  ;;  %129 = sbr.rel (%p1102_p4) target bundleno = 32 (0x20), region = 20 }
   0xc   : > { %132 = sbr.rel (!%p50_p3) target bundleno = 32 (0x20), region = 24  ;;  %s134_s20 = sand.u32 (%p50_p3), 1, %s1156_s13  }
   0xd   : > { %s1113_s21 = sshll.u32 (%p50_p3), %s1160_s14, 5  ;;  %s1103_s22 = sshll.u32 (%p50_p3), %s134_s20, 7 }
   0xe   : > { %s1216_s25 = scalar_lea.vmem (%p50_p3), %s1498_s1, %s1113_s21  ;;  %s136_s26 = scalar_lea.vmem (%p50_p3), [#allocation2], %s1103_s22 }
   0xf   : > { %v152_v0 = vld [vmem:[%s1216_s25] sm:$0xff] (%p50_p3)  ;;  %v154_v1 = vld [vmem:[%s1216_s25 + $0x8] sm:$0xff] (%p50_p3)  ;;  %v156_v2 = vld [vmem:[%s1216_s25 + $0x10] sm:$0xff] (%p50_p3) }
  0x10   : > { %153 = vst [vmem:[%s136_s26] sm:$0xff] (%p50_p3), %v152_v0  ;;  %v158_v3 = vld [vmem:[%s1216_s25 + $0x18] sm:$0xff] (%p50_p3)  ;;  %v160_v4 = vld [vmem:[%s1216_s25 + $0xa0] sm:$0xff] (%p50_p3)  ;;  %v162_v5 = vld [vmem:[%s1216_s25 + $0xa8] sm:$0xff] (%p50_p3) }
  0x11   : > { %155 = vst [vmem:[%s136_s26 + $0x8] sm:$0xff] %v154_v1  ;;  %v164_v6 = vld [vmem:[%s1216_s25 + $0xb0] sm:$0xff]  ;;  %v166_v7 = vld [vmem:[%s1216_s25 + $0xb8] sm:$0xff]  ;;  %v168_v8 = vld [vmem:[%s1216_s25 + $0x140] sm:$0xff] }
  0x12   : > { %157 = vst [vmem:[%s136_s26 + $0x10] sm:$0xff] %v156_v2  ;;  %v170_v9 = vld [vmem:[%s1216_s25 + $0x148] sm:$0xff]  ;;  %v172_v10 = vld [vmem:[%s1216_s25 + $0x150] sm:$0xff]  ;;  %v174_v11 = vld [vmem:[%s1216_s25 + $0x158] sm:$0xff] }
  0x13   : > { %159 = vst [vmem:[%s136_s26 + $0x18] sm:$0xff] %v158_v3  ;;  %v176_v12 = vld [vmem:[%s1216_s25 + $0x1e0] sm:$0xff]  ;;  %v178_v13 = vld [vmem:[%s1216_s25 + $0x1e8] sm:$0xff]  ;;  %v180_v14 = vld [vmem:[%s1216_s25 + $0x1f0] sm:$0xff] }
  0x14   : > { %161 = vst [vmem:[%s136_s26 + $0x20] sm:$0xff] %v160_v4  ;;  %v182_v15 = vld [vmem:[%s1216_s25 + $0x1f8] sm:$0xff] }
  0x15   : > { %163 = vst [vmem:[%s136_s26 + $0x28] sm:$0xff] %v162_v5 }
  0x16   : > { %165 = vst [vmem:[%s136_s26 + $0x30] sm:$0xff] %v164_v6 }
  0x17   : > { %167 = vst [vmem:[%s136_s26 + $0x38] sm:$0xff] %v166_v7 }
  0x18   : > { %169 = vst [vmem:[%s136_s26 + $0x40] sm:$0xff] %v168_v8 }
  0x19   : > { %171 = vst [vmem:[%s136_s26 + $0x48] sm:$0xff] %v170_v9 }
  0x1a   : > { %173 = vst [vmem:[%s136_s26 + $0x50] sm:$0xff] %v172_v10 }
  0x1b   : > { %175 = vst [vmem:[%s136_s26 + $0x58] sm:$0xff] %v174_v11 }
  0x1c   : > { %177 = vst [vmem:[%s136_s26 + $0x60] sm:$0xff] %v176_v12 }
  0x1d   : > { %179 = vst [vmem:[%s136_s26 + $0x68] sm:$0xff] %v178_v13 }
  0x1e   : > { %181 = vst [vmem:[%s136_s26 + $0x70] sm:$0xff] %v180_v14 }
  0x1f   : > { %183 = vst [vmem:[%s136_s26 + $0x78] sm:$0xff] %v182_v15 }
  0x20 PF: > { %p1106_p5 = scmp.ge.s32.totalorder %s1160_s14, 1  ;;  %p196_p6 = scmp.lt.s32.totalorder %s1160_s14, 6 }
  0x22   : > { %p197_p7 = pnand %p1106_p5, %p196_p6 }
  0x23   : > { %s203_s27 = sand.u32 (!%p197_p7), 1, %s1152_s12   ;;  %s1108_s5 = sshll.u32 (!%p197_p7), %s1099_s15, 2 }
  0x24   : > { %200 = sbr.rel (%p197_p7) target bundleno = 245 (0xf5), region = 51  ;;  %s1107_s30 = sshll.u32 (!%p197_p7), %s203_s27, 7 }
  0x25   : > { %s1242_s4 = scalar_lea.vmem (!%p197_p7), [#allocation2], %s1107_s30  ;;  %p232_p8 = scmp.lt.s32.totalorder (!%p197_p7), %s1108_s5, 19 }
  0x29   : > { %v242_v16 = vld [vmem:[%s1497_s0] sm:$0x3]  ;;  %vm269_vm0 = vcmask 261120   ;;  %v256_v27 = vld [vmem:[%s1242_s4 + $0x68] sm:$0xff]  ;;  %v257_v5 = vld [vmem:[%s1242_s4 + $0x70] sm:$0xff]  ;;  %s1505_s5 = smov (!%p232_p8, %s1108_s5), 19 }
  0x2a   : > { %v271_v17 = vsel %vm269_vm0, %v242_v16, 0  ;;  %v255_v19 = vld [vmem:[%s1242_s4 + $0x60] sm:$0xff]  ;;  %v252_v28 = vld [vmem:[%s1242_s4 + $0x48] sm:$0xff]  ;;  %v1261_v30 = vand.u32 4294901760, %v256_v27  ;;  %v253_v7 = vld [vmem:[%s1242_s4 + $0x50] sm:$0xff]  ;;  %v1332_v8 = vand.u32 4294901760, %v257_v5  ;;  %s234_s8 = scalar_lea.vmem %s1499_s2, %s1505_s5 }
  0x2b   : > { %v1240_v18 = vand.u32 4294901760, %v271_v17  ;;  %v251_v20 = vld [vmem:[%s1242_s4 + $0x40] sm:$0xff]  ;;  %v1247_v22 = vand.u32 4294901760, %v255_v19  ;;  %v1263_v31 = vand.u32 4294901760, %v252_v28  ;;  %v248_v32 = vld [vmem:[%s1242_s4 + $0x28] sm:$0xff]  ;;  %v249_v10 = vld [vmem:[%s1242_s4 + $0x30] sm:$0xff] }
  0x2c   : > { %v247_v21 = vld [vmem:[%s1242_s4 + $0x20] sm:$0xff]  ;;  %v1249_v23 = vand.u32 4294901760, %v251_v20  ;;  %v244_v37 = vld [vmem:[%s1242_s4 + $0x8] sm:$0xff]  ;;  %v1281_v39 = vsub.f32 %v256_v27, %v1261_v30  ;;  %v1283_v40 = vand.u32 4294901760, %v248_v32  ;;  %v1338_v11 = vand.u32 4294901760, %v253_v7  ;;  %v245_v14 = vld [vmem:[%s1242_s4 + $0x10] sm:$0xff] }
  0x2d   : > { %v1251_v24 = vand.u32 4294901760, %v247_v21  ;;  %v243_v25 = vld [vmem:[%s1242_s4] sm:$0xff]  ;;  %v1255_v26 = vsub.f32 %v271_v17, %v1240_v18  ;;  %v315_v33 = vsub.f32 %v255_v19, %v1247_v22  ;;  %286 = vmatpush.msra.mxu0 %v1247_v22  ;;  %386 = vmatpush.msra.mxu3 %v1247_v22  ;;  %v1286_v41 = vsub.f32 %v252_v28, %v1263_v31  ;;  %v258_v16 = vld [vmem:[%s1242_s4 + $0x78] sm:$0xff]  ;;  %s1110_s9 = sshll.u32 %s1505_s5, 1 }
  0x2e   : > { %v1259_v29 = vand.u32 4294901760, %v243_v25  ;;  %v321_v34 = vsub.f32 %v251_v20, %v1249_v23  ;;  %v501_v46 = vand.u32 4294901760, %v1281_v39  ;;  %v1296_v49 = vand.u32 4294901760, %v244_v37  ;;  %s240_s12 = scalar_lea.vmem %s1500_s3, %s1110_s9 }
  0x2f   : > { %v1271_v35 = vsub.f32 %v247_v21, %v1251_v24  ;;  %v1274_v36 = vand.u32 4294901760, %v1255_v26  ;;  %357 = vmatpush.msra.mxu2 %v315_v33  ;;  %288 = vmatpush.msra.mxu0 %v1249_v23  ;;  %v316_v42 = vand.u32 4294901760, %v315_v33  ;;  %v507_v48 = vand.u32 4294901760, %v1286_v41  ;;  %v254_v21 = vld [vmem:[%s1242_s4 + $0x58] sm:$0xff] }
  0x30   : > { %v1278_v38 = vsub.f32 %v243_v25, %v1259_v29  ;;  %v322_v43 = vand.u32 4294901760, %v321_v34  ;;  %388 = vmatpush.msra.mxu3 %v1249_v23  ;;  %v502_v54 = vsub.f32 %v1281_v39, %v501_v46  ;;  %v1308_v56 = vsub.f32 %v248_v32, %v1283_v40 }
  0x31   : > { %v328_v44 = vand.u32 4294901760, %v1271_v35  ;;  %v296_v45 = vsub.f32 %v1255_v26, %v1274_v36  ;;  %360 = vmatpush.msra.mxu2 %v321_v34  ;;  %v317_v50 = vsub.f32 %v315_v33, %v316_v42  ;;  %290 = vmatpush.msra.mxu0 %v1251_v24  ;;  %v508_v55 = vsub.f32 %v1286_v41, %v507_v48 }
  0x32   : > { %v334_v47 = vand.u32 4294901760, %v1278_v38  ;;  %v323_v51 = vsub.f32 %v321_v34, %v322_v43  ;;  %390 = vmatpush.msra.mxu3 %v1251_v24  ;;  %v1314_v60 = vsub.f32 %v244_v37, %v1296_v49  ;;  %v503_v61 = vand.u32 4294901760, %v502_v54 }
  0x33   : > { %v329_v52 = vsub.f32 %v1271_v35, %v328_v44  ;;  %v1300_v53 = vand.u32 4294901760, %v296_v45  ;;  %v318_v57 = vand.u32 4294901760, %v317_v50  ;;  %363 = vmatpush.msra.mxu2 %v1271_v35  ;;  %292 = vmatpush.msra.mxu0 %v1259_v29  ;;  %v513_v62 = vand.u32 4294901760, %v1308_v56 }
  0x34   : > { %v324_v58 = vand.u32 4294901760, %v323_v51  ;;  %v335_v59 = vsub.f32 %v1278_v38, %v334_v47  ;;  %392 = vmatpush.msra.mxu3 %v1259_v29  ;;  %v519_v0 = vand.u32 4294901760, %v1314_v60  ;;  %v509_v1 = vand.u32 4294901760, %v508_v55 }
  0x35   : > { %298 = vmatmul.f32.vlgmr.msra.gmra.mxu0 %v1300_v53  ;;  %319 = vmatpush.msra.mxu1 %v318_v57  ;;  %v330_v63 = vand.u32 4294901760, %v329_v52  ;;  %v514_v2 = vsub.f32 %v1308_v56, %v513_v62  ;;  %v1343_v12 = vsub.f32 %v257_v5, %v1332_v8  ;;  %v1345_v13 = vand.u32 4294901760, %v249_v10 }
  0x36   : > { %366 = vmatpush.msra.mxu2 %v1278_v38  ;;  %396 = vmatmul.f32.vlgmr.msra.gmra.mxu3 %v1274_v36  ;;  %v336_v3 = vand.u32 4294901760, %v335_v59  ;;  %v520_v4 = vsub.f32 %v1314_v60, %v519_v0  ;;  %v1351_v15 = vsub.f32 %v253_v7, %v1338_v11  ;;  %v1356_v17 = vand.u32 4294901760, %v245_v14 }
  0x37   : > { %369 = vmatmul.f32.vlgmr.msra.gmra.mxu2 %v1255_v26  ;;  %325 = vmatpush.msra.mxu1 %v324_v58  ;;  %v515_v6 = vand.u32 4294901760, %v514_v2  ;;  %v686_v19 = vand.u32 4294901760, %v1343_v12  ;;  %v1363_v20 = vsub.f32 %v249_v10, %v1345_v13  ;;  %v1378_v27 = vand.u32 4294901760, %v254_v21 }
  0x38   : > { %471 = vmatpush.msrb.mxu2 %v1261_v30  ;;  %415 = vmatpush.msrb.mxu0 %v316_v42  ;;  %v521_v9 = vand.u32 4294901760, %v520_v4  ;;  %v1376_v25 = vsub.f32 %v245_v14, %v1356_v17  ;;  %vm1020_vm1 = vcmask 1041408   ;;  %vm1022_vm2 = vcmask 1045508  }
  0x39   : > { %504 = vmatpush.msrb.mxu3 %v503_v61  ;;  %331 = vmatpush.msra.mxu1 %v330_v63  ;;  %v687_v28 = vsub.f32 %v1343_v12, %v686_v19  ;;  %v1404_v35 = vsub.f32 %v254_v21, %v1378_v27  ;;  %vm1024_vm3 = vcmask 1043456  }
  0x3a   : > { %473 = vmatpush.msrb.mxu2 %v1263_v31  ;;  %419 = vmatpush.msrb.mxu0 %v322_v43  ;;  %v704_v34 = vand.u32 4294901760, %v1376_v25 }
  0x3b   : > { %510 = vmatpush.msrb.mxu3 %v509_v1  ;;  %337 = vmatpush.msra.mxu1 %v336_v3  ;;  %v688_v38 = vand.u32 4294901760, %v687_v28 }
  0x3c   : > { %475 = vmatpush.msrb.mxu2 %v1283_v40  ;;  %339 = vmatmul.f32.vlgmr.msra.gmra.mxu1 %v1240_v18  ;;  %v705_v43 = vsub.f32 %v1376_v25, %v704_v34 }
  0x3d   : > { %423 = vmatpush.msrb.mxu0 %v328_v44  ;;  %446 = vmatpush.msrb.mxu1 %v1247_v22  ;;  %v1368_v22 = vand.u32 4294901760, %v258_v16  ;;  %v877_v44 = vand.u32 4294901760, %v1404_v35 }
  0x3e   : > { %477 = vmatpush.msrb.mxu2 %v1296_v49  ;;  %516 = vmatpush.msrb.mxu3 %v515_v6 }
  0x3f   : > { %427 = vmatpush.msrb.mxu0 %v334_v47  ;;  %448 = vmatpush.msrb.mxu1 %v1249_v23  ;;  %v692_v23 = vand.u32 4294901760, %v1351_v15  ;;  %v1391_v32 = vsub.f32 %v258_v16, %v1368_v22  ;;  %v878_v50 = vsub.f32 %v1404_v35, %v877_v44 }
  0x40   : > { %483 = vmatmul.f32.vlgmr.msrb.gmra.mxu2 %v1300_v53  ;;  %522 = vmatpush.msrb.mxu3 %v521_v9 }
  0x41   : > { %600 = vmatpush.msra.mxu2 %v501_v46  ;;  %450 = vmatpush.msrb.mxu1 %v1251_v24  ;;  %v250_v24 = vld [vmem:[%s1242_s4 + $0x38] sm:$0xff]  ;;  %v879_v55 = vand.u32 4294901760, %v878_v50 }
  0x42   : > { %429 = vmatmul.f32.vlgmr.msrb.gmra.mxu0 %v1240_v18  ;;  %524 = vmatmul.f32.vlgmr.msrb.gmra.mxu3 %v1240_v18  ;;  %v1393_v33 = vand.u32 4294901760, %v250_v24 }
  0x43   : > { %542 = vmatpush.msra.mxu0 %v1281_v39  ;;  %452 = vmatpush.msrb.mxu1 %v1259_v29  ;;  %v698_v29 = vand.u32 4294901760, %v1363_v20 }
  0x44   : > { %604 = vmatpush.msra.mxu2 %v507_v48  ;;  %631 = vmatpush.msra.mxu3 %v1261_v30 }
  0x45   : > { %454 = vmatmul.f32.vlgmr.msrb.gmra.mxu1 %v1240_v18  ;;  %545 = vmatpush.msra.mxu0 %v1286_v41  ;;  %v699_v39 = vsub.f32 %v1363_v20, %v698_v29  ;;  %v1417_v41 = vsub.f32 %v250_v24, %v1393_v33 }
  0x46   : > { %571 = vmatpush.msra.mxu1 %v1261_v30  ;;  %608 = vmatpush.msra.mxu2 %v513_v62  ;;  %v246_v30 = vld [vmem:[%s1242_s4 + $0x18] sm:$0xff] }
  0x47   : > { %633 = vmatpush.msra.mxu3 %v1263_v31  ;;  %548 = vmatpush.msra.mxu0 %v1308_v56  ;;  %v1406_v37 = vand.u32 4294901760, %v246_v30  ;;  %v700_v46 = vand.u32 4294901760, %v699_v39  ;;  %v883_v48 = vand.u32 4294901760, %v1417_v41 }
  0x48   : > { %573 = vmatpush.msra.mxu1 %v1263_v31  ;;  %612 = vmatpush.msra.mxu2 %v519_v0  ;;  %v693_v31 = vsub.f32 %v1351_v15, %v692_v23 }
  0x49   : > { %635 = vmatpush.msra.mxu3 %v1283_v40  ;;  %551 = vmatpush.msra.mxu0 %v1314_v60  ;;  %v888_v45 = vsub.f32 %v246_v30, %v1406_v37  ;;  %v884_v54 = vsub.f32 %v1417_v41, %v883_v48 }
  0x4a   : > { %575 = vmatpush.msra.mxu1 %v1283_v40  ;;  %614 = vmatmul.f32.vlgmr.msra.gmra.mxu2 %v1240_v18  ;;  %v871_v40 = vand.u32 4294901760, %v1391_v32  ;;  %v694_v42 = vand.u32 4294901760, %v693_v31 }
  0x4b   : > { %637 = vmatpush.msra.mxu3 %v1296_v49  ;;  %727 = vmatpush.msrb.mxu2 %v1343_v12  ;;  %v889_v51 = vand.u32 4294901760, %v888_v45  ;;  %v885_v57 = vand.u32 4294901760, %v884_v54 }
  0x4c   : > { %554 = vmatmul.f32.vlgmr.msra.gmra.mxu0 %v1255_v26  ;;  %577 = vmatpush.msra.mxu1 %v1296_v49  ;;  %v872_v47 = vsub.f32 %v1391_v32, %v871_v40  ;;  %v706_v49 = vand.u32 4294901760, %v705_v43 }
  0x4d   : > { %639 = vmatmul.f32.vlgmr.msra.gmra.mxu3 %v1240_v18  ;;  %656 = vmatpush.msrb.mxu0 %v1332_v8  ;;  %v890_v56 = vsub.f32 %v888_v45, %v889_v51 }
  0x4e   : > { %730 = vmatpush.msrb.mxu2 %v1351_v15  ;;  %756 = vmatpush.msrb.mxu3 %v1332_v8  ;;  %v873_v52 = vand.u32 4294901760, %v872_v47 }
  0x4f   : > { %581 = vmatmul.f32.vlgmr.msra.gmra.mxu1 %v1274_v36  ;;  %658 = vmatpush.msrb.mxu0 %v1338_v11  ;;  %v891_v58 = vand.u32 4294901760, %v890_v56 }
  0x50   : > { %689 = vmatpush.msrb.mxu1 %v688_v38  ;;  %733 = vmatpush.msrb.mxu2 %v1363_v20 }
  0x51   : > { %758 = vmatpush.msrb.mxu3 %v1338_v11  ;;  %660 = vmatpush.msrb.mxu0 %v1345_v13 }
  0x52   : > { %695 = vmatpush.msrb.mxu1 %v694_v42  ;;  %736 = vmatpush.msrb.mxu2 %v1376_v25 }
  0x53   : > { %760 = vmatpush.msrb.mxu3 %v1345_v13  ;;  %662 = vmatpush.msrb.mxu0 %v1356_v17 }
  0x54   : > { %701 = vmatpush.msrb.mxu1 %v700_v46  ;;  %739 = vmatmul.f32.vlgmr.msrb.gmra.mxu2 %v1255_v26 }
  0x55   : > { %762 = vmatpush.msrb.mxu3 %v1356_v17  ;;  %841 = vmatpush.msra.mxu2 %v1368_v22 }
  0x56   : > { %668 = vmatmul.f32.vlgmr.msrb.gmra.mxu0 %v1300_v53  ;;  %707 = vmatpush.msrb.mxu1 %v706_v49 }
  0x57   : > { %766 = vmatmul.f32.vlgmr.msrb.gmra.mxu3 %v1274_v36  ;;  %785 = vmatpush.msra.mxu0 %v686_v19 }
  0x58   : > { %843 = vmatpush.msra.mxu2 %v1378_v27  ;;  %874 = vmatpush.msra.mxu3 %v873_v52 }
  0x59   : > { %709 = vmatmul.f32.vlgmr.msrb.gmra.mxu1 %v1240_v18  ;;  %789 = vmatpush.msra.mxu0 %v692_v23 }
  0x5a   : > { %816 = vmatpush.msra.mxu1 %v1332_v8  ;;  %845 = vmatpush.msra.mxu2 %v1393_v33 }
  0x5b   : > { %880 = vmatpush.msra.mxu3 %v879_v55  ;;  %793 = vmatpush.msra.mxu0 %v698_v29 }
  0x5c   : > { %818 = vmatpush.msra.mxu1 %v1338_v11  ;;  %847 = vmatpush.msra.mxu2 %v1406_v37 }
  0x5d   : > { %886 = vmatpush.msra.mxu3 %v885_v57  ;;  %797 = vmatpush.msra.mxu0 %v704_v34 }
  0x5e   : > { %820 = vmatpush.msra.mxu1 %v1345_v13  ;;  %853 = vmatmul.f32.vlgmr.msra.gmra.mxu2 %v1300_v53 }
  0x5f   : > { %892 = vmatpush.msra.mxu3 %v891_v58  ;;  %970 = vmatpush.msrb.mxu2 %v871_v40 }
  0x60   : > { %799 = vmatmul.f32.vlgmr.msra.gmra.mxu0 %v1240_v18  ;;  %822 = vmatpush.msra.mxu1 %v1356_v17 }
  0x61   : > { %894 = vmatmul.f32.vlgmr.msra.gmra.mxu3 %v1240_v18  ;;  %912 = vmatpush.msrb.mxu0 %v1391_v32 }
  0x62   : > { %974 = vmatpush.msrb.mxu2 %v877_v44  ;;  %1001 = vmatpush.msrb.mxu3 %v1368_v22 }
  0x63   : > { %824 = vmatmul.f32.vlgmr.msra.gmra.mxu1 %v1240_v18  ;;  %915 = vmatpush.msrb.mxu0 %v1404_v35 }
  0x64   : > { %941 = vmatpush.msrb.mxu1 %v1368_v22  ;;  %978 = vmatpush.msrb.mxu2 %v883_v48 }
  0x65   : > { %1003 = vmatpush.msrb.mxu3 %v1378_v27  ;;  %918 = vmatpush.msrb.mxu0 %v1417_v41 }
  0x66   : > { %943 = vmatpush.msrb.mxu1 %v1378_v27  ;;  %982 = vmatpush.msrb.mxu2 %v889_v51 }
  0x67   : > { %1005 = vmatpush.msrb.mxu3 %v1393_v33  ;;  %921 = vmatpush.msrb.mxu0 %v888_v45 }
  0x68   : > { %945 = vmatpush.msrb.mxu1 %v1393_v33  ;;  %984 = vmatmul.f32.vlgmr.msrb.gmra.mxu2 %v1240_v18 }
  0x69   : > { %1007 = vmatpush.msrb.mxu3 %v1406_v37  ;;  %924 = vmatmul.f32.vlgmr.msrb.gmra.mxu0 %v1255_v26 }
  0x6a   : > { %947 = vmatpush.msrb.mxu1 %v1406_v37  ;;  %1009 = vmatmul.f32.vlgmr.msrb.gmra.mxu3 %v1240_v18 }
  0x6b   : > { %951 = vmatmul.f32.vlgmr.msrb.gmra.mxu1 %v1274_v36  ;;  %v259_v36 = vld [vmem:[%s234_s8] sm:$0xf] }
  0x6c   : > { %v262_v4 = vperm.slane %v259_v36, 1  ;;  %v263_v6 = vperm.slane %v259_v36, 2  ;;  %v261_v10 = vperm.slane %v259_v36, 0  ;;  %v264_v19 = vperm.slane %v259_v36, 3 }
  0xb2   : > { %v299_v53 = vpop.f32.mrf.mxu0 }
  0xb3   : > { %v300_v14 = vadd.f32 %v299_v53, %v261_v10 }
  0xb9   : > { %v340_v59 = vpop.f32.mrf.mxu1  ;;  %v397_v61 = vpop.f32.mrf.mxu3 }
  0xba   : > { %v370_v60 = vpop.f32.mrf.mxu2  ;;  %v341_v21 = vadd.f32 %v340_v59, %v300_v14 }
  0xbc   : > { %v371_v28 = vadd.f32 %v370_v60, %v341_v21 }
  0xbe   : > { %v398_v35 = vadd.f32 %v397_v61, %v371_v28 }
  0xbf   : > { %v430_v62 = vpop.f32.mrf.mxu0 }
  0xc0   : > { %v431_v41 = vadd.f32 %v430_v62, %v398_v35 }
  0xc2   : > { %v455_v63 = vpop.f32.mrf.mxu1 }
  0xc3   : > { %v484_v0 = vpop.f32.mrf.mxu2  ;;  %v456_v47 = vadd.f32 %v455_v63, %v431_v41 }
  0xc4   : > { %v485_v8 = vadd.f32 %v484_v0, %v262_v4 }
  0xc5   : > { %v525_v1 = vpop.f32.mrf.mxu3 }
  0xc6   : > { %v526_v13 = vadd.f32 %v525_v1, %v485_v8 }
  0xc9   : > { %v555_v2 = vpop.f32.mrf.mxu0 }
  0xca   : > { %v556_v17 = vadd.f32 %v555_v2, %v526_v13 }
  0xcc   : > { %v582_v26 = vpop.f32.mrf.mxu1 }
  0xcd   : > { %v615_v3 = vpop.f32.mrf.mxu2  ;;  %v583_v24 = vadd.f32 %v582_v26, %v556_v17 }
  0xcf   : > { %v616_v32 = vadd.f32 %v615_v3, %v583_v24 }
  0xd0   : > { %v640_v18 = vpop.f32.mrf.mxu3 }
  0xd1   : > { %v641_v39 = vadd.f32 %v640_v18, %v616_v32 }
  0xd3   : > { %v669_v5 = vpop.f32.mrf.mxu0  ;;  %v1017_v45 = vrot.slane %v641_v39, 6 }
  0xd4   : > { %v670_v11 = vadd.f32 %v669_v5, %v263_v6 }
  0xd5   : > { %v1021_v50 = vsel %vm1020_vm1, %v456_v47, %v1017_v45 }
  0xd6   : > { %v710_v7 = vpop.f32.mrf.mxu1 }
  0xd7   : > { %v740_v9 = vpop.f32.mrf.mxu2  ;;  %v711_v15 = vadd.f32 %v710_v7, %v670_v11 }
  0xd9   : > { %v741_v22 = vadd.f32 %v740_v9, %v711_v15 }
  0xda   : > { %v767_v12 = vpop.f32.mrf.mxu3 }
  0xdb   : > { %v768_v29 = vadd.f32 %v767_v12, %v741_v22 }
  0xdd   : > { %v800_v16 = vpop.f32.mrf.mxu0 }
  0xde   : > { %v801_v37 = vadd.f32 %v800_v16, %v768_v29 }
  0xe0   : > { %v825_v20 = vpop.f32.mrf.mxu1 }
  0xe1   : > { %v854_v23 = vpop.f32.mrf.mxu2  ;;  %v826_v42 = vadd.f32 %v825_v20, %v801_v37 }
  0xe2   : > { %v855_v25 = vadd.f32 %v854_v23, %v264_v19 }
  0xe3   : > { %v1018_v48 = vrot.slane %v826_v42, 4 }
  0xe4   : > { %v895_v27 = vpop.f32.mrf.mxu3 }
  0xe5   : > { %v896_v30 = vadd.f32 %v895_v27, %v855_v25 }
  0xe6   : > { %v925_v33 = vpop.f32.mrf.mxu0 }
  0xe7   : > { %v926_v31 = vadd.f32 %v925_v33, %v896_v30 }
  0xe8   : > { %v952_v34 = vpop.f32.mrf.mxu1 }
  0xe9   : > { %v953_v38 = vadd.f32 %v952_v34, %v926_v31 }
  0xeb   : > { %v985_v40 = vpop.f32.mrf.mxu2 }
  0xec   : > { %v986_v43 = vadd.f32 %v985_v40, %v953_v38 }
  0xed   : > { %v1010_v44 = vpop.f32.mrf.mxu3 }
  0xee   : > { %v1011_v46 = vadd.f32 %v1010_v44, %v986_v43 }
  0xf0   : > { %v1019_v49 = vrot.slane %v1011_v46, 2 }
  0xf2   : > { %v1023_v51 = vsel %vm1022_vm2, %v1018_v48, %v1019_v49 }
  0xf3   : > { %v1025_v52 = vsel %vm1024_vm3, %v1021_v50, %v1023_v51 }
  0xf4   : > { %1027 = vst [vmem:[%s240_s12] sm:$0xff] %v1025_v52 }
  0xf5 PF: > { %p10_p9 = scmp.ge.s32.totalorder %s1199_s16, 7   ;;  %s1501_s12 = smov %s1156_s13 }
  0xf6   : > { %s1502_s13 = smov %s1208_s19  ;;  %s1503_s14 = smov %s1199_s16 }
  0xf7   :  { %12 = sbr.rel (!%p10_p9) target bundleno = 2 (0x2), region = 93 }

// kernel: autoencoder_forward.7
= control target key start
LH: loop header
LB: loop body
LE: loop exit
PB: predicated region body
PF: predicated region fallthrough
CT: control target
= control target key end

     0   :  { %s3486_s23 = smov 0   ;;  %s3488_s24 = smov 0   ;;  %s5404_s0 = inlined_call_operand.vmem [shape: f32[2,64,40], index: 0, kind: input, shape index: {}]   ;;  %s5405_s1 = inlined_call_operand.vmem [shape: f32[2,1,64,4], index: 1, kind: input, shape index: {}]   ;;  %s5406_s2 = inlined_call_operand.vmem [shape: f32[32,192], index: 2, kind: input, shape index: {}]   ;;  %s5407_s3 = inlined_call_operand.vmem [shape: f32[32,1], index: 3, kind: input, shape index: {}]   ;;  %s5408_s4 = inlined_call_operand.vmem [shape: f32[32,4], index: 4, kind: input, shape index: {}]   ;;  %s5409_s5 = inlined_call_operand.<no memory space> [shape: f32[1,1], index: 5, kind: input, shape index: {}]   ;;  %s5410_s6 = inlined_call_operand.vmem [shape: f32[2,2,40], index: 6, kind: output, shape index: {}]  }
   0x1   :  { %v11_v0 = vstv %s5409_s5  ;;  %s3490_s25 = smov 0  }
   0x2   :  { %12 = vst [vmem:[#allocation2] sm:$0x1] %v11_v0 }
   0x3 LB: > { %s30_s5 = sadd.s32 1, %s3433_s24  ;;  %p3332_p0 = scmp.ge.s32.totalorder %s3437_s25, 1  ;;  %s3437_s25 = sphi %s3490_s25, %s18_s25   ;;  %s3433_s24 = sphi %s3488_s24, %s5841_s24   ;;  %s3429_s23 = sphi %s3486_s23, %s5840_s23  }
   0x4   : > { %p32_p1 = scmp.ge.s32.totalorder %s30_s5, 2  ;;  %p249_p2 = scmp.lt.s32.totalorder %s3437_s25, 3 }
   0x6   : > { %s5843_s5 = smov (%p32_p1, %s30_s5), 0  ;;  %p250_p3 = pnand %p3332_p0, %p249_p2 }
   0x8   : > { %253 = sbr.rel (%p250_p3) target bundleno = 948 (0x3b4), region = 44 }
   0xd   : > { %p293_p4 = scmp.lt.s32.totalorder %s3429_s23, 1  ;;  %v5415_v1 = vmov 1   ;;  %s3440_s30 = smov 40   ;;  %v5417_v18 = vmov 0   ;;  %vm336_vm0 = vcmask 1047872   ;;  %v5413_v48 = vmov 2  }
   0xe   : > { %3379 = vset.pattern.permute.xlu2 %v5415_v1  ;;  %3377 = vset.pattern.permute.xlu1 %v5415_v1  ;;  %s3442_s10 = smov 89   ;;  %s3444_s11 = smov 90   ;;  %v5411_v61 = vmov 3   ;;  %v333_v63 = vlaneseq  ;;  %vm722_vm4 = vcmask 523264   ;;  %vm3109_vm8 = vcmask 326656  }
   0xf   : > { %s5845_s23 = smov (!%p293_p4, %s3429_s23), 1  ;;  %3378 = vset.pattern.permute.xlu0 %v5415_v1  ;;  %s3445_s12 = smov 127   ;;  %vm3226_vm15 = vcmask 1040384  }
  0x10   : > { %s3342_s26 = sshll.u32 %s5845_s23, 6  ;;  %s3447_s13 = smov 126  }
  0x11   : > { %s300_s29 = scalar_lea.vmem %s5404_s0, %s3342_s26  ;;  %s309_s9 = scalar_lea.vmem %s5405_s1, %s3342_s26 }
  0x12   : > { %v3513_v2 = vld [vmem:[%s300_s29 + $0x38] sm:$0xff]  ;;  %v3515_v3 = vld [vmem:[%s300_s29 + $0x28] sm:$0xff]  ;;  %v3525_v5 = vld [vmem:[%s300_s29 + $0x30] sm:$0xff]  ;;  %s3337_s28 = sshll.u32 %s5845_s23, 1 }
  0x13   : > { %358 = vrot.lane.b32.xlu0 %v3513_v2, %s3440_s30  ;;  %352 = vrot.lane.b32.xlu1 %v3515_v3, %s3440_s30  ;;  %v3521_v4 = vld [vmem:[%s300_s29 + $0x18] sm:$0xff]  ;;  %v3527_v6 = vld [vmem:[%s300_s29 + $0x20] sm:$0xff]  ;;  %s316_s7 = scalar_lea.vmem %s5410_s6, %s3337_s28 }
  0x14   : > { %346 = vrot.lane.b32.xlu2 %v3521_v4, %s3440_s30  ;;  %v3529_v7 = vld [vmem:[%s300_s29 + $0x10] sm:$0xff]  ;;  %v3540_v8 = vld [vmem:[%s300_s29 + $0x8] sm:$0xff]  ;;  %v3542_v9 = vld [vmem:[%s300_s29] sm:$0xff] }
  0x15   : > { %v3544_v10 = vld [vmem:[%s309_s9 + $0x28] sm:$0xff]  ;;  %v3551_v11 = vld [vmem:[%s309_s9 + $0x38] sm:$0xff]  ;;  %v3553_v12 = vld [vmem:[%s309_s9 + $0x30] sm:$0xff] }
  0x16   : > { %v3555_v13 = vld [vmem:[%s309_s9 + $0x20] sm:$0xff]  ;;  %v3560_v14 = vld [vmem:[%s309_s9 + $0x18] sm:$0xff]  ;;  %v3562_v15 = vld [vmem:[%s309_s9 + $0x10] sm:$0xff] }
  0x17   : > { %v3564_v16 = vld [vmem:[%s309_s9 + $0x8] sm:$0xff]  ;;  %v3569_v17 = vld [vmem:[%s309_s9] sm:$0xff] }
  0x1b   : > { %355 = vrot.lane.b32.xlu0 %v3525_v5, %s3440_s30  ;;  %349 = vrot.lane.b32.xlu1 %v3527_v6, %s3440_s30 }
  0x1c   : > { %343 = vrot.lane.b32.xlu2 %v3529_v7, %s3440_s30 }
  0x23   : > { %340 = vrot.lane.b32.xlu0 %v3540_v8, %s3440_s30  ;;  %337 = vrot.lane.b32.xlu1 %v3542_v9, %s3440_s30 }
  0x24   : > { %414 = vperm.xlu2 %3379, %v3544_v10  }
  0x2b   : > { %424 = vperm.xlu1 %3377, %v3551_v11   ;;  %419 = vperm.xlu0 %3378, %v3553_v12  }
  0x2c   : > { %409 = vperm.xlu2 %3379, %v3555_v13  }
  0x33   : > { %404 = vperm.xlu1 %3377, %v3560_v14   ;;  %399 = vperm.xlu0 %3378, %v3562_v15  }
  0x34   : > { %394 = vperm.xlu2 %3379, %v3564_v16  }
  0x3b   : > { %389 = vperm.xlu1 %3377, %v3569_v17   ;;  %3380 = vset.pattern.permute.xlu0 %v5417_v18 }
  0x3c   : > { %3381 = vset.pattern.permute.xlu2 %v5417_v18 }
  0x43   : > { %3382 = vset.pattern.permute.xlu1 %v5417_v18 }
  0x6e   : > { %v347_v19 = vpop.permute.xlu2 %346 }
  0x6f   : > { %v348_v30 = vsel %vm336_vm0, %v347_v19, %v3521_v4  ;;  %v3707_v19 = vand.u32 127, %v333_v63 }
  0x71   : > { %5553 = vst [vmem:[#allocation3_spill] sm:$0xff] %v3707_v19  ;;  %vm335_vm1 = vcmp.ge.s32.totalorder %v3707_v19, 1  ;;  %vm468_vm2 = vcmp.eq.s32.totalorder %v3707_v19, 0  ;;  %vm467_vm3 = vcmp.ge.s32.totalorder %v3707_v19, 2 }
  0x76   : > { %v344_v24 = vpop.permute.xlu2 %343 }
  0x77   : > { %v345_v27 = vsel %vm336_vm0, %v344_v24, %v3529_v7 }
  0x7e   : > { %v3606_v35 = vpop.permute.xlu2 %414 }
  0x85   : > { %v359_v20 = vpop.permute.xlu0 %358  ;;  %v353_v21 = vpop.permute.xlu1 %352 }
  0x86   : > { %v360_v22 = vsel %vm336_vm0, %v359_v20, %v3513_v2  ;;  %v354_v23 = vsel %vm336_vm0, %v353_v21, %v3515_v3  ;;  %v3608_v36 = vpop.permute.xlu2 %409 }
  0x87   : > { %375 = vrot.lane.b32.xlu2 %v360_v22, %s3440_s30  ;;  %371 = vrot.lane.b32.xlu1 %v354_v23, %s3440_s30 }
  0x8d   : > { %v356_v25 = vpop.permute.xlu0 %355  ;;  %v350_v26 = vpop.permute.xlu1 %349 }
  0x8e   : > { %v351_v28 = vsel %vm336_vm0, %v350_v26, %v3527_v6  ;;  %v357_v29 = vsel %vm336_vm0, %v356_v25, %v3525_v5  ;;  %v3610_v37 = vpop.permute.xlu2 %394 }
  0x8f   : > { %369 = vrot.lane.b32.xlu2 %v351_v28, %s3440_s30  ;;  %373 = vrot.lane.b32.xlu0 %v357_v29, %s3440_s30 }
  0x90   : > { %365 = vrot.lane.b32.xlu1 %v345_v27, %s3440_s30 }
  0x95   : > { %v341_v31 = vpop.permute.xlu0 %340  ;;  %v338_v33 = vpop.permute.xlu1 %337 }
  0x96   : > { %v342_v32 = vsel %vm336_vm0, %v341_v31, %v3540_v8  ;;  %v339_v34 = vsel %vm336_vm0, %v338_v33, %v3542_v9 }
  0x97   : > { %367 = vrot.lane.b32.xlu0 %v348_v30, %s3440_s30  ;;  %363 = vrot.lane.b32.xlu2 %v342_v32, %s3440_s30 }
  0x98   : > { %488 = vperm.xlu1 %3382, %v3555_v13  }
  0x9d   : > { %v3612_v38 = vpop.permute.xlu1 %424  ;;  %v3628_v44 = vpop.permute.xlu0 %419 }
  0x9f   : > { %496 = vperm.xlu2 %3381, %v3553_v12   ;;  %361 = vrot.lane.b32.xlu0 %v339_v34, %s3440_s30 }
  0xa0   : > { %476 = vperm.xlu1 %3382, %v3564_v16  }
  0xa5   : > { %v3620_v41 = vpop.permute.xlu1 %404  ;;  %v3640_v49 = vpop.permute.xlu0 %399 }
  0xa7   : > { %492 = vperm.xlu2 %3381, %v3544_v10   ;;  %500 = vperm.xlu0 %3380, %v3551_v11  }
  0xa8   : > { %3384 = vset.pattern.permute.xlu1 %v5413_v48 }
  0xad   : > { %v3630_v45 = vpop.permute.xlu1 %389 }
  0xaf   : > { %480 = vperm.xlu2 %3381, %v3562_v15   ;;  %484 = vperm.xlu0 %3380, %v3560_v14  }
  0xb7   : > { %3383 = vset.pattern.permute.xlu2 %v5413_v48 }
  0xe1   : > { %v376_v39 = vpop.permute.xlu2 %375 }
  0xe2   : > { %v3616_v40 = vsel %vm336_vm0, %v376_v39, %v3513_v2 }
  0xe3   : > { %449 = vrot.lane.b32.xlu2 %v3616_v40, %s3442_s10 }
  0xe9   : > { %v370_v42 = vpop.permute.xlu2 %369 }
  0xea   : > { %v3624_v43 = vsel %vm336_vm0, %v370_v42, %v3527_v6 }
  0xeb   : > { %443 = vrot.lane.b32.xlu0 %v3624_v43, %s3442_s10 }
  0xf1   : > { %v364_v46 = vpop.permute.xlu2 %363 }
  0xf2   : > { %v3634_v47 = vsel %vm336_vm0, %v364_v46, %v3540_v8 }
  0xf3   : > { %437 = vrot.lane.b32.xlu0 %v3634_v47, %s3442_s10 }
  0xf9   : > { %v372_v50 = vpop.permute.xlu1 %371  ;;  %v3684_v60 = vpop.permute.xlu2 %496 }
  0xfa   : > { %v3644_v51 = vsel %vm336_vm0, %v372_v50, %v3515_v3 }
  0xfb   : > { %523 = vrot.lane.b32.xlu0 %v3644_v51, %s3444_s11 }
 0x101   : > { %v374_v52 = vpop.permute.xlu0 %373  ;;  %v3693_v62 = vpop.permute.xlu2 %492 }
 0x102   : > { %v3650_v53 = vsel %vm336_vm0, %v374_v52, %v3525_v5  ;;  %v366_v54 = vpop.permute.xlu1 %365 }
 0x103   : > { %v3654_v55 = vsel %vm336_vm0, %v366_v54, %v3529_v7  ;;  %447 = vrot.lane.b32.xlu1 %v3650_v53, %s3442_s10 }
 0x104   : > { %517 = vrot.lane.b32.xlu0 %v3654_v55, %s3444_s11 }
 0x109   : > { %v368_v56 = vpop.permute.xlu0 %367  ;;  %v3703_v0 = vpop.permute.xlu2 %480 }
 0x10a   : > { %v3662_v57 = vsel %vm336_vm0, %v368_v56, %v3521_v4  ;;  %v3755_v26 = vpop.permute.xlu1 %488 }
 0x10b   : > { %441 = vrot.lane.b32.xlu2 %v3662_v57, %s3442_s10  ;;  %445 = vrot.lane.b32.xlu1 %v3644_v51, %s3442_s10 }
 0x10c   : > { %472 = vperm.xlu0 %3380, %v3569_v17  }
 0x111   : > { %v362_v58 = vpop.permute.xlu0 %361 }
 0x112   : > { %v3671_v59 = vsel %vm336_vm0, %v362_v58, %v3542_v9  ;;  %v3763_v28 = vpop.permute.xlu1 %476 }
 0x113   : > { %435 = vrot.lane.b32.xlu2 %v3671_v59, %s3442_s10  ;;  %439 = vrot.lane.b32.xlu1 %v3654_v55, %s3442_s10 }
 0x114   : > { %3385 = vset.pattern.permute.xlu0 %v5413_v48  ;;  %v505_v48 = vsel %vm468_vm2, %v3703_v0, %v3640_v49 }
 0x115   : > { %569 = vperm.xlu0 %3385, %v3544_v10  }
 0x11b   : > { %521 = vrot.lane.b32.xlu2 %v3624_v43, %s3444_s11  ;;  %527 = vrot.lane.b32.xlu1 %v3616_v40, %s3444_s11 }
 0x11d   : > { %553 = vperm.xlu0 %3385, %v3564_v16  }
 0x123   : > { %515 = vrot.lane.b32.xlu2 %v3634_v47, %s3444_s11  ;;  %525 = vrot.lane.b32.xlu1 %v3650_v53, %s3444_s11 }
 0x125   : > { %594 = vrot.lane.b32.xlu0 %v3616_v40, %s3445_s12 }
 0x126   : > { %3387 = vset.pattern.permute.xlu0 %v5411_v61 }
 0x12b   : > { %577 = vperm.xlu2 %3383, %v3551_v11   ;;  %519 = vrot.lane.b32.xlu1 %v3662_v57, %s3444_s11 }
 0x12d   : > { %586 = vrot.lane.b32.xlu0 %v3662_v57, %s3445_s12 }
 0x133   : > { %565 = vperm.xlu2 %3383, %v3555_v13   ;;  %513 = vrot.lane.b32.xlu1 %v3671_v59, %s3444_s11 }
 0x135   : > { %580 = vrot.lane.b32.xlu0 %v3671_v59, %s3445_s12 }
 0x13b   : > { %561 = vperm.xlu2 %3383, %v3560_v14   ;;  %573 = vperm.xlu1 %3384, %v3553_v12  }
 0x13d   : > { %641 = vperm.xlu0 %3387, %v3553_v12   ;;  %v450_v20 = vpop.permute.xlu2 %449 }
 0x13e   : > { %v466_v21 = vsel %vm335_vm1, %v450_v20, %v3612_v38 }
 0x13f   : > { %v3716_v22 = vand.u32 4294901760, %v466_v21 }
 0x141   : > { %v3719_v23 = vsub.f32 %v466_v21, %v3716_v22  ;;  %736 = vmatpush.msra.mxu0 %v3716_v22  ;;  %983 = vmatpush.msra.mxu3 %v3716_v22 }
 0x143   : > { %5554 = vst [vmem:[#allocation4_spill] sm:$0xff] %v3719_v23  ;;  %592 = vrot.lane.b32.xlu2 %v3650_v53, %s3445_s12  ;;  %915 = vmatpush.msra.mxu2 %v3719_v23  ;;  %v3727_v12 = vand.u32 4294901760, %v3719_v23 }
 0x144   : > { %557 = vperm.xlu1 %3384, %v3562_v15  }
 0x145   : > { %5555 = vst [vmem:[#allocation5_spill] sm:$0xff] %v3727_v12  ;;  %625 = vperm.xlu0 %3387, %v3562_v15   ;;  %v803_v24 = vsub.f32 %v3719_v23, %v3727_v12  ;;  %v3753_v15 = vpop.permute.xlu0 %500 }
 0x147   : > { %v3733_v25 = vand.u32 4294901760, %v803_v24 }
 0x149   : > { %5556 = vst [vmem:[#allocation6_spill] sm:$0xff] %v3733_v25  ;;  %805 = vmatpush.msra.mxu1 %v3733_v25 }
 0x14b   : > { %584 = vrot.lane.b32.xlu2 %v3654_v55, %s3445_s12 }
 0x14c   : > { %590 = vrot.lane.b32.xlu1 %v3644_v51, %s3445_s12 }
 0x14d   : > { %666 = vrot.lane.b32.xlu0 %v3624_v43, %s3447_s13  ;;  %3386 = vset.pattern.permute.xlu1 %v5411_v61  ;;  %v3759_v27 = vpop.permute.xlu0 %484 }
 0x14e   : > { %3389 = vset.pattern.permute.xlu0 %v5417_v18 }
 0x153   : > { %549 = vperm.xlu2 %3383, %v3569_v17  }
 0x154   : > { %588 = vrot.lane.b32.xlu1 %v3624_v43, %s3445_s12 }
 0x155   : > { %660 = vrot.lane.b32.xlu0 %v3634_v47, %s3447_s13 }
 0x15b   : > { %3388 = vset.pattern.permute.xlu2 %v5411_v61 }
 0x15c   : > { %582 = vrot.lane.b32.xlu1 %v3634_v47, %s3445_s12  ;;  %637 = vperm.xlu2 %3388, %v3544_v10  }
 0x15d   : > { %v444_v29 = vpop.permute.xlu0 %443 }
 0x164   : > { %645 = vperm.xlu1 %3386, %v3551_v11   ;;  %633 = vperm.xlu2 %3388, %v3555_v13   ;;  %v463_v11 = vsel %vm335_vm1, %v444_v29, %v3608_v36 }
 0x165   : > { %v442_v30 = vpop.permute.xlu2 %441  ;;  %v438_v33 = vpop.permute.xlu0 %437 }
 0x166   : > { %v462_v31 = vsel %vm335_vm1, %v442_v30, %v3620_v41  ;;  %v460_v47 = vsel %vm335_vm1, %v438_v33, %v3610_v37 }
 0x167   : > { %v3792_v39 = vand.u32 4294901760, %v462_v31  ;;  %v3819_v56 = vand.u32 4294901760, %v460_v47 }
 0x169   : > { %v3844_v24 = vsub.f32 %v460_v47, %v3819_v56 }
 0x16b   : > { %5566 = vst [vmem:[#allocation16_spill] sm:$0xff] %v3844_v24 }
 0x16c   : > { %629 = vperm.xlu1 %3386, %v3560_v14   ;;  %621 = vperm.xlu2 %3388, %v3564_v16   ;;  %v3778_v16 = vand.u32 4294901760, %v463_v11 }
 0x16d   : > { %v436_v42 = vpop.permute.xlu2 %435  ;;  %v524_v33 = vpop.permute.xlu0 %523 }
 0x16e   : > { %v459_v54 = vsel %vm335_vm1, %v436_v42, %v3630_v45 }
 0x16f   : > { %v3830_v63 = vand.u32 4294901760, %v459_v54 }
 0x174   : > { %670 = vrot.lane.b32.xlu1 %v3650_v53, %s3447_s13  ;;  %672 = vrot.lane.b32.xlu2 %v3616_v40, %s3447_s13  ;;  %v3799_v40 = vsub.f32 %v463_v11, %v3778_v16  ;;  %v3814_v53 = vsub.f32 %v462_v31, %v3792_v39  ;;  %v3859_v11 = vsub.f32 %v459_v54, %v3830_v63 }
 0x175   : > { %v448_v10 = vpop.permute.xlu1 %447  ;;  %3391 = vset.pattern.permute.xlu2 %v5417_v18  ;;  %v508_v54 = vsel %vm468_vm2, %v3693_v62, %v3606_v35 }
 0x176   : > { %v465_v13 = vsel %vm335_vm1, %v448_v10, %v3628_v44  ;;  %5559 = vst [vmem:[#allocation9_spill] sm:$0xff] %v3799_v40  ;;  %v3827_v58 = vand.u32 4294901760, %v3799_v40  ;;  %v3841_v21 = vand.u32 4294901760, %v3814_v53  ;;  %v542_v62 = vsel %vm467_vm3, %v524_v33, %v508_v54 }
 0x177   : > { %v3776_v14 = vand.u32 4294901760, %v465_v13  ;;  %5561 = vst [vmem:[#allocation11_spill] sm:$0xff] %v3814_v53 }
 0x178   : > { %5563 = vst [vmem:[#allocation13_spill] sm:$0xff] %v3827_v58  ;;  %v827_v31 = vsub.f32 %v3814_v53, %v3841_v21 }
 0x179   : > { %v3784_v32 = vsub.f32 %v465_v13, %v3776_v14  ;;  %738 = vmatpush.msra.mxu0 %v3776_v14  ;;  %985 = vmatpush.msra.mxu3 %v3776_v14  ;;  %5565 = vst [vmem:[#allocation15_spill] sm:$0xff] %v3841_v21 }
 0x17a   : > { %5567 = vst [vmem:[#allocation17_spill] sm:$0xff] %v3859_v11 }
 0x17b   : > { %5557 = vst [vmem:[#allocation7_spill] sm:$0xff] %v3784_v32  ;;  %918 = vmatpush.msra.mxu2 %v3784_v32  ;;  %v3790_v34 = vand.u32 4294901760, %v3784_v32 }
 0x17c   : > { %668 = vrot.lane.b32.xlu1 %v3644_v51, %s3447_s13  ;;  %664 = vrot.lane.b32.xlu2 %v3662_v57, %s3447_s13 }
 0x17d   : > { %5558 = vst [vmem:[#allocation8_spill] sm:$0xff] %v3790_v34  ;;  %v446_v43 = vpop.permute.xlu1 %445  ;;  %v809_v46 = vsub.f32 %v3784_v32, %v3790_v34 }
 0x17e   : > { %v464_v50 = vsel %vm335_vm1, %v446_v43, %v3606_v35 }
 0x17f   : > { %v3809_v51 = vand.u32 4294901760, %v464_v50  ;;  %v3811_v52 = vand.u32 4294901760, %v809_v46  ;;  %v3876_v46 = vand.u32 4294901760, %v3844_v24 }
 0x181   : > { %5560 = vst [vmem:[#allocation10_spill] sm:$0xff] %v3811_v52  ;;  %v3822_v57 = vsub.f32 %v464_v50, %v3809_v51  ;;  %740 = vmatpush.msra.mxu0 %v3809_v51  ;;  %811 = vmatpush.msra.mxu1 %v3811_v52  ;;  %v3887_v50 = vand.u32 4294901760, %v3859_v11 }
 0x182   : > { %987 = vmatpush.msra.mxu3 %v3809_v51  ;;  %5571 = vst [vmem:[#allocation21_spill] sm:$0xff] %v3876_v46 }
 0x183   : > { %5562 = vst [vmem:[#allocation12_spill] sm:$0xff] %v3822_v57  ;;  %742 = vmatpush.msra.mxu0 %v3778_v16  ;;  %921 = vmatpush.msra.mxu2 %v3822_v57  ;;  %v3835_v20 = vand.u32 4294901760, %v3822_v57  ;;  %v845_v33 = vsub.f32 %v3859_v11, %v3887_v50 }
 0x184   : > { %662 = vrot.lane.b32.xlu1 %v3654_v55, %s3447_s13  ;;  %989 = vmatpush.msra.mxu3 %v3778_v16  ;;  %v821_v55 = vsub.f32 %v3799_v40, %v3827_v58  ;;  %5573 = vst [vmem:[#allocation23_spill] sm:$0xff] %v3887_v50 }
 0x185   : > { %5564 = vst [vmem:[#allocation14_spill] sm:$0xff] %v3835_v20  ;;  %658 = vrot.lane.b32.xlu2 %v3671_v59, %s3447_s13  ;;  %744 = vmatpush.msra.mxu0 %v3792_v39  ;;  %v440_v29 = vpop.permute.xlu1 %439  ;;  %v815_v30 = vsub.f32 %v3822_v57, %v3835_v20 }
 0x186   : > { %924 = vmatpush.msra.mxu2 %v3799_v40  ;;  %991 = vmatpush.msra.mxu3 %v3792_v39  ;;  %v461_v10 = vsel %vm335_vm1, %v440_v29, %v3640_v49  ;;  %v3873_v43 = vand.u32 4294901760, %v821_v55  ;;  %v522_v29 = vpop.permute.xlu2 %521  ;;  %v510_v55 = vsel %vm468_vm2, %v3753_v15, %v3612_v38  ;;  %v507_v15 = vsel %vm468_vm2, %v3755_v26, %v3608_v36 }
 0x187   : > { %v3861_v59 = vand.u32 4294901760, %v461_v10  ;;  %v3863_v13 = vand.u32 4294901760, %v815_v30  ;;  %v3895_v30 = vand.u32 4294901760, %v827_v31  ;;  %v541_v54 = vsel %vm467_vm3, %v522_v29, %v507_v15  ;;  %v690_v15 = vld [vmem:[%s5406_s2] sm:$0xff] }
 0x188   : > { %927 = vmatpush.msra.mxu2 %v3814_v53  ;;  %5570 = vst [vmem:[#allocation20_spill] sm:$0xff] %v3873_v43  ;;  %v3937_v26 = vand.u32 4294901760, %v541_v54  ;;  %v3941_v29 = vand.u32 4294901760, %v845_v33 }
 0x189   : > { %5568 = vst [vmem:[#allocation18_spill] sm:$0xff] %v3863_v13  ;;  %v3869_v42 = vsub.f32 %v461_v10, %v3861_v59  ;;  %746 = vmatpush.msra.mxu0 %v3861_v59  ;;  %817 = vmatpush.msra.mxu1 %v3863_v13 }
 0x18a   : > { %993 = vmatpush.msra.mxu3 %v3861_v59  ;;  %5574 = vst [vmem:[#allocation24_spill] sm:$0xff] %v3895_v30  ;;  %v3970_v49 = vsub.f32 %v541_v54, %v3937_v26 }
 0x18b   : > { %5569 = vst [vmem:[#allocation19_spill] sm:$0xff] %v3869_v42  ;;  %748 = vmatpush.msra.mxu0 %v3819_v56  ;;  %823 = vmatpush.msra.mxu1 %v3873_v43  ;;  %v3884_v47 = vand.u32 4294901760, %v3869_v42 }
 0x18c   : > { %617 = vperm.xlu1 %3386, %v3569_v17   ;;  %930 = vmatpush.msra.mxu2 %v3869_v42  ;;  %v839_v17 = vsub.f32 %v3844_v24, %v3876_v46  ;;  %5577 = vst [vmem:[#allocation27_spill] sm:$0xff] %v3941_v29  ;;  %v5585_v13 = vand.u32 4294901760, %v3970_v49 }
 0x18d   : > { %5572 = vst [vmem:[#allocation22_spill] sm:$0xff] %v3884_v47  ;;  %995 = vmatpush.msra.mxu3 %v3819_v56  ;;  %750 = vmatpush.msra.mxu0 %v3830_v63  ;;  %v528_v10 = vpop.permute.xlu1 %527  ;;  %v833_v35 = vsub.f32 %v3869_v42, %v3884_v47 }
 0x18e   : > { %829 = vmatpush.msra.mxu1 %v3895_v30  ;;  %933 = vmatpush.msra.mxu2 %v3844_v24  ;;  %v544_v38 = vsel %vm467_vm3, %v528_v10, %v510_v55  ;;  %v3927_v55 = vand.u32 4294901760, %v542_v62  ;;  %v3934_v36 = vand.u32 4294901760, %v839_v17  ;;  %v509_v17 = vsel %vm468_vm2, %v3684_v60, %v3628_v44 }
 0x18f   : > { %997 = vmatpush.msra.mxu3 %v3830_v63  ;;  %v3918_v31 = vand.u32 4294901760, %v544_v38  ;;  %v3920_v61 = vand.u32 4294901760, %v833_v35  ;;  %v518_v35 = vpop.permute.xlu0 %517  ;;  %v3967_v60 = vand.u32 4294901760, %v690_v15 }
 0x190   : > { %936 = vmatpush.msra.mxu2 %v3859_v11  ;;  %5576 = vst [vmem:[#allocation26_spill] sm:$0xff] %v3934_v36  ;;  %v3957_v33 = vsub.f32 %v542_v62, %v3927_v55 }
 0x191   : > { %5575 = vst [vmem:[#allocation25_spill] sm:$0xff] %v3920_v61  ;;  %v3930_v10 = vsub.f32 %v544_v38, %v3918_v31  ;;  %752 = vmatpush.msra.mxu0 %v3918_v31  ;;  %835 = vmatpush.msra.mxu1 %v3920_v61  ;;  %v516_v61 = vpop.permute.xlu2 %515 }
 0x192   : > { %999 = vmatpush.msra.mxu3 %v3918_v31  ;;  %5578 = vst [vmem:[#allocation28_spill] sm:$0xff] %v3967_v60  ;;  %v5426_v54 = vand.u32 4294901760, %v3957_v33 }
 0x193   : > { %841 = vmatpush.msra.mxu1 %v3934_v36  ;;  %939 = vmatpush.msra.mxu2 %v3930_v10  ;;  %v5421_v38 = vand.u32 4294901760, %v3930_v10  ;;  %v539_v36 = vsel %vm467_vm3, %v518_v35, %v505_v48  ;;  %v3999_v35 = vand.u32 4294901760, %v3525_v5 }
 0x194   : > { %3390 = vset.pattern.permute.xlu1 %v5417_v18 }
 0x195   : > { %847 = vmatpush.msra.mxu1 %v3941_v29  ;;  %v526_v1 = vpop.permute.xlu1 %525  ;;  %v851_v18 = vsub.f32 %v3930_v10, %v5421_v38  ;;  %v504_v38 = vsel %vm468_vm2, %v3763_v28, %v3610_v37  ;;  %v3978_v29 = vand.u32 4294901760, %v539_v36  ;;  %v3992_v37 = vsub.f32 %v690_v15, %v3967_v60  ;;  %v692_v15 = vld [vmem:[%s5406_s2 + $0x10] sm:$0xff] }
 0x196   : > { %v543_v44 = vsel %vm467_vm3, %v526_v1, %v509_v17  ;;  %v538_v48 = vsel %vm467_vm3, %v516_v61, %v504_v38  ;;  %v506_v38 = vsel %vm468_vm2, %v3759_v27, %v3620_v41  ;;  %v863_v27 = vsub.f32 %v3957_v33, %v5426_v54 }
 0x197   : > { %v3972_v0 = vand.u32 4294901760, %v543_v44  ;;  %v852_v62 = vand.u32 4294901760, %v851_v18  ;;  %5579 = vst [vmem:[#allocation29_spill] sm:$0xff] %v3978_v29  ;;  %v3988_v18 = vand.u32 4294901760, %v3513_v2  ;;  %v4005_v17 = vand.u32 4294901760, %v538_v48  ;;  %v473_v42 = vpop.permute.xlu0 %472 }
 0x198   : > { %5580 = vst [vmem:[#allocation30_spill] sm:$0xff] %v3992_v37  ;;  %v4033_v43 = vand.u32 4294901760, %v3992_v37  ;;  %v4041_v52 = vand.u32 4294901760, %v692_v15  ;;  %v4045_v25 = vsub.f32 %v3525_v5, %v3999_v35  ;;  %v4081_v5 = vand.u32 4294901760, %v3521_v4 }
 0x199   : > { %v3983_v1 = vsub.f32 %v543_v44, %v3972_v0  ;;  %754 = vmatpush.msra.mxu0 %v3972_v0  ;;  %853 = vmatpush.msra.mxu1 %v852_v62  ;;  %5581 = vst [vmem:[#allocation31_spill] sm:$0xff] %v4005_v17  ;;  %v4012_v44 = vsub.f32 %v539_v36, %v3978_v29  ;;  %v4027_v36 = vand.u32 4294901760, %v3515_v3 }
 0x19a   : > { %1001 = vmatpush.msra.mxu3 %v3972_v0  ;;  %v4024_v28 = vsub.f32 %v3513_v2, %v3988_v18  ;;  %5583 = vst [vmem:[#allocation33_spill] sm:$0xff] %v4033_v43  ;;  %v869_v2 = vsub.f32 %v3970_v49, %v5585_v13  ;;  %v864_v13 = vand.u32 4294901760, %v863_v27  ;;  %v4074_v27 = vsub.f32 %v692_v15, %v4041_v52 }
 0x19b   : > { %756 = vmatpush.msra.mxu0 %v3927_v55  ;;  %942 = vmatpush.msra.mxu2 %v3983_v1  ;;  %v5425_v61 = vand.u32 4294901760, %v3983_v1  ;;  %5586 = vst [vmem:[#allocation35_spill] sm:$0xff] %v4041_v52  ;;  %v4063_v24 = vsub.f32 %v3515_v3, %v4027_v36 }
 0x19c   : > { %1003 = vmatpush.msra.mxu3 %v3927_v55  ;;  %5582 = vst [vmem:[#allocation32_spill] sm:$0xff] %v4024_v28  ;;  %v4069_v53 = vand.u32 4294901760, %v4024_v28 }
 0x19d   : > { %758 = vmatpush.msra.mxu0 %v3937_v26  ;;  %945 = vmatpush.msra.mxu2 %v3957_v33  ;;  %v520_v62 = vpop.permute.xlu1 %519  ;;  %v857_v41 = vsub.f32 %v3983_v1, %v5425_v61  ;;  %5587 = vst [vmem:[#allocation36_spill] sm:$0xff] %v4045_v25 }
 0x19e   : > { %1005 = vmatpush.msra.mxu3 %v3937_v26  ;;  %v540_v30 = vsel %vm467_vm3, %v520_v62, %v506_v38  ;;  %v4048_v38 = vand.u32 4294901760, %v3527_v6  ;;  %v4051_v62 = vsub.f32 %v538_v48, %v4005_v17  ;;  %5588 = vst [vmem:[#allocation37_spill] sm:$0xff] %v4063_v24  ;;  %v770_v48 = vsub.f32 %v3992_v37, %v4033_v43 }
 0x19f   : > { %v4035_v61 = vand.u32 4294901760, %v540_v30  ;;  %948 = vmatpush.msra.mxu2 %v3970_v49  ;;  %v858_v54 = vand.u32 4294901760, %v857_v41  ;;  %v698_v41 = vld [vmem:[%s5407_s3] sm:$0xff]  ;;  %5589 = vst [vmem:[#allocation38_spill] sm:$0xff] %v4074_v27 }
 0x1a0   : > { %704 = vperm.xlu0 %3389, %v698_v41   ;;  %v4078_v3 = vsub.f32 %v3527_v6, %v4048_v38  ;;  %v503_v6 = vsel %vm468_vm2, %v473_v42, %v3630_v45  ;;  %v5592_v41 = vand.u32 4294901760, %v4012_v44  ;;  %v4106_v45 = vand.u32 4294901760, %v770_v48 }
 0x1a1   : > { %5584 = vst [vmem:[#allocation34_spill] sm:$0xff] %v4035_v61  ;;  %v4057_v11 = vsub.f32 %v540_v30, %v4035_v61  ;;  %760 = vmatpush.msra.mxu0 %v4035_v61  ;;  %859 = vmatpush.msra.mxu1 %v858_v54  ;;  %v870_v30 = vand.u32 4294901760, %v869_v2  ;;  %v4087_v2 = vand.u32 4294901760, %v4045_v25  ;;  %v1237_v42 = vsub.f32 %v4024_v28, %v4069_v53 }
 0x1a2   : > { %1007 = vmatpush.msra.mxu3 %v4035_v61  ;;  %5590 = vst [vmem:[#allocation39_spill] sm:$0xff] %v4078_v3  ;;  %v881_v57 = vsub.f32 %v4012_v44, %v5592_v41  ;;  %v4117_v41 = vand.u32 4294901760, %v3540_v8  ;;  %v4126_v48 = vsub.f32 %v3521_v4, %v4081_v5 }
 0x1a3   : > { %762 = vmatpush.msra.mxu0 %v3978_v29  ;;  %865 = vmatpush.msra.mxu1 %v864_v13  ;;  %v5437_v54 = vand.u32 4294901760, %v4057_v11  ;;  %5591 = vst [vmem:[#allocation40_spill] sm:$0xff] %v4087_v2  ;;  %v4090_v13 = vand.u32 4294901760, %v3529_v7  ;;  %v4146_v28 = vand.u32 4294901760, %v1237_v42  ;;  %v4163_v42 = vand.u32 4294901760, %v3542_v9 }
 0x1a4   : > { %951 = vmatpush.msra.mxu2 %v4057_v11  ;;  %1009 = vmatpush.msra.mxu3 %v3978_v29  ;;  %5593 = vst [vmem:[#allocation41_spill] sm:$0xff] %v4106_v45  ;;  %v1243_v29 = vsub.f32 %v4045_v25, %v4087_v2 }
 0x1a5   : > { %764 = vmatpush.msra.mxu0 %v4005_v17  ;;  %871 = vmatpush.msra.mxu1 %v870_v30  ;;  %v514_v15 = vpop.permute.xlu1 %513  ;;  %v875_v40 = vsub.f32 %v4057_v11, %v5437_v54  ;;  %v4111_v30 = vand.u32 4294901760, %v4063_v24  ;;  %v694_v54 = vld [vmem:[%s5406_s2 + $0x20] sm:$0xff]  ;;  %5596 = vst [vmem:[#allocation44_spill] sm:$0xff] %v4126_v48  ;;  %v4136_v61 = vsub.f32 %v3529_v7, %v4090_v13  ;;  %v4151_v7 = vand.u32 4294901760, %v4078_v3 }
 0x1a6   : > { %954 = vmatpush.msra.mxu2 %v4012_v44  ;;  %1011 = vmatpush.msra.mxu3 %v4005_v17  ;;  %v537_v32 = vsel %vm467_vm3, %v514_v15, %v503_v6  ;;  %v4122_v6 = vand.u32 4294901760, %v4074_v27  ;;  %v5597_v15 = vand.u32 4294901760, %v4051_v62  ;;  %v4142_v4 = vand.u32 4294901760, %v694_v54  ;;  %5600 = vst [vmem:[#allocation47_spill] sm:$0xff] %v4146_v28 }
 0x1a7   : > { %v4119_v23 = vand.u32 4294901760, %v537_v32  ;;  %v876_v17 = vand.u32 4294901760, %v875_v40  ;;  %5598 = vst [vmem:[#allocation45_spill] sm:$0xff] %v4136_v61  ;;  %v1249_v25 = vsub.f32 %v4063_v24, %v4111_v30 }
 0x1a8   : > { %5595 = vst [vmem:[#allocation43_spill] sm:$0xff] %v4122_v6  ;;  %957 = vmatpush.msra.mxu2 %v4051_v62  ;;  %v887_v19 = vsub.f32 %v4051_v62, %v5597_v15  ;;  %v882_v15 = vand.u32 4294901760, %v881_v57  ;;  %v778_v57 = vsub.f32 %v4074_v27, %v4122_v6 }
 0x1a9   : > { %5594 = vst [vmem:[#allocation42_spill] sm:$0xff] %v4119_v23  ;;  %v4139_v40 = vsub.f32 %v537_v32, %v4119_v23  ;;  %766 = vmatpush.msra.mxu0 %v4119_v23  ;;  %877 = vmatpush.msra.mxu1 %v876_v17  ;;  %v4155_v32 = vsub.f32 %v3540_v8, %v4117_v41  ;;  %v4169_v8 = vand.u32 4294901760, %v4126_v48 }
 0x1aa   : > { %5599 = vst [vmem:[#allocation46_spill] sm:$0xff] %v4142_v4  ;;  %1013 = vmatpush.msra.mxu3 %v4119_v23  ;;  %772 = vmatmul.f32.vlgmr.msra.gmra.mxu0 %v4106_v45  ;;  %v888_v45 = vand.u32 4294901760, %v887_v19  ;;  %v4166_v23 = vand.u32 4294901760, %v1243_v29  ;;  %v699_v19 = vld [vmem:[%s5407_s3 + $0x8] sm:$0xff]  ;;  %v4183_v29 = vand.u32 4294901760, %v1249_v25 }
 0x1ab   : > { %5601 = vst [vmem:[#allocation48_spill] sm:$0xff] %v4155_v32  ;;  %1017 = vmatmul.f32.vlgmr.msra.gmra.mxu3 %v4033_v43  ;;  %1042 = vmatpush.msrb.mxu0 %v3727_v12  ;;  %v5456_v17 = vand.u32 4294901760, %v4139_v40  ;;  %v4177_v12 = vsub.f32 %v694_v54, %v4142_v4  ;;  %v1261_v25 = vsub.f32 %v4126_v48, %v4169_v8 }
 0x1ac   : > { %5602 = vst [vmem:[#allocation49_spill] sm:$0xff] %v4163_v42  ;;  %883 = vmatpush.msra.mxu1 %v882_v15  ;;  %960 = vmatpush.msra.mxu2 %v4139_v40  ;;  %v1255_v15 = vsub.f32 %v4078_v3, %v4151_v7 }
 0x1ad   : > { %5603 = vst [vmem:[#allocation50_spill] sm:$0xff] %v4166_v23  ;;  %963 = vmatmul.f32.vlgmr.msra.gmra.mxu2 %v3992_v37  ;;  %1046 = vmatpush.msrb.mxu0 %v3790_v34  ;;  %v893_v43 = vsub.f32 %v4139_v40, %v5456_v17  ;;  %v4188_v37 = vand.u32 4294901760, %v4136_v61  ;;  %v4192_v17 = vand.u32 4294901760, %v778_v57  ;;  %v4196_v34 = vsub.f32 %v3542_v9, %v4163_v42  ;;  %v696_v9 = vld [vmem:[%s5406_s2 + $0x30] sm:$0xff] }
 0x1ae   : > { %5604 = vst [vmem:[#allocation51_spill] sm:$0xff] %v4169_v8  ;;  %1239 = vmatpush.msrb.mxu3 %v4146_v28  ;;  %889 = vmatpush.msra.mxu1 %v888_v45  ;;  %v4202_v45 = vand.u32 4294901760, %v4155_v32  ;;  %v4213_v57 = vand.u32 4294901760, %v1255_v15  ;;  %v4228_v15 = vand.u32 4294901760, %v696_v9 }
 0x1af   : > { %5605 = vst [vmem:[#allocation52_spill] sm:$0xff] %v4177_v12  ;;  %1050 = vmatpush.msrb.mxu0 %v3835_v20  ;;  %1178 = vmatpush.msrb.mxu2 %v3988_v18  ;;  %v894_v54 = vand.u32 4294901760, %v893_v43  ;;  %v4207_v43 = vand.u32 4294901760, %v4177_v12  ;;  %v1267_v20 = vsub.f32 %v4136_v61, %v4188_v37 }
 0x1b0   : > { %5606 = vst [vmem:[#allocation53_spill] sm:$0xff] %v4183_v29  ;;  %1245 = vmatpush.msrb.mxu3 %v4166_v23  ;;  %709 = vperm.xlu1 %3390, %v699_v19   ;;  %v4221_v19 = vand.u32 4294901760, %v1261_v25 }
 0x1b1   : > { %5607 = vst [vmem:[#allocation54_spill] sm:$0xff] %v4188_v37  ;;  %1054 = vmatpush.msrb.mxu0 %v3827_v58  ;;  %1180 = vmatpush.msrb.mxu2 %v3999_v35  ;;  %v1273_v58 = vsub.f32 %v4155_v32, %v4202_v45  ;;  %v4236_v25 = vand.u32 4294901760, %v1267_v20 }
 0x1b2   : > { %5608 = vst [vmem:[#allocation55_spill] sm:$0xff] %v4192_v17  ;;  %1251 = vmatpush.msrb.mxu3 %v4183_v29  ;;  %895 = vmatpush.msra.mxu1 %v894_v54  ;;  %v4226_v54 = vand.u32 4294901760, %v4196_v34  ;;  %v4247_v29 = vsub.f32 %v696_v9, %v4228_v15 }
 0x1b3   : > { %5609 = vst [vmem:[#allocation56_spill] sm:$0xff] %v4196_v34  ;;  %780 = vmatmul.f32.gmra.mxu0 %v4192_v17  ;;  %897 = vmatmul.f32.vlgmr.msra.gmra.mxu1 %v3967_v60  ;;  %v786_v17 = vsub.f32 %v4177_v12, %v4207_v43 }
 0x1b4   : > { %5610 = vst [vmem:[#allocation57_spill] sm:$0xff] %v4202_v45  ;;  %1023 = vmatmul.f32.gmra.mxu3 %v4122_v6  ;;  %1058 = vmatpush.msrb.mxu0 %v3841_v21  ;;  %v4242_v6 = vand.u32 4294901760, %v1273_v58  ;;  %v1279_v21 = vsub.f32 %v4196_v34, %v4226_v54  ;;  %v4262_v9 = vand.u32 4294901760, %v4247_v29 }
 0x1b5   : > { %5611 = vst [vmem:[#allocation58_spill] sm:$0xff] %v4207_v43  ;;  %1121 = vmatpush.msrb.mxu1 %v3716_v22  ;;  %1182 = vmatpush.msrb.mxu2 %v4027_v36  ;;  %v4251_v20 = vand.u32 4294901760, %v786_v17  ;;  %v691_v17 = vld [vmem:[%s5406_s2 + $0x8] sm:$0xff] }
 0x1b6   : > { %5612 = vst [vmem:[#allocation59_spill] sm:$0xff] %v4213_v57  ;;  %1257 = vmatpush.msrb.mxu3 %v4213_v57  ;;  %968 = vmatmul.f32.gmra.mxu2 %v4074_v27  ;;  %v4259_v58 = vand.u32 4294901760, %v1279_v21  ;;  %v724_v21 = vsel %vm722_vm4, %v691_v17, 0 }
 0x1b7   : > { %5613 = vst [vmem:[#allocation60_spill] sm:$0xff] %v4221_v19  ;;  %1062 = vmatpush.msrb.mxu0 %v3884_v47  ;;  %1123 = vmatpush.msrb.mxu1 %v3776_v14  ;;  %v5654_v47 = vld [vmem:[#allocation12_spill] sm:$0xff] }
 0x1b8   : > { %5614 = vst [vmem:[#allocation61_spill] sm:$0xff] %v4226_v54  ;;  %1184 = vmatpush.msrb.mxu2 %v4048_v38  ;;  %1263 = vmatpush.msrb.mxu3 %v4221_v19 }
 0x1b9   : > { %5615 = vst [vmem:[#allocation62_spill] sm:$0xff] %v4236_v25  ;;  %1066 = vmatpush.msrb.mxu0 %v3876_v46  ;;  %1125 = vmatpush.msrb.mxu1 %v3809_v51 }
 0x1ba   : > { %5616 = vst [vmem:[#allocation63_spill] sm:$0xff] %v4242_v6  ;;  %1186 = vmatpush.msrb.mxu2 %v4081_v5  ;;  %1269 = vmatpush.msrb.mxu3 %v4236_v25 }
 0x1bb   : > { %5617 = vst [vmem:[#allocation64_spill] sm:$0xff] %v4247_v29  ;;  %1070 = vmatpush.msrb.mxu0 %v3887_v50  ;;  %1127 = vmatpush.msrb.mxu1 %v3778_v16  ;;  %v5621_v50 = vand.u32 4294901760, %v3930_v10  ;;  %v5623_v10 = vand.u32 4294901760, %v3957_v33  ;;  %v693_v33 = vld [vmem:[%s5406_s2 + $0x18] sm:$0xff] }
 0x1bc   : > { %5618 = vst [vmem:[#allocation65_spill] sm:$0xff] %v4251_v20  ;;  %1188 = vmatpush.msrb.mxu2 %v4090_v13  ;;  %1275 = vmatpush.msrb.mxu3 %v4242_v6 }
 0x1bd   : > { %5619 = vst [vmem:[#allocation66_spill] sm:$0xff] %v4259_v58  ;;  %788 = vmatmul.f32.gmra.mxu0 %v4251_v20  ;;  %901 = vmatmul.f32.gmra.mxu1 %v4041_v52  ;;  %v794_v20 = vsub.f32 %v4247_v29, %v4262_v9 }
 0x1be   : > { %5620 = vst [vmem:[#allocation67_spill] sm:$0xff] %v4262_v9  ;;  %1029 = vmatmul.f32.gmra.mxu3 %v4207_v43  ;;  %1074 = vmatpush.msrb.mxu0 %v5621_v50  ;;  %v5622_v43 = vand.u32 4294901760, %v3983_v1  ;;  %v4284_v50 = vand.u32 4294901760, %v724_v21  ;;  %v5626_v1 = vand.u32 4294901760, %v3970_v49  ;;  %v5628_v49 = vand.u32 4294901760, %v4057_v11  ;;  %v4324_v11 = vpop.permute.xlu1 %573 }
 0x1bf   : > { %1129 = vmatpush.msrb.mxu1 %v3792_v39  ;;  %1190 = vmatpush.msrb.mxu2 %v4117_v41  ;;  %v4291_v17 = vand.u32 4294901760, %v794_v20  ;;  %5631 = vst [vmem:[#allocation72_spill] sm:$0xff] %v4324_v11 }
 0x1c0   : > { %1281 = vmatpush.msrb.mxu3 %v4259_v58  ;;  %973 = vmatmul.f32.gmra.mxu2 %v4177_v12  ;;  %v4293_v12 = vpop.permute.xlu2 %577 }
 0x1c1   : > { %1078 = vmatpush.msrb.mxu0 %v5622_v43  ;;  %1131 = vmatpush.msrb.mxu1 %v3861_v59  ;;  %5624 = vst [vmem:[#allocation68_spill] sm:$0xff] %v4291_v17  ;;  %v4301_v43 = vsub.f32 %v724_v21, %v4284_v50  ;;  %v727_v21 = vsel %vm722_vm4, %v693_v33, 0 }
 0x1c2   : > { %1467 = vmatpush.msra.mxu3 %v3988_v18  ;;  %1192 = vmatpush.msrb.mxu2 %v4163_v42  ;;  %5625 = vst [vmem:[#allocation69_spill] sm:$0xff] %v4293_v12 }
 0x1c3   : > { %1082 = vmatpush.msrb.mxu0 %v5623_v10  ;;  %1133 = vmatpush.msrb.mxu1 %v3819_v56  ;;  %5627 = vst [vmem:[#allocation70_spill] sm:$0xff] %v4301_v43  ;;  %v4316_v20 = vand.u32 4294901760, %v4301_v43  ;;  %v5630_v10 = vand.u32 4294901760, %v4012_v44 }
 0x1c4   : > { %1412 = vmatpush.msra.mxu2 %v4069_v53  ;;  %1469 = vmatpush.msra.mxu3 %v3999_v35 }
 0x1c5   : > { %1086 = vmatpush.msrb.mxu0 %v5626_v1  ;;  %1135 = vmatpush.msrb.mxu1 %v3830_v63  ;;  %5629 = vst [vmem:[#allocation71_spill] sm:$0xff] %v4316_v20  ;;  %v5632_v1 = vand.u32 4294901760, %v4051_v62  ;;  %v1196_v33 = vsub.f32 %v4301_v43, %v4316_v20  ;;  %v5636_v62 = vld [vmem:[#allocation32_spill] sm:$0xff] }
 0x1c6   : > { %1416 = vmatpush.msra.mxu2 %v4087_v2  ;;  %1471 = vmatpush.msra.mxu3 %v4027_v36 }
 0x1c7   : > { %796 = vmatmul.f32.gmra.mxu0 %v4291_v17  ;;  %905 = vmatmul.f32.gmra.mxu1 %v4142_v4 }
 0x1c8   : > { %1420 = vmatpush.msra.mxu2 %v4111_v30  ;;  %1473 = vmatpush.msra.mxu3 %v4048_v38  ;;  %v4335_v44 = vpop.permute.xlu2 %565 }
 0x1c9   : > { %1035 = vmatmul.f32.gmra.mxu3 %v4262_v9  ;;  %1090 = vmatpush.msrb.mxu0 %v5628_v49  ;;  %5633 = vst [vmem:[#allocation73_spill] sm:$0xff] %v4335_v44  ;;  %v4342_v49 = vpop.permute.xlu0 %569 }
 0x1ca   : > { %1137 = vmatpush.msrb.mxu1 %v3918_v31  ;;  %1424 = vmatpush.msra.mxu2 %v4151_v7  ;;  %v4328_v31 = vand.u32 4294901760, %v727_v21  ;;  %5635 = vst [vmem:[#allocation74_spill] sm:$0xff] %v4342_v49 }
 0x1cb   : > { %1475 = vmatpush.msra.mxu3 %v4081_v5  ;;  %978 = vmatmul.f32.gmra.mxu2 %v4247_v29  ;;  %v5641_v29 = vld [vmem:[#allocation29_spill] sm:$0xff] }
 0x1cc   : > { %1094 = vmatpush.msrb.mxu0 %v5630_v10  ;;  %1139 = vmatpush.msrb.mxu1 %v3972_v0  ;;  %v5634_v0 = vand.u32 4294901760, %v4139_v40  ;;  %v695_v10 = vld [vmem:[%s5406_s2 + $0x28] sm:$0xff]  ;;  %v4354_v40 = vand.u32 4294901760, %v1196_v33  ;;  %v4368_v33 = vpop.permute.xlu1 %557 }
 0x1cd   : > { %1428 = vmatpush.msra.mxu2 %v4169_v8  ;;  %1477 = vmatpush.msra.mxu3 %v4090_v13 }
 0x1ce   : > { %1098 = vmatpush.msrb.mxu0 %v5632_v1  ;;  %1141 = vmatpush.msrb.mxu1 %v3927_v55  ;;  %v4347_v55 = vsub.f32 %v727_v21, %v4328_v31  ;;  %5638 = vst [vmem:[#allocation76_spill] sm:$0xff] %v4354_v40  ;;  %v5640_v1 = vld [vmem:[#allocation36_spill] sm:$0xff]  ;;  %v730_v21 = vsel %vm722_vm4, %v695_v10, 0  ;;  %v5643_v10 = vld [vmem:[#allocation31_spill] sm:$0xff] }
 0x1cf   : > { %1432 = vmatpush.msra.mxu2 %v4188_v37  ;;  %1479 = vmatpush.msra.mxu3 %v4117_v41 }
 0x1d0   : > { %1102 = vmatpush.msrb.mxu0 %v5634_v0  ;;  %1143 = vmatpush.msrb.mxu1 %v3937_v26  ;;  %5637 = vst [vmem:[#allocation75_spill] sm:$0xff] %v4347_v55  ;;  %v5639_v26 = vld [vmem:[#allocation34_spill] sm:$0xff]  ;;  %v4364_v0 = vand.u32 4294901760, %v4347_v55  ;;  %v4376_v9 = vpop.permute.xlu2 %561 }
 0x1d1   : > { %1436 = vmatpush.msra.mxu2 %v4202_v45  ;;  %1481 = vmatpush.msra.mxu3 %v4163_v42  ;;  %5642 = vst [vmem:[#allocation34_spill] sm:$0xff] %v4368_v33 }
 0x1d2   : > { %1309 = vmatpush.msra.mxu0 %v5636_v62  ;;  %909 = vmatmul.f32.gmra.mxu1 %v4228_v15  ;;  %5644 = vst [vmem:[#allocation29_spill] sm:$0xff] %v4376_v9 }
 0x1d3   : > { %1104 = vmatmul.f32.vlgmr.msrb.gmra.mxu0 %v3967_v60  ;;  %1145 = vmatpush.msrb.mxu1 %v5639_v26  ;;  %v4372_v26 = vand.u32 4294901760, %v730_v21 }
 0x1d4   : > { %1283 = vmatmul.f32.vlgmr.msrb.gmra.mxu3 %v4284_v50  ;;  %1312 = vmatpush.msra.mxu0 %v5640_v1  ;;  %v591_v27 = vpop.permute.xlu1 %590 }
 0x1d5   : > { %1751 = vmatpush.msrb.mxu3 %v3988_v18  ;;  %1440 = vmatpush.msra.mxu2 %v4226_v54 }
 0x1d6   : > { %1147 = vmatpush.msrb.mxu1 %v5641_v29  ;;  %1198 = vmatmul.f32.vlgmr.msrb.gmra.mxu2 %v4354_v40  ;;  %v1204_v29 = vsub.f32 %v4347_v55, %v4364_v0  ;;  %v4384_v40 = vpop.permute.xlu0 %553 }
 0x1d7   : > { %1683 = vmatpush.msrb.mxu2 %v5636_v62  ;;  %1753 = vmatpush.msrb.mxu3 %v3999_v35  ;;  %v5645_v62 = vld [vmem:[#allocation42_spill] sm:$0xff]  ;;  %5646 = vst [vmem:[#allocation31_spill] sm:$0xff] %v4384_v40 }
 0x1d8   : > { %1315 = vmatpush.msra.mxu0 %v4063_v24  ;;  %1149 = vmatpush.msrb.mxu1 %v5643_v10  ;;  %v4389_v10 = vsub.f32 %v730_v21, %v4372_v26 }
 0x1d9   : > { %1686 = vmatpush.msrb.mxu2 %v5640_v1  ;;  %1755 = vmatpush.msrb.mxu3 %v4027_v36  ;;  %v697_v1 = vld [vmem:[%s5406_s2 + $0x38] sm:$0xff] }
 0x1da   : > { %1318 = vmatpush.msra.mxu0 %v4078_v3  ;;  %1151 = vmatpush.msrb.mxu1 %v5645_v62  ;;  %v701_v62 = vld [vmem:[%s5407_s3 + $0x18] sm:$0xff]  ;;  %v733_v21 = vsel %vm722_vm4, %v697_v1, 0  ;;  %v4408_v17 = vand.u32 4294901760, %v4389_v10  ;;  %v593_v1 = vpop.permute.xlu2 %592 }
 0x1db   : > { %1689 = vmatpush.msrb.mxu2 %v4063_v24  ;;  %1757 = vmatpush.msrb.mxu3 %v4048_v38  ;;  %v4401_v24 = vand.u32 4294901760, %v1204_v29  ;;  %v4414_v29 = vand.u32 4294901760, %v733_v21 }
 0x1dc   : > { %1321 = vmatpush.msra.mxu0 %v4126_v48  ;;  %1361 = vmatpush.msra.mxu1 %v3988_v18 }
 0x1dd   : > { %1108 = vmatmul.f32.gmra.mxu0 %v4041_v52  ;;  %1153 = vmatmul.f32.vlgmr.msrb.gmra.mxu1 %v3967_v60  ;;  %5647 = vst [vmem:[#allocation42_spill] sm:$0xff] %v4401_v24  ;;  %v5653_v60 = vld [vmem:[#allocation7_spill] sm:$0xff] }
 0x1de   : > { %1287 = vmatmul.f32.gmra.mxu3 %v4328_v31  ;;  %1692 = vmatpush.msrb.mxu2 %v4078_v3  ;;  %v595_v3 = vpop.permute.xlu0 %594 }
 0x1df   : > { %1759 = vmatpush.msrb.mxu3 %v4081_v5  ;;  %719 = vperm.xlu1 %3390, %v701_v62   ;;  %v1212_v62 = vsub.f32 %v4389_v10, %v4408_v17 }
 0x1e0   : > { %1324 = vmatpush.msra.mxu0 %v4136_v61  ;;  %1363 = vmatpush.msra.mxu1 %v3999_v35 }
 0x1e1   : > { %1206 = vmatmul.f32.gmra.mxu2 %v4401_v24  ;;  %1761 = vmatpush.msrb.mxu3 %v4090_v13  ;;  %v5649_v24 = vld [vmem:[#allocation3_spill] sm:$0xff] }
 0x1e2   : > { %1695 = vmatpush.msrb.mxu2 %v4126_v48  ;;  %1327 = vmatpush.msra.mxu0 %v4155_v32  ;;  %v4427_v48 = vsub.f32 %v733_v21, %v4414_v29  ;;  %vm545_vm5 = vcmp.le.s32.totalorder %v5649_v24, 38 }
 0x1e3   : > { %1365 = vmatpush.msra.mxu1 %v4027_v36  ;;  %1763 = vmatpush.msrb.mxu3 %v4117_v41 }
 0x1e4   : > { %1698 = vmatpush.msrb.mxu2 %v4136_v61  ;;  %1330 = vmatpush.msra.mxu0 %v4196_v34  ;;  %5648 = vst [vmem:[#allocation77_spill] sm:$0xff] %v4427_v48  ;;  %v4434_v61 = vand.u32 4294901760, %v1212_v62  ;;  %v4441_v21 = vand.u32 4294901760, %v4427_v48  ;;  %v589_v62 = vpop.permute.xlu1 %588 }
 0x1e5   : > { %1367 = vmatpush.msra.mxu1 %v4048_v38  ;;  %1765 = vmatpush.msrb.mxu3 %v4163_v42 }
 0x1e6   : > { %1504 = vmatpush.msrb.mxu0 %v3988_v18  ;;  %1701 = vmatpush.msrb.mxu2 %v4155_v32  ;;  %5650 = vst [vmem:[#allocation78_spill] sm:$0xff] %v4434_v61  ;;  %v611_v32 = vsel %vm545_vm5, %v595_v3, %v4293_v12  ;;  %v585_v3 = vpop.permute.xlu2 %584  ;;  %v609_v12 = vsel %vm545_vm5, %v591_v27, %v4342_v49 }
 0x1e7   : > { %1369 = vmatpush.msra.mxu1 %v4081_v5  ;;  %1112 = vmatmul.f32.gmra.mxu0 %v4142_v4  ;;  %5651 = vst [vmem:[#allocation79_spill] sm:$0xff] %v4441_v21  ;;  %v4455_v46 = vand.u32 4294901760, %v611_v32 }
 0x1e8   : > { %1157 = vmatmul.f32.gmra.mxu1 %v4041_v52  ;;  %1291 = vmatmul.f32.gmra.mxu3 %v4372_v26  ;;  %v5652_v52 = vld [vmem:[#allocation4_spill] sm:$0xff] }
 0x1e9   : > { %1506 = vmatpush.msrb.mxu0 %v3999_v35  ;;  %1704 = vmatpush.msrb.mxu2 %v4196_v34  ;;  %v610_v34 = vsel %vm545_vm5, %v593_v1, %v4324_v11  ;;  %v608_v11 = vsel %vm545_vm5, %v589_v62, %v4335_v44  ;;  %v4476_v27 = vsub.f32 %v611_v32, %v4455_v46  ;;  %v700_v62 = vld [vmem:[%s5407_s3 + $0x10] sm:$0xff] }
 0x1ea   : > { %1767 = vmatpush.msrb.mxu3 %v3716_v22  ;;  %1371 = vmatpush.msra.mxu1 %v4090_v13  ;;  %v4466_v1 = vand.u32 4294901760, %v610_v34  ;;  %v4492_v32 = vand.u32 4294901760, %v608_v11 }
 0x1eb   : > { %1214 = vmatmul.f32.gmra.mxu2 %v4434_v61  ;;  %1508 = vmatpush.msrb.mxu0 %v4027_v36  ;;  %v1220_v61 = vsub.f32 %v4427_v48, %v4441_v21  ;;  %5655 = vst [vmem:[#allocation4_spill] sm:$0xff] %v4476_v27  ;;  %v4502_v44 = vand.u32 4294901760, %v4476_v27 }
 0x1ec   : > { %1707 = vmatpush.msrb.mxu2 %v5652_v52  ;;  %1769 = vmatpush.msrb.mxu3 %v3776_v14  ;;  %v587_v52 = vpop.permute.xlu0 %586  ;;  %v4518_v21 = vsub.f32 %v608_v11, %v4492_v32  ;;  %v5661_v11 = vld [vmem:[#allocation19_spill] sm:$0xff] }
 0x1ed   : > { %1373 = vmatpush.msra.mxu1 %v4117_v41  ;;  %1510 = vmatpush.msrb.mxu0 %v4048_v38  ;;  %v4482_v49 = vand.u32 4294901760, %v1220_v61  ;;  %v607_v61 = vsel %vm545_vm5, %v587_v52, %v4376_v9  ;;  %v5658_v52 = vld [vmem:[#allocation53_spill] sm:$0xff] }
 0x1ee   : > { %1710 = vmatpush.msrb.mxu2 %v5653_v60  ;;  %1771 = vmatpush.msrb.mxu3 %v3809_v51  ;;  %v4478_v60 = vand.u32 4294901760, %v609_v12  ;;  %v4515_v9 = vpop.permute.xlu2 %549 }
 0x1ef   : > { %1375 = vmatpush.msra.mxu1 %v4163_v42  ;;  %1512 = vmatpush.msrb.mxu0 %v4081_v5  ;;  %5656 = vst [vmem:[#allocation7_spill] sm:$0xff] %v4482_v49 }
 0x1f0   : > { %1713 = vmatpush.msrb.mxu2 %v5654_v47  ;;  %1773 = vmatpush.msrb.mxu3 %v3778_v16  ;;  %v4490_v47 = vsub.f32 %v610_v34, %v4466_v1  ;;  %v4505_v34 = vsub.f32 %v609_v12, %v4478_v60  ;;  %5659 = vst [vmem:[#allocation12_spill] sm:$0xff] %v4515_v9  ;;  %v5660_v12 = vld [vmem:[#allocation11_spill] sm:$0xff] }
 0x1f1   : > { %1573 = vmatpush.msrb.mxu1 %v4146_v28  ;;  %1116 = vmatmul.f32.gmra.mxu0 %v4228_v15  ;;  %v5657_v28 = vld [vmem:[#allocation9_spill] sm:$0xff] }
 0x1f2   : > { %1161 = vmatmul.f32.gmra.mxu1 %v4142_v4  ;;  %1295 = vmatmul.f32.gmra.mxu3 %v4414_v29  ;;  %v583_v4 = vpop.permute.xlu1 %582 }
 0x1f3   : > { %1514 = vmatpush.msrb.mxu0 %v4090_v13  ;;  %1579 = vmatpush.msrb.mxu1 %v4166_v23  ;;  %v606_v23 = vsel %vm545_vm5, %v585_v3, %v4368_v33  ;;  %v605_v3 = vsel %vm545_vm5, %v583_v4, %v4384_v40  ;;  %v4537_v33 = vand.u32 4294901760, %v4505_v34  ;;  %v5662_v40 = vld [vmem:[#allocation16_spill] sm:$0xff] }
 0x1f4   : > { %1716 = vmatpush.msrb.mxu2 %v5657_v28  ;;  %1775 = vmatpush.msrb.mxu3 %v3792_v39  ;;  %v4513_v28 = vand.u32 4294901760, %v607_v61 }
 0x1f5   : > { %714 = vperm.xlu2 %3391, %v700_v62   ;;  %1222 = vmatmul.f32.gmra.mxu2 %v4482_v49  ;;  %v4523_v62 = vand.u32 4294901760, %v4490_v47  ;;  %v4530_v49 = vand.u32 4294901760, %v606_v23 }
 0x1f6   : > { %1516 = vmatpush.msrb.mxu0 %v4117_v41  ;;  %1585 = vmatpush.msrb.mxu1 %v5658_v52  ;;  %v581_v52 = vpop.permute.xlu0 %580 }
 0x1f7   : > { %1719 = vmatpush.msrb.mxu2 %v5660_v12  ;;  %1777 = vmatpush.msrb.mxu3 %v3861_v59  ;;  %v2005_v12 = vsub.f32 %v4476_v27, %v4502_v44  ;;  %v604_v4 = vsel %vm545_vm5, %v581_v52, %v4515_v9  ;;  %v2011_v27 = vsub.f32 %v4490_v47, %v4523_v62  ;;  %v5663_v9 = vld [vmem:[#allocation17_spill] sm:$0xff] }
 0x1f8   : > { %1518 = vmatpush.msrb.mxu0 %v4163_v42  ;;  %1591 = vmatpush.msrb.mxu1 %v4213_v57  ;;  %v4545_v57 = vsub.f32 %v607_v61, %v4513_v28  ;;  %v4554_v42 = vand.u32 4294901760, %v4518_v21  ;;  %v4558_v52 = vand.u32 4294901760, %v604_v4  ;;  %v4561_v61 = vsub.f32 %v606_v23, %v4530_v49 }
 0x1f9   : > { %1722 = vmatpush.msrb.mxu2 %v5661_v11  ;;  %1779 = vmatpush.msrb.mxu3 %v3819_v56  ;;  %v4547_v11 = vand.u32 4294901760, %v605_v3  ;;  %v4576_v23 = vand.u32 4294901760, %v2011_v27 }
 0x1fa   : > { %1520 = vmatpush.msrb.mxu0 %v3716_v22  ;;  %1597 = vmatpush.msrb.mxu1 %v4221_v19  ;;  %v2017_v19 = vsub.f32 %v4505_v34, %v4537_v33  ;;  %v4581_v24 = vand.u32 4294901760, %v4545_v57  ;;  %v4593_v27 = vand.u32 4294901760, %v4561_v61 }
 0x1fb   : > { %1725 = vmatpush.msrb.mxu2 %v5662_v40  ;;  %1781 = vmatpush.msrb.mxu3 %v3830_v63  ;;  %v4565_v40 = vand.u32 4294901760, %v2005_v12  ;;  %5664 = vst [vmem:[#allocation9_spill] sm:$0xff] %v4576_v23  ;;  %v2023_v12 = vsub.f32 %v4518_v21, %v4554_v42 }
 0x1fc   : > { %1165 = vmatmul.f32.gmra.mxu1 %v4228_v15  ;;  %1333 = vmatmul.f32.vlgmr.msra.gmra.mxu0 %v4301_v43  ;;  %v4572_v43 = vsub.f32 %v605_v3, %v4547_v11  ;;  %v4590_v3 = vand.u32 4294901760, %v2017_v19  ;;  %v5667_v19 = vld [vmem:[#allocation6_spill] sm:$0xff] }
 0x1fd   : > { %1483 = vmatmul.f32.vlgmr.msra.gmra.mxu3 %v4284_v50  ;;  %1522 = vmatpush.msrb.mxu0 %v3776_v14 }
 0x1fe   : > { %1603 = vmatpush.msrb.mxu1 %v4236_v25  ;;  %1728 = vmatpush.msrb.mxu2 %v5663_v9  ;;  %v4586_v9 = vsub.f32 %v604_v4, %v4558_v52  ;;  %5665 = vst [vmem:[#allocation11_spill] sm:$0xff] %v4590_v3  ;;  %v2029_v4 = vsub.f32 %v4545_v57, %v4581_v24  ;;  %v4604_v25 = vand.u32 4294901760, %v4572_v43 }
 0x1ff   : > { %2007 = vmatpush.msra.mxu3 %v4565_v40  ;;  %1442 = vmatmul.f32.vlgmr.msra.gmra.mxu2 %v4284_v50 }
 0x200   : > { %1524 = vmatpush.msrb.mxu0 %v3809_v51  ;;  %1609 = vmatpush.msrb.mxu1 %v4242_v6  ;;  %v4599_v6 = vand.u32 4294901760, %v2023_v12  ;;  %v4613_v12 = vand.u32 4294901760, %v4586_v9 }
 0x201   : > { %1946 = vmatpush.msra.mxu2 %v4455_v46  ;;  %2013 = vmatpush.msra.mxu3 %v4576_v23  ;;  %v5672_v23 = vld [vmem:[#allocation24_spill] sm:$0xff] }
 0x202   : > { %1526 = vmatpush.msrb.mxu0 %v3778_v16  ;;  %1615 = vmatpush.msrb.mxu1 %v4259_v58  ;;  %5666 = vst [vmem:[#allocation19_spill] sm:$0xff] %v4599_v6  ;;  %v2035_v58 = vsub.f32 %v4561_v61, %v4593_v27 }
 0x203   : > { %1948 = vmatpush.msra.mxu2 %v4466_v1  ;;  %2019 = vmatpush.msra.mxu3 %v4590_v3  ;;  %v4619_v3 = vand.u32 4294901760, %v2029_v4  ;;  %v5670_v4 = vld [vmem:[#allocation18_spill] sm:$0xff] }
 0x204   : > { %1528 = vmatpush.msrb.mxu0 %v3792_v39  ;;  %1621 = vmatpush.msrb.mxu1 %v5667_v19  ;;  %v2041_v19 = vsub.f32 %v4572_v43, %v4604_v25 }
 0x205   : > { %1950 = vmatpush.msra.mxu2 %v4478_v60  ;;  %2025 = vmatpush.msra.mxu3 %v4599_v6  ;;  %5668 = vst [vmem:[#allocation16_spill] sm:$0xff] %v4619_v3  ;;  %v5669_v6 = vld [vmem:[#allocation10_spill] sm:$0xff] }
 0x206   : > { %1338 = vmatmul.f32.gmra.mxu0 %v4347_v55  ;;  %1379 = vmatmul.f32.vlgmr.msra.gmra.mxu1 %v4316_v20  ;;  %v4627_v55 = vand.u32 4294901760, %v2035_v58  ;;  %v2047_v20 = vsub.f32 %v4586_v9, %v4613_v12 }
 0x207   : > { %1487 = vmatmul.f32.gmra.mxu3 %v4328_v31  ;;  %1530 = vmatpush.msrb.mxu0 %v3861_v59 }
 0x208   : > { %1627 = vmatpush.msrb.mxu1 %v5669_v6  ;;  %1952 = vmatpush.msra.mxu2 %v4492_v32  ;;  %v4635_v6 = vand.u32 4294901760, %v2041_v19  ;;  %v4641_v58 = vand.u32 4294901760, %v2047_v20  ;;  %v5674_v20 = vld [vmem:[#allocation25_spill] sm:$0xff]  ;;  %v5675_v19 = vld [vmem:[#allocation26_spill] sm:$0xff] }
 0x209   : > { %2031 = vmatpush.msra.mxu3 %v4619_v3  ;;  %1446 = vmatmul.f32.gmra.mxu2 %v4328_v31  ;;  %v5671_v3 = vld [vmem:[#allocation20_spill] sm:$0xff] }
 0x20a   : > { %1532 = vmatpush.msrb.mxu0 %v3819_v56  ;;  %1633 = vmatpush.msrb.mxu1 %v5670_v4  ;;  %v4648_v4 = vld [vmem:[%s5408_s4] sm:$0xff] }
 0x20b   : > { %1954 = vmatpush.msra.mxu2 %v4513_v28  ;;  %2037 = vmatpush.msra.mxu3 %v4627_v55 }
 0x20c   : > { %1534 = vmatpush.msrb.mxu0 %v3830_v63  ;;  %1639 = vmatpush.msrb.mxu1 %v5671_v3  ;;  %v5673_v3 = vmov 1  }
 0x20d   : > { %1956 = vmatpush.msra.mxu2 %v4530_v49  ;;  %2043 = vmatpush.msra.mxu3 %v4635_v6 }
 0x20e   : > { %1810 = vmatpush.msra.mxu0 %v4069_v53  ;;  %1645 = vmatpush.msrb.mxu1 %v5672_v23  ;;  %v3057_v23 = vld [vmem:[%s5408_s4 + $0x8] sm:$0xff] }
 0x20f   : > { %1958 = vmatpush.msra.mxu2 %v4547_v11  ;;  %2049 = vmatpush.msra.mxu3 %v4641_v58 }
 0x210   : > { %3392 = vset.pattern.permute.xlu1 %v5673_v3  ;;  %1814 = vmatpush.msra.mxu0 %v4087_v2  ;;  %v5676_v2 = vld [vmem:[#allocation27_spill] sm:$0xff] }
 0x211   : > { %3086 = vperm.xlu1 %3392, %v4648_v4   ;;  %1343 = vmatmul.f32.gmra.mxu0 %v4389_v10 }
 0x212   : > { %1385 = vmatmul.f32.gmra.mxu1 %v4364_v0  ;;  %1491 = vmatmul.f32.gmra.mxu3 %v4372_v26 }
 0x213   : > { %1651 = vmatpush.msrb.mxu1 %v5674_v20  ;;  %1960 = vmatpush.msra.mxu2 %v4558_v52  ;;  %v5677_v20 = vmov 2  }
 0x214   : > { %1818 = vmatpush.msra.mxu0 %v4111_v30  ;;  %1450 = vmatmul.f32.gmra.mxu2 %v4372_v26 }
 0x215   : > { %1657 = vmatpush.msrb.mxu1 %v5675_v19  ;;  %3068 = vperm.xlu0 %3389, %v3057_v23   ;;  %v5679_v19 = vld [vmem:[#allocation41_spill] sm:$0xff] }
 0x216   : > { %1822 = vmatpush.msra.mxu0 %v4151_v7  ;;  %3063 = vperm.xlu2 %3391, %v4648_v4  }
 0x217   : > { %1663 = vmatpush.msrb.mxu1 %v5676_v2  ;;  %v5678_v2 = vld [vmem:[#allocation5_spill] sm:$0xff] }
 0x218   : > { %1826 = vmatpush.msra.mxu0 %v4169_v8  ;;  %v5685_v8 = vld [vmem:[#allocation30_spill] sm:$0xff] }
 0x219   : > { %1889 = vmatpush.msra.mxu1 %v3988_v18  ;;  %3394 = vset.pattern.permute.xlu1 %v5677_v20 }
 0x21a   : > { %1348 = vmatmul.f32.gmra.mxu0 %v4427_v48  ;;  %1391 = vmatmul.f32.gmra.mxu1 %v4408_v17  ;;  %v5693_v48 = vld [vmem:[#allocation43_spill] sm:$0xff] }
 0x21b   : > { %1830 = vmatpush.msra.mxu0 %v4188_v37  ;;  %1891 = vmatpush.msra.mxu1 %v3999_v35  ;;  %v5680_v37 = vld [vmem:[#allocation8_spill] sm:$0xff] }
 0x21c   : > { %1495 = vmatmul.f32.gmra.mxu3 %v4414_v29  ;;  %3135 = vperm.xlu1 %3394, %v3057_v23  }
 0x21d   : > { %1834 = vmatpush.msra.mxu0 %v4202_v45  ;;  %1893 = vmatpush.msra.mxu1 %v4027_v36  ;;  %v4690_v45 = vld [vmem:[%s5408_s4 + $0x10] sm:$0xff] }
 0x21e   : > { %1454 = vmatmul.f32.gmra.mxu2 %v4414_v29  ;;  %3393 = vset.pattern.permute.xlu2 %v5673_v3 }
 0x21f   : > { %1838 = vmatpush.msra.mxu0 %v4226_v54  ;;  %1895 = vmatpush.msra.mxu1 %v4048_v38  ;;  %v5681_v54 = vld [vmem:[#allocation33_spill] sm:$0xff] }
 0x220   : > { %3090 = vperm.xlu2 %3393, %v3057_v23   ;;  %3398 = vset.pattern.permute.xlu0 %v5673_v3  ;;  %v5683_v3 = vmov 3  }
 0x221   : > { %1842 = vmatpush.msra.mxu0 %v5678_v2  ;;  %1897 = vmatpush.msra.mxu1 %v4081_v5  ;;  %v5682_v2 = vld [vmem:[#allocation79_spill] sm:$0xff] }
 0x222   : > { %1540 = vmatmul.f32.vlgmr.msrb.gmra.mxu0 %v5679_v19  ;;  %3094 = vperm.xlu0 %3398, %v4690_v45   ;;  %v5684_v19 = vld [vmem:[#allocation14_spill] sm:$0xff] }
 0x223   : > { %1846 = vmatpush.msra.mxu0 %v5680_v37  ;;  %1899 = vmatpush.msra.mxu1 %v4090_v13  ;;  %v5686_v37 = vld [vmem:[#allocation13_spill] sm:$0xff] }
 0x224   : > { %1785 = vmatmul.f32.vlgmr.msrb.gmra.mxu3 %v5681_v54  ;;  %1397 = vmatmul.f32.gmra.mxu1 %v5682_v2  ;;  %v5687_v54 = vld [vmem:[#allocation49_spill] sm:$0xff]  ;;  %v5688_v2 = vld [vmem:[#allocation15_spill] sm:$0xff] }
 0x225   : > { %2235 = vmatpush.msrb.mxu3 %v4455_v46  ;;  %3396 = vset.pattern.permute.xlu1 %v5683_v3 }
 0x226   : > { %1850 = vmatpush.msra.mxu0 %v5684_v19  ;;  %1901 = vmatpush.msra.mxu1 %v4117_v41 }
 0x227   : > { %3155 = vperm.xlu1 %3396, %v3057_v23   ;;  %1731 = vmatmul.f32.vlgmr.msrb.gmra.mxu2 %v5685_v8  ;;  %v4709_v19 = vpop.f32.mrf.mxu0  ;;  %v5690_v23 = vld [vmem:[#allocation22_spill] sm:$0xff]  ;;  %v5692_v8 = vld [vmem:[#allocation28_spill] sm:$0xff] }
 0x228   : > { %2237 = vmatpush.msrb.mxu3 %v4466_v1  ;;  %2180 = vmatpush.msrb.mxu2 %v4502_v44  ;;  %5689 = vst [vmem:[#allocation17_spill] sm:$0xff] %v4709_v19  ;;  %v5698_v19 = vld [vmem:[#allocation4_spill] sm:$0xff] }
 0x229   : > { %1854 = vmatpush.msra.mxu0 %v5686_v37  ;;  %1903 = vmatpush.msra.mxu1 %v5687_v54  ;;  %v5691_v37 = vld [vmem:[#allocation55_spill] sm:$0xff] }
 0x22a   : > { %2239 = vmatpush.msrb.mxu3 %v4478_v60  ;;  %2184 = vmatpush.msrb.mxu2 %v4523_v62 }
 0x22b   : > { %1858 = vmatpush.msra.mxu0 %v5688_v2  ;;  %1905 = vmatpush.msra.mxu1 %v3716_v22  ;;  %v5694_v2 = vld [vmem:[#allocation21_spill] sm:$0xff]  ;;  %v5695_v22 = vld [vmem:[#allocation38_spill] sm:$0xff] }
 0x22c   : > { %2241 = vmatpush.msrb.mxu3 %v4492_v32  ;;  %2188 = vmatpush.msrb.mxu2 %v4537_v33 }
 0x22d   : > { %1862 = vmatpush.msra.mxu0 %v5690_v23  ;;  %1907 = vmatpush.msra.mxu1 %v3776_v14  ;;  %v5696_v14 = vld [vmem:[#allocation23_spill] sm:$0xff] }
 0x22e   : > { %1548 = vmatmul.f32.gmra.mxu0 %v5691_v37  ;;  %1665 = vmatmul.f32.vlgmr.msrb.gmra.mxu1 %v5692_v8  ;;  %v5713_v37 = vld [vmem:[#allocation67_spill] sm:$0xff] }
 0x22f   : > { %1791 = vmatmul.f32.gmra.mxu3 %v5693_v48  ;;  %2192 = vmatpush.msrb.mxu2 %v4554_v42  ;;  %v4741_v48 = vpop.f32.mrf.mxu3 }
 0x230   : > { %2243 = vmatpush.msrb.mxu3 %v4513_v28  ;;  %1866 = vmatpush.msra.mxu0 %v5694_v2  ;;  %v4729_v23 = vpop.f32.mrf.mxu2  ;;  %v4733_v2 = vpop.f32.mrf.mxu0  ;;  %5701 = vst [vmem:[#allocation20_spill] sm:$0xff] %v4741_v48  ;;  %v5705_v48 = vld [vmem:[#allocation52_spill] sm:$0xff] }
 0x231   : > { %1909 = vmatpush.msra.mxu1 %v3809_v51  ;;  %3400 = vset.pattern.permute.xlu1 %v5677_v20  ;;  %5697 = vst [vmem:[#allocation6_spill] sm:$0xff] %v4729_v23  ;;  %v4737_v51 = vpop.f32.mrf.mxu1  ;;  %v5703_v23 = vld [vmem:[#allocation35_spill] sm:$0xff] }
 0x232   : > { %1736 = vmatmul.f32.gmra.mxu2 %v5695_v22  ;;  %2245 = vmatpush.msrb.mxu3 %v4530_v49  ;;  %5699 = vst [vmem:[#allocation10_spill] sm:$0xff] %v4733_v2  ;;  %v5704_v2 = vld [vmem:[#allocation58_spill] sm:$0xff] }
 0x233   : > { %2196 = vmatpush.msrb.mxu2 %v4581_v24  ;;  %3139 = vperm.xlu1 %3400, %v4690_v45   ;;  %5700 = vst [vmem:[#allocation18_spill] sm:$0xff] %v4737_v51  ;;  %v5706_v51 = vmov 0   ;;  %v5712_v22 = vld [vmem:[#allocation46_spill] sm:$0xff] }
 0x234   : > { %1870 = vmatpush.msra.mxu0 %v5696_v14  ;;  %1911 = vmatpush.msra.mxu1 %v3778_v16  ;;  %v4743_v14 = vpop.permute.xlu1 %645  ;;  %v5702_v16 = vld [vmem:[#allocation65_spill] sm:$0xff] }
 0x235   : > { %2200 = vmatpush.msrb.mxu2 %v4593_v27  ;;  %2247 = vmatpush.msrb.mxu3 %v4547_v11 }
 0x236   : > { %2077 = vmatpush.msrb.mxu0 %v5698_v19  ;;  %1913 = vmatpush.msra.mxu1 %v3792_v39  ;;  %v4756_v39 = vld [vmem:[%s5408_s4 + $0x18] sm:$0xff] }
 0x237   : > { %2204 = vmatpush.msrb.mxu2 %v4604_v25  ;;  %2249 = vmatpush.msrb.mxu3 %v4558_v52 }
 0x238   : > { %2080 = vmatpush.msrb.mxu0 %v4490_v47  ;;  %1915 = vmatpush.msra.mxu1 %v3861_v59  ;;  %v4760_v59 = vpop.permute.xlu2 %637 }
 0x239   : > { %1556 = vmatmul.f32.gmra.mxu0 %v5702_v16  ;;  %1669 = vmatmul.f32.gmra.mxu1 %v5703_v23 }
 0x23a   : > { %1797 = vmatmul.f32.gmra.mxu3 %v5704_v2  ;;  %2083 = vmatpush.msrb.mxu0 %v4505_v34  ;;  %v4766_v2 = vpop.f32.mrf.mxu2  ;;  %v4770_v16 = vpop.f32.mrf.mxu0 }
 0x23b   : > { %2208 = vmatpush.msrb.mxu2 %v4613_v12  ;;  %1917 = vmatpush.msra.mxu1 %v3819_v56  ;;  %5707 = vst [vmem:[#allocation24_spill] sm:$0xff] %v4766_v2  ;;  %v4773_v56 = vpop.f32.mrf.mxu1  ;;  %v5711_v2 = vld [vmem:[#allocation68_spill] sm:$0xff] }
 0x23c   : > { %1741 = vmatmul.f32.gmra.mxu2 %v5705_v48  ;;  %2086 = vmatpush.msrb.mxu0 %v4518_v21  ;;  %5708 = vst [vmem:[#allocation25_spill] sm:$0xff] %v4770_v16  ;;  %v4780_v48 = vpop.permute.xlu1 %629  ;;  %v5714_v16 = vld [vmem:[#allocation64_spill] sm:$0xff] }
 0x23d   : > { %3402 = vset.pattern.permute.xlu1 %v5706_v51  ;;  %1919 = vmatpush.msra.mxu1 %v3830_v63  ;;  %5709 = vst [vmem:[#allocation26_spill] sm:$0xff] %v4773_v56  ;;  %v4778_v63 = vpop.f32.mrf.mxu3 }
 0x23e   : > { %3078 = vperm.xlu1 %3402, %v4756_v39   ;;  %2089 = vmatpush.msrb.mxu0 %v4545_v57  ;;  %5710 = vst [vmem:[#allocation27_spill] sm:$0xff] %v4778_v63 }
 0x23f   : > { %2129 = vmatpush.msrb.mxu1 %v4455_v46  ;;  %3395 = vset.pattern.permute.xlu2 %v5683_v3 }
 0x240   : > { %3399 = vset.pattern.permute.xlu0 %v5677_v20  ;;  %2092 = vmatpush.msrb.mxu0 %v4561_v61  ;;  %v4792_v20 = vpop.permute.xlu2 %633 }
 0x241   : > { %2131 = vmatpush.msrb.mxu1 %v4466_v1  ;;  %1564 = vmatmul.f32.gmra.mxu0 %v5711_v2 }
 0x242   : > { %1673 = vmatmul.f32.gmra.mxu1 %v5712_v22  ;;  %1803 = vmatmul.f32.gmra.mxu3 %v5713_v37 }
 0x243   : > { %2095 = vmatpush.msrb.mxu0 %v4572_v43  ;;  %2133 = vmatpush.msrb.mxu1 %v4478_v60  ;;  %v4796_v63 = vpop.f32.mrf.mxu2 }
 0x244   : > { %1746 = vmatmul.f32.gmra.mxu2 %v5714_v16  ;;  %3151 = vperm.xlu2 %3395, %v4648_v4   ;;  %5715 = vst [vmem:[#allocation5_spill] sm:$0xff] %v4796_v63  ;;  %v4799_v56 = vpop.f32.mrf.mxu0  ;;  %v4803_v37 = vpop.f32.mrf.mxu1 }
 0x245   : > { %2098 = vmatpush.msrb.mxu0 %v4586_v9  ;;  %2135 = vmatpush.msrb.mxu1 %v4492_v32  ;;  %5716 = vst [vmem:[#allocation8_spill] sm:$0xff] %v4799_v56  ;;  %v4809_v16 = vpop.permute.xlu1 %670  ;;  %v642_v63 = vpop.permute.xlu0 %641  ;;  %v5719_v56 = vld [vmem:[#allocation76_spill] sm:$0xff] }
 0x246   : > { %3131 = vperm.xlu0 %3399, %v4648_v4   ;;  %3404 = vset.pattern.permute.xlu1 %v5683_v3  ;;  %5717 = vst [vmem:[#allocation14_spill] sm:$0xff] %v4803_v37  ;;  %v4807_v4 = vpop.f32.mrf.mxu3 }
 0x247   : > { %2137 = vmatpush.msrb.mxu1 %v4513_v28  ;;  %3163 = vperm.xlu1 %3404, %v4756_v39   ;;  %5718 = vst [vmem:[#allocation13_spill] sm:$0xff] %v4807_v4 }
 0x248   : > { %v4821_v4 = vpop.permute.xlu2 %621 }
 0x249   : > { %2139 = vmatpush.msrb.mxu1 %v4530_v49  ;;  %1872 = vmatmul.f32.vlgmr.msra.gmra.mxu0 %v5692_v8 }
 0x24a   : > { %1677 = vmatmul.f32.gmra.mxu1 %v4228_v15  ;;  %2051 = vmatmul.f32.vlgmr.msra.gmra.mxu3 %v4284_v50 }
 0x24b   : > { %2141 = vmatpush.msrb.mxu1 %v4547_v11  ;;  %2272 = vmatpush.msra.mxu0 %v4455_v46 }
 0x24c   : > { %2519 = vmatpush.msra.mxu3 %v4455_v46  ;;  %1966 = vmatmul.f32.vlgmr.msra.gmra.mxu2 %v5719_v56 }
 0x24d   : > { %2143 = vmatpush.msrb.mxu1 %v4558_v52  ;;  %2274 = vmatpush.msra.mxu0 %v4466_v1 }
 0x24e   : > { %2451 = vmatpush.msra.mxu2 %v5698_v19  ;;  %2521 = vmatpush.msra.mxu3 %v4466_v1  ;;  %v4827_v37 = vpop.f32.mrf.mxu2 }
 0x24f   : > { %3397 = vset.pattern.permute.xlu2 %v5706_v51  ;;  %2276 = vmatpush.msra.mxu0 %v4478_v60  ;;  %5720 = vst [vmem:[#allocation49_spill] sm:$0xff] %v4827_v37  ;;  %v4835_v56 = vpop.f32.mrf.mxu1  ;;  %v669_v51 = vpop.permute.xlu1 %668  ;;  %v5724_v37 = vld [vmem:[#allocation42_spill] sm:$0xff] }
 0x250   : > { %3073 = vperm.xlu2 %3397, %v4690_v45   ;;  %2454 = vmatpush.msra.mxu2 %v4490_v47  ;;  %v4831_v19 = vpop.f32.mrf.mxu0  ;;  %5722 = vst [vmem:[#allocation22_spill] sm:$0xff] %v4835_v56  ;;  %v4839_v47 = vpop.f32.mrf.mxu3  ;;  %v5725_v56 = vld [vmem:[#allocation9_spill] sm:$0xff] }
 0x251   : > { %2523 = vmatpush.msra.mxu3 %v4478_v60  ;;  %2278 = vmatpush.msra.mxu0 %v4492_v32  ;;  %5721 = vst [vmem:[#allocation15_spill] sm:$0xff] %v4831_v19  ;;  %v5728_v19 = vld [vmem:[#allocation69_spill] sm:$0xff] }
 0x252   : > { %2457 = vmatpush.msra.mxu2 %v4505_v34  ;;  %1876 = vmatmul.f32.gmra.mxu0 %v5703_v23  ;;  %5723 = vst [vmem:[#allocation21_spill] sm:$0xff] %v4839_v47  ;;  %v4843_v34 = vpop.permute.xlu0 %625  ;;  %v5726_v47 = vld [vmem:[#allocation11_spill] sm:$0xff] }
 0x253   : > { %2525 = vmatpush.msra.mxu3 %v4492_v32  ;;  %1921 = vmatmul.f32.vlgmr.msra.gmra.mxu1 %v5692_v8 }
 0x254   : > { %2055 = vmatmul.f32.gmra.mxu3 %v4328_v31  ;;  %2280 = vmatpush.msra.mxu0 %v4513_v28 }
 0x255   : > { %2341 = vmatpush.msra.mxu1 %v4565_v40  ;;  %2460 = vmatpush.msra.mxu2 %v4518_v21  ;;  %v5727_v40 = vld [vmem:[#allocation3_spill] sm:$0xff]  ;;  %v673_v21 = vpop.permute.xlu2 %672 }
 0x256   : > { %2527 = vmatpush.msra.mxu3 %v4513_v28  ;;  %1974 = vmatmul.f32.gmra.mxu2 %v5724_v37  ;;  %vm613_vm6 = vcmp.eq.s32.totalorder %v5727_v40, 38  ;;  %vm612_vm7 = vcmp.le.s32.totalorder %v5727_v40, 37 }
 0x257   : > { %2282 = vmatpush.msra.mxu0 %v4530_v49  ;;  %2347 = vmatpush.msra.mxu1 %v5725_v56  ;;  %v655_v56 = vsel %vm613_vm6, %v5728_v19, %v4743_v14 }
 0x258   : > { %2463 = vmatpush.msra.mxu2 %v4545_v57  ;;  %2529 = vmatpush.msra.mxu3 %v4530_v49  ;;  %v5729_v57 = vld [vmem:[#allocation19_spill] sm:$0xff]  ;;  %v689_v19 = vsel %vm612_vm7, %v673_v21, %v655_v56  ;;  %v5737_v56 = vld [vmem:[#allocation78_spill] sm:$0xff] }
 0x259   : > { %2284 = vmatpush.msra.mxu0 %v4547_v11  ;;  %2353 = vmatpush.msra.mxu1 %v5726_v47  ;;  %v4862_v37 = vpop.f32.mrf.mxu2 }
 0x25a   : > { %2466 = vmatpush.msra.mxu2 %v4561_v61  ;;  %2531 = vmatpush.msra.mxu3 %v4547_v11  ;;  %5730 = vst [vmem:[#allocation23_spill] sm:$0xff] %v4862_v37  ;;  %v4866_v47 = vpop.f32.mrf.mxu0  ;;  %v5732_v61 = vld [vmem:[#allocation72_spill] sm:$0xff]  ;;  %v4874_v14 = vpop.f32.mrf.mxu1  ;;  %v5736_v37 = vld [vmem:[#allocation74_spill] sm:$0xff] }
 0x25b   : > { %2286 = vmatpush.msra.mxu0 %v4558_v52  ;;  %2359 = vmatpush.msra.mxu1 %v5729_v57  ;;  %5731 = vst [vmem:[#allocation4_spill] sm:$0xff] %v4866_v47  ;;  %v654_v2 = vsel %vm613_vm6, %v5732_v61, %v642_v63  ;;  %v4880_v57 = vpop.f32.mrf.mxu3  ;;  %v653_v63 = vsel %vm613_vm6, %v5736_v37, %v4760_v59  ;;  %v663_v61 = vpop.permute.xlu1 %662  ;;  %v4897_v37 = vand.u32 4294901760, %v689_v19  ;;  %v5739_v59 = vld [vmem:[#allocation32_spill] sm:$0xff]  ;;  %v5748_v47 = vld [vmem:[#allocation47_spill] sm:$0xff] }
 0x25c   : > { %2469 = vmatpush.msra.mxu2 %v4572_v43  ;;  %2533 = vmatpush.msra.mxu3 %v4558_v52  ;;  %5733 = vst [vmem:[#allocation9_spill] sm:$0xff] %v4874_v14  ;;  %v5734_v43 = vld [vmem:[#allocation16_spill] sm:$0xff]  ;;  %v667_v14 = vpop.permute.xlu0 %666  ;;  %v688_v21 = vsel %vm612_vm7, %v4809_v16, %v654_v2 }
 0x25d   : > { %1880 = vmatmul.f32.gmra.mxu0 %v5712_v22  ;;  %1925 = vmatmul.f32.gmra.mxu1 %v5703_v23  ;;  %5735 = vst [vmem:[#allocation11_spill] sm:$0xff] %v4880_v57  ;;  %v4905_v2 = vand.u32 4294901760, %v688_v21 }
 0x25e   : > { %2059 = vmatmul.f32.gmra.mxu3 %v4372_v26  ;;  %2365 = vmatpush.msra.mxu1 %v5734_v43  ;;  %v5738_v43 = vld [vmem:[#allocation73_spill] sm:$0xff] }
 0x25f   : > { %2472 = vmatpush.msra.mxu2 %v4586_v9  ;;  %2288 = vmatpush.msra.mxu0 %v3988_v18  ;;  %v652_v57 = vsel %vm613_vm6, %v5738_v43, %v4792_v20  ;;  %v687_v9 = vsel %vm612_vm7, %v669_v51, %v653_v63  ;;  %v665_v20 = vpop.permute.xlu2 %664  ;;  %v4914_v51 = vsub.f32 %v689_v19, %v4897_v37  ;;  %v5742_v43 = vld [vmem:[#allocation29_spill] sm:$0xff] }
 0x260   : > { %2535 = vmatpush.msra.mxu3 %v3988_v18  ;;  %1982 = vmatmul.f32.gmra.mxu2 %v5737_v56  ;;  %v686_v16 = vsel %vm612_vm7, %v667_v14, %v652_v57  ;;  %v4916_v63 = vand.u32 4294901760, %v687_v9  ;;  %v651_v14 = vsel %vm613_vm6, %v5742_v43, %v4780_v48  ;;  %v5743_v57 = vld [vmem:[#allocation37_spill] sm:$0xff]  ;;  %v5747_v48 = vld [vmem:[#allocation34_spill] sm:$0xff]  ;;  %v5750_v56 = vld [vmem:[#allocation31_spill] sm:$0xff] }
 0x261   : > { %2371 = vmatpush.msra.mxu1 %v4627_v55  ;;  %2290 = vmatpush.msra.mxu0 %v3999_v35  ;;  %v5740_v55 = vld [vmem:[#allocation36_spill] sm:$0xff]  ;;  %v4930_v19 = vand.u32 4294901760, %v686_v16  ;;  %v650_v43 = vsel %vm613_vm6, %v5747_v48, %v4843_v34  ;;  %v649_v34 = vsel %vm613_vm6, %v5750_v56, %v4821_v4 }
 0x262   : > { %2475 = vmatpush.msra.mxu2 %v5739_v59  ;;  %2537 = vmatpush.msra.mxu3 %v3999_v35  ;;  %v5753_v4 = vld [vmem:[#allocation12_spill] sm:$0xff] }
 0x263   : > { %2377 = vmatpush.msra.mxu1 %v4635_v6  ;;  %2292 = vmatpush.msra.mxu0 %v4027_v36 }
 0x264   : > { %2478 = vmatpush.msra.mxu2 %v5740_v55  ;;  %2539 = vmatpush.msra.mxu3 %v4027_v36  ;;  %v4920_v6 = vpop.f32.mrf.mxu2  ;;  %v4928_v59 = vpop.f32.mrf.mxu0  ;;  %v4933_v55 = vsub.f32 %v688_v21, %v4905_v2  ;;  %v5751_v21 = vld [vmem:[#allocation7_spill] sm:$0xff] }
 0x265   : > { %2383 = vmatpush.msra.mxu1 %v4641_v58  ;;  %2294 = vmatpush.msra.mxu0 %v4048_v38  ;;  %5741 = vst [vmem:[#allocation69_spill] sm:$0xff] %v4920_v6  ;;  %v4937_v58 = vpop.f32.mrf.mxu1  ;;  %v4939_v6 = vpop.f32.mrf.mxu3 }
 0x266   : > { %2481 = vmatpush.msra.mxu2 %v5743_v57  ;;  %2541 = vmatpush.msra.mxu3 %v4048_v38  ;;  %5744 = vst [vmem:[#allocation19_spill] sm:$0xff] %v4928_v59  ;;  %v685_v57 = vsel %vm612_vm7, %v665_v20, %v651_v14  ;;  %v4951_v59 = vsub.f32 %v687_v9, %v4916_v63  ;;  %v661_v48 = vpop.permute.xlu0 %660 }
 0x267   : > { %1884 = vmatmul.f32.gmra.mxu0 %v4228_v15  ;;  %1929 = vmatmul.f32.gmra.mxu1 %v5712_v22  ;;  %5745 = vst [vmem:[#allocation72_spill] sm:$0xff] %v4937_v58  ;;  %v618_v58 = vpop.permute.xlu1 %617  ;;  %v4962_v20 = vsub.f32 %v686_v16, %v4930_v19  ;;  %v684_v9 = vsel %vm612_vm7, %v663_v61, %v650_v43  ;;  %v4969_v14 = vand.u32 4294901760, %v685_v57  ;;  %v5754_v22 = vld [vmem:[#allocation44_spill] sm:$0xff]  ;;  %v5755_v61 = vld [vmem:[#allocation53_spill] sm:$0xff]  ;;  %v5756_v43 = vand.u32 4294901760, %v4914_v51 }
 0x268   : > { %5746 = vst [vmem:[#allocation16_spill] sm:$0xff] %v4939_v6  ;;  %2063 = vmatmul.f32.gmra.mxu3 %v4414_v29  ;;  %2296 = vmatpush.msra.mxu0 %v4081_v5  ;;  %v5749_v6 = vld [vmem:[#allocation39_spill] sm:$0xff]  ;;  %v648_v56 = vsel %vm613_vm6, %v5753_v4, %v618_v58  ;;  %v683_v16 = vsel %vm612_vm7, %v661_v48, %v649_v34  ;;  %v4984_v23 = vand.u32 4294901760, %v684_v9  ;;  %v5757_v58 = vld [vmem:[#allocation45_spill] sm:$0xff]  ;;  %v5759_v48 = vand.u32 4294901760, %v4933_v55 }
 0x269   : > { %2389 = vmatpush.msra.mxu1 %v5748_v47  ;;  %2484 = vmatpush.msra.mxu2 %v5749_v6  ;;  %v5752_v47 = vld [vmem:[#allocation50_spill] sm:$0xff]  ;;  %v5758_v34 = vld [vmem:[#allocation59_spill] sm:$0xff]  ;;  %v5003_v8 = vsub.f32 %v685_v57, %v4969_v14 }
 0x26a   : > { %2543 = vmatpush.msra.mxu3 %v4081_v5  ;;  %1990 = vmatmul.f32.gmra.mxu2 %v5751_v21  ;;  %v659_v21 = vpop.permute.xlu2 %658  ;;  %v2779_v4 = vsub.f32 %v4933_v55, %v5759_v48  ;;  %v5017_v57 = vsub.f32 %v684_v9, %v4984_v23 }
 0x26b   : > { %2298 = vmatpush.msra.mxu0 %v4090_v13  ;;  %2395 = vmatpush.msra.mxu1 %v5752_v47  ;;  %v2773_v47 = vsub.f32 %v4914_v51, %v5756_v43  ;;  %v5552_v9 = vand.u32 4294901760, %v5003_v8 }
 0x26c   : > { %2487 = vmatpush.msra.mxu2 %v5754_v22  ;;  %2545 = vmatpush.msra.mxu3 %v4090_v13  ;;  %v682_v22 = vsel %vm612_vm7, %v659_v21, %v648_v56  ;;  %v5762_v21 = vld [vmem:[#allocation48_spill] sm:$0xff] }
 0x26d   : > { %2300 = vmatpush.msra.mxu0 %v4117_v41  ;;  %2401 = vmatpush.msra.mxu1 %v5755_v61  ;;  %v4998_v6 = vpop.f32.mrf.mxu3  ;;  %v2774_v48 = vand.u32 4294901760, %v2773_v47  ;;  %v5765_v61 = vand.u32 4294901760, %v4951_v59  ;;  %v5768_v47 = vand.u32 4294901760, %v4962_v20 }
 0x26e   : > { %2490 = vmatpush.msra.mxu2 %v5757_v58  ;;  %2547 = vmatpush.msra.mxu3 %v4117_v41  ;;  %v4996_v43 = vpop.f32.mrf.mxu2  ;;  %5761 = vst [vmem:[#allocation73_spill] sm:$0xff] %v4998_v6  ;;  %v5000_v58 = vand.u32 4294901760, %v683_v16  ;;  %v5007_v56 = vpop.f32.mrf.mxu0 }
 0x26f   : > { %2302 = vmatpush.msra.mxu0 %v5687_v54  ;;  %2407 = vmatpush.msra.mxu1 %v5758_v34  ;;  %5760 = vst [vmem:[#allocation74_spill] sm:$0xff] %v4996_v43  ;;  %v5764_v34 = vld [vmem:[#allocation70_spill] sm:$0xff]  ;;  %v2785_v40 = vsub.f32 %v4951_v59, %v5765_v61  ;;  %v5014_v6 = vpop.f32.mrf.mxu1  ;;  %v5019_v43 = vand.u32 4294901760, %v682_v22 }
 0x270   : > { %2493 = vmatpush.msra.mxu2 %v5762_v21  ;;  %2549 = vmatpush.msra.mxu3 %v5687_v54  ;;  %5763 = vst [vmem:[#allocation32_spill] sm:$0xff] %v5007_v56  ;;  %v5767_v21 = vld [vmem:[#allocation60_spill] sm:$0xff]  ;;  %v2780_v56 = vand.u32 4294901760, %v2779_v4  ;;  %v5028_v61 = vsub.f32 %v683_v16, %v5000_v58  ;;  %v5770_v4 = vld [vmem:[#allocation62_spill] sm:$0xff]  ;;  %v5551_v16 = vand.u32 4294901760, %v5017_v57 }
 0x271   : > { %1933 = vmatmul.f32.gmra.mxu1 %v4228_v15  ;;  %2101 = vmatmul.f32.vlgmr.msrb.gmra.mxu0 %v5764_v34  ;;  %5766 = vst [vmem:[#allocation36_spill] sm:$0xff] %v5014_v6  ;;  %v2791_v34 = vsub.f32 %v4962_v20, %v5768_v47  ;;  %v5769_v6 = vld [vmem:[#allocation56_spill] sm:$0xff] }
 0x272   : > { %2251 = vmatmul.f32.vlgmr.msrb.gmra.mxu3 %v4284_v50  ;;  %2578 = vmatpush.msrb.mxu0 %v4502_v44  ;;  %v2786_v44 = vand.u32 4294901760, %v2785_v40  ;;  %v2797_v40 = vsub.f32 %v5003_v8, %v5552_v9 }
 0x273   : > { %2775 = vmatpush.msrb.mxu3 %v2774_v48  ;;  %2413 = vmatpush.msra.mxu1 %v5767_v21  ;;  %v5035_v48 = vsub.f32 %v682_v22, %v5019_v43  ;;  %v2808_v22 = vand.u32 4294901760, %v5028_v61 }
 0x274   : > { %2496 = vmatpush.msra.mxu2 %v5769_v6  ;;  %2582 = vmatpush.msrb.mxu0 %v4523_v62  ;;  %v2792_v6 = vand.u32 4294901760, %v2791_v34  ;;  %v5771_v62 = vld [vmem:[#allocation63_spill] sm:$0xff]  ;;  %v2803_v34 = vsub.f32 %v5017_v57, %v5551_v16 }
 0x275   : > { %2210 = vmatmul.f32.vlgmr.msrb.gmra.mxu2 %v4284_v50  ;;  %2781 = vmatpush.msrb.mxu3 %v2780_v56  ;;  %v5047_v56 = vpop.f32.mrf.mxu3  ;;  %v2814_v47 = vand.u32 4294901760, %v5035_v48 }
 0x276   : > { %2714 = vmatpush.msrb.mxu2 %v4897_v37  ;;  %2419 = vmatpush.msra.mxu1 %v5770_v4  ;;  %v5773_v4 = vld [vmem:[#allocation75_spill] sm:$0xff]  ;;  %v2804_v16 = vand.u32 4294901760, %v2803_v34 }
 0x277   : > { %2586 = vmatpush.msrb.mxu0 %v4537_v33  ;;  %2787 = vmatpush.msrb.mxu3 %v2786_v44  ;;  %v5772_v33 = vld [vmem:[#allocation66_spill] sm:$0xff]  ;;  %v2815_v9 = vsub.f32 %v5035_v48, %v2814_v47 }
 0x278   : > { %2716 = vmatpush.msrb.mxu2 %v4905_v2  ;;  %2425 = vmatpush.msra.mxu1 %v5771_v62  ;;  %v5050_v21 = vpop.f32.mrf.mxu2  ;;  %v5774_v62 = vld [vmem:[#allocation71_spill] sm:$0xff] }
 0x279   : > { %2590 = vmatpush.msrb.mxu0 %v4554_v42  ;;  %2793 = vmatpush.msrb.mxu3 %v2792_v6  ;;  %v5058_v44 = vpop.f32.mrf.mxu0  ;;  %v5062_v42 = vpop.f32.mrf.mxu1  ;;  %v2798_v6 = vand.u32 4294901760, %v2797_v40 }
 0x27a   : > { %2718 = vmatpush.msrb.mxu2 %v4916_v63  ;;  %2431 = vmatpush.msra.mxu1 %v5772_v33  ;;  %v2809_v33 = vsub.f32 %v5028_v61, %v2808_v22 }
 0x27b   : > { %2106 = vmatmul.f32.gmra.mxu0 %v5773_v4  ;;  %2147 = vmatmul.f32.vlgmr.msrb.gmra.mxu1 %v5774_v62 }
 0x27c   : > { %2255 = vmatmul.f32.gmra.mxu3 %v4328_v31  ;;  %2594 = vmatpush.msrb.mxu0 %v4581_v24  ;;  %v2810_v24 = vand.u32 4294901760, %v2809_v33  ;;  %v5787_v33 = vand.u32 4294901760, %v4933_v55 }
 0x27d   : > { %2657 = vmatpush.msrb.mxu1 %v4455_v46  ;;  %2720 = vmatpush.msrb.mxu2 %v4930_v19  ;;  %v2816_v46 = vand.u32 4294901760, %v2815_v9  ;;  %v5782_v9 = vld [vmem:[#allocation79_spill] sm:$0xff] }
 0x27e   : > { %2799 = vmatpush.msrb.mxu3 %v2798_v6  ;;  %2214 = vmatmul.f32.gmra.mxu2 %v4328_v31  ;;  %v5786_v6 = vand.u32 4294901760, %v4914_v51 }
 0x27f   : > { %2598 = vmatpush.msrb.mxu0 %v4593_v27  ;;  %2659 = vmatpush.msrb.mxu1 %v4466_v1 }
 0x280   : > { %2722 = vmatpush.msrb.mxu2 %v4969_v14  ;;  %2805 = vmatpush.msrb.mxu3 %v2804_v16  ;;  %v5081_v40 = vpop.f32.mrf.mxu3  ;;  %v5783_v16 = vld [vmem:[#allocation41_spill] sm:$0xff] }
 0x281   : > { %2602 = vmatpush.msrb.mxu0 %v4604_v25  ;;  %2661 = vmatpush.msrb.mxu1 %v4478_v60  ;;  %v5775_v60 = vld [vmem:[#allocation40_spill] sm:$0xff] }
 0x282   : > { %2724 = vmatpush.msrb.mxu2 %v4984_v23  ;;  %2811 = vmatpush.msrb.mxu3 %v2810_v24  ;;  %v5085_v27 = vpop.f32.mrf.mxu2  ;;  %v5790_v24 = vld [vmem:[#allocation28_spill] sm:$0xff] }
 0x283   : > { %2606 = vmatpush.msrb.mxu0 %v4613_v12  ;;  %2663 = vmatpush.msrb.mxu1 %v4492_v32  ;;  %v5088_v1 = vpop.f32.mrf.mxu0  ;;  %v5092_v25 = vpop.f32.mrf.mxu1  ;;  %v5781_v12 = vld [vmem:[#allocation61_spill] sm:$0xff] }
 0x284   : > { %2726 = vmatpush.msrb.mxu2 %v5000_v58  ;;  %2817 = vmatpush.msrb.mxu3 %v2816_v46 }
 0x285   : > { %2111 = vmatmul.f32.gmra.mxu0 %v4389_v10  ;;  %2153 = vmatmul.f32.gmra.mxu1 %v4364_v0 }
 0x286   : > { %2259 = vmatmul.f32.gmra.mxu3 %v4372_v26  ;;  %2665 = vmatpush.msrb.mxu1 %v4513_v28 }
 0x287   : > { %2728 = vmatpush.msrb.mxu2 %v5019_v43  ;;  %2610 = vmatpush.msrb.mxu0 %v4069_v53 }
 0x288   : > { %2218 = vmatmul.f32.gmra.mxu2 %v4372_v26  ;;  %2667 = vmatpush.msrb.mxu1 %v4530_v49  ;;  %v5776_v49 = vld [vmem:[#allocation77_spill] sm:$0xff] }
 0x289   : > { %2614 = vmatpush.msrb.mxu0 %v5775_v60  ;;  %3143 = vperm.xlu0 %3399, %v4756_v39   ;;  %v5793_v60 = vld [vmem:[#allocation38_spill] sm:$0xff] }
 0x28a   : > { %2669 = vmatpush.msrb.mxu1 %v4547_v11  ;;  %3401 = vset.pattern.permute.xlu2 %v5683_v3  ;;  %v5105_v32 = vpop.f32.mrf.mxu3  ;;  %v5777_v11 = vld [vmem:[#allocation51_spill] sm:$0xff] }
 0x28b   : > { %2618 = vmatpush.msrb.mxu0 %v4111_v30  ;;  %3159 = vperm.xlu2 %3401, %v4690_v45   ;;  %v5778_v45 = vld [vmem:[#allocation54_spill] sm:$0xff] }
 0x28c   : > { %2671 = vmatpush.msrb.mxu1 %v4558_v52  ;;  %v5111_v53 = vpop.f32.mrf.mxu2  ;;  %v5780_v52 = vmov 1  }
 0x28d   : > { %2622 = vmatpush.msrb.mxu0 %v4151_v7  ;;  %2159 = vmatmul.f32.gmra.mxu1 %v4408_v17  ;;  %v5779_v7 = vld [vmem:[#allocation57_spill] sm:$0xff] }
 0x28e   : > { %2116 = vmatmul.f32.gmra.mxu0 %v5776_v49  ;;  %2263 = vmatmul.f32.gmra.mxu3 %v4414_v29  ;;  %v5115_v28 = vpop.f32.mrf.mxu0 }
 0x28f   : > { %2626 = vmatpush.msrb.mxu0 %v5777_v11  ;;  %2673 = vmatpush.msrb.mxu1 %v3988_v18  ;;  %v5119_v30 = vpop.f32.mrf.mxu1  ;;  %v5795_v11 = vld [vmem:[#allocation43_spill] sm:$0xff] }
 0x290   : > { %2222 = vmatmul.f32.gmra.mxu2 %v4414_v29 }
 0x291   : > { %2630 = vmatpush.msrb.mxu0 %v5778_v45  ;;  %2675 = vmatpush.msrb.mxu1 %v3999_v35  ;;  %v5784_v35 = vld [vmem:[#allocation33_spill] sm:$0xff] }
 0x292   : > { %3406 = vset.pattern.permute.xlu0 %v5683_v3 }
 0x293   : > { %2634 = vmatpush.msrb.mxu0 %v5779_v7  ;;  %2677 = vmatpush.msrb.mxu1 %v4027_v36 }
 0x294   : > { %3403 = vset.pattern.permute.xlu2 %v5780_v52 }
 0x295   : > { %2638 = vmatpush.msrb.mxu0 %v5781_v12  ;;  %2679 = vmatpush.msrb.mxu1 %v4048_v38  ;;  %v5130_v18 = vpop.f32.mrf.mxu3  ;;  %v5785_v38 = vld [vmem:[#allocation30_spill] sm:$0xff] }
 0x296   : > { %2165 = vmatmul.f32.gmra.mxu1 %v5782_v9  ;;  %2308 = vmatmul.f32.vlgmr.msra.gmra.mxu0 %v5783_v16  ;;  %v5799_v12 = vld [vmem:[#allocation58_spill] sm:$0xff] }
 0x297   : > { %v5134_v34 = vpop.f32.mrf.mxu0  ;;  %2553 = vmatmul.f32.vlgmr.msra.gmra.mxu3 %v5784_v35  ;;  %2845 = vmatpush.msra.mxu0 %v4914_v51  ;;  %v5138_v3 = vpop.f32.mrf.mxu2  ;;  %v5789_v51 = vld [vmem:[#allocation55_spill] sm:$0xff]  ;;  %v3060_v35 = vld [vmem:[#allocation2] sm:$0x1] }
 0x298   : > { %3003 = vmatpush.msra.mxu3 %v4897_v37  ;;  %2681 = vmatpush.msrb.mxu1 %v4081_v5  ;;  %v5142_v36 = vpop.f32.mrf.mxu1  ;;  %v5788_v5 = vand.u32 4294901760, %v4951_v59 }
 0x299   : > { %2499 = vmatmul.f32.vlgmr.msra.gmra.mxu2 %v5785_v38  ;;  %2848 = vmatpush.msra.mxu0 %v4933_v55 }
 0x29a   : > { %2948 = vmatpush.msra.mxu2 %v5786_v6  ;;  %3005 = vmatpush.msra.mxu3 %v4905_v2  ;;  %v5802_v6 = vmov 0  }
 0x29b   : > { %2683 = vmatpush.msrb.mxu1 %v4090_v13  ;;  %2851 = vmatpush.msra.mxu0 %v4951_v59 }
 0x29c   : > { %2952 = vmatpush.msra.mxu2 %v5787_v33  ;;  %3007 = vmatpush.msra.mxu3 %v4916_v63 }
 0x29d   : > { %2685 = vmatpush.msrb.mxu1 %v4117_v41  ;;  %2854 = vmatpush.msra.mxu0 %v4962_v20  ;;  %v5791_v41 = vand.u32 4294901760, %v4962_v20  ;;  %v5184_v20 = vpop.permute.xlu0 %704 }
 0x29e   : > { %2956 = vmatpush.msra.mxu2 %v5788_v5  ;;  %3009 = vmatpush.msra.mxu3 %v4930_v19 }
 0x29f   : > { %2687 = vmatpush.msrb.mxu1 %v5687_v54  ;;  %2316 = vmatmul.f32.gmra.mxu0 %v5789_v51  ;;  %v5161_v13 = vpop.f32.mrf.mxu3  ;;  %v1541_v55 = vpop.f32.mrf.mxu0  ;;  %v5792_v54 = vand.u32 4294901760, %v5003_v8  ;;  %v5804_v51 = vld [vmem:[#allocation67_spill] sm:$0xff] }
 0x2a0   : > { %2433 = vmatmul.f32.vlgmr.msra.gmra.mxu1 %v5790_v24  ;;  %2857 = vmatpush.msra.mxu0 %v5003_v8  ;;  %v1542_v8 = vadd.f32 %v1541_v55, %v5184_v20 }
 0x2a1   : > { %2897 = vmatpush.msra.mxu1 %v4897_v37  ;;  %2960 = vmatpush.msra.mxu2 %v5791_v41  ;;  %v5168_v59 = vpop.f32.mrf.mxu1  ;;  %v5170_v46 = vpop.f32.mrf.mxu2  ;;  %v5794_v37 = vand.u32 4294901760, %v5017_v57 }
 0x2a2   : > { %3011 = vmatpush.msra.mxu3 %v4969_v14  ;;  %2860 = vmatpush.msra.mxu0 %v5017_v57  ;;  %v5797_v57 = vld [vmem:[#allocation35_spill] sm:$0xff]  ;;  %v5213_v41 = vpop.permute.xlu2 %714 }
 0x2a3   : > { %2899 = vmatpush.msra.mxu1 %v4905_v2  ;;  %2964 = vmatpush.msra.mxu2 %v5792_v54 }
 0x2a4   : > { %3013 = vmatpush.msra.mxu3 %v4984_v23  ;;  %2504 = vmatmul.f32.gmra.mxu2 %v5793_v60 }
 0x2a5   : > { %2863 = vmatpush.msra.mxu0 %v5028_v61  ;;  %2901 = vmatpush.msra.mxu1 %v4916_v63  ;;  %v5796_v63 = vld [vmem:[#allocation65_spill] sm:$0xff]  ;;  %v5798_v61 = vld [vmem:[#allocation52_spill] sm:$0xff] }
 0x2a6   : > { %2968 = vmatpush.msra.mxu2 %v5794_v37  ;;  %3015 = vmatpush.msra.mxu3 %v5000_v58  ;;  %v5805_v37 = vld [vmem:[#allocation76_spill] sm:$0xff] }
 0x2a7   : > { %2559 = vmatmul.f32.gmra.mxu3 %v5795_v11  ;;  %2866 = vmatpush.msra.mxu0 %v5035_v48  ;;  %v1786_v2 = vpop.f32.mrf.mxu3  ;;  %v5800_v48 = vld [vmem:[#allocation68_spill] sm:$0xff] }
 0x2a8   : > { %2903 = vmatpush.msra.mxu1 %v4930_v19  ;;  %2972 = vmatpush.msra.mxu2 %v2808_v22 }
 0x2a9   : > { %3017 = vmatpush.msra.mxu3 %v5019_v43  ;;  %2324 = vmatmul.f32.gmra.mxu0 %v5796_v63 }
 0x2aa   : > { %2437 = vmatmul.f32.gmra.mxu1 %v5797_v57  ;;  %2976 = vmatpush.msra.mxu2 %v2814_v47  ;;  %v1732_v19 = vpop.f32.mrf.mxu2  ;;  %v5801_v47 = vld [vmem:[#allocation46_spill] sm:$0xff] }
 0x2ab   : > { %v1549_v45 = vpop.f32.mrf.mxu0  ;;  %2905 = vmatpush.msra.mxu1 %v4969_v14  ;;  %v1666_v7 = vpop.f32.mrf.mxu1  ;;  %3098 = vperm.xlu2 %3403, %v4756_v39  }
 0x2ac   : > { %2509 = vmatmul.f32.gmra.mxu2 %v5798_v61  ;;  %v1667_v22 = vadd.f32 %v1666_v7, %v1542_v8  ;;  %v5205_v14 = vpop.permute.xlu1 %709 }
 0x2ad   : > { %2907 = vmatpush.msra.mxu1 %v4984_v23  ;;  %v1550_v38 = vadd.f32 %v1549_v45, %v5205_v14  ;;  %v5803_v23 = vld [vmem:[#allocation64_spill] sm:$0xff] }
 0x2ae   : > { %v1733_v52 = vadd.f32 %v1732_v19, %v1667_v22  ;;  %v5806_v22 = vld [vmem:[#allocation42_spill] sm:$0xff] }
 0x2af   : > { %2909 = vmatpush.msra.mxu1 %v5000_v58  ;;  %2565 = vmatmul.f32.gmra.mxu3 %v5799_v12 }
 0x2b0   : > { %v1787_v16 = vadd.f32 %v1786_v2, %v1733_v52 }
 0x2b1   : > { %2911 = vmatpush.msra.mxu1 %v5019_v43  ;;  %2332 = vmatmul.f32.gmra.mxu0 %v5800_v48 }
 0x2b2   : > { %2441 = vmatmul.f32.gmra.mxu1 %v5801_v47  ;;  %v1792_v39 = vpop.f32.mrf.mxu3 }
 0x2b3   : > { %3405 = vset.pattern.permute.xlu2 %v5802_v6 }
 0x2b4   : > { %2514 = vmatmul.f32.gmra.mxu2 %v5803_v23  ;;  %3125 = vperm.xlu2 %3405, %v3060_v35   ;;  %v5221_v19 = vpop.permute.xlu1 %719  ;;  %v5807_v23 = vld [vmem:[#allocation78_spill] sm:$0xff] }
 0x2b5   : > { %v1737_v33 = vpop.f32.mrf.mxu2 }
 0x2b6   : > { %v1557_v58 = vpop.f32.mrf.mxu0  ;;  %v1670_v5 = vpop.f32.mrf.mxu1 }
 0x2b7   : > { %2571 = vmatmul.f32.gmra.mxu3 %v5804_v51  ;;  %v1671_v43 = vadd.f32 %v1670_v5, %v1550_v38  ;;  %v1558_v54 = vadd.f32 %v1557_v58, %v5213_v41 }
 0x2b9   : > { %2640 = vmatmul.f32.vlgmr.msrb.gmra.mxu0 %v5790_v24  ;;  %v1738_v55 = vadd.f32 %v1737_v33, %v1671_v43 }
 0x2ba   : > { %2445 = vmatmul.f32.gmra.mxu1 %v4228_v15 }
 0x2bb   : > { %v1793_v60 = vadd.f32 %v1792_v39, %v1738_v55 }
 0x2bc   : > { %2734 = vmatmul.f32.vlgmr.msrb.gmra.mxu2 %v5805_v37  ;;  %v5808_v37 = vld [vmem:[#allocation7_spill] sm:$0xff] }
 0x2bd   : > { %v1798_v11 = vpop.f32.mrf.mxu3 }
 0x2be   : > { %v1565_v8 = vpop.f32.mrf.mxu0 }
 0x2bf   : > { %v1674_v2 = vpop.f32.mrf.mxu1  ;;  %2819 = vmatmul.f32.vlgmr.msrb.gmra.mxu3 %v4284_v50  ;;  %v1742_v45 = vpop.f32.mrf.mxu2  ;;  %v1566_v52 = vadd.f32 %v1565_v8, %v5221_v19  ;;  %v5809_v8 = vld [vmem:[#allocation70_spill] sm:$0xff] }
 0x2c0   : > { %v1675_v63 = vadd.f32 %v1674_v2, %v1558_v54 }
 0x2c1   : > { %2644 = vmatmul.f32.gmra.mxu0 %v5797_v57 }
 0x2c2   : > { %v1743_v7 = vadd.f32 %v1742_v45, %v1675_v63  ;;  %2689 = vmatmul.f32.vlgmr.msrb.gmra.mxu1 %v5790_v24  ;;  %v5810_v63 = vld [vmem:[#allocation17_spill] sm:$0xff] }
 0x2c3   : > { %v774_v45 = vadd.f32 %v5810_v63, %v5184_v20  ;;  %v5819_v63 = vld [vmem:[#allocation14_spill] sm:$0xff] }
 0x2c4   : > { %v1799_v61 = vadd.f32 %v1798_v11, %v1743_v7  ;;  %2742 = vmatmul.f32.gmra.mxu2 %v5806_v22 }
 0x2c5   : > { %v1804_v12 = vpop.f32.mrf.mxu3 }
 0x2c6   : > { %v1873_v48 = vpop.f32.mrf.mxu0 }
 0x2c7   : > { %2823 = vmatmul.f32.gmra.mxu3 %v4328_v31  ;;  %v1678_v39 = vpop.f32.mrf.mxu1  ;;  %v1874_v35 = vadd.f32 %v1873_v48, %v1787_v16  ;;  %v1747_v38 = vpop.f32.mrf.mxu2 }
 0x2c8   : > { %v1679_v6 = vadd.f32 %v1678_v39, %v1566_v52  ;;  %v5812_v39 = vld [vmem:[#allocation18_spill] sm:$0xff] }
 0x2c9   : > { %2648 = vmatmul.f32.gmra.mxu0 %v5801_v47 }
 0x2ca   : > { %2693 = vmatmul.f32.gmra.mxu1 %v5797_v57  ;;  %v1748_v24 = vadd.f32 %v1747_v38, %v1679_v6  ;;  %v5813_v6 = vld [vmem:[#allocation26_spill] sm:$0xff] }
 0x2cc   : > { %2750 = vmatmul.f32.gmra.mxu2 %v5807_v23  ;;  %v1805_v58 = vadd.f32 %v1804_v12, %v1748_v24 }
 0x2cd   : > { %v2052_v33 = vpop.f32.mrf.mxu3 }
 0x2cf   : > { %2827 = vmatmul.f32.gmra.mxu3 %v4372_v26  ;;  %v1877_v5 = vpop.f32.mrf.mxu0  ;;  %v1967_v51 = vpop.f32.mrf.mxu2 }
 0x2d0   : > { %v1878_v43 = vadd.f32 %v1877_v5, %v1793_v60  ;;  %v1922_v55 = vpop.f32.mrf.mxu1  ;;  %v5815_v5 = vld [vmem:[#allocation24_spill] sm:$0xff] }
 0x2d1   : > { %2652 = vmatmul.f32.gmra.mxu0 %v4228_v15  ;;  %v1923_v16 = vadd.f32 %v1922_v55, %v1874_v35  ;;  %v899_v35 = vadd.f32 %v5812_v39, %v774_v45 }
 0x2d2   : > { %2697 = vmatmul.f32.gmra.mxu1 %v5801_v47  ;;  %v5811_v47 = vld [vmem:[#allocation10_spill] sm:$0xff] }
 0x2d3   : > { %v1968_v54 = vadd.f32 %v1967_v51, %v1923_v16  ;;  %v782_v12 = vadd.f32 %v5811_v47, %v5205_v14 }
 0x2d4   : > { %2758 = vmatmul.f32.gmra.mxu2 %v5808_v37 }
 0x2d5   : > { %v2053_v57 = vadd.f32 %v2052_v33, %v1968_v54  ;;  %v903_v24 = vadd.f32 %v5813_v6, %v782_v12  ;;  %v5821_v12 = vld [vmem:[#allocation4_spill] sm:$0xff] }
 0x2d7   : > { %2831 = vmatmul.f32.gmra.mxu3 %v4414_v29  ;;  %v2056_v11 = vpop.f32.mrf.mxu3  ;;  %v970_v51 = vadd.f32 %v5815_v5, %v903_v24 }
 0x2d9   : > { %2869 = vmatmul.f32.vlgmr.msra.gmra.mxu0 %v5809_v8  ;;  %v1975_v2 = vpop.f32.mrf.mxu2 }
 0x2da   : > { %2701 = vmatmul.f32.gmra.mxu1 %v4228_v15  ;;  %v1881_v60 = vpop.f32.mrf.mxu0  ;;  %v1926_v7 = vpop.f32.mrf.mxu1  ;;  %v5814_v15 = vld [vmem:[#allocation6_spill] sm:$0xff] }
 0x2db   : > { %v1882_v22 = vadd.f32 %v1881_v60, %v1799_v61  ;;  %v1927_v52 = vadd.f32 %v1926_v7, %v1878_v43  ;;  %v965_v23 = vadd.f32 %v5814_v15, %v899_v35  ;;  %v5816_v43 = vld [vmem:[#allocation25_spill] sm:$0xff]  ;;  %v5820_v60 = vld [vmem:[#allocation15_spill] sm:$0xff]  ;;  %v5824_v35 = vld [vmem:[#allocation72_spill] sm:$0xff] }
 0x2dc   : > { %2978 = vmatmul.f32.vlgmr.msra.gmra.mxu2 %v4284_v50  ;;  %v790_v55 = vadd.f32 %v5816_v43, %v5213_v41  ;;  %v5825_v15 = vld [vmem:[#allocation8_spill] sm:$0xff] }
 0x2dd   : > { %v1976_v48 = vadd.f32 %v1975_v2, %v1927_v52  ;;  %v5818_v2 = vld [vmem:[#allocation27_spill] sm:$0xff]  ;;  %v5258_v52 = vpop.permute.xlu2 %3063 }
 0x2de   : > { %v907_v45 = vadd.f32 %v5819_v63, %v790_v55 }
 0x2df   : > { %3019 = vmatmul.f32.vlgmr.msra.gmra.mxu3 %v4284_v50  ;;  %v5243_v38 = vadd.f32 %v2056_v11, %v1976_v48  ;;  %v5817_v11 = vld [vmem:[#allocation20_spill] sm:$0xff] }
 0x2e0   : > { %v1019_v8 = vadd.f32 %v5817_v11, %v965_v23  ;;  %v798_v23 = vadd.f32 %v5825_v15, %v5221_v19  ;;  %v5829_v11 = vld [vmem:[#allocation22_spill] sm:$0xff] }
 0x2e1   : > { %2874 = vmatmul.f32.gmra.mxu0 %v5773_v4  ;;  %v2060_v61 = vpop.f32.mrf.mxu3 }
 0x2e2   : > { %2915 = vmatmul.f32.vlgmr.msra.gmra.mxu1 %v5774_v62  ;;  %v1025_v62 = vadd.f32 %v5818_v2, %v970_v51  ;;  %v1106_v7 = vadd.f32 %v5820_v60, %v1019_v8  ;;  %v911_v8 = vadd.f32 %v5829_v11, %v798_v23 }
 0x2e3   : > { %v1983_v33 = vpop.f32.mrf.mxu2 }
 0x2e4   : > { %2982 = vmatmul.f32.gmra.mxu2 %v4328_v31  ;;  %v1885_v50 = vpop.f32.mrf.mxu0  ;;  %v1930_v16 = vpop.f32.mrf.mxu1 }
 0x2e5   : > { %v1886_v54 = vadd.f32 %v1885_v50, %v1805_v58  ;;  %v1931_v37 = vadd.f32 %v1930_v16, %v1882_v22  ;;  %v1110_v58 = vadd.f32 %v5821_v12, %v1025_v62  ;;  %v5822_v22 = vld [vmem:[#allocation9_spill] sm:$0xff]  ;;  %v5830_v62 = vld [vmem:[#allocation11_spill] sm:$0xff]  ;;  %v5833_v12 = vld [vmem:[#allocation36_spill] sm:$0xff] }
 0x2e6   : > { %v1155_v48 = vadd.f32 %v5822_v22, %v1106_v7  ;;  %v5828_v16 = vld [vmem:[#allocation69_spill] sm:$0xff]  ;;  %v3091_v7 = vpop.permute.xlu2 %3090 }
 0x2e7   : > { %3023 = vmatmul.f32.gmra.mxu3 %v4328_v31  ;;  %v1984_v4 = vadd.f32 %v1983_v33, %v1931_v37  ;;  %v5823_v31 = vld [vmem:[#allocation5_spill] sm:$0xff]  ;;  %v1159_v6 = vadd.f32 %v5824_v35, %v1110_v58 }
 0x2e8   : > { %v975_v39 = vadd.f32 %v5823_v31, %v907_v45  ;;  %v5831_v45 = vld [vmem:[#allocation19_spill] sm:$0xff] }
 0x2e9   : > { %2879 = vmatmul.f32.gmra.mxu0 %v4389_v10  ;;  %v5261_v47 = vadd.f32 %v2060_v61, %v1984_v4  ;;  %v5826_v10 = vld [vmem:[#allocation23_spill] sm:$0xff]  ;;  %v1208_v37 = vadd.f32 %v5828_v16, %v1159_v6  ;;  %v3087_v4 = vpop.permute.xlu1 %3086 }
 0x2ea   : > { %2921 = vmatmul.f32.gmra.mxu1 %v4364_v0  ;;  %v1200_v61 = vadd.f32 %v5826_v10, %v1155_v48  ;;  %v5827_v0 = vld [vmem:[#allocation13_spill] sm:$0xff] }
 0x2eb   : > { %v2064_v24 = vpop.f32.mrf.mxu3  ;;  %v1031_v50 = vadd.f32 %v5827_v0, %v975_v39  ;;  %v5834_v48 = vld [vmem:[#allocation49_spill] sm:$0xff] }
 0x2ec   : > { %2986 = vmatmul.f32.gmra.mxu2 %v4372_v26  ;;  %v1285_v63 = vadd.f32 %v5830_v62, %v1200_v61  ;;  %v5838_v0 = vld [vmem:[#allocation73_spill] sm:$0xff] }
 0x2ed   : > { %v1991_v33 = vpop.f32.mrf.mxu2  ;;  %v1114_v60 = vadd.f32 %v5831_v45, %v1031_v50 }
 0x2ee   : > { %v1934_v5 = vpop.f32.mrf.mxu1  ;;  %v2102_v51 = vpop.f32.mrf.mxu0  ;;  %v1335_v22 = vadd.f32 %v5058_v44, %v1285_v63 }
 0x2ef   : > { %3027 = vmatmul.f32.gmra.mxu3 %v4372_v26  ;;  %v1935_v43 = vadd.f32 %v1934_v5, %v1886_v54  ;;  %v2103_v55 = vadd.f32 %v2102_v51, %v2053_v57  ;;  %v5832_v57 = vld [vmem:[#allocation16_spill] sm:$0xff]  ;;  %v1163_v58 = vadd.f32 %v5833_v12, %v1114_v60  ;;  %v5839_v12 = vld [vmem:[#allocation3_spill] sm:$0xff] }
 0x2f0   : > { %v1289_v54 = vadd.f32 %v5832_v57, %v1208_v37  ;;  %v1381_v39 = vadd.f32 %v5092_v25, %v1335_v22  ;;  %v5302_v37 = vpop.permute.xlu2 %3151  ;;  %vm3049_vm9 = vcmp.eq.s32.totalorder %v5839_v12, 39 }
 0x2f1   : > { %2884 = vmatmul.f32.gmra.mxu0 %v5776_v49  ;;  %v1992_v2 = vadd.f32 %v1991_v33, %v1935_v43  ;;  %v980_v49 = vadd.f32 %v5834_v48, %v911_v8  ;;  %v5836_v33 = vld [vmem:[#allocation21_spill] sm:$0xff]  ;;  %v5297_v43 = vpop.permute.xlu1 %3135 }
 0x2f2   : > { %2927 = vmatmul.f32.gmra.mxu1 %v4408_v17  ;;  %v1340_v31 = vadd.f32 %v5088_v1, %v1289_v54  ;;  %v5835_v17 = vld [vmem:[#allocation74_spill] sm:$0xff]  ;;  %v1444_v51 = vadd.f32 %v5085_v27, %v1381_v39  ;;  %v5837_v1 = vld [vmem:[#allocation32_spill] sm:$0xff] }
 0x2f3   : > { %v5280_v26 = vadd.f32 %v2064_v24, %v1992_v2  ;;  %v1216_v6 = vadd.f32 %v5835_v17, %v1163_v58  ;;  %v1037_v10 = vadd.f32 %v5836_v33, %v980_v49 }
 0x2f4   : > { %2990 = vmatmul.f32.gmra.mxu2 %v4414_v29  ;;  %v1387_v24 = vadd.f32 %v5119_v30, %v1340_v31 }
 0x2f5   : > { %v2252_v35 = vpop.f32.mrf.mxu3  ;;  %v1118_v25 = vadd.f32 %v5837_v1, %v1037_v10  ;;  %v1293_v50 = vadd.f32 %v5838_v0, %v1216_v6 }
 0x2f6   : > { %v1448_v30 = vadd.f32 %v5111_v53, %v1387_v24 }
 0x2f7   : > { %3031 = vmatmul.f32.gmra.mxu3 %v4414_v29  ;;  %v1167_v16 = vadd.f32 %v5062_v42, %v1118_v25  ;;  %v1345_v27 = vadd.f32 %v5115_v28, %v1293_v50 }
 0x2f8   : > { %v2107_v15 = vpop.f32.mrf.mxu0  ;;  %v2148_v23 = vpop.f32.mrf.mxu1 }
 0x2f9   : > { %v2108_v44 = vadd.f32 %v2107_v15, %v5243_v38  ;;  %v2149_v61 = vadd.f32 %v2148_v23, %v2103_v55  ;;  %v2211_v5 = vpop.f32.mrf.mxu2  ;;  %v1485_v55 = vadd.f32 %v5081_v40, %v1444_v51  ;;  %v1393_v11 = vadd.f32 %v5142_v36, %v1345_v27  ;;  %v3074_v22 = vpop.permute.xlu2 %3073 }
 0x2fa   : > { %2933 = vmatmul.f32.gmra.mxu1 %v5782_v9  ;;  %v1489_v9 = vadd.f32 %v5105_v32, %v1448_v30  ;;  %v1224_v2 = vadd.f32 %v5050_v21, %v1167_v16  ;;  %v5315_v32 = vpop.permute.xlu1 %3155 }
 0x2fb   : > { %v2212_v29 = vadd.f32 %v2211_v5, %v2149_v61  ;;  %v1499_v63 = vmax.f32 %v1485_v55, 0.0  ;;  %v1452_v40 = vadd.f32 %v5138_v3, %v1393_v11 }
 0x2fc   : > { %v1500_v54 = vmax.f32 %v1489_v9, 0.0  ;;  %v1297_v28 = vadd.f32 %v5047_v56, %v1224_v2 }
 0x2fd   : > { %v5304_v38 = vadd.f32 %v2252_v35, %v2212_v29  ;;  %v3045_v21 = vsel %vm468_vm2, 0.0, %v1499_v63  ;;  %v1493_v56 = vadd.f32 %v5130_v18, %v1452_v40 }
 0x2fe   : > { %v1350_v58 = vadd.f32 %v5134_v34, %v1297_v28  ;;  %v3046_v3 = vsel %vm468_vm2, 0.0, %v1500_v54  ;;  %v3081_v31 = vmul.f32 %v5258_v52, %v3045_v21 }
 0x2ff   : > { %v2256_v8 = vpop.f32.mrf.mxu3  ;;  %v2267_v42 = vmax.f32 %v5304_v38, 0.0  ;;  %v1501_v10 = vmax.f32 %v1493_v56, 0.0 }
 0x300   : > { %v1399_v39 = vadd.f32 %v5168_v59, %v1350_v58 }
 0x301   : > { %v2215_v62 = vpop.f32.mrf.mxu2  ;;  %v3101_v48 = vmul.f32 %v3087_v4, %v2267_v42  ;;  %v3047_v25 = vsel %vm468_vm2, 0.0, %v1501_v10 }
 0x302   : > { %v2112_v53 = vpop.f32.mrf.mxu0  ;;  %v2154_v45 = vpop.f32.mrf.mxu1  ;;  %v1456_v52 = vadd.f32 %v5170_v46, %v1399_v39  ;;  %v3083_v50 = vmul.f32 %v3074_v22, %v3047_v25 }
 0x303   : > { %v2113_v60 = vadd.f32 %v2112_v53, %v5261_v47  ;;  %v2155_v57 = vadd.f32 %v2154_v45, %v2108_v44  ;;  %v3069_v47 = vpop.permute.xlu0 %3068  ;;  %v3105_v24 = vadd.f32 %v3101_v48, %v3081_v31  ;;  %v5334_v61 = vpop.permute.xlu1 %3139 }
 0x304   : > { %v3082_v6 = vmul.f32 %v3069_v47, %v3046_v3 }
 0x305   : > { %v2216_v36 = vadd.f32 %v2215_v62, %v2155_v57  ;;  %v3110_v5 = vsel %vm3109_vm8, %v3105_v24, 0.0 }
 0x307   : > { %v5322_v49 = vadd.f32 %v2256_v8, %v2216_v36 }
 0x309   : > { %v2268_v35 = vmax.f32 %v5322_v49, 0.0  ;;  %v2260_v34 = vpop.f32.mrf.mxu3 }
 0x30a   : > { %v2160_v17 = vpop.f32.mrf.mxu1 }
 0x30b   : > { %v3102_v4 = vmul.f32 %v3091_v7, %v2268_v35  ;;  %v2117_v15 = vpop.f32.mrf.mxu0  ;;  %v2161_v23 = vadd.f32 %v2160_v17, %v2113_v60  ;;  %v2219_v33 = vpop.f32.mrf.mxu2 }
 0x30c   : > { %v2118_v18 = vadd.f32 %v2117_v15, %v5280_v26  ;;  %v5340_v7 = vpop.permute.xlu2 %3159  ;;  %v1497_v26 = vadd.f32 %v5161_v13, %v1456_v52  ;;  %v3095_v0 = vpop.permute.xlu0 %3094 }
 0x30d   : > { %v3106_v44 = vadd.f32 %v3102_v4, %v3082_v6  ;;  %v2220_v59 = vadd.f32 %v2219_v33, %v2161_v23  ;;  %v3079_v45 = vpop.permute.xlu1 %3078 }
 0x30e   : > { %v1502_v11 = vmax.f32 %v1497_v26, 0.0 }
 0x30f   : > { %v3111_v51 = vsel %vm3109_vm8, %v3106_v44, 0.0  ;;  %v5338_v1 = vadd.f32 %v2260_v34, %v2220_v59 }
 0x310   : > { %v3112_v29 = vadd.f32 %v3111_v51, %v3110_v5  ;;  %v3048_v60 = vsel %vm468_vm2, 0.0, %v1502_v11  ;;  %vm3228_vm2 = vcmask 320512  }
 0x311   : > { %v2269_v46 = vmax.f32 %v5338_v1, 0.0  ;;  %v2264_v2 = vpop.f32.mrf.mxu3  ;;  %v3084_v28 = vmul.f32 %v3079_v45, %v3048_v60 }
 0x313   : > { %v3103_v30 = vmul.f32 %v3095_v0, %v2269_v46  ;;  %v2166_v16 = vpop.f32.mrf.mxu1  ;;  %v2309_v55 = vpop.f32.mrf.mxu0 }
 0x314   : > { %v2167_v27 = vadd.f32 %v2166_v16, %v2118_v18  ;;  %v2223_v9 = vpop.f32.mrf.mxu2  ;;  %v3099_v57 = vpop.permute.xlu2 %3098  ;;  %v2310_v54 = vadd.f32 %v2309_v55, %v5184_v20 }
 0x315   : > { %v3107_v8 = vadd.f32 %v3103_v30, %v3083_v50 }
 0x316   : > { %v2224_v62 = vadd.f32 %v2223_v9, %v2167_v27 }
 0x317   : > { %v3113_v63 = vsel %vm3109_vm8, %v3107_v8, 0.0 }
 0x318   : > { %v5349_v53 = vadd.f32 %v2264_v2, %v2224_v62  ;;  %v3114_v13 = vadd.f32 %v3113_v63, %v3112_v29 }
 0x31a   : > { %v2270_v40 = vmax.f32 %v5349_v53, 0.0  ;;  %v2554_v3 = vpop.f32.mrf.mxu3 }
 0x31c   : > { %v3104_v36 = vmul.f32 %v3099_v57, %v2270_v40  ;;  %v2317_v21 = vpop.f32.mrf.mxu0  ;;  %v2500_v22 = vpop.f32.mrf.mxu2 }
 0x31d   : > { %v2434_v58 = vpop.f32.mrf.mxu1  ;;  %v2318_v30 = vadd.f32 %v2317_v21, %v5205_v14 }
 0x31e   : > { %v3108_v48 = vadd.f32 %v3104_v36, %v3084_v28  ;;  %v2435_v47 = vadd.f32 %v2434_v58, %v2310_v54 }
 0x320   : > { %v3115_v56 = vsel %vm3109_vm8, %v3108_v48, 0.0  ;;  %v2501_v31 = vadd.f32 %v2500_v22, %v2435_v47 }
 0x321   : > { %v5358_v39 = vadd.f32 %v3115_v56, %v3114_v13 }
 0x322   : > { %v2555_v17 = vadd.f32 %v2554_v3, %v2501_v31 }
 0x326   : > { %v2325_v34 = vpop.f32.mrf.mxu0 }
 0x327   : > { %v2438_v20 = vpop.f32.mrf.mxu1  ;;  %v2505_v6 = vpop.f32.mrf.mxu2  ;;  %v2326_v2 = vadd.f32 %v2325_v34, %v5213_v41 }
 0x328   : > { %v2439_v9 = vadd.f32 %v2438_v20, %v2318_v30 }
 0x32a   : > { %v2560_v24 = vpop.f32.mrf.mxu3  ;;  %v2506_v62 = vadd.f32 %v2505_v6, %v2439_v9 }
 0x32c   : > { %v2561_v57 = vadd.f32 %v2560_v24, %v2506_v62 }
 0x32e   : > { %v2333_v4 = vpop.f32.mrf.mxu0 }
 0x32f   : > { %v2442_v15 = vpop.f32.mrf.mxu1  ;;  %v2510_v23 = vpop.f32.mrf.mxu2  ;;  %v2334_v14 = vadd.f32 %v2333_v4, %v5221_v19 }
 0x330   : > { %v2443_v54 = vadd.f32 %v2442_v15, %v2326_v2  ;;  %v3132_v19 = vpop.permute.xlu0 %3131 }
 0x332   : > { %v2566_v33 = vpop.f32.mrf.mxu3  ;;  %v2511_v21 = vadd.f32 %v2510_v23, %v2443_v54 }
 0x334   : > { %v2567_v41 = vadd.f32 %v2566_v33, %v2511_v21 }
 0x336   : > { %v2641_v10 = vpop.f32.mrf.mxu0 }
 0x337   : > { %v2446_v18 = vpop.f32.mrf.mxu1  ;;  %v2515_v52 = vpop.f32.mrf.mxu2  ;;  %v2642_v11 = vadd.f32 %v2641_v10, %v2555_v17 }
 0x338   : > { %v2447_v17 = vadd.f32 %v2446_v18, %v2334_v14 }
 0x33a   : > { %v2572_v44 = vpop.f32.mrf.mxu3  ;;  %v2516_v15 = vadd.f32 %v2515_v52, %v2447_v17  ;;  %v3146_v52 = vmul.f32 %v3132_v19, %v2267_v42  ;;  %v3147_v42 = vmul.f32 %v5297_v43, %v2268_v35  ;;  %v3148_v35 = vmul.f32 %v5334_v61, %v2269_v46 }
 0x33c   : > { %v2573_v33 = vadd.f32 %v2572_v44, %v2516_v15 }
 0x33e   : > { %v2645_v59 = vpop.f32.mrf.mxu0 }
 0x33f   : > { %v2690_v5 = vpop.f32.mrf.mxu1  ;;  %v2735_v51 = vpop.f32.mrf.mxu2  ;;  %v2646_v36 = vadd.f32 %v2645_v59, %v2561_v57 }
 0x340   : > { %v2691_v63 = vadd.f32 %v2690_v5, %v2642_v11 }
 0x342   : > { %v2820_v25 = vpop.f32.mrf.mxu3  ;;  %v2736_v28 = vadd.f32 %v2735_v51, %v2691_v63 }
 0x344   : > { %v2821_v22 = vadd.f32 %v2820_v25, %v2736_v28  ;;  %v3117_v25 = vrot.slane %v5358_v39, 4 }
 0x346   : > { %v2649_v29 = vpop.f32.mrf.mxu0  ;;  %v3118_v63 = vadd.f32 %v3117_v25, %v5358_v39  ;;  %v3164_v25 = vpop.permute.xlu1 %3163 }
 0x347   : > { %v2694_v26 = vpop.f32.mrf.mxu1  ;;  %v2743_v0 = vpop.f32.mrf.mxu2  ;;  %v2650_v6 = vadd.f32 %v2649_v29, %v2567_v41 }
 0x348   : > { %v2695_v48 = vadd.f32 %v2694_v26, %v2646_v36  ;;  %v3119_v14 = vrot.slane %v3118_v63, 2 }
 0x34a   : > { %v2824_v50 = vpop.f32.mrf.mxu3  ;;  %v2744_v34 = vadd.f32 %v2743_v0, %v2695_v48  ;;  %v3120_v48 = vadd.f32 %v3119_v14, %v3118_v63 }
 0x34c   : > { %v2825_v5 = vadd.f32 %v2824_v50, %v2744_v34 }
 0x34e   : > { %v2653_v16 = vpop.f32.mrf.mxu0 }
 0x34f   : > { %v2698_v55 = vpop.f32.mrf.mxu1  ;;  %v2751_v27 = vpop.f32.mrf.mxu2  ;;  %v2654_v9 = vadd.f32 %v2653_v16, %v2573_v33 }
 0x350   : > { %v2699_v59 = vadd.f32 %v2698_v55, %v2650_v6 }
 0x352   : > { %v2828_v8 = vpop.f32.mrf.mxu3  ;;  %v2752_v18 = vadd.f32 %v2751_v27, %v2699_v59 }
 0x356   : > { %v2870_v13 = vpop.f32.mrf.mxu0 }
 0x357   : > { %v2702_v45 = vpop.f32.mrf.mxu1  ;;  %v2759_v60 = vpop.f32.mrf.mxu2  ;;  %v2871_v47 = vadd.f32 %v2870_v13, %v2821_v22  ;;  %v2829_v13 = vadd.f32 %v2828_v8, %v2752_v18 }
 0x358   : > { %v2703_v57 = vadd.f32 %v2702_v45, %v2654_v9 }
 0x35a   : > { %v2832_v58 = vpop.f32.mrf.mxu3  ;;  %v2760_v21 = vadd.f32 %v2759_v60, %v2703_v57 }
 0x35e   : > { %v2875_v3 = vpop.f32.mrf.mxu0 }
 0x35f   : > { %v2916_v56 = vpop.f32.mrf.mxu1  ;;  %v2979_v31 = vpop.f32.mrf.mxu2  ;;  %v2876_v4 = vadd.f32 %v2875_v3, %v2825_v5 }
 0x360   : > { %v2917_v20 = vadd.f32 %v2916_v56, %v2871_v47  ;;  %v2833_v47 = vadd.f32 %v2832_v58, %v2760_v21  ;;  %v3126_v58 = vpop.permute.xlu2 %3125 }
 0x361   : > { %v3128_v59 = vperm.slane %v3126_v58, 0 }
 0x362   : > { %v2980_v10 = vadd.f32 %v2979_v31, %v2917_v20  ;;  %v3020_v24 = vpop.f32.mrf.mxu3  ;;  %v3121_v20 = vrot.slane %v3120_v48, 1 }
 0x364   : > { %v3021_v51 = vadd.f32 %v3020_v24, %v2980_v10  ;;  %v3122_v5 = vadd.f32 %v3121_v20, %v3120_v48 }
 0x366   : > { %v3035_v23 = vmax.f32 %v3021_v51, 0.0  ;;  %v2880_v55 = vpop.f32.mrf.mxu0 }
 0x367   : > { %v2922_v26 = vpop.f32.mrf.mxu1  ;;  %v2983_v30 = vpop.f32.mrf.mxu2  ;;  %v2881_v27 = vadd.f32 %v2880_v55, %v2829_v13 }
 0x368   : > { %v3052_v29 = vsel %vm3049_vm9, 0.0, %v3035_v23  ;;  %v2923_v0 = vadd.f32 %v2922_v26, %v2876_v4  ;;  %v3144_v4 = vpop.permute.xlu0 %3143 }
 0x369   : > { %v3166_v50 = vmul.f32 %v5302_v37, %v3052_v29  ;;  %v3149_v61 = vmul.f32 %v3144_v4, %v2270_v40 }
 0x36a   : > { %v2984_v11 = vadd.f32 %v2983_v30, %v2923_v0  ;;  %v3024_v2 = vpop.f32.mrf.mxu3  ;;  %v3129_v30 = vadd.f32 %v3128_v59, %v3122_v5 }
 0x36b   : > { %v3170_v62 = vadd.f32 %v3166_v50, %v3146_v52 }
 0x36c   : > { %v3025_v44 = vadd.f32 %v3024_v2, %v2984_v11  ;;  %v3338_v33 = vmul.f32 -1.442695, %v3129_v30 }
 0x36d   : > { %v3174_v56 = vsel %vm3109_vm8, %v3170_v62, 0.0 }
 0x36e   : > { %v3036_v54 = vmax.f32 %v3025_v44, 0.0  ;;  %v2885_v22 = vpop.f32.mrf.mxu0  ;;  %3407 = vpow2.f32 %v3338_v33 }
 0x36f   : > { %v2928_v28 = vpop.f32.mrf.mxu1  ;;  %v2987_v36 = vpop.f32.mrf.mxu2  ;;  %v2886_v41 = vadd.f32 %v2885_v22, %v2833_v47 }
 0x370   : > { %v3053_v38 = vsel %vm3049_vm9, 0.0, %v3036_v54  ;;  %v2929_v37 = vadd.f32 %v2928_v28, %v2881_v27 }
 0x371   : > { %v3167_v16 = vmul.f32 %v5315_v32, %v3053_v38 }
 0x372   : > { %v2988_v39 = vadd.f32 %v2987_v36, %v2929_v37  ;;  %v3028_v8 = vpop.f32.mrf.mxu3 }
 0x373   : > { %v3171_v45 = vadd.f32 %v3167_v16, %v3147_v42 }
 0x374   : > { %v3029_v3 = vadd.f32 %v3028_v8, %v2988_v39  ;;  %v3408_v55 = vpop.eup %3407 }
 0x375   : > { %v3175_v60 = vsel %vm3109_vm8, %v3171_v45, 0.0  ;;  %v3191_v2 = vadd.f32 1.0, %v3408_v55 }
 0x376   : > { %v3176_v31 = vadd.f32 %v3175_v60, %v3174_v56  ;;  %v3037_v17 = vmax.f32 %v3029_v3, 0.0 }
 0x377   : > { %v2934_v34 = vpop.f32.mrf.mxu1  ;;  %v2991_v49 = vpop.f32.mrf.mxu2  ;;  %3409 = vrcp.f32 %v3191_v2  ;;  %vm3197_vm11 = vweird.f32 %v3191_v2  ;;  %v3203_v21 = vand.u32 2147483648, %v3191_v2  ;;  %v3201_v37 = vand.u32 2147483647, %v3191_v2 }
 0x378   : > { %v3054_v43 = vsel %vm3049_vm9, 0.0, %v3037_v17  ;;  %v2935_v32 = vadd.f32 %v2934_v34, %v2886_v41 }
 0x379   : > { %v3168_v6 = vmul.f32 %v5340_v7, %v3054_v43  ;;  %v3204_v45 = vor.u32 1.1754944e-38, %v3203_v21  ;;  %vm3202_vm1 = vcmp.eq.f32.partialorder %v3201_v37, 8.507059e+37 }
 0x37a   : > { %v2992_v10 = vadd.f32 %v2991_v49, %v2935_v32  ;;  %v3032_v24 = vpop.f32.mrf.mxu3 }
 0x37b   : > { %v3172_v15 = vadd.f32 %v3168_v6, %v3148_v35 }
 0x37c   : > { %v3033_v51 = vadd.f32 %v3032_v24, %v2992_v10 }
 0x37d   : > { %v3177_v19 = vsel %vm3109_vm8, %v3172_v15, 0.0  ;;  %v3410_v53 = vpop.eup %3409 }
 0x37e   : > { %v3038_v23 = vmax.f32 %v3033_v51, 0.0  ;;  %v3178_v26 = vadd.f32 %v3177_v19, %v3176_v31  ;;  %v3193_v13 = vmul.f32 %v3410_v53, %v3191_v2  ;;  %vm3198_vm10 = vweird.f32 %v3410_v53 }
 0x37f   : > { %vm3199_vm13 = vmor %vm3197_vm11, %vm3198_vm10 }
 0x380   : > { %v3055_v1 = vsel %vm3049_vm9, 0.0, %v3038_v23  ;;  %v3194_v44 = vsub.f32 1.0, %v3193_v13 }
 0x381   : > { %v3169_v7 = vmul.f32 %v3164_v25, %v3055_v1 }
 0x382   : > { %v3195_v27 = vmul.f32 %v3410_v53, %v3194_v44 }
 0x383   : > { %v3173_v46 = vadd.f32 %v3169_v7, %v3149_v61 }
 0x384   : > { %v3196_v36 = vadd.f32 %v3410_v53, %v3195_v27 }
 0x385   : > { %v3179_v18 = vsel %vm3109_vm8, %v3173_v46, 0.0 }
 0x386   : > { %v3180_v29 = vadd.f32 %v3179_v18, %v3178_v26  ;;  %v3200_v39 = vsel %vm3199_vm13, %v3410_v53, %v3196_v36 }
 0x387   : > { %v3205_v47 = vsel %vm3202_vm1, %v3204_v45, %v3200_v39 }
 0x388   : > { %v3181_v0 = vrot.slane %v3180_v29, 4 }
 0x38a   : > { %v3182_v52 = vadd.f32 %v3181_v0, %v3180_v29 }
 0x38c   : > { %v3183_v50 = vrot.slane %v3182_v52, 2 }
 0x38e   : > { %v3184_v9 = vadd.f32 %v3183_v50, %v3182_v52 }
 0x390   : > { %v3185_v11 = vrot.slane %v3184_v9, 1 }
 0x392   : > { %v3186_v62 = vadd.f32 %v3185_v11, %v3184_v9 }
 0x394   : > { %v3187_v12 = vadd.f32 %v3186_v62, %v3128_v59 }
 0x396   : > { %v3339_v63 = vmul.f32 -1.442695, %v3187_v12 }
 0x398   : > { %3411 = vpow2.f32 %v3339_v63 }
 0x39e   : > { %v3412_v40 = vpop.eup %3411 }
 0x39f   : > { %v3210_v57 = vadd.f32 1.0, %v3412_v40 }
 0x3a1   : > { %3413 = vrcp.f32 %v3210_v57  ;;  %v3222_v38 = vand.u32 2147483648, %v3210_v57  ;;  %v3220_v16 = vand.u32 2147483647, %v3210_v57  ;;  %vm3216_vm14 = vweird.f32 %v3210_v57 }
 0x3a3   : > { %v3223_v22 = vor.u32 1.1754944e-38, %v3222_v38  ;;  %vm3221_vm3 = vcmp.eq.f32.partialorder %v3220_v16, 8.507059e+37 }
 0x3a7   : > { %v3414_v54 = vpop.eup %3413 }
 0x3a8   : > { %v3212_v28 = vmul.f32 %v3414_v54, %v3210_v57  ;;  %vm3217_vm12 = vweird.f32 %v3414_v54 }
 0x3a9   : > { %vm3218_vm0 = vmor %vm3216_vm14, %vm3217_vm12 }
 0x3aa   : > { %v3213_v14 = vsub.f32 1.0, %v3212_v28 }
 0x3ac   : > { %v3214_v42 = vmul.f32 %v3414_v54, %v3213_v14 }
 0x3ae   : > { %v3215_v8 = vadd.f32 %v3414_v54, %v3214_v42 }
 0x3b0   : > { %v3219_v48 = vsel %vm3218_vm0, %v3414_v54, %v3215_v8 }
 0x3b1   : > { %v3224_v3 = vsel %vm3221_vm3, %v3223_v22, %v3219_v48 }
 0x3b2   : > { %v3227_v56 = vsel %vm3226_vm15, %v3205_v47, %v3224_v3 }
 0x3b3   : > { %3229 = vst.msk [vmem:[%s316_s7] sm:$0x3] %vm3228_vm2, %v3227_v56 }
 0x3b4 PF: > { %s18_s25 = sadd.s32 1, %s3437_s25   ;;  %s5840_s23 = smov %s3433_s24 }
 0x3b5   : > { %p15_p5 = scmp.ge.s32.totalorder %s18_s25, 4   ;;  %s5841_s24 = smov %s5843_s5 }
 0x3b7   :  { %17 = sbr.rel (!%p15_p5) target bundleno = 3 (0x3), region = 77 }

</bundles_post_ra>
